<compile_context>
chip_gen: v7x
topology: tpu7x:2x2x1
jax: 0.10.0
libtpu: 0.0.40
codegen_flags: <defaults>
</compile_context>

<pallas_src>
import functools

import numpy as np

import jax
import jax.numpy as jnp
from jax.experimental import pallas as pl
from jax.experimental.pallas import tpu as pltpu


# MXU operand dtype (accumulation is always f32 via preferred_element_type).
MXU_DTYPE = jnp.bfloat16

_CONVPOOL_ROW_TILE = 512   # pooled-output rows per grid step (mult of 8)
_RBLOCK_ROW_CAP = 512      # target rows per grid step for residual blocks
_FC_ROW_TILE = 256         # batch rows per grid step for the fc layer


# ---------------------------------------------------------------------------
# Kernels
# ---------------------------------------------------------------------------

def _conv_pool_kernel(p_ref, w_ref, b_ref, o_ref):
    """5x5 conv (one GEMM per pool quarter) + bias + 2x2 maxpool + ReLU.

    p_ref: (4, TQ, K) im2col patches, leading dim = pool-window offset (dh, dw)
    w_ref: (K, Cout) bf16 GEMM weights;  b_ref: (1, Cout) f32
    o_ref: (TQ, Cout) f32 pooled activations, rows in (n, ho, wo) raster order
    """
    w = w_ref[...]
    d0 = jnp.dot(p_ref[0], w, preferred_element_type=jnp.float32)
    d1 = jnp.dot(p_ref[1], w, preferred_element_type=jnp.float32)
    d2 = jnp.dot(p_ref[2], w, preferred_element_type=jnp.float32)
    d3 = jnp.dot(p_ref[3], w, preferred_element_type=jnp.float32)
    m = jnp.maximum(jnp.maximum(d0, d1), jnp.maximum(d2, d3))
    # bias is a per-channel constant (commutes with max); relu(max)==max(relu)
    o_ref[...] = jnp.maximum(m + b_ref[...], 0.0)


def _residual_block_kernel(x_ref, mask_ref, wa_ref, ba_ref, wb_ref, bb_ref,
                           o_ref, *, W):
    """Whole ResidualBlock: out = relu(x + conv_b(relu(conv_a(x)))), padding=1.

    x_ref:    (TM, C) f32, rows = (n, h, w) NHWC-flattened; TM is a whole
              number of samples, so every tap of a valid row stays in-block.
    mask_ref: (TM, 9) f32 0/1 tap-validity (zero padding at spatial borders).
    wa_ref/wb_ref: (9*C, C) bf16 tap-major GEMM weights; ba/bb: (1, C) f32.
    """
    x = x_ref[...]
    masks = mask_ref[...]
    tm, c = x.shape

    def conv3x3(inp, w_ref_):
        acc = jnp.zeros((tm, c), jnp.float32)
        for t in range(9):
            di, dj = t // 3 - 1, t % 3 - 1     # spatial offset of tap t
            s = di * W + dj                    # flat row offset of tap t
            if s == 0:
                shifted = inp
            else:
                # pltpu.roll follows jnp.roll semantics (out[r] = in[r-shift]),
                # so shift = -s makes row r read row r + s.  Wrap-around /
                # cross-sample rows are zeroed by the precomputed tap mask.
                shifted = pltpu.roll(inp, shift=(-s) % tm, axis=0)
            tap = (shifted * masks[:, t:t + 1]).astype(MXU_DTYPE)
            acc += jnp.dot(tap, w_ref_[pl.ds(t * c, c), :],
                           preferred_element_type=jnp.float32)
        return acc

    y = jnp.maximum(conv3x3(x, wa_ref) + ba_ref[...], 0.0)   # relu(conv_a(x))
    z = conv3x3(y, wb_ref) + bb_ref[...]                     # conv_b(y)
    o_ref[...] = jnp.maximum(x + z, 0.0)                     # relu(x + z)


def _linear_kernel(x_ref, w_ref, b_ref, o_ref):
    o_ref[...] = (jnp.dot(x_ref[...], w_ref[...],
                          preferred_element_type=jnp.float32) + b_ref[...])


# ---------------------------------------------------------------------------
# Tiling helpers
# ---------------------------------------------------------------------------

def _row_block(total, cap):
    """Row tile: whole extent if small, otherwise `cap` (a multiple of 8)."""
    return total if total <= cap else cap


def _sample_block(n_rows, hw, cap):
    """Largest row tile <= cap that is a whole number of samples AND divides
    the total row count (so residual-block grid blocks are never ragged)."""
    n_samples = n_rows // hw
    nb = max(1, min(n_samples, cap // hw))
    while n_samples % nb:
        nb -= 1
    return nb * hw


def _tap_masks(n, h, w):
    """(n*h*w, 9) f32 0/1 validity of each 3x3 tap (padding=1) per output row.
    Pure geometry -> built with numpy at trace time (folded to a constant)."""
    hh, ww = np.meshgrid(np.arange(h), np.arange(w), indexing="ij")
    cols = []
    for t in range(9):
        di, dj = t // 3 - 1, t % 3 - 1
        valid = ((hh + di >= 0) & (hh + di < h) &
                 (ww + dj >= 0) & (ww + dj < w))
        cols.append(valid.reshape(-1).astype(np.float32))
    per_sample = np.stack(cols, axis=1)               # (h*w, 9)
    return jnp.asarray(np.tile(per_sample, (n, 1)))   # (n*h*w, 9)


# ---------------------------------------------------------------------------
# Layers (wrappers do layout glue only; kernels do all the compute)
# ---------------------------------------------------------------------------

def _im2col_valid(x_nhwc, k):
    n, h, w, _ = x_nhwc.shape
    hout, wout = h - k + 1, w - k + 1
    cols = [x_nhwc[:, i:i + hout, j:j + wout, :]
            for i in range(k) for j in range(k)]
    return jnp.concatenate(cols, axis=-1), hout, wout


def conv_relu_pool(x_nhwc, cp, *, ksize):
    """k x k valid conv + bias + ReLU + 2x2 maxpool, one fused kernel."""
    x_nhwc = x_nhwc.astype(MXU_DTYPE)
    patches, hout, wout = _im2col_valid(x_nhwc, ksize)
    n = x_nhwc.shape[0]
    k = patches.shape[-1]
    cout = cp["w"].shape[-1]
    ho, wo = hout // 2, wout // 2
    q = n * ho * wo
    # (4, q, K): leading dim = pool-window offset; keeping quarters as a
    # leading dim (not concatenated along rows) lets the row grid tile q
    # without ever splitting a pool window across blocks.
    p = jnp.stack([patches[:, dh::2, dw::2, :].reshape(q, k)
                   for dh in (0, 1) for dw in (0, 1)], axis=0)

    tq = _row_block(q, _CONVPOOL_ROW_TILE)
    out = pl.pallas_call(
        _conv_pool_kernel,
        out_shape=jax.ShapeDtypeStruct((q, cout), jnp.float32),
        grid=(pl.cdiv(q, tq),),
        in_specs=[
            pl.BlockSpec((4, tq, k), lambda i: (0, i, 0)),
            pl.BlockSpec(cp["w"].shape, lambda i: (0, 0)),
            pl.BlockSpec(cp["b"].shape, lambda i: (0, 0)),
        ],
        out_specs=pl.BlockSpec((tq, cout), lambda i: (i, 0)),
        compiler_params=pltpu.CompilerParams(
            dimension_semantics=("parallel",)),
    )(p, cp["w"], cp["b"])
    return out.reshape(n, ho, wo, cout)


def residual_block(x_nhwc, blk):
    """y = relu(conv3x3(x)); z = conv3x3(y); return relu(x + z) — one kernel."""
    n, h, w, c = x_nhwc.shape
    m, hw = n * h * w, h * w
    tm = _sample_block(m, hw, _RBLOCK_ROW_CAP)
    tap_mask = _tap_masks(n, h, w)
    kernel = functools.partial(_residual_block_kernel, W=w)
    out = pl.pallas_call(
        kernel,
        out_shape=jax.ShapeDtypeStruct((m, c), jnp.float32),
        grid=(pl.cdiv(m, tm),),
        in_specs=[
            pl.BlockSpec((tm, c), lambda i: (i, 0)),
            pl.BlockSpec((tm, 9), lambda i: (i, 0)),
            pl.BlockSpec(blk["wa"].shape, lambda i: (0, 0)),
            pl.BlockSpec(blk["ba"].shape, lambda i: (0, 0)),
            pl.BlockSpec(blk["wb"].shape, lambda i: (0, 0)),
            pl.BlockSpec(blk["bb"].shape, lambda i: (0, 0)),
        ],
        out_specs=pl.BlockSpec((tm, c), lambda i: (i, 0)),
        compiler_params=pltpu.CompilerParams(
            dimension_semantics=("parallel",)),
    )(x_nhwc.reshape(m, c), tap_mask,
      blk["wa"], blk["ba"], blk["wb"], blk["bb"])
    return out.reshape(n, h, w, c)


def linear(x, fc):
    n = x.shape[0]
    d_in, d_out = fc["w"].shape
    tn = _row_block(n, _FC_ROW_TILE)
    return pl.pallas_call(
        _linear_kernel,
        out_shape=jax.ShapeDtypeStruct((n, d_out), jnp.float32),
        grid=(pl.cdiv(n, tn),),
        in_specs=[
            pl.BlockSpec((tn, d_in), lambda i: (i, 0)),
            pl.BlockSpec(fc["w"].shape, lambda i: (0, 0)),
            pl.BlockSpec(fc["b"].shape, lambda i: (0, 0)),
        ],
        out_specs=pl.BlockSpec((tn, d_out), lambda i: (i, 0)),
        compiler_params=pltpu.CompilerParams(
            dimension_semantics=("parallel",)),
    )(x.astype(MXU_DTYPE), fc["w"], fc["b"])


def net_forward(x_nchw, p):
    n = x_nchw.shape[0]
    x = jnp.transpose(x_nchw, (0, 2, 3, 1)).astype(jnp.float32)  # NCHW -> NHWC

    x = conv_relu_pool(x, p["conv1"], ksize=5)    # (N,12,12,16)
    x = residual_block(x, p["rblock1"])           # (N,12,12,16)
    x = conv_relu_pool(x, p["conv2"], ksize=5)    # (N, 4, 4,32)
    x = residual_block(x, p["rblock2"])           # (N, 4, 4,32)

    # fc weight rows were pre-permuted to (h, w, c) input order, so torch's
    # view(N,-1)-on-NCHW is a plain reshape of the NHWC activation here.
    return linear(x.reshape(n, -1), p["fc"])      # (N, 10)


# ---------------------------------------------------------------------------
# Parameters: PyTorch layouts (OIHW conv, (out,in) fc), transformed ONCE into
# GEMM-ready layouts outside the jitted forward.
# ---------------------------------------------------------------------------

def init_params(key):
    ks = jax.random.split(key, 14)

    def w(k, shape, scale=0.05):
        return (scale * jax.random.normal(k, shape)).astype(jnp.float32)

    return {
        "conv1_w": w(ks[0], (16, 1, 5, 5)),  "conv1_b": w(ks[1], (16,)),
        "conv2_w": w(ks[2], (32, 16, 5, 5)), "conv2_b": w(ks[3], (32,)),
        "rblock1": {
            "conv1_w": w(ks[4], (16, 16, 3, 3)), "conv1_b": w(ks[5], (16,)),
            "conv2_w": w(ks[6], (16, 16, 3, 3)), "conv2_b": w(ks[7], (16,)),
        },
        "rblock2": {
            "conv1_w": w(ks[8], (32, 32, 3, 3)),  "conv1_b": w(ks[9], (32,)),
            "conv2_w": w(ks[10], (32, 32, 3, 3)), "conv2_b": w(ks[11], (32,)),
        },
        "fc_w": w(ks[12], (10, 512)), "fc_b": w(ks[13], (10,)),
    }


def prepare_params(params):
    """OIHW -> (KH*KW*Cin, Cout) bf16 GEMM weights; fc rows permuted to (h,w,c)."""
    def conv(w_oihw, b):
        cout, cin, kh, kw = w_oihw.shape
        wk = jnp.transpose(w_oihw, (2, 3, 1, 0)).reshape(kh * kw * cin, cout)
        return {"w": wk.astype(MXU_DTYPE),
                "b": b.reshape(1, cout).astype(jnp.float32)}

    def rblock(blk):
        a = conv(blk["conv1_w"], blk["conv1_b"])
        b = conv(blk["conv2_w"], blk["conv2_b"])
        return {"wa": a["w"], "ba": a["b"], "wb": b["w"], "bb": b["b"]}

    # torch flattens NCHW (feature index = c*16 + h*4 + w).  Re-order fc weight
    # rows once to (h, w, c) so the forward-pass flatten needs no transpose.
    wf = params["fc_w"].reshape(10, 32, 4, 4)               # (out, c, h, w)
    wf = jnp.transpose(wf, (2, 3, 1, 0)).reshape(512, 10)   # rows = (h, w, c)

    return {
        "conv1": conv(params["conv1_w"], params["conv1_b"]),
        "conv2": conv(params["conv2_w"], params["conv2_b"]),
        "rblock1": rblock(params["rblock1"]),
        "rblock2": rblock(params["rblock2"]),
        "fc": {"w": wf.astype(MXU_DTYPE),
               "b": params["fc_b"].reshape(1, -1).astype(jnp.float32)},
    }


if __name__ == "__main__":
    key = jax.random.PRNGKey(0)
    k_x, k_p = jax.random.split(key)

    # MNIST-sized input: fc expects 512 = 32*4*4, which implies 28x28x1 input.
    x = jax.random.normal(k_x, (2, 1, 28, 28), dtype=jnp.float32)
    params = prepare_params(init_params(k_p))

    fwd = jax.jit(net_forward)
    out = jax.block_until_ready(fwd(x, params))

    assert out.shape == (2, 10), out.shape
    assert bool(jnp.all(jnp.isfinite(out)))
    print("KERNEL_OK")
</pallas_src>

<mosaic_0001>
module attributes {stable_mosaic.version = 11 : i64} {
  func.func @_conv_pool_kernel(%arg0: i32, %arg1: memref<4x288x25xbf16, #tpu.memory_space<vmem>>, %arg2: memref<25x16xbf16, #tpu.memory_space<vmem>>, %arg3: memref<1x16xf32, #tpu.memory_space<vmem>>, %arg4: memref<288x16xf32, #tpu.memory_space<vmem>>) attributes {dimension_semantics = [#tpu.dimension_semantics<parallel>], iteration_bounds = array<i64: 1>, scalar_prefetch = 0 : i64, scratch_operands = 0 : i64, tpu.core_type = #tpu.core_type<tc>, window_params = [{transform_indices = @transform_0, window_bounds = array<i64: 4, 288, 25>}, {pipeline_mode = #tpu.pipeline_mode<synchronous>, transform_indices = @transform_1, window_bounds = array<i64: 25, 16>}, {pipeline_mode = #tpu.pipeline_mode<synchronous>, transform_indices = @transform_2, window_bounds = array<i64: 1, 16>}, {transform_indices = @transform_3, window_bounds = array<i64: 288, 16>}]} {
    %c0 = arith.constant 0 : index
    %c0_0 = arith.constant 0 : index
    %0 = vector.load %arg2[%c0, %c0_0] : memref<25x16xbf16, #tpu.memory_space<vmem>>, vector<25x16xbf16>
    %c0_1 = arith.constant 0 : index
    %c0_2 = arith.constant 0 : index
    %c0_3 = arith.constant 0 : index
    %1 = vector.load %arg1[%c0_1, %c0_2, %c0_3] : memref<4x288x25xbf16, #tpu.memory_space<vmem>>, vector<1x288x25xbf16>
    %2 = vector.shape_cast %1 : vector<1x288x25xbf16> to vector<288x25xbf16>
    %cst = arith.constant dense<0.000000e+00> : vector<288x16xf32>
    %3 = tpu.matmul %2, %0, %cst {dimension_numbers = #tpu.dot_dimension_numbers<[1], [0], [0], [1], [0, 0, 1, 1], [], []>} : vector<288x25xbf16>, vector<25x16xbf16>, vector<288x16xf32> -> vector<288x16xf32>
    %c1 = arith.constant 1 : index
    %c0_4 = arith.constant 0 : index
    %c0_5 = arith.constant 0 : index
    %4 = vector.load %arg1[%c1, %c0_4, %c0_5] : memref<4x288x25xbf16, #tpu.memory_space<vmem>>, vector<1x288x25xbf16>
    %5 = vector.shape_cast %4 : vector<1x288x25xbf16> to vector<288x25xbf16>
    %cst_6 = arith.constant dense<0.000000e+00> : vector<288x16xf32>
    %6 = tpu.matmul %5, %0, %cst_6 {dimension_numbers = #tpu.dot_dimension_numbers<[1], [0], [0], [1], [0, 0, 1, 1], [], []>} : vector<288x25xbf16>, vector<25x16xbf16>, vector<288x16xf32> -> vector<288x16xf32>
    %c2 = arith.constant 2 : index
    %c0_7 = arith.constant 0 : index
    %c0_8 = arith.constant 0 : index
    %7 = vector.load %arg1[%c2, %c0_7, %c0_8] : memref<4x288x25xbf16, #tpu.memory_space<vmem>>, vector<1x288x25xbf16>
    %8 = vector.shape_cast %7 : vector<1x288x25xbf16> to vector<288x25xbf16>
    %cst_9 = arith.constant dense<0.000000e+00> : vector<288x16xf32>
    %9 = tpu.matmul %8, %0, %cst_9 {dimension_numbers = #tpu.dot_dimension_numbers<[1], [0], [0], [1], [0, 0, 1, 1], [], []>} : vector<288x25xbf16>, vector<25x16xbf16>, vector<288x16xf32> -> vector<288x16xf32>
    %c3 = arith.constant 3 : index
    %c0_10 = arith.constant 0 : index
    %c0_11 = arith.constant 0 : index
    %10 = vector.load %arg1[%c3, %c0_10, %c0_11] : memref<4x288x25xbf16, #tpu.memory_space<vmem>>, vector<1x288x25xbf16>
    %11 = vector.shape_cast %10 : vector<1x288x25xbf16> to vector<288x25xbf16>
    %cst_12 = arith.constant dense<0.000000e+00> : vector<288x16xf32>
    %12 = tpu.matmul %11, %0, %cst_12 {dimension_numbers = #tpu.dot_dimension_numbers<[1], [0], [0], [1], [0, 0, 1, 1], [], []>} : vector<288x25xbf16>, vector<25x16xbf16>, vector<288x16xf32> -> vector<288x16xf32>
    %13 = arith.maximumf %3, %6 : vector<288x16xf32>
    %14 = arith.maximumf %9, %12 : vector<288x16xf32>
    %15 = arith.maximumf %13, %14 : vector<288x16xf32>
    %c0_13 = arith.constant 0 : index
    %c0_14 = arith.constant 0 : index
    %16 = vector.load %arg3[%c0_13, %c0_14] : memref<1x16xf32, #tpu.memory_space<vmem>>, vector<1x16xf32>
    %17 = vector.broadcast %16 : vector<1x16xf32> to vector<288x16xf32>
    %18 = arith.addf %15, %17 : vector<288x16xf32>
    %cst_15 = arith.constant 0.000000e+00 : f32
    %19 = vector.broadcast %cst_15 : f32 to vector<288x16xf32>
    %20 = arith.maximumf %18, %19 : vector<288x16xf32>
    %c0_16 = arith.constant 0 : index
    %c0_17 = arith.constant 0 : index
    %21 = vector.load %arg4[%c0_16, %c0_17] : memref<288x16xf32, #tpu.memory_space<vmem>>, vector<288x16xf32>
    tpu.vector_store %arg4[%c0_16, %c0_17], %20 {strides = array<i32>} : memref<288x16xf32, #tpu.memory_space<vmem>>, vector<288x16xf32>,
    return
  }
  func.func @transform_0(%arg0: i32) -> (i32, i32, i32) {
    %c0_i32 = arith.constant 0 : i32
    %c0_i32_0 = arith.constant 0 : i32
    %c0_i32_1 = arith.constant 0 : i32
    return %c0_i32, %arg0, %c0_i32_0 : i32, i32, i32
  }
  func.func @transform_1(%arg0: i32) -> (i32, i32) {
    %c0_i32 = arith.constant 0 : i32
    %c0_i32_0 = arith.constant 0 : i32
    %c0_i32_1 = arith.constant 0 : i32
    return %c0_i32, %c0_i32_0 : i32, i32
  }
  func.func @transform_2(%arg0: i32) -> (i32, i32) {
    %c0_i32 = arith.constant 0 : i32
    %c0_i32_0 = arith.constant 0 : i32
    %c0_i32_1 = arith.constant 0 : i32
    return %c0_i32, %c0_i32_0 : i32, i32
  }
  func.func @transform_3(%arg0: i32) -> (i32, i32) {
    %c0_i32 = arith.constant 0 : i32
    %c0_i32_0 = arith.constant 0 : i32
    return %arg0, %c0_i32 : i32, i32
  }
}

module attributes {stable_mosaic.version = 11 : i64} {
  func.func @_residual_block_kernel(%arg0: i32, %arg1: memref<288x16xf32, #tpu.memory_space<vmem>>, %arg2: memref<288x9xf32, #tpu.memory_space<vmem>>, %arg3: memref<144x16xbf16, #tpu.memory_space<vmem>>, %arg4: memref<1x16xf32, #tpu.memory_space<vmem>>, %arg5: memref<144x16xbf16, #tpu.memory_space<vmem>>, %arg6: memref<1x16xf32, #tpu.memory_space<vmem>>, %arg7: memref<288x16xf32, #tpu.memory_space<vmem>>) attributes {dimension_semantics = [#tpu.dimension_semantics<parallel>], iteration_bounds = array<i64: 1>, scalar_prefetch = 0 : i64, scratch_operands = 0 : i64, tpu.core_type = #tpu.core_type<tc>, window_params = [{transform_indices = @transform_0, window_bounds = array<i64: 288, 16>}, {transform_indices = @transform_1, window_bounds = array<i64: 288, 9>}, {pipeline_mode = #tpu.pipeline_mode<synchronous>, transform_indices = @transform_2, window_bounds = array<i64: 144, 16>}, {pipeline_mode = #tpu.pipeline_mode<synchronous>, transform_indices = @transform_3, window_bounds = array<i64: 1, 16>}, {pipeline_mode = #tpu.pipeline_mode<synchronous>, transform_indices = @transform_4, window_bounds = array<i64: 144, 16>}, {pipeline_mode = #tpu.pipeline_mode<synchronous>, transform_indices = @transform_5, window_bounds = array<i64: 1, 16>}, {transform_indices = @transform_6, window_bounds = array<i64: 288, 16>}]} {
    %c0 = arith.constant 0 : index
    %c0_0 = arith.constant 0 : index
    %0 = vector.load %arg1[%c0, %c0_0] : memref<288x16xf32, #tpu.memory_space<vmem>>, vector<288x16xf32>
    %c0_1 = arith.constant 0 : index
    %c0_2 = arith.constant 0 : index
    %1 = vector.load %arg2[%c0_1, %c0_2] : memref<288x9xf32, #tpu.memory_space<vmem>>, vector<288x9xf32>
    %cst = arith.constant 0.000000e+00 : f32
    %2 = vector.broadcast %cst : f32 to vector<288x16xf32>
    %c13_i32 = arith.constant 13 : i32
    %3 = tpu.dynamic_rotate %0 by %c13_i32 dim 0 : vector<288x16xf32>, i32 -> vector<288x16xf32>
    %4 = vector.extract_strided_slice %1 {offsets = [0, 0], sizes = [288, 1], strides = [1, 1]} : vector<288x9xf32> to vector<288x1xf32>
    %5 = vector.broadcast %4 : vector<288x1xf32> to vector<288x16xf32>
    %6 = arith.mulf %3, %5 : vector<288x16xf32>
    %7 = arith.truncf %6 : vector<288x16xf32> to vector<288x16xbf16>
    %c0_3 = arith.constant 0 : index
    %c0_4 = arith.constant 0 : index
    %8 = vector.load %arg3[%c0_3, %c0_4] : memref<144x16xbf16, #tpu.memory_space<vmem>>, vector<16x16xbf16>
    %cst_5 = arith.constant dense<0.000000e+00> : vector<288x16xf32>
    %9 = tpu.matmul %7, %8, %cst_5 {dimension_numbers = #tpu.dot_dimension_numbers<[1], [0], [0], [1], [0, 0, 1, 1], [], []>} : vector<288x16xbf16>, vector<16x16xbf16>, vector<288x16xf32> -> vector<288x16xf32>
    %10 = arith.addf %2, %9 : vector<288x16xf32>
    %c12_i32 = arith.constant 12 : i32
    %11 = tpu.dynamic_rotate %0 by %c12_i32 dim 0 : vector<288x16xf32>, i32 -> vector<288x16xf32>
    %12 = vector.extract_strided_slice %1 {offsets = [0, 1], sizes = [288, 1], strides = [1, 1]} : vector<288x9xf32> to vector<288x1xf32>
    %13 = vector.broadcast %12 : vector<288x1xf32> to vector<288x16xf32>
    %14 = arith.mulf %11, %13 : vector<288x16xf32>
    %15 = arith.truncf %14 : vector<288x16xf32> to vector<288x16xbf16>
    %c16 = arith.constant 16 : index
    %c0_6 = arith.constant 0 : index
    %16 = vector.load %arg3[%c16, %c0_6] : memref<144x16xbf16, #tpu.memory_space<vmem>>, vector<16x16xbf16>
    %cst_7 = arith.constant dense<0.000000e+00> : vector<288x16xf32>
    %17 = tpu.matmul %15, %16, %cst_7 {dimension_numbers = #tpu.dot_dimension_numbers<[1], [0], [0], [1], [0, 0, 1, 1], [], []>} : vector<288x16xbf16>, vector<16x16xbf16>, vector<288x16xf32> -> vector<288x16xf32>
    %18 = arith.addf %10, %17 : vector<288x16xf32>
    %c11_i32 = arith.constant 11 : i32
    %19 = tpu.dynamic_rotate %0 by %c11_i32 dim 0 : vector<288x16xf32>, i32 -> vector<288x16xf32>
    %20 = vector.extract_strided_slice %1 {offsets = [0, 2], sizes = [288, 1], strides = [1, 1]} : vector<288x9xf32> to vector<288x1xf32>
    %21 = vector.broadcast %20 : vector<288x1xf32> to vector<288x16xf32>
    %22 = arith.mulf %19, %21 : vector<288x16xf32>
    %23 = arith.truncf %22 : vector<288x16xf32> to vector<288x16xbf16>
    %c32 = arith.constant 32 : index
    %c0_8 = arith.constant 0 : index
    %24 = vector.load %arg3[%c32, %c0_8] : memref<144x16xbf16, #tpu.memory_space<vmem>>, vector<16x16xbf16>
    %cst_9 = arith.constant dense<0.000000e+00> : vector<288x16xf32>
    %25 = tpu.matmul %23, %24, %cst_9 {dimension_numbers = #tpu.dot_dimension_numbers<[1], [0], [0], [1], [0, 0, 1, 1], [], []>} : vector<288x16xbf16>, vector<16x16xbf16>, vector<288x16xf32> -> vector<288x16xf32>
    %26 = arith.addf %18, %25 : vector<288x16xf32>
    %c1_i32 = arith.constant 1 : i32
    %27 = tpu.dynamic_rotate %0 by %c1_i32 dim 0 : vector<288x16xf32>, i32 -> vector<288x16xf32>
    %28 = vector.extract_strided_slice %1 {offsets = [0, 3], sizes = [288, 1], strides = [1, 1]} : vector<288x9xf32> to vector<288x1xf32>
    %29 = vector.broadcast %28 : vector<288x1xf32> to vector<288x16xf32>
    %30 = arith.mulf %27, %29 : vector<288x16xf32>
    %31 = arith.truncf %30 : vector<288x16xf32> to vector<288x16xbf16>
    %c48 = arith.constant 48 : index
    %c0_10 = arith.constant 0 : index
    %32 = vector.load %arg3[%c48, %c0_10] : memref<144x16xbf16, #tpu.memory_space<vmem>>, vector<16x16xbf16>
    %cst_11 = arith.constant dense<0.000000e+00> : vector<288x16xf32>
    %33 = tpu.matmul %31, %32, %cst_11 {dimension_numbers = #tpu.dot_dimension_numbers<[1], [0], [0], [1], [0, 0, 1, 1], [], []>} : vector<288x16xbf16>, vector<16x16xbf16>, vector<288x16xf32> -> vector<288x16xf32>
    %34 = arith.addf %26, %33 : vector<288x16xf32>
    %35 = vector.extract_strided_slice %1 {offsets = [0, 4], sizes = [288, 1], strides = [1, 1]} : vector<288x9xf32> to vector<288x1xf32>
    %36 = vector.broadcast %35 : vector<288x1xf32> to vector<288x16xf32>
    %37 = arith.mulf %0, %36 : vector<288x16xf32>
    %38 = arith.truncf %37 : vector<288x16xf32> to vector<288x16xbf16>
    %c64 = arith.constant 64 : index
    %c0_12 = arith.constant 0 : index
    %39 = vector.load %arg3[%c64, %c0_12] : memref<144x16xbf16, #tpu.memory_space<vmem>>, vector<16x16xbf16>
    %cst_13 = arith.constant dense<0.000000e+00> : vector<288x16xf32>
    %40 = tpu.matmul %38, %39, %cst_13 {dimension_numbers = #tpu.dot_dimension_numbers<[1], [0], [0], [1], [0, 0, 1, 1], [], []>} : vector<288x16xbf16>, vector<16x16xbf16>, vector<288x16xf32> -> vector<288x16xf32>
    %41 = arith.addf %34, %40 : vector<288x16xf32>
    %c287_i32 = arith.constant 287 : i32
    %42 = tpu.dynamic_rotate %0 by %c287_i32 dim 0 : vector<288x16xf32>, i32 -> vector<288x16xf32>
    %43 = vector.extract_strided_slice %1 {offsets = [0, 5], sizes = [288, 1], strides = [1, 1]} : vector<288x9xf32> to vector<288x1xf32>
    %44 = vector.broadcast %43 : vector<288x1xf32> to vector<288x16xf32>
    %45 = arith.mulf %42, %44 : vector<288x16xf32>
    %46 = arith.truncf %45 : vector<288x16xf32> to vector<288x16xbf16>
    %c80 = arith.constant 80 : index
    %c0_14 = arith.constant 0 : index
    %47 = vector.load %arg3[%c80, %c0_14] : memref<144x16xbf16, #tpu.memory_space<vmem>>, vector<16x16xbf16>
    %cst_15 = arith.constant dense<0.000000e+00> : vector<288x16xf32>
    %48 = tpu.matmul %46, %47, %cst_15 {dimension_numbers = #tpu.dot_dimension_numbers<[1], [0], [0], [1], [0, 0, 1, 1], [], []>} : vector<288x16xbf16>, vector<16x16xbf16>, vector<288x16xf32> -> vector<288x16xf32>
    %49 = arith.addf %41, %48 : vector<288x16xf32>
    %c277_i32 = arith.constant 277 : i32
    %50 = tpu.dynamic_rotate %0 by %c277_i32 dim 0 : vector<288x16xf32>, i32 -> vector<288x16xf32>
    %51 = vector.extract_strided_slice %1 {offsets = [0, 6], sizes = [288, 1], strides = [1, 1]} : vector<288x9xf32> to vector<288x1xf32>
    %52 = vector.broadcast %51 : vector<288x1xf32> to vector<288x16xf32>
    %53 = arith.mulf %50, %52 : vector<288x16xf32>
    %54 = arith.truncf %53 : vector<288x16xf32> to vector<288x16xbf16>
    %c96 = arith.constant 96 : index
    %c0_16 = arith.constant 0 : index
    %55 = vector.load %arg3[%c96, %c0_16] : memref<144x16xbf16, #tpu.memory_space<vmem>>, vector<16x16xbf16>
    %cst_17 = arith.constant dense<0.000000e+00> : vector<288x16xf32>
    %56 = tpu.matmul %54, %55, %cst_17 {dimension_numbers = #tpu.dot_dimension_numbers<[1], [0], [0], [1], [0, 0, 1, 1], [], []>} : vector<288x16xbf16>, vector<16x16xbf16>, vector<288x16xf32> -> vector<288x16xf32>
    %57 = arith.addf %49, %56 : vector<288x16xf32>
    %c276_i32 = arith.constant 276 : i32
    %58 = tpu.dynamic_rotate %0 by %c276_i32 dim 0 : vector<288x16xf32>, i32 -> vector<288x16xf32>
    %59 = vector.extract_strided_slice %1 {offsets = [0, 7], sizes = [288, 1], strides = [1, 1]} : vector<288x9xf32> to vector<288x1xf32>
    %60 = vector.broadcast %59 : vector<288x1xf32> to vector<288x16xf32>
    %61 = arith.mulf %58, %60 : vector<288x16xf32>
    %62 = arith.truncf %61 : vector<288x16xf32> to vector<288x16xbf16>
    %c112 = arith.constant 112 : index
    %c0_18 = arith.constant 0 : index
    %63 = vector.load %arg3[%c112, %c0_18] : memref<144x16xbf16, #tpu.memory_space<vmem>>, vector<16x16xbf16>
    %cst_19 = arith.constant dense<0.000000e+00> : vector<288x16xf32>
    %64 = tpu.matmul %62, %63, %cst_19 {dimension_numbers = #tpu.dot_dimension_numbers<[1], [0], [0], [1], [0, 0, 1, 1], [], []>} : vector<288x16xbf16>, vector<16x16xbf16>, vector<288x16xf32> -> vector<288x16xf32>
    %65 = arith.addf %57, %64 : vector<288x16xf32>
    %c275_i32 = arith.constant 275 : i32
    %66 = tpu.dynamic_rotate %0 by %c275_i32 dim 0 : vector<288x16xf32>, i32 -> vector<288x16xf32>
    %67 = vector.extract_strided_slice %1 {offsets = [0, 8], sizes = [288, 1], strides = [1, 1]} : vector<288x9xf32> to vector<288x1xf32>
    %68 = vector.broadcast %67 : vector<288x1xf32> to vector<288x16xf32>
    %69 = arith.mulf %66, %68 : vector<288x16xf32>
    %70 = arith.truncf %69 : vector<288x16xf32> to vector<288x16xbf16>
    %c128 = arith.constant 128 : index
    %c0_20 = arith.constant 0 : index
    %71 = vector.load %arg3[%c128, %c0_20] : memref<144x16xbf16, #tpu.memory_space<vmem>>, vector<16x16xbf16>
    %cst_21 = arith.constant dense<0.000000e+00> : vector<288x16xf32>
    %72 = tpu.matmul %70, %71, %cst_21 {dimension_numbers = #tpu.dot_dimension_numbers<[1], [0], [0], [1], [0, 0, 1, 1], [], []>} : vector<288x16xbf16>, vector<16x16xbf16>, vector<288x16xf32> -> vector<288x16xf32>
    %73 = arith.addf %65, %72 : vector<288x16xf32>
    %c0_22 = arith.constant 0 : index
    %c0_23 = arith.constant 0 : index
    %74 = vector.load %arg4[%c0_22, %c0_23] : memref<1x16xf32, #tpu.memory_space<vmem>>, vector<1x16xf32>
    %75 = vector.broadcast %74 : vector<1x16xf32> to vector<288x16xf32>
    %76 = arith.addf %73, %75 : vector<288x16xf32>
    %cst_24 = arith.constant 0.000000e+00 : f32
    %77 = vector.broadcast %cst_24 : f32 to vector<288x16xf32>
    %78 = arith.maximumf %76, %77 : vector<288x16xf32>
    %cst_25 = arith.constant 0.000000e+00 : f32
    %79 = vector.broadcast %cst_25 : f32 to vector<288x16xf32>
    %c13_i32_26 = arith.constant 13 : i32
    %80 = tpu.dynamic_rotate %78 by %c13_i32_26 dim 0 : vector<288x16xf32>, i32 -> vector<288x16xf32>
    %81 = vector.extract_strided_slice %1 {offsets = [0, 0], sizes = [288, 1], strides = [1, 1]} : vector<288x9xf32> to vector<288x1xf32>
    %82 = vector.broadcast %81 : vector<288x1xf32> to vector<288x16xf32>
    %83 = arith.mulf %80, %82 : vector<288x16xf32>
    %84 = arith.truncf %83 : vector<288x16xf32> to vector<288x16xbf16>
    %c0_27 = arith.constant 0 : index
    %c0_28 = arith.constant 0 : index
    %85 = vector.load %arg5[%c0_27, %c0_28] : memref<144x16xbf16, #tpu.memory_space<vmem>>, vector<16x16xbf16>
    %cst_29 = arith.constant dense<0.000000e+00> : vector<288x16xf32>
    %86 = tpu.matmul %84, %85, %cst_29 {dimension_numbers = #tpu.dot_dimension_numbers<[1], [0], [0], [1], [0, 0, 1, 1], [], []>} : vector<288x16xbf16>, vector<16x16xbf16>, vector<288x16xf32> -> vector<288x16xf32>
    %87 = arith.addf %79, %86 : vector<288x16xf32>
    %c12_i32_30 = arith.constant 12 : i32
    %88 = tpu.dynamic_rotate %78 by %c12_i32_30 dim 0 : vector<288x16xf32>, i32 -> vector<288x16xf32>
    %89 = vector.extract_strided_slice %1 {offsets = [0, 1], sizes = [288, 1], strides = [1, 1]} : vector<288x9xf32> to vector<288x1xf32>
    %90 = vector.broadcast %89 : vector<288x1xf32> to vector<288x16xf32>
    %91 = arith.mulf %88, %90 : vector<288x16xf32>
    %92 = arith.truncf %91 : vector<288x16xf32> to vector<288x16xbf16>
    %c16_31 = arith.constant 16 : index
    %c0_32 = arith.constant 0 : index
    %93 = vector.load %arg5[%c16_31, %c0_32] : memref<144x16xbf16, #tpu.memory_space<vmem>>, vector<16x16xbf16>
    %cst_33 = arith.constant dense<0.000000e+00> : vector<288x16xf32>
    %94 = tpu.matmul %92, %93, %cst_33 {dimension_numbers = #tpu.dot_dimension_numbers<[1], [0], [0], [1], [0, 0, 1, 1], [], []>} : vector<288x16xbf16>, vector<16x16xbf16>, vector<288x16xf32> -> vector<288x16xf32>
    %95 = arith.addf %87, %94 : vector<288x16xf32>
    %c11_i32_34 = arith.constant 11 : i32
    %96 = tpu.dynamic_rotate %78 by %c11_i32_34 dim 0 : vector<288x16xf32>, i32 -> vector<288x16xf32>
    %97 = vector.extract_strided_slice %1 {offsets = [0, 2], sizes = [288, 1], strides = [1, 1]} : vector<288x9xf32> to vector<288x1xf32>
    %98 = vector.broadcast %97 : vector<288x1xf32> to vector<288x16xf32>
    %99 = arith.mulf %96, %98 : vector<288x16xf32>
    %100 = arith.truncf %99 : vector<288x16xf32> to vector<288x16xbf16>
    %c32_35 = arith.constant 32 : index
    %c0_36 = arith.constant 0 : index
    %101 = vector.load %arg5[%c32_35, %c0_36] : memref<144x16xbf16, #tpu.memory_space<vmem>>, vector<16x16xbf16>
    %cst_37 = arith.constant dense<0.000000e+00> : vector<288x16xf32>
    %102 = tpu.matmul %100, %101, %cst_37 {dimension_numbers = #tpu.dot_dimension_numbers<[1], [0], [0], [1], [0, 0, 1, 1], [], []>} : vector<288x16xbf16>, vector<16x16xbf16>, vector<288x16xf32> -> vector<288x16xf32>
    %103 = arith.addf %95, %102 : vector<288x16xf32>
    %c1_i32_38 = arith.constant 1 : i32
    %104 = tpu.dynamic_rotate %78 by %c1_i32_38 dim 0 : vector<288x16xf32>, i32 -> vector<288x16xf32>
    %105 = vector.extract_strided_slice %1 {offsets = [0, 3], sizes = [288, 1], strides = [1, 1]} : vector<288x9xf32> to vector<288x1xf32>
    %106 = vector.broadcast %105 : vector<288x1xf32> to vector<288x16xf32>
    %107 = arith.mulf %104, %106 : vector<288x16xf32>
    %108 = arith.truncf %107 : vector<288x16xf32> to vector<288x16xbf16>
    %c48_39 = arith.constant 48 : index
    %c0_40 = arith.constant 0 : index
    %109 = vector.load %arg5[%c48_39, %c0_40] : memref<144x16xbf16, #tpu.memory_space<vmem>>, vector<16x16xbf16>
    %cst_41 = arith.constant dense<0.000000e+00> : vector<288x16xf32>
    %110 = tpu.matmul %108, %109, %cst_41 {dimension_numbers = #tpu.dot_dimension_numbers<[1], [0], [0], [1], [0, 0, 1, 1], [], []>} : vector<288x16xbf16>, vector<16x16xbf16>, vector<288x16xf32> -> vector<288x16xf32>
    %111 = arith.addf %103, %110 : vector<288x16xf32>
    %112 = vector.extract_strided_slice %1 {offsets = [0, 4], sizes = [288, 1], strides = [1, 1]} : vector<288x9xf32> to vector<288x1xf32>
    %113 = vector.broadcast %112 : vector<288x1xf32> to vector<288x16xf32>
    %114 = arith.mulf %78, %113 : vector<288x16xf32>
    %115 = arith.truncf %114 : vector<288x16xf32> to vector<288x16xbf16>
    %c64_42 = arith.constant 64 : index
    %c0_43 = arith.constant 0 : index
    %116 = vector.load %arg5[%c64_42, %c0_43] : memref<144x16xbf16, #tpu.memory_space<vmem>>, vector<16x16xbf16>
    %cst_44 = arith.constant dense<0.000000e+00> : vector<288x16xf32>
    %117 = tpu.matmul %115, %116, %cst_44 {dimension_numbers = #tpu.dot_dimension_numbers<[1], [0], [0], [1], [0, 0, 1, 1], [], []>} : vector<288x16xbf16>, vector<16x16xbf16>, vector<288x16xf32> -> vector<288x16xf32>
    %118 = arith.addf %111, %117 : vector<288x16xf32>
    %c287_i32_45 = arith.constant 287 : i32
    %119 = tpu.dynamic_rotate %78 by %c287_i32_45 dim 0 : vector<288x16xf32>, i32 -> vector<288x16xf32>
    %120 = vector.extract_strided_slice %1 {offsets = [0, 5], sizes = [288, 1], strides = [1, 1]} : vector<288x9xf32> to vector<288x1xf32>
    %121 = vector.broadcast %120 : vector<288x1xf32> to vector<288x16xf32>
    %122 = arith.mulf %119, %121 : vector<288x16xf32>
    %123 = arith.truncf %122 : vector<288x16xf32> to vector<288x16xbf16>
    %c80_46 = arith.constant 80 : index
    %c0_47 = arith.constant 0 : index
    %124 = vector.load %arg5[%c80_46, %c0_47] : memref<144x16xbf16, #tpu.memory_space<vmem>>, vector<16x16xbf16>
    %cst_48 = arith.constant dense<0.000000e+00> : vector<288x16xf32>
    %125 = tpu.matmul %123, %124, %cst_48 {dimension_numbers = #tpu.dot_dimension_numbers<[1], [0], [0], [1], [0, 0, 1, 1], [], []>} : vector<288x16xbf16>, vector<16x16xbf16>, vector<288x16xf32> -> vector<288x16xf32>
    %126 = arith.addf %118, %125 : vector<288x16xf32>
    %c277_i32_49 = arith.constant 277 : i32
    %127 = tpu.dynamic_rotate %78 by %c277_i32_49 dim 0 : vector<288x16xf32>, i32 -> vector<288x16xf32>
    %128 = vector.extract_strided_slice %1 {offsets = [0, 6], sizes = [288, 1], strides = [1, 1]} : vector<288x9xf32> to vector<288x1xf32>
    %129 = vector.broadcast %128 : vector<288x1xf32> to vector<288x16xf32>
    %130 = arith.mulf %127, %129 : vector<288x16xf32>
    %131 = arith.truncf %130 : vector<288x16xf32> to vector<288x16xbf16>
    %c96_50 = arith.constant 96 : index
    %c0_51 = arith.constant 0 : index
    %132 = vector.load %arg5[%c96_50, %c0_51] : memref<144x16xbf16, #tpu.memory_space<vmem>>, vector<16x16xbf16>
    %cst_52 = arith.constant dense<0.000000e+00> : vector<288x16xf32>
    %133 = tpu.matmul %131, %132, %cst_52 {dimension_numbers = #tpu.dot_dimension_numbers<[1], [0], [0], [1], [0, 0, 1, 1], [], []>} : vector<288x16xbf16>, vector<16x16xbf16>, vector<288x16xf32> -> vector<288x16xf32>
    %134 = arith.addf %126, %133 : vector<288x16xf32>
    %c276_i32_53 = arith.constant 276 : i32
    %135 = tpu.dynamic_rotate %78 by %c276_i32_53 dim 0 : vector<288x16xf32>, i32 -> vector<288x16xf32>
    %136 = vector.extract_strided_slice %1 {offsets = [0, 7], sizes = [288, 1], strides = [1, 1]} : vector<288x9xf32> to vector<288x1xf32>
    %137 = vector.broadcast %136 : vector<288x1xf32> to vector<288x16xf32>
    %138 = arith.mulf %135, %137 : vector<288x16xf32>
    %139 = arith.truncf %138 : vector<288x16xf32> to vector<288x16xbf16>
    %c112_54 = arith.constant 112 : index
    %c0_55 = arith.constant 0 : index
    %140 = vector.load %arg5[%c112_54, %c0_55] : memref<144x16xbf16, #tpu.memory_space<vmem>>, vector<16x16xbf16>
    %cst_56 = arith.constant dense<0.000000e+00> : vector<288x16xf32>
    %141 = tpu.matmul %139, %140, %cst_56 {dimension_numbers = #tpu.dot_dimension_numbers<[1], [0], [0], [1], [0, 0, 1, 1], [], []>} : vector<288x16xbf16>, vector<16x16xbf16>, vector<288x16xf32> -> vector<288x16xf32>
    %142 = arith.addf %134, %141 : vector<288x16xf32>
    %c275_i32_57 = arith.constant 275 : i32
    %143 = tpu.dynamic_rotate %78 by %c275_i32_57 dim 0 : vector<288x16xf32>, i32 -> vector<288x16xf32>
    %144 = vector.extract_strided_slice %1 {offsets = [0, 8], sizes = [288, 1], strides = [1, 1]} : vector<288x9xf32> to vector<288x1xf32>
    %145 = vector.broadcast %144 : vector<288x1xf32> to vector<288x16xf32>
    %146 = arith.mulf %143, %145 : vector<288x16xf32>
    %147 = arith.truncf %146 : vector<288x16xf32> to vector<288x16xbf16>
    %c128_58 = arith.constant 128 : index
    %c0_59 = arith.constant 0 : index
    %148 = vector.load %arg5[%c128_58, %c0_59] : memref<144x16xbf16, #tpu.memory_space<vmem>>, vector<16x16xbf16>
    %cst_60 = arith.constant dense<0.000000e+00> : vector<288x16xf32>
    %149 = tpu.matmul %147, %148, %cst_60 {dimension_numbers = #tpu.dot_dimension_numbers<[1], [0], [0], [1], [0, 0, 1, 1], [], []>} : vector<288x16xbf16>, vector<16x16xbf16>, vector<288x16xf32> -> vector<288x16xf32>
    %150 = arith.addf %142, %149 : vector<288x16xf32>
    %c0_61 = arith.constant 0 : index
    %c0_62 = arith.constant 0 : index
    %151 = vector.load %arg6[%c0_61, %c0_62] : memref<1x16xf32, #tpu.memory_space<vmem>>, vector<1x16xf32>
    %152 = vector.broadcast %151 : vector<1x16xf32> to vector<288x16xf32>
    %153 = arith.addf %150, %152 : vector<288x16xf32>
    %154 = arith.addf %0, %153 : vector<288x16xf32>
    %cst_63 = arith.constant 0.000000e+00 : f32
    %155 = vector.broadcast %cst_63 : f32 to vector<288x16xf32>
    %156 = arith.maximumf %154, %155 : vector<288x16xf32>
    %c0_64 = arith.constant 0 : index
    %c0_65 = arith.constant 0 : index
    %157 = vector.load %arg7[%c0_64, %c0_65] : memref<288x16xf32, #tpu.memory_space<vmem>>, vector<288x16xf32>
    tpu.vector_store %arg7[%c0_64, %c0_65], %156 {strides = array<i32>} : memref<288x16xf32, #tpu.memory_space<vmem>>, vector<288x16xf32>,
    return
  }
  func.func @transform_0(%arg0: i32) -> (i32, i32) {
    %c0_i32 = arith.constant 0 : i32
    %c0_i32_0 = arith.constant 0 : i32
    return %arg0, %c0_i32 : i32, i32
  }
  func.func @transform_1(%arg0: i32) -> (i32, i32) {
    %c0_i32 = arith.constant 0 : i32
    %c0_i32_0 = arith.constant 0 : i32
    return %arg0, %c0_i32 : i32, i32
  }
  func.func @transform_2(%arg0: i32) -> (i32, i32) {
    %c0_i32 = arith.constant 0 : i32
    %c0_i32_0 = arith.constant 0 : i32
    %c0_i32_1 = arith.constant 0 : i32
    return %c0_i32, %c0_i32_0 : i32, i32
  }
  func.func @transform_3(%arg0: i32) -> (i32, i32) {
    %c0_i32 = arith.constant 0 : i32
    %c0_i32_0 = arith.constant 0 : i32
    %c0_i32_1 = arith.constant 0 : i32
    return %c0_i32, %c0_i32_0 : i32, i32
  }
  func.func @transform_4(%arg0: i32) -> (i32, i32) {
    %c0_i32 = arith.constant 0 : i32
    %c0_i32_0 = arith.constant 0 : i32
    %c0_i32_1 = arith.constant 0 : i32
    return %c0_i32, %c0_i32_0 : i32, i32
  }
  func.func @transform_5(%arg0: i32) -> (i32, i32) {
    %c0_i32 = arith.constant 0 : i32
    %c0_i32_0 = arith.constant 0 : i32
    %c0_i32_1 = arith.constant 0 : i32
    return %c0_i32, %c0_i32_0 : i32, i32
  }
  func.func @transform_6(%arg0: i32) -> (i32, i32) {
    %c0_i32 = arith.constant 0 : i32
    %c0_i32_0 = arith.constant 0 : i32
    return %arg0, %c0_i32 : i32, i32
  }
}

module attributes {stable_mosaic.version = 11 : i64} {
  func.func @_conv_pool_kernel(%arg0: i32, %arg1: memref<4x32x400xbf16, #tpu.memory_space<vmem>>, %arg2: memref<400x32xbf16, #tpu.memory_space<vmem>>, %arg3: memref<1x32xf32, #tpu.memory_space<vmem>>, %arg4: memref<32x32xf32, #tpu.memory_space<vmem>>) attributes {dimension_semantics = [#tpu.dimension_semantics<parallel>], iteration_bounds = array<i64: 1>, scalar_prefetch = 0 : i64, scratch_operands = 0 : i64, tpu.core_type = #tpu.core_type<tc>, window_params = [{transform_indices = @transform_0, window_bounds = array<i64: 4, 32, 400>}, {pipeline_mode = #tpu.pipeline_mode<synchronous>, transform_indices = @transform_1, window_bounds = array<i64: 400, 32>}, {pipeline_mode = #tpu.pipeline_mode<synchronous>, transform_indices = @transform_2, window_bounds = array<i64: 1, 32>}, {transform_indices = @transform_3, window_bounds = array<i64: 32, 32>}]} {
    %c0 = arith.constant 0 : index
    %c0_0 = arith.constant 0 : index
    %0 = vector.load %arg2[%c0, %c0_0] : memref<400x32xbf16, #tpu.memory_space<vmem>>, vector<400x32xbf16>
    %c0_1 = arith.constant 0 : index
    %c0_2 = arith.constant 0 : index
    %c0_3 = arith.constant 0 : index
    %1 = vector.load %arg1[%c0_1, %c0_2, %c0_3] : memref<4x32x400xbf16, #tpu.memory_space<vmem>>, vector<1x32x400xbf16>
    %2 = vector.shape_cast %1 : vector<1x32x400xbf16> to vector<32x400xbf16>
    %cst = arith.constant dense<0.000000e+00> : vector<32x32xf32>
    %3 = tpu.matmul %2, %0, %cst {dimension_numbers = #tpu.dot_dimension_numbers<[1], [0], [0], [1], [0, 0, 1, 1], [], []>} : vector<32x400xbf16>, vector<400x32xbf16>, vector<32x32xf32> -> vector<32x32xf32>
    %c1 = arith.constant 1 : index
    %c0_4 = arith.constant 0 : index
    %c0_5 = arith.constant 0 : index
    %4 = vector.load %arg1[%c1, %c0_4, %c0_5] : memref<4x32x400xbf16, #tpu.memory_space<vmem>>, vector<1x32x400xbf16>
    %5 = vector.shape_cast %4 : vector<1x32x400xbf16> to vector<32x400xbf16>
    %cst_6 = arith.constant dense<0.000000e+00> : vector<32x32xf32>
    %6 = tpu.matmul %5, %0, %cst_6 {dimension_numbers = #tpu.dot_dimension_numbers<[1], [0], [0], [1], [0, 0, 1, 1], [], []>} : vector<32x400xbf16>, vector<400x32xbf16>, vector<32x32xf32> -> vector<32x32xf32>
    %c2 = arith.constant 2 : index
    %c0_7 = arith.constant 0 : index
    %c0_8 = arith.constant 0 : index
    %7 = vector.load %arg1[%c2, %c0_7, %c0_8] : memref<4x32x400xbf16, #tpu.memory_space<vmem>>, vector<1x32x400xbf16>
    %8 = vector.shape_cast %7 : vector<1x32x400xbf16> to vector<32x400xbf16>
    %cst_9 = arith.constant dense<0.000000e+00> : vector<32x32xf32>
    %9 = tpu.matmul %8, %0, %cst_9 {dimension_numbers = #tpu.dot_dimension_numbers<[1], [0], [0], [1], [0, 0, 1, 1], [], []>} : vector<32x400xbf16>, vector<400x32xbf16>, vector<32x32xf32> -> vector<32x32xf32>
    %c3 = arith.constant 3 : index
    %c0_10 = arith.constant 0 : index
    %c0_11 = arith.constant 0 : index
    %10 = vector.load %arg1[%c3, %c0_10, %c0_11] : memref<4x32x400xbf16, #tpu.memory_space<vmem>>, vector<1x32x400xbf16>
    %11 = vector.shape_cast %10 : vector<1x32x400xbf16> to vector<32x400xbf16>
    %cst_12 = arith.constant dense<0.000000e+00> : vector<32x32xf32>
    %12 = tpu.matmul %11, %0, %cst_12 {dimension_numbers = #tpu.dot_dimension_numbers<[1], [0], [0], [1], [0, 0, 1, 1], [], []>} : vector<32x400xbf16>, vector<400x32xbf16>, vector<32x32xf32> -> vector<32x32xf32>
    %13 = arith.maximumf %3, %6 : vector<32x32xf32>
    %14 = arith.maximumf %9, %12 : vector<32x32xf32>
    %15 = arith.maximumf %13, %14 : vector<32x32xf32>
    %c0_13 = arith.constant 0 : index
    %c0_14 = arith.constant 0 : index
    %16 = vector.load %arg3[%c0_13, %c0_14] : memref<1x32xf32, #tpu.memory_space<vmem>>, vector<1x32xf32>
    %17 = vector.broadcast %16 : vector<1x32xf32> to vector<32x32xf32>
    %18 = arith.addf %15, %17 : vector<32x32xf32>
    %cst_15 = arith.constant 0.000000e+00 : f32
    %19 = vector.broadcast %cst_15 : f32 to vector<32x32xf32>
    %20 = arith.maximumf %18, %19 : vector<32x32xf32>
    %c0_16 = arith.constant 0 : index
    %c0_17 = arith.constant 0 : index
    %21 = vector.load %arg4[%c0_16, %c0_17] : memref<32x32xf32, #tpu.memory_space<vmem>>, vector<32x32xf32>
    tpu.vector_store %arg4[%c0_16, %c0_17], %20 {strides = array<i32>} : memref<32x32xf32, #tpu.memory_space<vmem>>, vector<32x32xf32>,
    return
  }
  func.func @transform_0(%arg0: i32) -> (i32, i32, i32) {
    %c0_i32 = arith.constant 0 : i32
    %c0_i32_0 = arith.constant 0 : i32
    %c0_i32_1 = arith.constant 0 : i32
    return %c0_i32, %arg0, %c0_i32_0 : i32, i32, i32
  }
  func.func @transform_1(%arg0: i32) -> (i32, i32) {
    %c0_i32 = arith.constant 0 : i32
    %c0_i32_0 = arith.constant 0 : i32
    %c0_i32_1 = arith.constant 0 : i32
    return %c0_i32, %c0_i32_0 : i32, i32
  }
  func.func @transform_2(%arg0: i32) -> (i32, i32) {
    %c0_i32 = arith.constant 0 : i32
    %c0_i32_0 = arith.constant 0 : i32
    %c0_i32_1 = arith.constant 0 : i32
    return %c0_i32, %c0_i32_0 : i32, i32
  }
  func.func @transform_3(%arg0: i32) -> (i32, i32) {
    %c0_i32 = arith.constant 0 : i32
    %c0_i32_0 = arith.constant 0 : i32
    return %arg0, %c0_i32 : i32, i32
  }
}

module attributes {stable_mosaic.version = 11 : i64} {
  func.func @_residual_block_kernel(%arg0: i32, %arg1: memref<32x32xf32, #tpu.memory_space<vmem>>, %arg2: memref<32x9xf32, #tpu.memory_space<vmem>>, %arg3: memref<288x32xbf16, #tpu.memory_space<vmem>>, %arg4: memref<1x32xf32, #tpu.memory_space<vmem>>, %arg5: memref<288x32xbf16, #tpu.memory_space<vmem>>, %arg6: memref<1x32xf32, #tpu.memory_space<vmem>>, %arg7: memref<32x32xf32, #tpu.memory_space<vmem>>) attributes {dimension_semantics = [#tpu.dimension_semantics<parallel>], iteration_bounds = array<i64: 1>, scalar_prefetch = 0 : i64, scratch_operands = 0 : i64, tpu.core_type = #tpu.core_type<tc>, window_params = [{transform_indices = @transform_0, window_bounds = array<i64: 32, 32>}, {transform_indices = @transform_1, window_bounds = array<i64: 32, 9>}, {pipeline_mode = #tpu.pipeline_mode<synchronous>, transform_indices = @transform_2, window_bounds = array<i64: 288, 32>}, {pipeline_mode = #tpu.pipeline_mode<synchronous>, transform_indices = @transform_3, window_bounds = array<i64: 1, 32>}, {pipeline_mode = #tpu.pipeline_mode<synchronous>, transform_indices = @transform_4, window_bounds = array<i64: 288, 32>}, {pipeline_mode = #tpu.pipeline_mode<synchronous>, transform_indices = @transform_5, window_bounds = array<i64: 1, 32>}, {transform_indices = @transform_6, window_bounds = array<i64: 32, 32>}]} {
    %c0 = arith.constant 0 : index
    %c0_0 = arith.constant 0 : index
    %0 = vector.load %arg1[%c0, %c0_0] : memref<32x32xf32, #tpu.memory_space<vmem>>, vector<32x32xf32>
    %c0_1 = arith.constant 0 : index
    %c0_2 = arith.constant 0 : index
    %1 = vector.load %arg2[%c0_1, %c0_2] : memref<32x9xf32, #tpu.memory_space<vmem>>, vector<32x9xf32>
    %cst = arith.constant 0.000000e+00 : f32
    %2 = vector.broadcast %cst : f32 to vector<32x32xf32>
    %c5_i32 = arith.constant 5 : i32
    %3 = tpu.dynamic_rotate %0 by %c5_i32 dim 0 : vector<32x32xf32>, i32 -> vector<32x32xf32>
    %4 = vector.extract_strided_slice %1 {offsets = [0, 0], sizes = [32, 1], strides = [1, 1]} : vector<32x9xf32> to vector<32x1xf32>
    %5 = vector.broadcast %4 : vector<32x1xf32> to vector<32x32xf32>
    %6 = arith.mulf %3, %5 : vector<32x32xf32>
    %7 = arith.truncf %6 : vector<32x32xf32> to vector<32x32xbf16>
    %c0_3 = arith.constant 0 : index
    %c0_4 = arith.constant 0 : index
    %8 = vector.load %arg3[%c0_3, %c0_4] : memref<288x32xbf16, #tpu.memory_space<vmem>>, vector<32x32xbf16>
    %cst_5 = arith.constant dense<0.000000e+00> : vector<32x32xf32>
    %9 = tpu.matmul %7, %8, %cst_5 {dimension_numbers = #tpu.dot_dimension_numbers<[1], [0], [0], [1], [0, 0, 1, 1], [], []>} : vector<32x32xbf16>, vector<32x32xbf16>, vector<32x32xf32> -> vector<32x32xf32>
    %10 = arith.addf %2, %9 : vector<32x32xf32>
    %c4_i32 = arith.constant 4 : i32
    %11 = tpu.dynamic_rotate %0 by %c4_i32 dim 0 : vector<32x32xf32>, i32 -> vector<32x32xf32>
    %12 = vector.extract_strided_slice %1 {offsets = [0, 1], sizes = [32, 1], strides = [1, 1]} : vector<32x9xf32> to vector<32x1xf32>
    %13 = vector.broadcast %12 : vector<32x1xf32> to vector<32x32xf32>
    %14 = arith.mulf %11, %13 : vector<32x32xf32>
    %15 = arith.truncf %14 : vector<32x32xf32> to vector<32x32xbf16>
    %c32 = arith.constant 32 : index
    %c0_6 = arith.constant 0 : index
    %16 = vector.load %arg3[%c32, %c0_6] : memref<288x32xbf16, #tpu.memory_space<vmem>>, vector<32x32xbf16>
    %cst_7 = arith.constant dense<0.000000e+00> : vector<32x32xf32>
    %17 = tpu.matmul %15, %16, %cst_7 {dimension_numbers = #tpu.dot_dimension_numbers<[1], [0], [0], [1], [0, 0, 1, 1], [], []>} : vector<32x32xbf16>, vector<32x32xbf16>, vector<32x32xf32> -> vector<32x32xf32>
    %18 = arith.addf %10, %17 : vector<32x32xf32>
    %c3_i32 = arith.constant 3 : i32
    %19 = tpu.dynamic_rotate %0 by %c3_i32 dim 0 : vector<32x32xf32>, i32 -> vector<32x32xf32>
    %20 = vector.extract_strided_slice %1 {offsets = [0, 2], sizes = [32, 1], strides = [1, 1]} : vector<32x9xf32> to vector<32x1xf32>
    %21 = vector.broadcast %20 : vector<32x1xf32> to vector<32x32xf32>
    %22 = arith.mulf %19, %21 : vector<32x32xf32>
    %23 = arith.truncf %22 : vector<32x32xf32> to vector<32x32xbf16>
    %c64 = arith.constant 64 : index
    %c0_8 = arith.constant 0 : index
    %24 = vector.load %arg3[%c64, %c0_8] : memref<288x32xbf16, #tpu.memory_space<vmem>>, vector<32x32xbf16>
    %cst_9 = arith.constant dense<0.000000e+00> : vector<32x32xf32>
    %25 = tpu.matmul %23, %24, %cst_9 {dimension_numbers = #tpu.dot_dimension_numbers<[1], [0], [0], [1], [0, 0, 1, 1], [], []>} : vector<32x32xbf16>, vector<32x32xbf16>, vector<32x32xf32> -> vector<32x32xf32>
    %26 = arith.addf %18, %25 : vector<32x32xf32>
    %c1_i32 = arith.constant 1 : i32
    %27 = tpu.dynamic_rotate %0 by %c1_i32 dim 0 : vector<32x32xf32>, i32 -> vector<32x32xf32>
    %28 = vector.extract_strided_slice %1 {offsets = [0, 3], sizes = [32, 1], strides = [1, 1]} : vector<32x9xf32> to vector<32x1xf32>
    %29 = vector.broadcast %28 : vector<32x1xf32> to vector<32x32xf32>
    %30 = arith.mulf %27, %29 : vector<32x32xf32>
    %31 = arith.truncf %30 : vector<32x32xf32> to vector<32x32xbf16>
    %c96 = arith.constant 96 : index
    %c0_10 = arith.constant 0 : index
    %32 = vector.load %arg3[%c96, %c0_10] : memref<288x32xbf16, #tpu.memory_space<vmem>>, vector<32x32xbf16>
    %cst_11 = arith.constant dense<0.000000e+00> : vector<32x32xf32>
    %33 = tpu.matmul %31, %32, %cst_11 {dimension_numbers = #tpu.dot_dimension_numbers<[1], [0], [0], [1], [0, 0, 1, 1], [], []>} : vector<32x32xbf16>, vector<32x32xbf16>, vector<32x32xf32> -> vector<32x32xf32>
    %34 = arith.addf %26, %33 : vector<32x32xf32>
    %35 = vector.extract_strided_slice %1 {offsets = [0, 4], sizes = [32, 1], strides = [1, 1]} : vector<32x9xf32> to vector<32x1xf32>
    %36 = vector.broadcast %35 : vector<32x1xf32> to vector<32x32xf32>
    %37 = arith.mulf %0, %36 : vector<32x32xf32>
    %38 = arith.truncf %37 : vector<32x32xf32> to vector<32x32xbf16>
    %c128 = arith.constant 128 : index
    %c0_12 = arith.constant 0 : index
    %39 = vector.load %arg3[%c128, %c0_12] : memref<288x32xbf16, #tpu.memory_space<vmem>>, vector<32x32xbf16>
    %cst_13 = arith.constant dense<0.000000e+00> : vector<32x32xf32>
    %40 = tpu.matmul %38, %39, %cst_13 {dimension_numbers = #tpu.dot_dimension_numbers<[1], [0], [0], [1], [0, 0, 1, 1], [], []>} : vector<32x32xbf16>, vector<32x32xbf16>, vector<32x32xf32> -> vector<32x32xf32>
    %41 = arith.addf %34, %40 : vector<32x32xf32>
    %c31_i32 = arith.constant 31 : i32
    %42 = tpu.dynamic_rotate %0 by %c31_i32 dim 0 : vector<32x32xf32>, i32 -> vector<32x32xf32>
    %43 = vector.extract_strided_slice %1 {offsets = [0, 5], sizes = [32, 1], strides = [1, 1]} : vector<32x9xf32> to vector<32x1xf32>
    %44 = vector.broadcast %43 : vector<32x1xf32> to vector<32x32xf32>
    %45 = arith.mulf %42, %44 : vector<32x32xf32>
    %46 = arith.truncf %45 : vector<32x32xf32> to vector<32x32xbf16>
    %c160 = arith.constant 160 : index
    %c0_14 = arith.constant 0 : index
    %47 = vector.load %arg3[%c160, %c0_14] : memref<288x32xbf16, #tpu.memory_space<vmem>>, vector<32x32xbf16>
    %cst_15 = arith.constant dense<0.000000e+00> : vector<32x32xf32>
    %48 = tpu.matmul %46, %47, %cst_15 {dimension_numbers = #tpu.dot_dimension_numbers<[1], [0], [0], [1], [0, 0, 1, 1], [], []>} : vector<32x32xbf16>, vector<32x32xbf16>, vector<32x32xf32> -> vector<32x32xf32>
    %49 = arith.addf %41, %48 : vector<32x32xf32>
    %c29_i32 = arith.constant 29 : i32
    %50 = tpu.dynamic_rotate %0 by %c29_i32 dim 0 : vector<32x32xf32>, i32 -> vector<32x32xf32>
    %51 = vector.extract_strided_slice %1 {offsets = [0, 6], sizes = [32, 1], strides = [1, 1]} : vector<32x9xf32> to vector<32x1xf32>
    %52 = vector.broadcast %51 : vector<32x1xf32> to vector<32x32xf32>
    %53 = arith.mulf %50, %52 : vector<32x32xf32>
    %54 = arith.truncf %53 : vector<32x32xf32> to vector<32x32xbf16>
    %c192 = arith.constant 192 : index
    %c0_16 = arith.constant 0 : index
    %55 = vector.load %arg3[%c192, %c0_16] : memref<288x32xbf16, #tpu.memory_space<vmem>>, vector<32x32xbf16>
    %cst_17 = arith.constant dense<0.000000e+00> : vector<32x32xf32>
    %56 = tpu.matmul %54, %55, %cst_17 {dimension_numbers = #tpu.dot_dimension_numbers<[1], [0], [0], [1], [0, 0, 1, 1], [], []>} : vector<32x32xbf16>, vector<32x32xbf16>, vector<32x32xf32> -> vector<32x32xf32>
    %57 = arith.addf %49, %56 : vector<32x32xf32>
    %c28_i32 = arith.constant 28 : i32
    %58 = tpu.dynamic_rotate %0 by %c28_i32 dim 0 : vector<32x32xf32>, i32 -> vector<32x32xf32>
    %59 = vector.extract_strided_slice %1 {offsets = [0, 7], sizes = [32, 1], strides = [1, 1]} : vector<32x9xf32> to vector<32x1xf32>
    %60 = vector.broadcast %59 : vector<32x1xf32> to vector<32x32xf32>
    %61 = arith.mulf %58, %60 : vector<32x32xf32>
    %62 = arith.truncf %61 : vector<32x32xf32> to vector<32x32xbf16>
    %c224 = arith.constant 224 : index
    %c0_18 = arith.constant 0 : index
    %63 = vector.load %arg3[%c224, %c0_18] : memref<288x32xbf16, #tpu.memory_space<vmem>>, vector<32x32xbf16>
    %cst_19 = arith.constant dense<0.000000e+00> : vector<32x32xf32>
    %64 = tpu.matmul %62, %63, %cst_19 {dimension_numbers = #tpu.dot_dimension_numbers<[1], [0], [0], [1], [0, 0, 1, 1], [], []>} : vector<32x32xbf16>, vector<32x32xbf16>, vector<32x32xf32> -> vector<32x32xf32>
    %65 = arith.addf %57, %64 : vector<32x32xf32>
    %c27_i32 = arith.constant 27 : i32
    %66 = tpu.dynamic_rotate %0 by %c27_i32 dim 0 : vector<32x32xf32>, i32 -> vector<32x32xf32>
    %67 = vector.extract_strided_slice %1 {offsets = [0, 8], sizes = [32, 1], strides = [1, 1]} : vector<32x9xf32> to vector<32x1xf32>
    %68 = vector.broadcast %67 : vector<32x1xf32> to vector<32x32xf32>
    %69 = arith.mulf %66, %68 : vector<32x32xf32>
    %70 = arith.truncf %69 : vector<32x32xf32> to vector<32x32xbf16>
    %c256 = arith.constant 256 : index
    %c0_20 = arith.constant 0 : index
    %71 = vector.load %arg3[%c256, %c0_20] : memref<288x32xbf16, #tpu.memory_space<vmem>>, vector<32x32xbf16>
    %cst_21 = arith.constant dense<0.000000e+00> : vector<32x32xf32>
    %72 = tpu.matmul %70, %71, %cst_21 {dimension_numbers = #tpu.dot_dimension_numbers<[1], [0], [0], [1], [0, 0, 1, 1], [], []>} : vector<32x32xbf16>, vector<32x32xbf16>, vector<32x32xf32> -> vector<32x32xf32>
    %73 = arith.addf %65, %72 : vector<32x32xf32>
    %c0_22 = arith.constant 0 : index
    %c0_23 = arith.constant 0 : index
    %74 = vector.load %arg4[%c0_22, %c0_23] : memref<1x32xf32, #tpu.memory_space<vmem>>, vector<1x32xf32>
    %75 = vector.broadcast %74 : vector<1x32xf32> to vector<32x32xf32>
    %76 = arith.addf %73, %75 : vector<32x32xf32>
    %cst_24 = arith.constant 0.000000e+00 : f32
    %77 = vector.broadcast %cst_24 : f32 to vector<32x32xf32>
    %78 = arith.maximumf %76, %77 : vector<32x32xf32>
    %cst_25 = arith.constant 0.000000e+00 : f32
    %79 = vector.broadcast %cst_25 : f32 to vector<32x32xf32>
    %c5_i32_26 = arith.constant 5 : i32
    %80 = tpu.dynamic_rotate %78 by %c5_i32_26 dim 0 : vector<32x32xf32>, i32 -> vector<32x32xf32>
    %81 = vector.extract_strided_slice %1 {offsets = [0, 0], sizes = [32, 1], strides = [1, 1]} : vector<32x9xf32> to vector<32x1xf32>
    %82 = vector.broadcast %81 : vector<32x1xf32> to vector<32x32xf32>
    %83 = arith.mulf %80, %82 : vector<32x32xf32>
    %84 = arith.truncf %83 : vector<32x32xf32> to vector<32x32xbf16>
    %c0_27 = arith.constant 0 : index
    %c0_28 = arith.constant 0 : index
    %85 = vector.load %arg5[%c0_27, %c0_28] : memref<288x32xbf16, #tpu.memory_space<vmem>>, vector<32x32xbf16>
    %cst_29 = arith.constant dense<0.000000e+00> : vector<32x32xf32>
    %86 = tpu.matmul %84, %85, %cst_29 {dimension_numbers = #tpu.dot_dimension_numbers<[1], [0], [0], [1], [0, 0, 1, 1], [], []>} : vector<32x32xbf16>, vector<32x32xbf16>, vector<32x32xf32> -> vector<32x32xf32>
    %87 = arith.addf %79, %86 : vector<32x32xf32>
    %c4_i32_30 = arith.constant 4 : i32
    %88 = tpu.dynamic_rotate %78 by %c4_i32_30 dim 0 : vector<32x32xf32>, i32 -> vector<32x32xf32>
    %89 = vector.extract_strided_slice %1 {offsets = [0, 1], sizes = [32, 1], strides = [1, 1]} : vector<32x9xf32> to vector<32x1xf32>
    %90 = vector.broadcast %89 : vector<32x1xf32> to vector<32x32xf32>
    %91 = arith.mulf %88, %90 : vector<32x32xf32>
    %92 = arith.truncf %91 : vector<32x32xf32> to vector<32x32xbf16>
    %c32_31 = arith.constant 32 : index
    %c0_32 = arith.constant 0 : index
    %93 = vector.load %arg5[%c32_31, %c0_32] : memref<288x32xbf16, #tpu.memory_space<vmem>>, vector<32x32xbf16>
    %cst_33 = arith.constant dense<0.000000e+00> : vector<32x32xf32>
    %94 = tpu.matmul %92, %93, %cst_33 {dimension_numbers = #tpu.dot_dimension_numbers<[1], [0], [0], [1], [0, 0, 1, 1], [], []>} : vector<32x32xbf16>, vector<32x32xbf16>, vector<32x32xf32> -> vector<32x32xf32>
    %95 = arith.addf %87, %94 : vector<32x32xf32>
    %c3_i32_34 = arith.constant 3 : i32
    %96 = tpu.dynamic_rotate %78 by %c3_i32_34 dim 0 : vector<32x32xf32>, i32 -> vector<32x32xf32>
    %97 = vector.extract_strided_slice %1 {offsets = [0, 2], sizes = [32, 1], strides = [1, 1]} : vector<32x9xf32> to vector<32x1xf32>
    %98 = vector.broadcast %97 : vector<32x1xf32> to vector<32x32xf32>
    %99 = arith.mulf %96, %98 : vector<32x32xf32>
    %100 = arith.truncf %99 : vector<32x32xf32> to vector<32x32xbf16>
    %c64_35 = arith.constant 64 : index
    %c0_36 = arith.constant 0 : index
    %101 = vector.load %arg5[%c64_35, %c0_36] : memref<288x32xbf16, #tpu.memory_space<vmem>>, vector<32x32xbf16>
    %cst_37 = arith.constant dense<0.000000e+00> : vector<32x32xf32>
    %102 = tpu.matmul %100, %101, %cst_37 {dimension_numbers = #tpu.dot_dimension_numbers<[1], [0], [0], [1], [0, 0, 1, 1], [], []>} : vector<32x32xbf16>, vector<32x32xbf16>, vector<32x32xf32> -> vector<32x32xf32>
    %103 = arith.addf %95, %102 : vector<32x32xf32>
    %c1_i32_38 = arith.constant 1 : i32
    %104 = tpu.dynamic_rotate %78 by %c1_i32_38 dim 0 : vector<32x32xf32>, i32 -> vector<32x32xf32>
    %105 = vector.extract_strided_slice %1 {offsets = [0, 3], sizes = [32, 1], strides = [1, 1]} : vector<32x9xf32> to vector<32x1xf32>
    %106 = vector.broadcast %105 : vector<32x1xf32> to vector<32x32xf32>
    %107 = arith.mulf %104, %106 : vector<32x32xf32>
    %108 = arith.truncf %107 : vector<32x32xf32> to vector<32x32xbf16>
    %c96_39 = arith.constant 96 : index
    %c0_40 = arith.constant 0 : index
    %109 = vector.load %arg5[%c96_39, %c0_40] : memref<288x32xbf16, #tpu.memory_space<vmem>>, vector<32x32xbf16>
    %cst_41 = arith.constant dense<0.000000e+00> : vector<32x32xf32>
    %110 = tpu.matmul %108, %109, %cst_41 {dimension_numbers = #tpu.dot_dimension_numbers<[1], [0], [0], [1], [0, 0, 1, 1], [], []>} : vector<32x32xbf16>, vector<32x32xbf16>, vector<32x32xf32> -> vector<32x32xf32>
    %111 = arith.addf %103, %110 : vector<32x32xf32>
    %112 = vector.extract_strided_slice %1 {offsets = [0, 4], sizes = [32, 1], strides = [1, 1]} : vector<32x9xf32> to vector<32x1xf32>
    %113 = vector.broadcast %112 : vector<32x1xf32> to vector<32x32xf32>
    %114 = arith.mulf %78, %113 : vector<32x32xf32>
    %115 = arith.truncf %114 : vector<32x32xf32> to vector<32x32xbf16>
    %c128_42 = arith.constant 128 : index
    %c0_43 = arith.constant 0 : index
    %116 = vector.load %arg5[%c128_42, %c0_43] : memref<288x32xbf16, #tpu.memory_space<vmem>>, vector<32x32xbf16>
    %cst_44 = arith.constant dense<0.000000e+00> : vector<32x32xf32>
    %117 = tpu.matmul %115, %116, %cst_44 {dimension_numbers = #tpu.dot_dimension_numbers<[1], [0], [0], [1], [0, 0, 1, 1], [], []>} : vector<32x32xbf16>, vector<32x32xbf16>, vector<32x32xf32> -> vector<32x32xf32>
    %118 = arith.addf %111, %117 : vector<32x32xf32>
    %c31_i32_45 = arith.constant 31 : i32
    %119 = tpu.dynamic_rotate %78 by %c31_i32_45 dim 0 : vector<32x32xf32>, i32 -> vector<32x32xf32>
    %120 = vector.extract_strided_slice %1 {offsets = [0, 5], sizes = [32, 1], strides = [1, 1]} : vector<32x9xf32> to vector<32x1xf32>
    %121 = vector.broadcast %120 : vector<32x1xf32> to vector<32x32xf32>
    %122 = arith.mulf %119, %121 : vector<32x32xf32>
    %123 = arith.truncf %122 : vector<32x32xf32> to vector<32x32xbf16>
    %c160_46 = arith.constant 160 : index
    %c0_47 = arith.constant 0 : index
    %124 = vector.load %arg5[%c160_46, %c0_47] : memref<288x32xbf16, #tpu.memory_space<vmem>>, vector<32x32xbf16>
    %cst_48 = arith.constant dense<0.000000e+00> : vector<32x32xf32>
    %125 = tpu.matmul %123, %124, %cst_48 {dimension_numbers = #tpu.dot_dimension_numbers<[1], [0], [0], [1], [0, 0, 1, 1], [], []>} : vector<32x32xbf16>, vector<32x32xbf16>, vector<32x32xf32> -> vector<32x32xf32>
    %126 = arith.addf %118, %125 : vector<32x32xf32>
    %c29_i32_49 = arith.constant 29 : i32
    %127 = tpu.dynamic_rotate %78 by %c29_i32_49 dim 0 : vector<32x32xf32>, i32 -> vector<32x32xf32>
    %128 = vector.extract_strided_slice %1 {offsets = [0, 6], sizes = [32, 1], strides = [1, 1]} : vector<32x9xf32> to vector<32x1xf32>
    %129 = vector.broadcast %128 : vector<32x1xf32> to vector<32x32xf32>
    %130 = arith.mulf %127, %129 : vector<32x32xf32>
    %131 = arith.truncf %130 : vector<32x32xf32> to vector<32x32xbf16>
    %c192_50 = arith.constant 192 : index
    %c0_51 = arith.constant 0 : index
    %132 = vector.load %arg5[%c192_50, %c0_51] : memref<288x32xbf16, #tpu.memory_space<vmem>>, vector<32x32xbf16>
    %cst_52 = arith.constant dense<0.000000e+00> : vector<32x32xf32>
    %133 = tpu.matmul %131, %132, %cst_52 {dimension_numbers = #tpu.dot_dimension_numbers<[1], [0], [0], [1], [0, 0, 1, 1], [], []>} : vector<32x32xbf16>, vector<32x32xbf16>, vector<32x32xf32> -> vector<32x32xf32>
    %134 = arith.addf %126, %133 : vector<32x32xf32>
    %c28_i32_53 = arith.constant 28 : i32
    %135 = tpu.dynamic_rotate %78 by %c28_i32_53 dim 0 : vector<32x32xf32>, i32 -> vector<32x32xf32>
    %136 = vector.extract_strided_slice %1 {offsets = [0, 7], sizes = [32, 1], strides = [1, 1]} : vector<32x9xf32> to vector<32x1xf32>
    %137 = vector.broadcast %136 : vector<32x1xf32> to vector<32x32xf32>
    %138 = arith.mulf %135, %137 : vector<32x32xf32>
    %139 = arith.truncf %138 : vector<32x32xf32> to vector<32x32xbf16>
    %c224_54 = arith.constant 224 : index
    %c0_55 = arith.constant 0 : index
    %140 = vector.load %arg5[%c224_54, %c0_55] : memref<288x32xbf16, #tpu.memory_space<vmem>>, vector<32x32xbf16>
    %cst_56 = arith.constant dense<0.000000e+00> : vector<32x32xf32>
    %141 = tpu.matmul %139, %140, %cst_56 {dimension_numbers = #tpu.dot_dimension_numbers<[1], [0], [0], [1], [0, 0, 1, 1], [], []>} : vector<32x32xbf16>, vector<32x32xbf16>, vector<32x32xf32> -> vector<32x32xf32>
    %142 = arith.addf %134, %141 : vector<32x32xf32>
    %c27_i32_57 = arith.constant 27 : i32
    %143 = tpu.dynamic_rotate %78 by %c27_i32_57 dim 0 : vector<32x32xf32>, i32 -> vector<32x32xf32>
    %144 = vector.extract_strided_slice %1 {offsets = [0, 8], sizes = [32, 1], strides = [1, 1]} : vector<32x9xf32> to vector<32x1xf32>
    %145 = vector.broadcast %144 : vector<32x1xf32> to vector<32x32xf32>
    %146 = arith.mulf %143, %145 : vector<32x32xf32>
    %147 = arith.truncf %146 : vector<32x32xf32> to vector<32x32xbf16>
    %c256_58 = arith.constant 256 : index
    %c0_59 = arith.constant 0 : index
    %148 = vector.load %arg5[%c256_58, %c0_59] : memref<288x32xbf16, #tpu.memory_space<vmem>>, vector<32x32xbf16>
    %cst_60 = arith.constant dense<0.000000e+00> : vector<32x32xf32>
    %149 = tpu.matmul %147, %148, %cst_60 {dimension_numbers = #tpu.dot_dimension_numbers<[1], [0], [0], [1], [0, 0, 1, 1], [], []>} : vector<32x32xbf16>, vector<32x32xbf16>, vector<32x32xf32> -> vector<32x32xf32>
    %150 = arith.addf %142, %149 : vector<32x32xf32>
    %c0_61 = arith.constant 0 : index
    %c0_62 = arith.constant 0 : index
    %151 = vector.load %arg6[%c0_61, %c0_62] : memref<1x32xf32, #tpu.memory_space<vmem>>, vector<1x32xf32>
    %152 = vector.broadcast %151 : vector<1x32xf32> to vector<32x32xf32>
    %153 = arith.addf %150, %152 : vector<32x32xf32>
    %154 = arith.addf %0, %153 : vector<32x32xf32>
    %cst_63 = arith.constant 0.000000e+00 : f32
    %155 = vector.broadcast %cst_63 : f32 to vector<32x32xf32>
    %156 = arith.maximumf %154, %155 : vector<32x32xf32>
    %c0_64 = arith.constant 0 : index
    %c0_65 = arith.constant 0 : index
    %157 = vector.load %arg7[%c0_64, %c0_65] : memref<32x32xf32, #tpu.memory_space<vmem>>, vector<32x32xf32>
    tpu.vector_store %arg7[%c0_64, %c0_65], %156 {strides = array<i32>} : memref<32x32xf32, #tpu.memory_space<vmem>>, vector<32x32xf32>,
    return
  }
  func.func @transform_0(%arg0: i32) -> (i32, i32) {
    %c0_i32 = arith.constant 0 : i32
    %c0_i32_0 = arith.constant 0 : i32
    return %arg0, %c0_i32 : i32, i32
  }
  func.func @transform_1(%arg0: i32) -> (i32, i32) {
    %c0_i32 = arith.constant 0 : i32
    %c0_i32_0 = arith.constant 0 : i32
    return %arg0, %c0_i32 : i32, i32
  }
  func.func @transform_2(%arg0: i32) -> (i32, i32) {
    %c0_i32 = arith.constant 0 : i32
    %c0_i32_0 = arith.constant 0 : i32
    %c0_i32_1 = arith.constant 0 : i32
    return %c0_i32, %c0_i32_0 : i32, i32
  }
  func.func @transform_3(%arg0: i32) -> (i32, i32) {
    %c0_i32 = arith.constant 0 : i32
    %c0_i32_0 = arith.constant 0 : i32
    %c0_i32_1 = arith.constant 0 : i32
    return %c0_i32, %c0_i32_0 : i32, i32
  }
  func.func @transform_4(%arg0: i32) -> (i32, i32) {
    %c0_i32 = arith.constant 0 : i32
    %c0_i32_0 = arith.constant 0 : i32
    %c0_i32_1 = arith.constant 0 : i32
    return %c0_i32, %c0_i32_0 : i32, i32
  }
  func.func @transform_5(%arg0: i32) -> (i32, i32) {
    %c0_i32 = arith.constant 0 : i32
    %c0_i32_0 = arith.constant 0 : i32
    %c0_i32_1 = arith.constant 0 : i32
    return %c0_i32, %c0_i32_0 : i32, i32
  }
  func.func @transform_6(%arg0: i32) -> (i32, i32) {
    %c0_i32 = arith.constant 0 : i32
    %c0_i32_0 = arith.constant 0 : i32
    return %arg0, %c0_i32 : i32, i32
  }
}

module attributes {stable_mosaic.version = 11 : i64} {
  func.func @_linear_kernel(%arg0: i32, %arg1: memref<2x512xbf16, #tpu.memory_space<vmem>>, %arg2: memref<512x10xbf16, #tpu.memory_space<vmem>>, %arg3: memref<1x10xf32, #tpu.memory_space<vmem>>, %arg4: memref<2x10xf32, #tpu.memory_space<vmem>>) attributes {dimension_semantics = [#tpu.dimension_semantics<parallel>], iteration_bounds = array<i64: 1>, scalar_prefetch = 0 : i64, scratch_operands = 0 : i64, tpu.core_type = #tpu.core_type<tc>, window_params = [{transform_indices = @transform_0, window_bounds = array<i64: 2, 512>}, {pipeline_mode = #tpu.pipeline_mode<synchronous>, transform_indices = @transform_1, window_bounds = array<i64: 512, 10>}, {pipeline_mode = #tpu.pipeline_mode<synchronous>, transform_indices = @transform_2, window_bounds = array<i64: 1, 10>}, {transform_indices = @transform_3, window_bounds = array<i64: 2, 10>}]} {
    %c0 = arith.constant 0 : index
    %c0_0 = arith.constant 0 : index
    %0 = vector.load %arg1[%c0, %c0_0] : memref<2x512xbf16, #tpu.memory_space<vmem>>, vector<2x512xbf16>
    %c0_1 = arith.constant 0 : index
    %c0_2 = arith.constant 0 : index
    %1 = vector.load %arg2[%c0_1, %c0_2] : memref<512x10xbf16, #tpu.memory_space<vmem>>, vector<512x10xbf16>
    %cst = arith.constant dense<0.000000e+00> : vector<2x10xf32>
    %2 = tpu.matmul %0, %1, %cst {dimension_numbers = #tpu.dot_dimension_numbers<[1], [0], [0], [1], [0, 0, 1, 1], [], []>} : vector<2x512xbf16>, vector<512x10xbf16>, vector<2x10xf32> -> vector<2x10xf32>
    %c0_3 = arith.constant 0 : index
    %c0_4 = arith.constant 0 : index
    %3 = vector.load %arg3[%c0_3, %c0_4] : memref<1x10xf32, #tpu.memory_space<vmem>>, vector<1x10xf32>
    %4 = vector.broadcast %3 : vector<1x10xf32> to vector<2x10xf32>
    %5 = arith.addf %2, %4 : vector<2x10xf32>
    %c0_5 = arith.constant 0 : index
    %c0_6 = arith.constant 0 : index
    %6 = vector.load %arg4[%c0_5, %c0_6] : memref<2x10xf32, #tpu.memory_space<vmem>>, vector<2x10xf32>
    tpu.vector_store %arg4[%c0_5, %c0_6], %5 {strides = array<i32>} : memref<2x10xf32, #tpu.memory_space<vmem>>, vector<2x10xf32>,
    return
  }
  func.func @transform_0(%arg0: i32) -> (i32, i32) {
    %c0_i32 = arith.constant 0 : i32
    %c0_i32_0 = arith.constant 0 : i32
    return %arg0, %c0_i32 : i32, i32
  }
  func.func @transform_1(%arg0: i32) -> (i32, i32) {
    %c0_i32 = arith.constant 0 : i32
    %c0_i32_0 = arith.constant 0 : i32
    %c0_i32_1 = arith.constant 0 : i32
    return %c0_i32, %c0_i32_0 : i32, i32
  }
  func.func @transform_2(%arg0: i32) -> (i32, i32) {
    %c0_i32 = arith.constant 0 : i32
    %c0_i32_0 = arith.constant 0 : i32
    %c0_i32_1 = arith.constant 0 : i32
    return %c0_i32, %c0_i32_0 : i32, i32
  }
  func.func @transform_3(%arg0: i32) -> (i32, i32) {
    %c0_i32 = arith.constant 0 : i32
    %c0_i32_0 = arith.constant 0 : i32
    return %arg0, %c0_i32 : i32, i32
  }
}

</mosaic_0001>

<bundles_post_ra>
// kernel: net_forward.5
= control target key start
LH: loop header
LB: loop body
LE: loop exit
PB: predicated region body
PF: predicated region fallthrough
CT: control target
= control target key end

     0   :  { %vm211_vm0 = vcmask 1043456   ;;  %vm212_vm1 = vcmask 1044480   ;;  %vm156_vm2 = vcmask 203776   ;;  %v2267_v1 = vmov 65535   ;;  %s3091_s1 = inlined_call_operand.vmem [shape: bf16[25,16], index: 1, kind: input, shape index: {}]   ;;  %s3092_s0 = inlined_call_operand.vmem [shape: bf16[4,288,25], index: 0, kind: input, shape index: {}]   ;;  %s3093_s2 = inlined_call_operand.vmem [shape: f32[1,16], index: 2, kind: input, shape index: {}]   ;;  %s3094_s3 = inlined_call_operand.vmem [shape: f32[288,16], index: 3, kind: output, shape index: {}]  }
   0x1   :  { %v2193_v0 = vld [vmem:[%s3091_s1] sm:$0xff]   ;;  %v213_v2 = vsel %vm211_vm0, 4294967295, %v2267_v1  ;;  %v2194_v3 = vld [vmem:[%s3091_s1 + $0x8] sm:$0x1f]   ;;  %v2196_v7 = vld [vmem:[%s3092_s0 + $0x90] sm:$0xff]   ;;  %vm1656_vm3 = vcmask 130048  }
   0x2   :  { %2032 = vmatprep.subr.bf16.mxu0 %v2193_v0  ;;  %2072 = vmatprep.subr.bf16.mxu1 %v2193_v0  ;;  %v214_v4 = vsel %vm212_vm1, %v213_v2, 0  ;;  %v2195_v5 = vld [vmem:[%s3092_s0] sm:$0xff]   ;;  %v2197_v8 = vld [vmem:[%s3092_s0 + $0x8] sm:$0xff]   ;;  %v2198_v9 = vld [vmem:[%s3092_s0 + $0x98] sm:$0xff]  }
   0x3   :  { %2033 = vmatpush3.bf16.msra.mxu0 %v2193_v0  ;;  %2073 = vmatpush3.bf16.msra.mxu1 %v2193_v0  ;;  %v216_v6 = vand.u32 %v2194_v3, %v214_v4  ;;  %v2199_v10 = vld [vmem:[%s3092_s0 + $0x10] sm:$0xff]   ;;  %v2200_v11 = vld [vmem:[%s3092_s0 + $0xa0] sm:$0xff]   ;;  %v2201_v12 = vld [vmem:[%s3092_s0 + $0x18] sm:$0xff]  }
   0x4   :  { %2036 = vmatprep.mubr.msk.bf16.mxu0 %vm156_vm2, %v2195_v5  ;;  %2076 = vmatprep.mubr.msk.bf16.mxu1 %vm156_vm2, %v2196_v7  ;;  %v2202_v13 = vld [vmem:[%s3092_s0 + $0xa8] sm:$0xff]   ;;  %v2203_v14 = vld [vmem:[%s3092_s0 + $0x20] sm:$0xff]   ;;  %v2204_v15 = vld [vmem:[%s3092_s0 + $0xb0] sm:$0xff]  }
   0x5   :  { %2034 = vmatprep.subr.bf16.mxu0 %v216_v6  ;;  %2074 = vmatprep.subr.bf16.mxu1 %v216_v6  ;;  %v2205_v16 = vld [vmem:[%s3092_s0 + $0x28] sm:$0xff]   ;;  %v2206_v17 = vld [vmem:[%s3092_s0 + $0xb8] sm:$0xff]   ;;  %v2207_v18 = vld [vmem:[%s3092_s0 + $0x30] sm:$0xff]  }
   0x6   :  { %v2208_v19 = vld [vmem:[%s3092_s0 + $0xc0] sm:$0xff]   ;;  %v2209_v20 = vld [vmem:[%s3092_s0 + $0x38] sm:$0xff]   ;;  %v2210_v21 = vld [vmem:[%s3092_s0 + $0xc8] sm:$0xff]  }
   0x7   :  { %2035 = vmatpush3.bf16.msra.mxu0 %v216_v6  ;;  %2075 = vmatpush3.bf16.msra.mxu1 %v216_v6  ;;  %v2211_v22 = vld [vmem:[%s3092_s0 + $0x40] sm:$0xff]   ;;  %v2212_v23 = vld [vmem:[%s3092_s0 + $0xd0] sm:$0xff]   ;;  %v2213_v24 = vld [vmem:[%s3092_s0 + $0x48] sm:$0xff]  }
   0x8   :  { %2112 = vmatprep.subr.bf16.mxu0 %v2193_v0  ;;  %2152 = vmatprep.subr.bf16.mxu1 %v2193_v0  ;;  %v2214_v25 = vld [vmem:[%s3092_s0 + $0xd8] sm:$0xff]   ;;  %v2215_v26 = vld [vmem:[%s3092_s0 + $0x50] sm:$0xff]   ;;  %v2216_v27 = vld [vmem:[%s3092_s0 + $0xe0] sm:$0xff]  }
   0x9   :  { %v2217_v28 = vld [vmem:[%s3092_s0 + $0x58] sm:$0xff]   ;;  %v2218_v29 = vld [vmem:[%s3092_s0 + $0xe8] sm:$0xff]   ;;  %v2219_v30 = vld [vmem:[%s3092_s0 + $0x60] sm:$0xff]  }
   0xa   :  { %2037 = vmatmul.mubr.msk.bf16.vlgmr.msra.gmra.mrb[0].mxu0 %vm156_vm2, %v2197_v8  ;;  %2077 = vmatmul.mubr.msk.bf16.vlgmr.msra.gmra.mrb[0].mxu1 %vm156_vm2, %v2198_v9  ;;  %v2220_v31 = vld [vmem:[%s3092_s0 + $0xf0] sm:$0xff]   ;;  %v2221_v32 = vld [vmem:[%s3092_s0 + $0x68] sm:$0xff]   ;;  %v2222_v33 = vld [vmem:[%s3092_s0 + $0xf8] sm:$0xff]  }
   0xb   :  { %2113 = vmatpush3.bf16.msra.mxu0 %v2193_v0  ;;  %2153 = vmatpush3.bf16.msra.mxu1 %v2193_v0  ;;  %v2223_v34 = vld [vmem:[%s3092_s0 + $0x70] sm:$0xff]   ;;  %v2224_v35 = vld [vmem:[%s3092_s0 + $0x100] sm:$0xff]   ;;  %v2225_v36 = vld [vmem:[%s3092_s0 + $0x78] sm:$0xff]  }
   0xc   :  { %2040 = vmatprep.mubr.msk.bf16.mxu0 %vm156_vm2, %v2199_v10  ;;  %2080 = vmatprep.mubr.msk.bf16.mxu1 %vm156_vm2, %v2200_v11  ;;  %v2226_v37 = vld [vmem:[%s3092_s0 + $0x108] sm:$0xff]   ;;  %v2227_v38 = vld [vmem:[%s3092_s0 + $0x80] sm:$0xff]   ;;  %v2228_v39 = vld [vmem:[%s3092_s0 + $0x110] sm:$0xff]  }
   0xd   :  { %2114 = vmatprep.subr.bf16.mxu0 %v216_v6  ;;  %2154 = vmatprep.subr.bf16.mxu1 %v216_v6  ;;  %v2229_v40 = vld [vmem:[%s3092_s0 + $0x88] sm:$0xff]   ;;  %v2230_v41 = vld [vmem:[%s3092_s0 + $0x118] sm:$0xff]   ;;  %v2231_v42 = vld [vmem:[%s3092_s0 + $0x120] sm:$0xff]  }
   0xe   :  { %v2232_v43 = vld [vmem:[%s3092_s0 + $0x1b0] sm:$0xff]   ;;  %v2233_v44 = vld [vmem:[%s3092_s0 + $0x128] sm:$0xff]   ;;  %v2234_v45 = vld [vmem:[%s3092_s0 + $0x1b8] sm:$0xff]  }
   0xf   :  { %2115 = vmatpush3.bf16.msra.mxu0 %v216_v6  ;;  %2155 = vmatpush3.bf16.msra.mxu1 %v216_v6  ;;  %v2235_v46 = vld [vmem:[%s3092_s0 + $0x130] sm:$0xff]   ;;  %v2236_v47 = vld [vmem:[%s3092_s0 + $0x1c0] sm:$0xff]   ;;  %v2237_v48 = vld [vmem:[%s3092_s0 + $0x138] sm:$0xff]  }
  0x10   :  { %v2238_v49 = vld [vmem:[%s3092_s0 + $0x1c8] sm:$0xff]   ;;  %v2239_v50 = vld [vmem:[%s3092_s0 + $0x140] sm:$0xff]   ;;  %v2240_v51 = vld [vmem:[%s3092_s0 + $0x1d0] sm:$0xff]  }
  0x11   :  { %v2241_v52 = vld [vmem:[%s3092_s0 + $0x148] sm:$0xff]   ;;  %v2242_v53 = vld [vmem:[%s3092_s0 + $0x1d8] sm:$0xff]   ;;  %v2243_v54 = vld [vmem:[%s3092_s0 + $0x150] sm:$0xff]  }
  0x12   :  { %2041 = vmatmul.mubr.msk.bf16.gmra.mrb[4].mxu0 %vm156_vm2, %v2201_v12  ;;  %2081 = vmatmul.mubr.msk.bf16.gmra.mrb[4].mxu1 %vm156_vm2, %v2202_v13  ;;  %v2244_v55 = vld [vmem:[%s3092_s0 + $0x1e0] sm:$0xff]   ;;  %v2245_v56 = vld [vmem:[%s3092_s0 + $0x158] sm:$0xff]   ;;  %v2246_v57 = vld [vmem:[%s3092_s0 + $0x1e8] sm:$0xff]  }
  0x13   :  { %2044 = vmatprep.mubr.msk.bf16.mxu0 %vm156_vm2, %v2203_v14  ;;  %2084 = vmatprep.mubr.msk.bf16.mxu1 %vm156_vm2, %v2204_v15  ;;  %v2247_v58 = vld [vmem:[%s3092_s0 + $0x160] sm:$0xff]   ;;  %v2248_v59 = vld [vmem:[%s3092_s0 + $0x1f0] sm:$0xff]   ;;  %v2249_v60 = vld [vmem:[%s3092_s0 + $0x168] sm:$0xff]  }
  0x14   :  { %v2250_v61 = vld [vmem:[%s3092_s0 + $0x1f8] sm:$0xff]   ;;  %v2251_v62 = vld [vmem:[%s3092_s0 + $0x170] sm:$0xff]   ;;  %v2252_v63 = vld [vmem:[%s3092_s0 + $0x200] sm:$0xff]  }
  0x15   :  { %v2253_v0 = vld [vmem:[%s3092_s0 + $0x178] sm:$0xff]   ;;  %v2254_v1 = vld [vmem:[%s3092_s0 + $0x208] sm:$0xff]   ;;  %v2255_v2 = vld [vmem:[%s3092_s0 + $0x180] sm:$0xff]  }
  0x16   :  { %v2256_v3 = vld [vmem:[%s3092_s0 + $0x210] sm:$0xff]   ;;  %v2257_v4 = vld [vmem:[%s3092_s0 + $0x188] sm:$0xff]   ;;  %v2258_v5 = vld [vmem:[%s3092_s0 + $0x218] sm:$0xff]  }
  0x17   :  { %v2259_v6 = vld [vmem:[%s3092_s0 + $0x190] sm:$0xff]   ;;  %v2260_v7 = vld [vmem:[%s3092_s0 + $0x220] sm:$0xff]   ;;  %v2261_v8 = vld [vmem:[%s3092_s0 + $0x198] sm:$0xff]  }
  0x18   :  { %v2262_v9 = vld [vmem:[%s3092_s0 + $0x228] sm:$0xff]   ;;  %v2263_v10 = vld [vmem:[%s3092_s0 + $0x1a0] sm:$0xff]   ;;  %v2264_v11 = vld [vmem:[%s3092_s0 + $0x230] sm:$0xff]  }
  0x19   :  { %v2265_v12 = vld [vmem:[%s3092_s0 + $0x1a8] sm:$0xff]   ;;  %v2266_v13 = vld [vmem:[%s3092_s0 + $0x238] sm:$0xff]  }
  0x1a   :  { %2045 = vmatmul.mubr.msk.bf16.gmra.mrb[8].mxu0 %vm156_vm2, %v2205_v16  ;;  %2085 = vmatmul.mubr.msk.bf16.gmra.mrb[8].mxu1 %vm156_vm2, %v2206_v17 }
  0x1b   :  { %2048 = vmatprep.mubr.msk.bf16.mxu0 %vm156_vm2, %v2207_v18  ;;  %2088 = vmatprep.mubr.msk.bf16.mxu1 %vm156_vm2, %v2208_v19 }
  0x22   :  { %2049 = vmatmul.mubr.msk.bf16.gmra.mrb[12].mxu0 %vm156_vm2, %v2209_v20  ;;  %2089 = vmatmul.mubr.msk.bf16.gmra.mrb[12].mxu1 %vm156_vm2, %v2210_v21 }
  0x23   :  { %2052 = vmatprep.mubr.msk.bf16.mxu0 %vm156_vm2, %v2211_v22  ;;  %2092 = vmatprep.mubr.msk.bf16.mxu1 %vm156_vm2, %v2212_v23 }
  0x2a   :  { %2053 = vmatmul.mubr.msk.bf16.gmra.mrb[16].mxu0 %vm156_vm2, %v2213_v24  ;;  %2093 = vmatmul.mubr.msk.bf16.gmra.mrb[16].mxu1 %vm156_vm2, %v2214_v25 }
  0x2b   :  { %2056 = vmatprep.mubr.msk.bf16.mxu0 %vm156_vm2, %v2215_v26  ;;  %2096 = vmatprep.mubr.msk.bf16.mxu1 %vm156_vm2, %v2216_v27 }
  0x32   :  { %2057 = vmatmul.mubr.msk.bf16.gmra.mrb[20].mxu0 %vm156_vm2, %v2217_v28  ;;  %2097 = vmatmul.mubr.msk.bf16.gmra.mrb[20].mxu1 %vm156_vm2, %v2218_v29 }
  0x33   :  { %2060 = vmatprep.mubr.msk.bf16.mxu0 %vm156_vm2, %v2219_v30  ;;  %2100 = vmatprep.mubr.msk.bf16.mxu1 %vm156_vm2, %v2220_v31 }
  0x3a   :  { %2061 = vmatmul.mubr.msk.bf16.gmra.mrb[24].mxu0 %vm156_vm2, %v2221_v32  ;;  %2101 = vmatmul.mubr.msk.bf16.gmra.mrb[24].mxu1 %vm156_vm2, %v2222_v33 }
  0x3b   :  { %2064 = vmatprep.mubr.msk.bf16.mxu0 %vm156_vm2, %v2223_v34  ;;  %2104 = vmatprep.mubr.msk.bf16.mxu1 %vm156_vm2, %v2224_v35 }
  0x42   :  { %2065 = vmatmul.mubr.msk.bf16.gmra.mrb[28].mxu0 %vm156_vm2, %v2225_v36  ;;  %2105 = vmatmul.mubr.msk.bf16.gmra.mrb[28].mxu1 %vm156_vm2, %v2226_v37 }
  0x43   :  { %2068 = vmatprep.mubr.msk.bf16.mxu0 %vm156_vm2, %v2227_v38  ;;  %2108 = vmatprep.mubr.msk.bf16.mxu1 %vm156_vm2, %v2228_v39 }
  0x4a   :  { %2069 = vmatmul.mubr.msk.bf16.gmra.mrb[32].mxu0 %vm156_vm2, %v2229_v40  ;;  %2109 = vmatmul.mubr.msk.bf16.gmra.mrb[32].mxu1 %vm156_vm2, %v2230_v41 }
  0x4b   :  { %2116 = vmatprep.mubr.msk.bf16.mxu0 %vm156_vm2, %v2231_v42  ;;  %2156 = vmatprep.mubr.msk.bf16.mxu1 %vm156_vm2, %v2232_v43 }
  0x52   :  { %2117 = vmatmul.mubr.msk.bf16.vlgmr.msra.gmra.mrb[36].mxu0 %vm156_vm2, %v2233_v44  ;;  %2157 = vmatmul.mubr.msk.bf16.vlgmr.msra.gmra.mrb[36].mxu1 %vm156_vm2, %v2234_v45 }
  0x53   :  { %2120 = vmatprep.mubr.msk.bf16.mxu0 %vm156_vm2, %v2235_v46  ;;  %2160 = vmatprep.mubr.msk.bf16.mxu1 %vm156_vm2, %v2236_v47 }
  0x5a   :  { %2121 = vmatmul.mubr.msk.bf16.gmra.mrb[40].mxu0 %vm156_vm2, %v2237_v48  ;;  %2161 = vmatmul.mubr.msk.bf16.gmra.mrb[40].mxu1 %vm156_vm2, %v2238_v49 }
  0x5b   :  { %2124 = vmatprep.mubr.msk.bf16.mxu0 %vm156_vm2, %v2239_v50  ;;  %2164 = vmatprep.mubr.msk.bf16.mxu1 %vm156_vm2, %v2240_v51 }
  0x62   :  { %2125 = vmatmul.mubr.msk.bf16.gmra.mrb[44].mxu0 %vm156_vm2, %v2241_v52  ;;  %2165 = vmatmul.mubr.msk.bf16.gmra.mrb[44].mxu1 %vm156_vm2, %v2242_v53 }
  0x63   :  { %2128 = vmatprep.mubr.msk.bf16.mxu0 %vm156_vm2, %v2243_v54  ;;  %2168 = vmatprep.mubr.msk.bf16.mxu1 %vm156_vm2, %v2244_v55 }
  0x6a   :  { %2129 = vmatmul.mubr.msk.bf16.gmra.mrb[48].mxu0 %vm156_vm2, %v2245_v56  ;;  %2169 = vmatmul.mubr.msk.bf16.gmra.mrb[48].mxu1 %vm156_vm2, %v2246_v57 }
  0x6b   :  { %2132 = vmatprep.mubr.msk.bf16.mxu0 %vm156_vm2, %v2247_v58  ;;  %2172 = vmatprep.mubr.msk.bf16.mxu1 %vm156_vm2, %v2248_v59 }
  0x72   :  { %2133 = vmatmul.mubr.msk.bf16.gmra.mrb[52].mxu0 %vm156_vm2, %v2249_v60  ;;  %2173 = vmatmul.mubr.msk.bf16.gmra.mrb[52].mxu1 %vm156_vm2, %v2250_v61 }
  0x73   :  { %2136 = vmatprep.mubr.msk.bf16.mxu0 %vm156_vm2, %v2251_v62  ;;  %2176 = vmatprep.mubr.msk.bf16.mxu1 %vm156_vm2, %v2252_v63 }
  0x7a   :  { %2137 = vmatmul.mubr.msk.bf16.gmra.mrb[56].mxu0 %vm156_vm2, %v2253_v0  ;;  %2177 = vmatmul.mubr.msk.bf16.gmra.mrb[56].mxu1 %vm156_vm2, %v2254_v1 }
  0x7b   :  { %2140 = vmatprep.mubr.msk.bf16.mxu0 %vm156_vm2, %v2255_v2  ;;  %2180 = vmatprep.mubr.msk.bf16.mxu1 %vm156_vm2, %v2256_v3 }
  0x82   :  { %2141 = vmatmul.mubr.msk.bf16.gmra.mrb[60].mxu0 %vm156_vm2, %v2257_v4  ;;  %2181 = vmatmul.mubr.msk.bf16.gmra.mrb[60].mxu1 %vm156_vm2, %v2258_v5 }
  0x83   :  { %2144 = vmatprep.mubr.msk.bf16.mxu0 %vm156_vm2, %v2259_v6  ;;  %2184 = vmatprep.mubr.msk.bf16.mxu1 %vm156_vm2, %v2260_v7  ;;  %v2801_v6 = vld [vmem:[%s3093_s2] ss:$0 sm:$0xff] }
  0x8a   :  { %2145 = vmatmul.mubr.msk.bf16.gmra.mrb[64].mxu0 %vm156_vm2, %v2261_v8  ;;  %2185 = vmatmul.mubr.msk.bf16.gmra.mrb[64].mxu1 %vm156_vm2, %v2262_v9 }
  0x8b   :  { %2148 = vmatprep.mubr.msk.bf16.mxu0 %vm156_vm2, %v2263_v10  ;;  %2188 = vmatprep.mubr.msk.bf16.mxu1 %vm156_vm2, %v2264_v11 }
  0x92   :  { %2149 = vmatmul.mubr.msk.bf16.gmra.mrb[68].mxu0 %vm156_vm2, %v2265_v12  ;;  %2189 = vmatmul.mubr.msk.bf16.gmra.mrb[68].mxu1 %vm156_vm2, %v2266_v13 }
  0xdd   :  { %v2582_v14 = vpop.f32.mrb[0].mxu0  ;;  %v2584_v15 = vpop.f32.mrb[0].mxu1 }
  0xde   :  { %v2588_v17 = vpop.f32.mrb[1].mxu0  ;;  %v2590_v18 = vpop.f32.mrb[1].mxu1 }
  0xdf   :  { %v2594_v20 = vpop.f32.mrb[2].mxu0  ;;  %v2596_v21 = vpop.f32.mrb[2].mxu1 }
  0xe0   :  { %v2600_v23 = vpop.f32.mrb[3].mxu0  ;;  %v2602_v24 = vpop.f32.mrb[3].mxu1 }
  0xe5   :  { %v2606_v26 = vpop.f32.mrb[4].mxu0  ;;  %v2608_v27 = vpop.f32.mrb[4].mxu1 }
  0xe6   :  { %v2612_v29 = vpop.f32.mrb[5].mxu0  ;;  %v2614_v30 = vpop.f32.mrb[5].mxu1 }
  0xe7   :  { %v2618_v32 = vpop.f32.mrb[6].mxu0  ;;  %v2620_v33 = vpop.f32.mrb[6].mxu1 }
  0xe8   :  { %v2624_v35 = vpop.f32.mrb[7].mxu0  ;;  %v2626_v36 = vpop.f32.mrb[7].mxu1 }
  0xed   :  { %v2630_v38 = vpop.f32.mrb[8].mxu0  ;;  %v2632_v39 = vpop.f32.mrb[8].mxu1 }
  0xee   :  { %v2636_v41 = vpop.f32.mrb[9].mxu0  ;;  %v2638_v42 = vpop.f32.mrb[9].mxu1 }
  0xef   :  { %v2642_v44 = vpop.f32.mrb[10].mxu0  ;;  %v2644_v45 = vpop.f32.mrb[10].mxu1 }
  0xf0   :  { %v2648_v47 = vpop.f32.mrb[11].mxu0  ;;  %v2650_v48 = vpop.f32.mrb[11].mxu1 }
  0xf5   :  { %v2654_v50 = vpop.f32.mrb[12].mxu0  ;;  %v2656_v51 = vpop.f32.mrb[12].mxu1 }
  0xf6   :  { %v2660_v53 = vpop.f32.mrb[13].mxu0  ;;  %v2662_v54 = vpop.f32.mrb[13].mxu1 }
  0xf7   :  { %v2666_v56 = vpop.f32.mrb[14].mxu0  ;;  %v2668_v57 = vpop.f32.mrb[14].mxu1 }
  0xf8   :  { %v2672_v59 = vpop.f32.mrb[15].mxu0  ;;  %v2674_v60 = vpop.f32.mrb[15].mxu1 }
  0xfd   :  { %v2678_v62 = vpop.f32.mrb[16].mxu0  ;;  %v2680_v63 = vpop.f32.mrb[16].mxu1 }
  0xfe   :  { %v2684_v1 = vpop.f32.mrb[17].mxu0  ;;  %v2686_v2 = vpop.f32.mrb[17].mxu1 }
  0xff   :  { %v2690_v4 = vpop.f32.mrb[18].mxu0  ;;  %v2692_v5 = vpop.f32.mrb[18].mxu1 }
 0x100   :  { %v2696_v7 = vpop.f32.mrb[19].mxu0  ;;  %v2698_v8 = vpop.f32.mrb[19].mxu1 }
 0x105   :  { %v2702_v10 = vpop.f32.mrb[20].mxu0  ;;  %v2704_v11 = vpop.f32.mrb[20].mxu1 }
 0x106   :  { %v2708_v13 = vpop.f32.mrb[21].mxu0  ;;  %v2710_v3 = vpop.f32.mrb[21].mxu1 }
 0x107   :  { %v2714_v0 = vpop.f32.mrb[22].mxu0  ;;  %v2716_v61 = vpop.f32.mrb[22].mxu1 }
 0x108   :  { %v2720_v58 = vpop.f32.mrb[23].mxu0  ;;  %v2722_v55 = vpop.f32.mrb[23].mxu1 }
 0x109   :  { %3120 = vst [vmem:[#allocation2_spill] sm:$0xff] %v2722_v55  ;;  %v3147_v55 = vmax.f32 %v2594_v20, %v2596_v21 }
 0x10d   :  { %v2726_v52 = vpop.f32.mrb[24].mxu0  ;;  %v2728_v49 = vpop.f32.mrb[24].mxu1 }
 0x10e   :  { %3121 = vst [vmem:[#allocation3_spill] sm:$0xff] %v2726_v52  ;;  %3122 = vst [vmem:[#allocation4_spill] sm:$0xff] %v2728_v49  ;;  %v2732_v46 = vpop.f32.mrb[25].mxu0  ;;  %v2734_v43 = vpop.f32.mrb[25].mxu1 }
 0x10f   :  { %3123 = vst [vmem:[#allocation5_spill] sm:$0xff] %v2732_v46  ;;  %3124 = vst [vmem:[#allocation6_spill] sm:$0xff] %v2734_v43  ;;  %v2738_v40 = vpop.f32.mrb[26].mxu0  ;;  %v2740_v37 = vpop.f32.mrb[26].mxu1 }
 0x110   :  { %3125 = vst [vmem:[#allocation7_spill] sm:$0xff] %v2738_v40  ;;  %3126 = vst [vmem:[#allocation8_spill] sm:$0xff] %v2740_v37  ;;  %v2744_v34 = vpop.f32.mrb[27].mxu0  ;;  %v2746_v31 = vpop.f32.mrb[27].mxu1 }
 0x111   :  { %3127 = vst [vmem:[#allocation9_spill] sm:$0xff] %v2744_v34  ;;  %3128 = vst [vmem:[#allocation10_spill] sm:$0xff] %v2746_v31 }
 0x115   :  { %v2750_v28 = vpop.f32.mrb[28].mxu0  ;;  %v2752_v25 = vpop.f32.mrb[28].mxu1 }
 0x116   :  { %3129 = vst [vmem:[#allocation11_spill] sm:$0xff] %v2750_v28  ;;  %3130 = vst [vmem:[#allocation12_spill] sm:$0xff] %v2752_v25  ;;  %v2756_v22 = vpop.f32.mrb[29].mxu0  ;;  %v2758_v19 = vpop.f32.mrb[29].mxu1 }
 0x117   :  { %3131 = vst [vmem:[#allocation13_spill] sm:$0xff] %v2756_v22  ;;  %3132 = vst [vmem:[#allocation14_spill] sm:$0xff] %v2758_v19  ;;  %v2762_v16 = vpop.f32.mrb[30].mxu0  ;;  %v2764_v37 = vpop.f32.mrb[30].mxu1 }
 0x118   :  { %3133 = vst [vmem:[#allocation15_spill] sm:$0xff] %v2762_v16  ;;  %3134 = vst [vmem:[#allocation16_spill] sm:$0xff] %v2764_v37  ;;  %v2768_v31 = vpop.f32.mrb[31].mxu0  ;;  %v2770_v34 = vpop.f32.mrb[31].mxu1 }
 0x119   :  { %3135 = vst [vmem:[#allocation17_spill] sm:$0xff] %v2768_v31  ;;  %3136 = vst [vmem:[#allocation18_spill] sm:$0xff] %v2770_v34 }
 0x11d   :  { %v2774_v25 = vpop.f32.mrb[32].mxu0  ;;  %v2776_v28 = vpop.f32.mrb[32].mxu1 }
 0x11e   :  { %3137 = vst [vmem:[#allocation19_spill] sm:$0xff] %v2774_v25  ;;  %3138 = vst [vmem:[#allocation20_spill] sm:$0xff] %v2776_v28  ;;  %v2780_v19 = vpop.f32.mrb[33].mxu0  ;;  %v2782_v22 = vpop.f32.mrb[33].mxu1 }
 0x11f   :  { %3139 = vst [vmem:[#allocation21_spill] sm:$0xff] %v2780_v19  ;;  %3140 = vst [vmem:[#allocation22_spill] sm:$0xff] %v2782_v22  ;;  %v2786_v37 = vpop.f32.mrb[34].mxu0  ;;  %v2788_v16 = vpop.f32.mrb[34].mxu1 }
 0x120   :  { %3141 = vst [vmem:[#allocation23_spill] sm:$0xff] %v2786_v37  ;;  %3142 = vst [vmem:[#allocation24_spill] sm:$0xff] %v2788_v16  ;;  %v2792_v34 = vpop.f32.mrb[35].mxu0  ;;  %v2794_v31 = vpop.f32.mrb[35].mxu1  ;;  %v3145_v16 = vmax.f32 %v2582_v14, %v2584_v15  ;;  %v3148_v14 = vmax.f32 %v2600_v23, %v2602_v24 }
 0x121   :  { %3143 = vst [vmem:[#allocation25_spill] sm:$0xff] %v2792_v34  ;;  %3144 = vst [vmem:[#allocation26_spill] sm:$0xff] %v2794_v31 }
 0x125   :  { %v2118_v28 = vpop.f32.mrb[36].mxu0  ;;  %v2158_v25 = vpop.f32.mrb[36].mxu1 }
 0x126   :  { %v1507_v40 = vmax.f32 %v2118_v28, %v2158_v25  ;;  %v968_v43 = vpop.f32.mrb[37].mxu0  ;;  %v1326_v46 = vpop.f32.mrb[37].mxu1  ;;  %v3146_v25 = vmax.f32 %v2588_v17, %v2590_v18 }
 0x127   :  { %v1505_v22 = vmax.f32 %v968_v43, %v1326_v46  ;;  %v2119_v19 = vpop.f32.mrb[38].mxu0  ;;  %v2159_v9 = vpop.f32.mrb[38].mxu1 }
 0x128   :  { %v1543_v37 = vmax.f32 %v3145_v16, %v1507_v40  ;;  %v1508_v49 = vmax.f32 %v2119_v19, %v2159_v9  ;;  %v971_v52 = vpop.f32.mrb[39].mxu0  ;;  %v1329_v12 = vpop.f32.mrb[39].mxu1 }
 0x129   :  { %v1541_v28 = vmax.f32 %v3146_v25, %v1505_v22  ;;  %v1506_v31 = vmax.f32 %v971_v52, %v1329_v12  ;;  %v3149_v52 = vmax.f32 %v2606_v26, %v2608_v27 }
 0x12a   :  { %v1586_v34 = vadd.f32 %v2801_v6, %v1543_v37  ;;  %v1544_v43 = vmax.f32 %v3147_v55, %v1508_v49 }
 0x12b   :  { %v1584_v46 = vadd.f32 %v2801_v6, %v1541_v28  ;;  %v1542_v15 = vmax.f32 %v3148_v14, %v1506_v31  ;;  %v3150_v28 = vmax.f32 %v2612_v29, %v2614_v30 }
 0x12c   :  { %v1622_v16 = vmax.f32 %v1586_v34, 0.0  ;;  %v1587_v19 = vadd.f32 %v2801_v6, %v1544_v43 }
 0x12d   :  { %v1620_v40 = vmax.f32 %v1584_v46, 0.0  ;;  %v1585_v17 = vadd.f32 %v2801_v6, %v1542_v15  ;;  %v2122_v18 = vpop.f32.mrb[40].mxu0  ;;  %v2162_v22 = vpop.f32.mrb[40].mxu1  ;;  %v3151_v15 = vmax.f32 %v2618_v32, %v2620_v33 }
 0x12e   :  { %1659 = vst.msk [vmem:[%s3094_s3 + $0x10] sm:$0xff] %vm1656_vm3, %v1622_v16  ;;  %v1623_v20 = vmax.f32 %v1587_v19, 0.0  ;;  %v1511_v21 = vmax.f32 %v2122_v18, %v2162_v22  ;;  %v984_v37 = vpop.f32.mrb[41].mxu0  ;;  %v1342_v49 = vpop.f32.mrb[41].mxu1  ;;  %v3152_v16 = vmax.f32 %v2624_v35, %v2626_v36 }
 0x12f   :  { %1657 = vst.msk [vmem:[%s3094_s3] sm:$0xff] %vm1656_vm3, %v1620_v40  ;;  %v1621_v23 = vmax.f32 %v1585_v17, 0.0  ;;  %v1509_v24 = vmax.f32 %v984_v37, %v1342_v49  ;;  %v2123_v31 = vpop.f32.mrb[42].mxu0  ;;  %v2163_v34 = vpop.f32.mrb[42].mxu1 }
 0x130   :  { %1660 = vst.msk [vmem:[%s3094_s3 + $0x18] sm:$0xff] %vm1656_vm3, %v1623_v20  ;;  %v1547_v55 = vmax.f32 %v3149_v52, %v1511_v21  ;;  %v1512_v9 = vmax.f32 %v2123_v31, %v2163_v34  ;;  %v987_v12 = vpop.f32.mrb[43].mxu0  ;;  %v1345_v25 = vpop.f32.mrb[43].mxu1 }
 0x131   :  { %1658 = vst.msk [vmem:[%s3094_s3 + $0x8] sm:$0xff] %vm1656_vm3, %v1621_v23  ;;  %v1545_v43 = vmax.f32 %v3150_v28, %v1509_v24  ;;  %v1510_v46 = vmax.f32 %v987_v12, %v1345_v25  ;;  %v3153_v23 = vmax.f32 %v2630_v38, %v2632_v39  ;;  %v3155_v28 = vmax.f32 %v2642_v44, %v2644_v45 }
 0x132   :  { %v1590_v14 = vadd.f32 %v2801_v6, %v1547_v55  ;;  %v1548_v26 = vmax.f32 %v3151_v15, %v1512_v9  ;;  %v3154_v55 = vmax.f32 %v2636_v41, %v2638_v42 }
 0x133   :  { %v1588_v27 = vadd.f32 %v2801_v6, %v1545_v43  ;;  %v1546_v19 = vmax.f32 %v3152_v16, %v1510_v46  ;;  %v3156_v43 = vmax.f32 %v2648_v47, %v2650_v48 }
 0x134   :  { %v1626_v40 = vmax.f32 %v1590_v14, 0.0  ;;  %v1591_v17 = vadd.f32 %v2801_v6, %v1548_v26 }
 0x135   :  { %v1624_v18 = vmax.f32 %v1588_v27, 0.0  ;;  %v1589_v29 = vadd.f32 %v2801_v6, %v1546_v19  ;;  %v2126_v30 = vpop.f32.mrb[44].mxu0  ;;  %v2166_v22 = vpop.f32.mrb[44].mxu1 }
 0x136   :  { %1663 = vst.msk [vmem:[%s3094_s3 + $0x30] sm:$0xff] %vm1656_vm3, %v1626_v40  ;;  %v1627_v32 = vmax.f32 %v1591_v17, 0.0  ;;  %v1515_v33 = vmax.f32 %v2126_v30, %v2166_v22  ;;  %v1000_v20 = vpop.f32.mrb[45].mxu0  ;;  %v1358_v21 = vpop.f32.mrb[45].mxu1 }
 0x137   :  { %1661 = vst.msk [vmem:[%s3094_s3 + $0x20] sm:$0xff] %vm1656_vm3, %v1624_v18  ;;  %v1625_v35 = vmax.f32 %v1589_v29, 0.0  ;;  %v1513_v36 = vmax.f32 %v1000_v20, %v1358_v21  ;;  %v2127_v37 = vpop.f32.mrb[46].mxu0  ;;  %v2167_v49 = vpop.f32.mrb[46].mxu1  ;;  %v3157_v18 = vmax.f32 %v2654_v50, %v2656_v51 }
 0x138   :  { %1664 = vst.msk [vmem:[%s3094_s3 + $0x38] sm:$0xff] %vm1656_vm3, %v1627_v32  ;;  %v1551_v24 = vmax.f32 %v3153_v23, %v1515_v33  ;;  %v1516_v31 = vmax.f32 %v2127_v37, %v2167_v49  ;;  %v1003_v34 = vpop.f32.mrb[47].mxu0  ;;  %v1361_v52 = vpop.f32.mrb[47].mxu1  ;;  %v3158_v33 = vmax.f32 %v2660_v53, %v2662_v54  ;;  %v3160_v37 = vmax.f32 %v2672_v59, %v2674_v60 }
 0x139   :  { %1662 = vst.msk [vmem:[%s3094_s3 + $0x28] sm:$0xff] %vm1656_vm3, %v1625_v35  ;;  %v1549_v9 = vmax.f32 %v3154_v55, %v1513_v36  ;;  %v1514_v12 = vmax.f32 %v1003_v34, %v1361_v52  ;;  %v3159_v36 = vmax.f32 %v2666_v56, %v2668_v57 }
 0x13a   :  { %v1594_v25 = vadd.f32 %v2801_v6, %v1551_v24  ;;  %v1552_v38 = vmax.f32 %v3155_v28, %v1516_v31 }
 0x13b   :  { %v1592_v39 = vadd.f32 %v2801_v6, %v1549_v9  ;;  %v1550_v46 = vmax.f32 %v3156_v43, %v1514_v12 }
 0x13c   :  { %v1630_v14 = vmax.f32 %v1594_v25, 0.0  ;;  %v1595_v15 = vadd.f32 %v2801_v6, %v1552_v38  ;;  %v3161_v25 = vmax.f32 %v2678_v62, %v2680_v63 }
 0x13d   :  { %v1628_v26 = vmax.f32 %v1592_v39, 0.0  ;;  %v1593_v41 = vadd.f32 %v2801_v6, %v1550_v46  ;;  %v2130_v42 = vpop.f32.mrb[48].mxu0  ;;  %v2170_v27 = vpop.f32.mrb[48].mxu1  ;;  %v3162_v46 = vmax.f32 %v2684_v1, %v2686_v2 }
 0x13e   :  { %1667 = vst.msk [vmem:[%s3094_s3 + $0x50] sm:$0xff] %vm1656_vm3, %v1630_v14  ;;  %v1631_v44 = vmax.f32 %v1595_v15, 0.0  ;;  %v1519_v45 = vmax.f32 %v2130_v42, %v2170_v27  ;;  %v1016_v16 = vpop.f32.mrb[49].mxu0  ;;  %v1374_v19 = vpop.f32.mrb[49].mxu1  ;;  %v3164_v42 = vmax.f32 %v2696_v7, %v2698_v8 }
 0x13f   :  { %1665 = vst.msk [vmem:[%s3094_s3 + $0x40] sm:$0xff] %vm1656_vm3, %v1628_v26  ;;  %v1629_v47 = vmax.f32 %v1593_v41, 0.0  ;;  %v1517_v48 = vmax.f32 %v1016_v16, %v1374_v19  ;;  %v2131_v40 = vpop.f32.mrb[50].mxu0  ;;  %v2171_v17 = vpop.f32.mrb[50].mxu1  ;;  %v3163_v41 = vmax.f32 %v2690_v4, %v2692_v5 }
 0x140   :  { %1668 = vst.msk [vmem:[%s3094_s3 + $0x58] sm:$0xff] %vm1656_vm3, %v1631_v44  ;;  %v1555_v29 = vmax.f32 %v3157_v18, %v1519_v45  ;;  %v1520_v30 = vmax.f32 %v2131_v40, %v2171_v17  ;;  %v1019_v22 = vpop.f32.mrb[51].mxu0  ;;  %v1377_v32 = vpop.f32.mrb[51].mxu1  ;;  %v3165_v18 = vmax.f32 %v2702_v10, %v2704_v11 }
 0x141   :  { %1666 = vst.msk [vmem:[%s3094_s3 + $0x48] sm:$0xff] %vm1656_vm3, %v1629_v47  ;;  %v1553_v20 = vmax.f32 %v3158_v33, %v1517_v48  ;;  %v1518_v21 = vmax.f32 %v1019_v22, %v1377_v32  ;;  %v3166_v33 = vmax.f32 %v2708_v13, %v2710_v3 }
 0x142   :  { %v1598_v35 = vadd.f32 %v2801_v6, %v1555_v29  ;;  %v1556_v50 = vmax.f32 %v3159_v36, %v1520_v30  ;;  %v3167_v36 = vmax.f32 %v2714_v0, %v2716_v61 }
 0x143   :  { %v1596_v51 = vadd.f32 %v2801_v6, %v1553_v20  ;;  %v1554_v49 = vmax.f32 %v3160_v37, %v1518_v21 }
 0x144   :  { %v1634_v23 = vmax.f32 %v1598_v35, 0.0  ;;  %v1599_v24 = vadd.f32 %v2801_v6, %v1556_v50  ;;  %v3168_v50 = vld [vmem:[#allocation2_spill] sm:$0xff] }
 0x145   :  { %v1632_v31 = vmax.f32 %v1596_v51, 0.0  ;;  %v1597_v53 = vadd.f32 %v2801_v6, %v1554_v49  ;;  %v2134_v54 = vpop.f32.mrb[52].mxu0  ;;  %v2174_v34 = vpop.f32.mrb[52].mxu1  ;;  %v3169_v51 = vmax.f32 %v2720_v58, %v3168_v50 }
 0x146   :  { %1671 = vst.msk [vmem:[%s3094_s3 + $0x70] sm:$0xff] %vm1656_vm3, %v1634_v23  ;;  %v1635_v56 = vmax.f32 %v1599_v24, 0.0  ;;  %v1523_v57 = vmax.f32 %v2134_v54, %v2174_v34  ;;  %v1032_v52 = vpop.f32.mrb[53].mxu0  ;;  %v1390_v55 = vpop.f32.mrb[53].mxu1 }
 0x147   :  { %1669 = vst.msk [vmem:[%s3094_s3 + $0x60] sm:$0xff] %vm1656_vm3, %v1632_v31  ;;  %v1633_v59 = vmax.f32 %v1597_v53, 0.0  ;;  %v1521_v60 = vmax.f32 %v1032_v52, %v1390_v55  ;;  %v2135_v9 = vpop.f32.mrb[54].mxu0  ;;  %v2175_v12 = vpop.f32.mrb[54].mxu1  ;;  %v3170_v52 = vld [vmem:[#allocation3_spill] sm:$0xff]  ;;  %v3171_v55 = vld [vmem:[#allocation4_spill] sm:$0xff] }
 0x148   :  { %1672 = vst.msk [vmem:[%s3094_s3 + $0x78] sm:$0xff] %vm1656_vm3, %v1635_v56  ;;  %v1559_v28 = vmax.f32 %v3161_v25, %v1523_v57  ;;  %v1524_v38 = vmax.f32 %v2135_v9, %v2175_v12  ;;  %v1035_v39 = vpop.f32.mrb[55].mxu0  ;;  %v1393_v43 = vpop.f32.mrb[55].mxu1 }
 0x149   :  { %1670 = vst.msk [vmem:[%s3094_s3 + $0x68] sm:$0xff] %vm1656_vm3, %v1633_v59  ;;  %v1557_v14 = vmax.f32 %v3162_v46, %v1521_v60  ;;  %v1522_v15 = vmax.f32 %v1035_v39, %v1393_v43  ;;  %v3172_v59 = vmax.f32 %v3170_v52, %v3171_v55 }
 0x14a   :  { %v1602_v26 = vadd.f32 %v2801_v6, %v1559_v28  ;;  %v1560_v62 = vmax.f32 %v3163_v41, %v1524_v38  ;;  %v3173_v28 = vld [vmem:[#allocation5_spill] sm:$0xff]  ;;  %v3174_v38 = vld [vmem:[#allocation6_spill] sm:$0xff] }
 0x14b   :  { %v1600_v63 = vadd.f32 %v2801_v6, %v1557_v14  ;;  %v1558_v27 = vmax.f32 %v3164_v42, %v1522_v15  ;;  %v3175_v39 = vmax.f32 %v3173_v28, %v3174_v38  ;;  %v3176_v15 = vld [vmem:[#allocation7_spill] sm:$0xff]  ;;  %v3179_v42 = vld [vmem:[#allocation9_spill] sm:$0xff] }
 0x14c   :  { %v1638_v44 = vmax.f32 %v1602_v26, 0.0  ;;  %v1603_v45 = vadd.f32 %v2801_v6, %v1560_v62  ;;  %v3177_v26 = vld [vmem:[#allocation8_spill] sm:$0xff] }
 0x14d   :  { %v1636_v16 = vmax.f32 %v1600_v63, 0.0  ;;  %v1601_v1 = vadd.f32 %v2801_v6, %v1558_v27  ;;  %v2138_v2 = vpop.f32.mrb[56].mxu0  ;;  %v2178_v19 = vpop.f32.mrb[56].mxu1  ;;  %v3178_v41 = vmax.f32 %v3176_v15, %v3177_v26  ;;  %v3180_v27 = vld [vmem:[#allocation10_spill] sm:$0xff] }
 0x14e   :  { %1675 = vst.msk [vmem:[%s3094_s3 + $0x90] sm:$0xff] %vm1656_vm3, %v1638_v44  ;;  %v1639_v4 = vmax.f32 %v1603_v45, 0.0  ;;  %v1527_v5 = vmax.f32 %v2138_v2, %v2178_v19  ;;  %v1048_v47 = vpop.f32.mrb[57].mxu0  ;;  %v1406_v48 = vpop.f32.mrb[57].mxu1  ;;  %v3181_v44 = vmax.f32 %v3179_v42, %v3180_v27 }
 0x14f   :  { %1673 = vst.msk [vmem:[%s3094_s3 + $0x80] sm:$0xff] %vm1656_vm3, %v1636_v16  ;;  %v1637_v7 = vmax.f32 %v1601_v1, 0.0  ;;  %v1525_v8 = vmax.f32 %v1048_v47, %v1406_v48  ;;  %v2139_v40 = vpop.f32.mrb[58].mxu0  ;;  %v2179_v17 = vpop.f32.mrb[58].mxu1 }
 0x150   :  { %1676 = vst.msk [vmem:[%s3094_s3 + $0x98] sm:$0xff] %vm1656_vm3, %v1639_v4  ;;  %v1563_v29 = vmax.f32 %v3165_v18, %v1527_v5  ;;  %v1528_v30 = vmax.f32 %v2139_v40, %v2179_v17  ;;  %v1051_v22 = vpop.f32.mrb[59].mxu0  ;;  %v1409_v32 = vpop.f32.mrb[59].mxu1 }
 0x151   :  { %1674 = vst.msk [vmem:[%s3094_s3 + $0x88] sm:$0xff] %vm1656_vm3, %v1637_v7  ;;  %v1561_v20 = vmax.f32 %v3166_v33, %v1525_v8  ;;  %v1526_v21 = vmax.f32 %v1051_v22, %v1409_v32  ;;  %v3183_v22 = vld [vmem:[#allocation12_spill] sm:$0xff] }
 0x152   :  { %v1606_v35 = vadd.f32 %v2801_v6, %v1563_v29  ;;  %v1564_v10 = vmax.f32 %v3167_v36, %v1528_v30  ;;  %v3182_v30 = vld [vmem:[#allocation11_spill] sm:$0xff]  ;;  %v3185_v36 = vld [vmem:[#allocation13_spill] sm:$0xff] }
 0x153   :  { %v1604_v11 = vadd.f32 %v2801_v6, %v1561_v20  ;;  %v1562_v37 = vmax.f32 %v3169_v51, %v1526_v21  ;;  %v3184_v32 = vmax.f32 %v3182_v30, %v3183_v22 }
 0x154   :  { %v1642_v49 = vmax.f32 %v1606_v35, 0.0  ;;  %v1607_v23 = vadd.f32 %v2801_v6, %v1564_v10  ;;  %v3186_v10 = vld [vmem:[#allocation14_spill] sm:$0xff] }
 0x155   :  { %v1640_v24 = vmax.f32 %v1604_v11, 0.0  ;;  %v1605_v3 = vadd.f32 %v2801_v6, %v1562_v37  ;;  %v2142_v13 = vpop.f32.mrb[60].mxu0  ;;  %v2182_v31 = vpop.f32.mrb[60].mxu1  ;;  %v3187_v11 = vmax.f32 %v3185_v36, %v3186_v10 }
 0x156   :  { %1679 = vst.msk [vmem:[%s3094_s3 + $0xb0] sm:$0xff] %vm1656_vm3, %v1642_v49  ;;  %v1643_v61 = vmax.f32 %v1607_v23, 0.0  ;;  %v1531_v0 = vmax.f32 %v2142_v13, %v2182_v31  ;;  %v1064_v53 = vpop.f32.mrb[61].mxu0  ;;  %v1422_v54 = vpop.f32.mrb[61].mxu1  ;;  %v3188_v49 = vld [vmem:[#allocation15_spill] sm:$0xff]  ;;  %v3189_v23 = vld [vmem:[#allocation16_spill] sm:$0xff] }
 0x157   :  { %1677 = vst.msk [vmem:[%s3094_s3 + $0xa0] sm:$0xff] %vm1656_vm3, %v1640_v24  ;;  %v1641_v58 = vmax.f32 %v1605_v3, 0.0  ;;  %v1529_v34 = vmax.f32 %v1064_v53, %v1422_v54  ;;  %v2143_v56 = vpop.f32.mrb[62].mxu0  ;;  %v2183_v57 = vpop.f32.mrb[62].mxu1  ;;  %v3190_v24 = vmax.f32 %v3188_v49, %v3189_v23  ;;  %v3191_v31 = vld [vmem:[#allocation17_spill] sm:$0xff] }
 0x158   :  { %1680 = vst.msk [vmem:[%s3094_s3 + $0xb8] sm:$0xff] %vm1656_vm3, %v1643_v61  ;;  %v1567_v60 = vmax.f32 %v3172_v59, %v1531_v0  ;;  %v1532_v9 = vmax.f32 %v2143_v56, %v2183_v57  ;;  %v1067_v12 = vpop.f32.mrb[63].mxu0  ;;  %v1425_v25 = vpop.f32.mrb[63].mxu1  ;;  %v3192_v61 = vld [vmem:[#allocation18_spill] sm:$0xff] }
 0x159   :  { %1678 = vst.msk [vmem:[%s3094_s3 + $0xa8] sm:$0xff] %vm1656_vm3, %v1641_v58  ;;  %v1565_v43 = vmax.f32 %v3175_v39, %v1529_v34  ;;  %v1530_v46 = vmax.f32 %v1067_v12, %v1425_v25  ;;  %v3193_v0 = vmax.f32 %v3191_v31, %v3192_v61  ;;  %v3194_v39 = vld [vmem:[#allocation19_spill] sm:$0xff] }
 0x15a   :  { %v1610_v14 = vadd.f32 %v2801_v6, %v1567_v60  ;;  %v1568_v62 = vmax.f32 %v3178_v41, %v1532_v9 }
 0x15b   :  { %v1608_v63 = vadd.f32 %v2801_v6, %v1565_v43  ;;  %v1566_v45 = vmax.f32 %v3181_v44, %v1530_v46  ;;  %v3195_v43 = vld [vmem:[#allocation20_spill] sm:$0xff] }
 0x15c   :  { %v1646_v16 = vmax.f32 %v1610_v14, 0.0  ;;  %v1611_v1 = vadd.f32 %v2801_v6, %v1568_v62  ;;  %v3196_v46 = vmax.f32 %v3194_v39, %v3195_v43  ;;  %v3197_v62 = vld [vmem:[#allocation21_spill] sm:$0xff] }
 0x15d   :  { %v1644_v2 = vmax.f32 %v1608_v63, 0.0  ;;  %v1609_v19 = vadd.f32 %v2801_v6, %v1566_v45  ;;  %v2146_v4 = vpop.f32.mrb[64].mxu0  ;;  %v2186_v5 = vpop.f32.mrb[64].mxu1  ;;  %v3198_v63 = vld [vmem:[#allocation22_spill] sm:$0xff] }
 0x15e   :  { %1683 = vst.msk [vmem:[%s3094_s3 + $0xd0] sm:$0xff] %vm1656_vm3, %v1646_v16  ;;  %v1647_v47 = vmax.f32 %v1611_v1, 0.0  ;;  %v1535_v48 = vmax.f32 %v2146_v4, %v2186_v5  ;;  %v1080_v7 = vpop.f32.mrb[65].mxu0  ;;  %v1438_v8 = vpop.f32.mrb[65].mxu1  ;;  %v3199_v42 = vmax.f32 %v3197_v62, %v3198_v63  ;;  %v3200_v16 = vld [vmem:[#allocation23_spill] sm:$0xff]  ;;  %v3201_v1 = vld [vmem:[#allocation24_spill] sm:$0xff] }
 0x15f   :  { %1681 = vst.msk [vmem:[%s3094_s3 + $0xc0] sm:$0xff] %vm1656_vm3, %v1644_v2  ;;  %v1645_v40 = vmax.f32 %v1609_v19, 0.0  ;;  %v1533_v17 = vmax.f32 %v1080_v7, %v1438_v8  ;;  %v2147_v18 = vpop.f32.mrb[66].mxu0  ;;  %v2187_v29 = vpop.f32.mrb[66].mxu1  ;;  %v3202_v2 = vmax.f32 %v3200_v16, %v3201_v1  ;;  %v3203_v5 = vld [vmem:[#allocation25_spill] sm:$0xff] }
 0x160   :  { %1684 = vst.msk [vmem:[%s3094_s3 + $0xd8] sm:$0xff] %vm1656_vm3, %v1647_v47  ;;  %v1571_v33 = vmax.f32 %v3184_v32, %v1535_v48  ;;  %v1536_v20 = vmax.f32 %v2147_v18, %v2187_v29  ;;  %v1083_v21 = vpop.f32.mrb[67].mxu0  ;;  %v1441_v35 = vpop.f32.mrb[67].mxu1  ;;  %v3204_v47 = vld [vmem:[#allocation26_spill] sm:$0xff] }
 0x161   :  { %1682 = vst.msk [vmem:[%s3094_s3 + $0xc8] sm:$0xff] %vm1656_vm3, %v1645_v40  ;;  %v1569_v50 = vmax.f32 %v3187_v11, %v1533_v17  ;;  %v1534_v51 = vmax.f32 %v1083_v21, %v1441_v35  ;;  %v3205_v48 = vmax.f32 %v3203_v5, %v3204_v47 }
 0x162   :  { %v1614_v37 = vadd.f32 %v2801_v6, %v1571_v33  ;;  %v1572_v3 = vmax.f32 %v3190_v24, %v1536_v20 }
 0x163   :  { %v1612_v13 = vadd.f32 %v2801_v6, %v1569_v50  ;;  %v1570_v53 = vmax.f32 %v3193_v0, %v1534_v51 }
 0x164   :  { %v1650_v54 = vmax.f32 %v1614_v37, 0.0  ;;  %v1615_v58 = vadd.f32 %v2801_v6, %v1572_v3 }
 0x165   :  { %v1648_v34 = vmax.f32 %v1612_v13, 0.0  ;;  %v1613_v56 = vadd.f32 %v2801_v6, %v1570_v53  ;;  %v2150_v57 = vpop.f32.mrb[68].mxu0  ;;  %v2190_v52 = vpop.f32.mrb[68].mxu1 }
 0x166   :  { %1687 = vst.msk [vmem:[%s3094_s3 + $0xf0] sm:$0xff] %vm1656_vm3, %v1650_v54  ;;  %v1651_v55 = vmax.f32 %v1615_v58, 0.0  ;;  %v1539_v59 = vmax.f32 %v2150_v57, %v2190_v52  ;;  %v1096_v60 = vpop.f32.mrb[69].mxu0  ;;  %v1454_v9 = vpop.f32.mrb[69].mxu1 }
 0x167   :  { %1685 = vst.msk [vmem:[%s3094_s3 + $0xe0] sm:$0xff] %vm1656_vm3, %v1648_v34  ;;  %v1649_v12 = vmax.f32 %v1613_v56, 0.0  ;;  %v1537_v25 = vmax.f32 %v1096_v60, %v1454_v9  ;;  %v2151_v28 = vpop.f32.mrb[70].mxu0  ;;  %v2191_v38 = vpop.f32.mrb[70].mxu1 }
 0x168   :  { %1688 = vst.msk [vmem:[%s3094_s3 + $0xf8] sm:$0xff] %vm1656_vm3, %v1651_v55  ;;  %v1575_v14 = vmax.f32 %v3196_v46, %v1539_v59  ;;  %v1540_v15 = vmax.f32 %v2151_v28, %v2191_v38  ;;  %v1099_v26 = vpop.f32.mrb[71].mxu0  ;;  %v1457_v41 = vpop.f32.mrb[71].mxu1 }
 0x169   :  { %1686 = vst.msk [vmem:[%s3094_s3 + $0xe8] sm:$0xff] %vm1656_vm3, %v1649_v12  ;;  %v1573_v27 = vmax.f32 %v3199_v42, %v1537_v25  ;;  %v1538_v44 = vmax.f32 %v1099_v26, %v1457_v41 }
 0x16a   :  { %v1618_v45 = vadd.f32 %v2801_v6, %v1575_v14  ;;  %v1576_v19 = vmax.f32 %v3202_v2, %v1540_v15 }
 0x16b   :  { %v1616_v4 = vadd.f32 %v2801_v6, %v1573_v27  ;;  %v1574_v7 = vmax.f32 %v3205_v48, %v1538_v44 }
 0x16c   :  { %v1654_v8 = vmax.f32 %v1618_v45, 0.0  ;;  %v1619_v40 = vadd.f32 %v2801_v6, %v1576_v19 }
 0x16d   :  { %v1652_v17 = vmax.f32 %v1616_v4, 0.0  ;;  %v1617_v18 = vadd.f32 %v2801_v6, %v1574_v7 }
 0x16e   :  { %1691 = vst.msk [vmem:[%s3094_s3 + $0x110] sm:$0xff] %vm1656_vm3, %v1654_v8  ;;  %v1655_v29 = vmax.f32 %v1619_v40, 0.0 }
 0x16f   :  { %1689 = vst.msk [vmem:[%s3094_s3 + $0x100] sm:$0xff] %vm1656_vm3, %v1652_v17  ;;  %v1653_v30 = vmax.f32 %v1617_v18, 0.0 }
 0x170   :  { %1692 = vst.msk [vmem:[%s3094_s3 + $0x118] sm:$0xff] %vm1656_vm3, %v1655_v29 }
 0x171   :  { %1690 = vst.msk [vmem:[%s3094_s3 + $0x108] sm:$0xff] %vm1656_vm3, %v1653_v30 }

// kernel: net_forward.6
= control target key start
LH: loop header
LB: loop body
LE: loop exit
PB: predicated region body
PF: predicated region fallthrough
CT: control target
= control target key end

     0   :  { %v10304_v0 = vmov 1   ;;  %v10305_v39 = vmov 0   ;;  %v132_v40 = vlaneseq  ;;  %vm686_vm1 = vcmask 130048   ;;  %s15906_s1 = inlined_call_operand.vmem [shape: f32[288,9], index: 1, kind: input, shape index: {}]   ;;  %s15907_s2 = inlined_call_operand.vmem [shape: bf16[144,16], index: 2, kind: input, shape index: {}]   ;;  %s15908_s0 = inlined_call_operand.vmem [shape: f32[288,16], index: 0, kind: input, shape index: {}]   ;;  %s15909_s4 = inlined_call_operand.vmem [shape: bf16[144,16], index: 4, kind: input, shape index: {}]   ;;  %s15910_s3 = inlined_call_operand.vmem [shape: f32[1,16], index: 3, kind: input, shape index: {}]   ;;  %s15911_s5 = inlined_call_operand.vmem [shape: f32[1,16], index: 5, kind: input, shape index: {}]   ;;  %s15912_s6 = inlined_call_operand.vmem [shape: f32[288,16], index: 6, kind: output, shape index: {}]  }
   0x1   :  { %10124 = vset.pattern.permute.xlu1 %v10304_v0  ;;  %10123 = vset.pattern.permute.xlu0 %v10304_v0  ;;  %v10351_v1 = vld [vmem:[%s15906_s1 + $0x10] sm:$0xff]  ;;  %v10356_v2 = vld [vmem:[%s15906_s1] sm:$0xff]  ;;  %v10363_v3 = vld [vmem:[%s15906_s1 + $0x18] sm:$0xff] }
   0x2   :  { %16522 = vst [vmem:[#allocation2_spill] sm:$0xff] %v10351_v1  ;;  %489 = vperm.xlu1 %10124, %v10351_v1   ;;  %481 = vperm.xlu0 %10123, %v10356_v2   ;;  %v10368_v4 = vld [vmem:[%s15906_s1 + $0x8] sm:$0xff]  ;;  %v10380_v6 = vld [vmem:[%s15906_s1 + $0x20] sm:$0xff]  ;;  %v10387_v7 = vld [vmem:[%s15906_s1 + $0x38] sm:$0xff]  ;;  %v10609_v43 = vshrl.u32 %v132_v40, 7 }
   0x3   :  { %16523 = vst [vmem:[#allocation3_spill] sm:$0xff] %v10368_v4  ;;  %v10375_v5 = vld [vmem:[%s15906_s1 + $0x28] sm:$0xff]  ;;  %16524 = vst [vmem:[#allocation4_spill] sm:$0xff] %v10380_v6  ;;  %v10392_v8 = vld [vmem:[%s15906_s1 + $0x30] sm:$0xff] }
   0x4   :  { %16525 = vst [vmem:[#allocation5_spill] sm:$0xff] %v10392_v8  ;;  %v10141_v9 = vld [vmem:[%s15907_s2 + $0x8] sm:$0xff]   ;;  %v10407_v11 = vld [vmem:[%s15906_s1 + $0x40] sm:$0xff]  ;;  %v10414_v12 = vld [vmem:[%s15906_s1 + $0x58] sm:$0xff]  ;;  %vm443_vm0 = vcmp.lt.s32.totalorder %v10609_v43, 4  ;;  %vm134_vm2 = vcmp.lt.s32.totalorder %v10609_v43, 5 }
   0x5   :  { %v10402_v10 = vld [vmem:[%s15906_s1 + $0x48] sm:$0xff]  ;;  %16526 = vst [vmem:[#allocation6_spill] sm:$0xff] %v10407_v11  ;;  %8854 = vmatprep.subr.bf16.mxu0 %v10141_v9  ;;  %v10419_v13 = vld [vmem:[%s15906_s1 + $0x50] sm:$0xff]  ;;  %v10431_v15 = vld [vmem:[%s15906_s1 + $0x60] sm:$0xff]  ;;  %vm1191_vm3 = vcmp.lt.s32.totalorder %v10609_v43, 3  ;;  %vm1737_vm4 = vcmp.lt.s32.totalorder %v10609_v43, 1 }
   0x6   :  { %493 = vperm.xlu1 %10124, %v10363_v3   ;;  %485 = vperm.xlu0 %10123, %v10368_v4   ;;  %16527 = vst [vmem:[#allocation7_spill] sm:$0xff] %v10419_v13  ;;  %v10426_v14 = vld [vmem:[%s15906_s1 + $0x68] sm:$0xff]  ;;  %16528 = vst [vmem:[#allocation8_spill] sm:$0xff] %v10431_v15  ;;  %v10438_v16 = vld [vmem:[%s15906_s1 + $0x78] sm:$0xff]  ;;  %vm2756_vm5 = vcmp.lt.s32.totalorder %v10609_v43, 7 }
   0x7   :  { %8855 = vmatpush3.bf16.msra.mxu0 %v10141_v9  ;;  %v10443_v17 = vld [vmem:[%s15906_s1 + $0x70] sm:$0xff]  ;;  %v10450_v18 = vld [vmem:[%s15906_s1 + $0x88] sm:$0xff]  ;;  %v10455_v19 = vld [vmem:[%s15906_s1 + $0x80] sm:$0xff] }
   0x8   :  { %16529 = vst [vmem:[#allocation9_spill] sm:$0xff] %v10443_v17  ;;  %v10460_v20 = vld [vmem:[%s15907_s2] sm:$0xff]   ;;  %v10467_v21 = vld [vmem:[%s15906_s1 + $0x98] sm:$0xff]  ;;  %v10472_v22 = vld [vmem:[%s15906_s1 + $0x90] sm:$0xff] }
   0x9   :  { %8892 = vmatprep.subr.bf16.mxu0 %v10460_v20  ;;  %v10480_v23 = vld [vmem:[%s15906_s1 + $0xa8] sm:$0xff]  ;;  %v10485_v24 = vld [vmem:[%s15906_s1 + $0xa0] sm:$0xff]  ;;  %v10492_v25 = vld [vmem:[%s15906_s1 + $0xb8] sm:$0xff] }
   0xa   :  { %501 = vperm.xlu1 %10124, %v10375_v5   ;;  %497 = vperm.xlu0 %10123, %v10380_v6   ;;  %v10497_v26 = vld [vmem:[%s15906_s1 + $0xb0] sm:$0xff]  ;;  %v10504_v27 = vld [vmem:[%s15906_s1 + $0xc8] sm:$0xff]  ;;  %v10509_v28 = vld [vmem:[%s15906_s1 + $0xc0] sm:$0xff] }
   0xb   :  { %v10516_v29 = vld [vmem:[%s15906_s1 + $0xd8] sm:$0xff]  ;;  %v10521_v30 = vld [vmem:[%s15906_s1 + $0xd0] sm:$0xff]  ;;  %v10528_v31 = vld [vmem:[%s15906_s1 + $0xe8] sm:$0xff] }
   0xc   :  { %v10533_v32 = vld [vmem:[%s15906_s1 + $0xe0] sm:$0xff]  ;;  %v10540_v33 = vld [vmem:[%s15906_s1 + $0xf8] sm:$0xff]  ;;  %v10545_v34 = vld [vmem:[%s15906_s1 + $0xf0] sm:$0xff] }
   0xd   :  { %v10552_v35 = vld [vmem:[%s15906_s1 + $0x108] sm:$0xff]  ;;  %v10557_v36 = vld [vmem:[%s15906_s1 + $0x100] sm:$0xff]  ;;  %v10564_v37 = vld [vmem:[%s15906_s1 + $0x118] sm:$0xff] }
   0xe   :  { %509 = vperm.xlu1 %10124, %v10387_v7   ;;  %505 = vperm.xlu0 %10123, %v10392_v8   ;;  %16530 = vst [vmem:[#allocation10_spill] sm:$0xff] %v10552_v35  ;;  %16531 = vst [vmem:[#allocation11_spill] sm:$0xff] %v10564_v37  ;;  %v10569_v38 = vld [vmem:[%s15906_s1 + $0x110] sm:$0xff]  ;;  %v10605_v42 = vld [vmem:[%s15908_s0 + $0x118] sm:$0xff] }
   0xf   :  { %v10600_v41 = vld [vmem:[%s15908_s0 + $0x110] sm:$0xff]  ;;  %v10614_v44 = vld [vmem:[%s15908_s0] sm:$0xff]  ;;  %v10619_v45 = vld [vmem:[%s15908_s0 + $0x8] sm:$0xff]  ;;  %v442_v48 = vrot.slane %v10605_v42, 4 }
  0x10   :  { %v10624_v46 = vld [vmem:[%s15908_s0 + $0x10] sm:$0xff]  ;;  %v15913_v47 = vrot.slane %v10600_v41, 4  ;;  %v407_v49 = vrot.slane %v10614_v44, 4  ;;  %v408_v50 = vrot.slane %v10619_v45, 4  ;;  %v10637_v52 = vld [vmem:[%s15908_s0 + $0x18] sm:$0xff]  ;;  %v10642_v53 = vld [vmem:[%s15908_s0 + $0x20] sm:$0xff] }
  0x11   :  { %v409_v51 = vrot.slane %v10624_v46, 4  ;;  %v410_v59 = vrot.slane %v10637_v52, 4  ;;  %v411_v60 = vrot.slane %v10642_v53, 4  ;;  %v10675_v63 = vld [vmem:[%s15908_s0 + $0x28] sm:$0xff]  ;;  %v10680_v0 = vld [vmem:[%s15908_s0 + $0x30] sm:$0xff] }
  0x12   :  { %517 = vperm.xlu1 %10124, %v10402_v10   ;;  %513 = vperm.xlu0 %10123, %v10407_v11   ;;  %v10652_v56 = vsel %vm443_vm0, %v15913_v47, %v442_v48  ;;  %v10656_v57 = vsel %vm443_vm0, %v407_v49, %v408_v50  ;;  %v10668_v61 = vsel %vm443_vm0, %v442_v48, %v407_v49 }
  0x13   :  { %16534 = vst [vmem:[#allocation14_spill] sm:$0xff] %v10652_v56  ;;  %16535 = vst [vmem:[#allocation15_spill] sm:$0xff] %v10656_v57  ;;  %v10662_v58 = vsel %vm443_vm0, %v408_v50, %v409_v51  ;;  %v10696_v50 = vsel %vm443_vm0, %v410_v59, %v411_v60  ;;  %v10700_v47 = vsel %vm443_vm0, %v409_v51, %v410_v59 }
  0x14   :  { %16536 = vst [vmem:[#allocation16_spill] sm:$0xff] %v10662_v58  ;;  %16537 = vst [vmem:[#allocation17_spill] sm:$0xff] %v10668_v61 }
  0x15   :  { %16540 = vst [vmem:[#allocation20_spill] sm:$0xff] %v10696_v50  ;;  %16541 = vst [vmem:[#allocation21_spill] sm:$0xff] %v10700_v47 }
  0x16   :  { %525 = vperm.xlu1 %10124, %v10414_v12   ;;  %521 = vperm.xlu0 %10123, %v10419_v13  }
  0x1a   :  { %533 = vperm.xlu1 %10124, %v10426_v14   ;;  %529 = vperm.xlu0 %10123, %v10431_v15  }
  0x1e   :  { %541 = vperm.xlu1 %10124, %v10438_v16   ;;  %537 = vperm.xlu0 %10123, %v10443_v17  }
  0x22   :  { %549 = vperm.xlu1 %10124, %v10450_v18   ;;  %545 = vperm.xlu0 %10123, %v10455_v19  }
  0x26   :  { %557 = vperm.xlu1 %10124, %v10467_v21   ;;  %553 = vperm.xlu0 %10123, %v10472_v22  }
  0x2a   :  { %565 = vperm.xlu1 %10124, %v10480_v23   ;;  %561 = vperm.xlu0 %10123, %v10485_v24  }
  0x2e   :  { %573 = vperm.xlu1 %10124, %v10492_v25   ;;  %569 = vperm.xlu0 %10123, %v10497_v26  }
  0x32   :  { %581 = vperm.xlu1 %10124, %v10504_v27   ;;  %577 = vperm.xlu0 %10123, %v10509_v28  }
  0x36   :  { %589 = vperm.xlu1 %10124, %v10516_v29   ;;  %585 = vperm.xlu0 %10123, %v10521_v30  }
  0x3a   :  { %597 = vperm.xlu1 %10124, %v10528_v31   ;;  %593 = vperm.xlu0 %10123, %v10533_v32  }
  0x3e   :  { %605 = vperm.xlu1 %10124, %v10540_v33   ;;  %601 = vperm.xlu0 %10123, %v10545_v34  }
  0x42   :  { %613 = vperm.xlu1 %10124, %v10552_v35   ;;  %609 = vperm.xlu0 %10123, %v10557_v36  }
  0x46   :  { %621 = vperm.xlu1 %10124, %v10564_v37   ;;  %617 = vperm.xlu0 %10123, %v10569_v38  }
  0x4a   :  { %10126 = vset.pattern.permute.xlu1 %v10305_v39  ;;  %10125 = vset.pattern.permute.xlu0 %v10305_v39 }
  0x4b   :  { %178 = vperm.xlu1 %10126, %v10368_v4   ;;  %173 = vperm.xlu0 %10125, %v10356_v2  }
  0x4f   :  { %183 = vperm.xlu1 %10126, %v10351_v1   ;;  %188 = vperm.xlu0 %10125, %v10363_v3  }
  0x53   :  { %193 = vperm.xlu1 %10126, %v10380_v6   ;;  %198 = vperm.xlu0 %10125, %v10375_v5  }
  0x57   :  { %203 = vperm.xlu1 %10126, %v10392_v8   ;;  %208 = vperm.xlu0 %10125, %v10387_v7  }
  0x5b   :  { %213 = vperm.xlu1 %10126, %v10407_v11   ;;  %218 = vperm.xlu0 %10125, %v10402_v10  }
  0x5f   :  { %223 = vperm.xlu1 %10126, %v10419_v13   ;;  %228 = vperm.xlu0 %10125, %v10414_v12  }
  0x63   :  { %233 = vperm.xlu1 %10126, %v10431_v15   ;;  %238 = vperm.xlu0 %10125, %v10426_v14  }
  0x67   :  { %243 = vperm.xlu1 %10126, %v10443_v17   ;;  %248 = vperm.xlu0 %10125, %v10438_v16  }
  0x6b   :  { %253 = vperm.xlu1 %10126, %v10455_v19   ;;  %258 = vperm.xlu0 %10125, %v10450_v18  }
  0x6f   :  { %263 = vperm.xlu1 %10126, %v10472_v22   ;;  %268 = vperm.xlu0 %10125, %v10467_v21  }
  0x73   :  { %273 = vperm.xlu1 %10126, %v10485_v24   ;;  %278 = vperm.xlu0 %10125, %v10480_v23  }
  0x77   :  { %283 = vperm.xlu1 %10126, %v10497_v26   ;;  %288 = vperm.xlu0 %10125, %v10492_v25  }
  0x7b   :  { %293 = vperm.xlu1 %10126, %v10509_v28   ;;  %298 = vperm.xlu0 %10125, %v10504_v27  }
  0x7f   :  { %303 = vperm.xlu1 %10126, %v10521_v30   ;;  %308 = vperm.xlu0 %10125, %v10516_v29  }
  0x81   :  { %v10644_v54 = vpop.permute.xlu1 %489  ;;  %v10646_v55 = vpop.permute.xlu0 %481 }
  0x82   :  { %16532 = vst [vmem:[#allocation12_spill] sm:$0xff] %v10644_v54  ;;  %16533 = vst [vmem:[#allocation13_spill] sm:$0xff] %v10646_v55  ;;  %v624_v62 = vmul.f32 %v10646_v55, %v10652_v56  ;;  %v626_v40 = vmul.f32 %v10644_v54, %v10656_v57  ;;  %v412_v55 = vrot.slane %v10675_v63, 4 }
  0x83   :  { %313 = vperm.xlu1 %10126, %v10533_v32   ;;  %318 = vperm.xlu0 %10125, %v10528_v31  }
  0x85   :  { %v10682_v9 = vpop.permute.xlu1 %493  ;;  %v10684_v39 = vpop.permute.xlu0 %485 }
  0x86   :  { %16538 = vst [vmem:[#allocation18_spill] sm:$0xff] %v10682_v9  ;;  %16539 = vst [vmem:[#allocation19_spill] sm:$0xff] %v10684_v39  ;;  %v627_v48 = vmul.f32 %v10682_v9, %v10662_v58  ;;  %v625_v49 = vmul.f32 %v10684_v39, %v10668_v61  ;;  %v413_v9 = vrot.slane %v10680_v0, 4  ;;  %v10707_v39 = vld [vmem:[%s15908_s0 + $0x38] sm:$0xff]  ;;  %v10712_v61 = vld [vmem:[%s15908_s0 + $0x40] sm:$0xff] }
  0x87   :  { %323 = vperm.xlu1 %10126, %v10545_v34   ;;  %328 = vperm.xlu0 %10125, %v10540_v33  }
  0x88   :  { %v661_v54 = vpack.c.bf16 %v627_v48, %v626_v40  ;;  %v660_v57 = vpack.c.bf16 %v625_v49, %v624_v62  ;;  %v10726_v40 = vld [vmem:[%s15907_s2 + $0x10] sm:$0xff]   ;;  %v10732_v48 = vsel %vm443_vm0, %v412_v55, %v413_v9  ;;  %v10736_v49 = vsel %vm443_vm0, %v411_v60, %v412_v55 }
  0x89   :  { %v10714_v56 = vpop.permute.xlu1 %501  ;;  %v10716_v51 = vpop.permute.xlu0 %497  ;;  %16544 = vst [vmem:[#allocation24_spill] sm:$0xff] %v10726_v40  ;;  %16545 = vst [vmem:[#allocation25_spill] sm:$0xff] %v10732_v48 }
  0x8a   :  { %16542 = vst [vmem:[#allocation22_spill] sm:$0xff] %v10714_v56  ;;  %16543 = vst [vmem:[#allocation23_spill] sm:$0xff] %v10716_v51  ;;  %v629_v59 = vmul.f32 %v10714_v56, %v10696_v50  ;;  %v628_v62 = vmul.f32 %v10716_v51, %v10700_v47  ;;  %8856 = vmatprep.mubr.msk.bf16.mxu0 %vm686_vm1, %v660_v57  ;;  %v414_v51 = vrot.slane %v10707_v39, 4  ;;  %v415_v57 = vrot.slane %v10712_v61, 4  ;;  %v10744_v50 = vld [vmem:[%s15908_s0 + $0x48] sm:$0xff]  ;;  %v10749_v47 = vld [vmem:[%s15908_s0 + $0x50] sm:$0xff] }
  0x8b   :  { %333 = vperm.xlu1 %10126, %v10557_v36   ;;  %338 = vperm.xlu0 %10125, %v10552_v35   ;;  %16546 = vst [vmem:[#allocation26_spill] sm:$0xff] %v10736_v49  ;;  %16547 = vst [vmem:[#allocation27_spill] sm:$0xff] %v10744_v50 }
  0x8c   :  { %v662_v56 = vpack.c.bf16 %v629_v59, %v628_v62  ;;  %8857 = vmatmul.mubr.msk.bf16.vlgmr.msra.gmra.mrb[0].mxu0 %vm686_vm1, %v661_v54  ;;  %16548 = vst [vmem:[#allocation28_spill] sm:$0xff] %v10749_v47  ;;  %v10766_v59 = vsel %vm443_vm0, %v414_v51, %v415_v57  ;;  %v416_v62 = vrot.slane %v10744_v50, 4 }
  0x8d   :  { %v10751_v58 = vpop.permute.xlu1 %509  ;;  %v10753_v55 = vpop.permute.xlu0 %505  ;;  %8893 = vmatpush3.bf16.msra.mxu0 %v10460_v20  ;;  %16551 = vst [vmem:[#allocation31_spill] sm:$0xff] %v10766_v59  ;;  %v10770_v20 = vsel %vm443_vm0, %v413_v9, %v414_v51 }
  0x8e   :  { %16549 = vst [vmem:[#allocation29_spill] sm:$0xff] %v10751_v58  ;;  %16550 = vst [vmem:[#allocation30_spill] sm:$0xff] %v10753_v55  ;;  %v631_v60 = vmul.f32 %v10751_v58, %v10732_v48  ;;  %v630_v54 = vmul.f32 %v10753_v55, %v10736_v49  ;;  %8860 = vmatprep.mubr.msk.bf16.mxu0 %vm686_vm1, %v662_v56  ;;  %8930 = vmatprep.subr.bf16.mxu0 %v10726_v40  ;;  %v417_v58 = vrot.slane %v10749_v47, 4  ;;  %v10777_v56 = vld [vmem:[%s15908_s0 + $0x58] sm:$0xff]  ;;  %v10782_v48 = vld [vmem:[%s15908_s0 + $0x60] sm:$0xff] }
  0x8f   :  { %343 = vperm.xlu1 %10126, %v10569_v38   ;;  %348 = vperm.xlu0 %10125, %v10564_v37   ;;  %16552 = vst [vmem:[#allocation32_spill] sm:$0xff] %v10770_v20  ;;  %v10798_v47 = vsel %vm443_vm0, %v415_v57, %v416_v62  ;;  %v418_v50 = vrot.slane %v10777_v56, 4  ;;  %v419_v35 = vrot.slane %v10782_v48, 4 }
  0x90   :  { %v663_v55 = vpack.c.bf16 %v631_v60, %v630_v54  ;;  %v10306_v60 = vmov 2   ;;  %v10794_v54 = vsel %vm443_vm0, %v416_v62, %v417_v58  ;;  %16556 = vst [vmem:[#allocation36_spill] sm:$0xff] %v10798_v47 }
  0x91   :  { %v10784_v49 = vpop.permute.xlu1 %517  ;;  %v10786_v37 = vpop.permute.xlu0 %513  ;;  %16555 = vst [vmem:[#allocation35_spill] sm:$0xff] %v10794_v54 }
  0x92   :  { %16553 = vst [vmem:[#allocation33_spill] sm:$0xff] %v10784_v49  ;;  %16554 = vst [vmem:[#allocation34_spill] sm:$0xff] %v10786_v37  ;;  %v633_v9 = vmul.f32 %v10784_v49, %v10766_v59  ;;  %v632_v51 = vmul.f32 %v10786_v37, %v10770_v20  ;;  %v10812_v37 = vld [vmem:[%s15908_s0 + $0x70] sm:$0xff]  ;;  %v10830_v49 = vsel %vm443_vm0, %v417_v58, %v418_v50 }
  0x93   :  { %10127 = vset.pattern.permute.xlu1 %v10306_v60  ;;  %10128 = vset.pattern.permute.xlu0 %v10306_v60  ;;  %v10807_v60 = vld [vmem:[%s15908_s0 + $0x68] sm:$0xff]  ;;  %16560 = vst [vmem:[#allocation40_spill] sm:$0xff] %v10830_v49  ;;  %v421_v20 = vrot.slane %v10812_v37, 4 }
  0x94   :  { %v664_v40 = vpack.c.bf16 %v633_v9, %v632_v51  ;;  %8861 = vmatmul.mubr.msk.bf16.gmra.mrb[4].mxu0 %vm686_vm1, %v663_v55  ;;  %1229 = vperm.xlu1 %10127, %v10356_v2   ;;  %v10826_v51 = vsel %vm443_vm0, %v418_v50, %v419_v35  ;;  %v420_v59 = vrot.slane %v10807_v60, 4 }
  0x95   :  { %1233 = vperm.xlu0 %10128, %v10368_v4   ;;  %v10815_v57 = vpop.permute.xlu1 %525  ;;  %v10817_v62 = vpop.permute.xlu0 %521  ;;  %16559 = vst [vmem:[#allocation39_spill] sm:$0xff] %v10826_v51 }
  0x96   :  { %16557 = vst [vmem:[#allocation37_spill] sm:$0xff] %v10815_v57  ;;  %16558 = vst [vmem:[#allocation38_spill] sm:$0xff] %v10817_v62  ;;  %v635_v55 = vmul.f32 %v10815_v57, %v10794_v54  ;;  %v634_v9 = vmul.f32 %v10817_v62, %v10798_v47  ;;  %8864 = vmatprep.mubr.msk.bf16.mxu0 %vm686_vm1, %v664_v40  ;;  %v10838_v57 = vld [vmem:[%s15908_s0 + $0x78] sm:$0xff]  ;;  %v10843_v40 = vld [vmem:[%s15908_s0 + $0x80] sm:$0xff]  ;;  %v10856_v62 = vsel %vm443_vm0, %v420_v59, %v421_v20 }
  0x97   :  { %16561 = vst [vmem:[#allocation41_spill] sm:$0xff] %v10843_v40  ;;  %16564 = vst [vmem:[#allocation44_spill] sm:$0xff] %v10856_v62  ;;  %v10860_v54 = vsel %vm443_vm0, %v419_v35, %v420_v59  ;;  %v422_v47 = vrot.slane %v10838_v57, 4 }
  0x98   :  { %v665_v4 = vpack.c.bf16 %v635_v55, %v634_v9  ;;  %1237 = vperm.xlu1 %10127, %v10351_v1   ;;  %16565 = vst [vmem:[#allocation45_spill] sm:$0xff] %v10860_v54 }
  0x99   :  { %1245 = vperm.xlu0 %10128, %v10380_v6   ;;  %v10846_v58 = vpop.permute.xlu1 %533  ;;  %v10848_v50 = vpop.permute.xlu0 %529  ;;  %v423_v6 = vrot.slane %v10843_v40, 4 }
  0x9a   :  { %16562 = vst [vmem:[#allocation42_spill] sm:$0xff] %v10846_v58  ;;  %16563 = vst [vmem:[#allocation43_spill] sm:$0xff] %v10848_v50  ;;  %v637_v55 = vmul.f32 %v10846_v58, %v10826_v51  ;;  %v636_v9 = vmul.f32 %v10848_v50, %v10830_v49  ;;  %v10869_v50 = vld [vmem:[%s15908_s0 + $0x88] sm:$0xff]  ;;  %v10874_v58 = vld [vmem:[%s15908_s0 + $0x90] sm:$0xff]  ;;  %v10892_v51 = vsel %vm443_vm0, %v421_v20, %v422_v47 }
  0x9b   :  { %16566 = vst [vmem:[#allocation46_spill] sm:$0xff] %v10874_v58  ;;  %16570 = vst [vmem:[#allocation50_spill] sm:$0xff] %v10892_v51  ;;  %v424_v49 = vrot.slane %v10869_v50, 4 }
  0x9c   :  { %v666_v1 = vpack.c.bf16 %v637_v55, %v636_v9  ;;  %8865 = vmatmul.mubr.msk.bf16.gmra.mrb[8].mxu0 %vm686_vm1, %v665_v4  ;;  %1241 = vperm.xlu1 %10127, %v10363_v3   ;;  %v10888_v9 = vsel %vm443_vm0, %v422_v47, %v423_v6 }
  0x9d   :  { %1253 = vperm.xlu0 %10128, %v10392_v8   ;;  %v10877_v35 = vpop.permute.xlu1 %541  ;;  %v10879_v59 = vpop.permute.xlu0 %537  ;;  %16569 = vst [vmem:[#allocation49_spill] sm:$0xff] %v10888_v9  ;;  %v425_v8 = vrot.slane %v10874_v58, 4 }
  0x9e   :  { %16567 = vst [vmem:[#allocation47_spill] sm:$0xff] %v10877_v35  ;;  %16568 = vst [vmem:[#allocation48_spill] sm:$0xff] %v10879_v59  ;;  %v639_v4 = vmul.f32 %v10877_v35, %v10856_v62  ;;  %v638_v55 = vmul.f32 %v10879_v59, %v10860_v54  ;;  %8868 = vmatprep.mubr.msk.bf16.mxu0 %vm686_vm1, %v666_v1  ;;  %v10900_v35 = vld [vmem:[%s15908_s0 + $0x98] sm:$0xff]  ;;  %v10905_v1 = vld [vmem:[%s15908_s0 + $0xa0] sm:$0xff]  ;;  %v10922_v62 = vsel %vm443_vm0, %v423_v6, %v424_v49 }
  0x9f   :  { %16571 = vst [vmem:[#allocation51_spill] sm:$0xff] %v10905_v1  ;;  %v10918_v59 = vsel %vm443_vm0, %v424_v49, %v425_v8  ;;  %16575 = vst [vmem:[#allocation55_spill] sm:$0xff] %v10922_v62  ;;  %v426_v54 = vrot.slane %v10900_v35, 4 }
  0xa0   :  { %v667_v40 = vpack.c.bf16 %v639_v4, %v638_v55  ;;  %1249 = vperm.xlu1 %10127, %v10375_v5   ;;  %16574 = vst [vmem:[#allocation54_spill] sm:$0xff] %v10918_v59 }
  0xa1   :  { %1261 = vperm.xlu0 %10128, %v10407_v11   ;;  %v10908_v47 = vpop.permute.xlu1 %549  ;;  %v10910_v20 = vpop.permute.xlu0 %545  ;;  %v427_v11 = vrot.slane %v10905_v1, 4 }
  0xa2   :  { %16572 = vst [vmem:[#allocation52_spill] sm:$0xff] %v10908_v47  ;;  %16573 = vst [vmem:[#allocation53_spill] sm:$0xff] %v10910_v20  ;;  %v641_v4 = vmul.f32 %v10908_v47, %v10888_v9  ;;  %v640_v55 = vmul.f32 %v10910_v20, %v10892_v51  ;;  %v10931_v20 = vld [vmem:[%s15908_s0 + $0xa8] sm:$0xff]  ;;  %v10936_v47 = vld [vmem:[%s15908_s0 + $0xb0] sm:$0xff]  ;;  %v10954_v9 = vsel %vm443_vm0, %v425_v8, %v426_v54 }
  0xa3   :  { %16576 = vst [vmem:[#allocation56_spill] sm:$0xff] %v10936_v47  ;;  %16580 = vst [vmem:[#allocation60_spill] sm:$0xff] %v10954_v9  ;;  %v428_v51 = vrot.slane %v10931_v20, 4 }
  0xa4   :  { %v668_v58 = vpack.c.bf16 %v641_v4, %v640_v55  ;;  %8869 = vmatmul.mubr.msk.bf16.gmra.mrb[12].mxu0 %vm686_vm1, %v667_v40  ;;  %1257 = vperm.xlu1 %10127, %v10387_v7   ;;  %v10950_v55 = vsel %vm443_vm0, %v426_v54, %v427_v11 }
  0xa5   :  { %1269 = vperm.xlu0 %10128, %v10419_v13   ;;  %v10939_v6 = vpop.permute.xlu1 %557  ;;  %v10941_v49 = vpop.permute.xlu0 %553  ;;  %16579 = vst [vmem:[#allocation59_spill] sm:$0xff] %v10950_v55  ;;  %v429_v13 = vrot.slane %v10936_v47, 4 }
  0xa6   :  { %16577 = vst [vmem:[#allocation57_spill] sm:$0xff] %v10939_v6  ;;  %16578 = vst [vmem:[#allocation58_spill] sm:$0xff] %v10941_v49  ;;  %v643_v40 = vmul.f32 %v10939_v6, %v10918_v59  ;;  %v642_v4 = vmul.f32 %v10941_v49, %v10922_v62  ;;  %8872 = vmatprep.mubr.msk.bf16.mxu0 %vm686_vm1, %v668_v58  ;;  %v10962_v6 = vld [vmem:[%s15908_s0 + $0xb8] sm:$0xff]  ;;  %v10967_v58 = vld [vmem:[%s15908_s0 + $0xc0] sm:$0xff]  ;;  %v10984_v59 = vsel %vm443_vm0, %v427_v11, %v428_v51 }
  0xa7   :  { %16581 = vst [vmem:[#allocation61_spill] sm:$0xff] %v10967_v58  ;;  %v10980_v49 = vsel %vm443_vm0, %v428_v51, %v429_v13  ;;  %16585 = vst [vmem:[#allocation65_spill] sm:$0xff] %v10984_v59  ;;  %v430_v62 = vrot.slane %v10962_v6, 4 }
  0xa8   :  { %v669_v1 = vpack.c.bf16 %v643_v40, %v642_v4  ;;  %1265 = vperm.xlu1 %10127, %v10402_v10   ;;  %16584 = vst [vmem:[#allocation64_spill] sm:$0xff] %v10980_v49 }
  0xa9   :  { %1277 = vperm.xlu0 %10128, %v10431_v15   ;;  %v10970_v8 = vpop.permute.xlu1 %565  ;;  %v10972_v54 = vpop.permute.xlu0 %561  ;;  %v431_v15 = vrot.slane %v10967_v58, 4 }
  0xaa   :  { %16582 = vst [vmem:[#allocation62_spill] sm:$0xff] %v10970_v8  ;;  %16583 = vst [vmem:[#allocation63_spill] sm:$0xff] %v10972_v54  ;;  %v645_v40 = vmul.f32 %v10970_v8, %v10950_v55  ;;  %v644_v4 = vmul.f32 %v10972_v54, %v10954_v9  ;;  %v10993_v54 = vld [vmem:[%s15908_s0 + $0xc8] sm:$0xff]  ;;  %v10998_v8 = vld [vmem:[%s15908_s0 + $0xd0] sm:$0xff]  ;;  %v11016_v55 = vsel %vm443_vm0, %v429_v13, %v430_v62 }
  0xab   :  { %16586 = vst [vmem:[#allocation66_spill] sm:$0xff] %v10998_v8  ;;  %16590 = vst [vmem:[#allocation70_spill] sm:$0xff] %v11016_v55  ;;  %v432_v9 = vrot.slane %v10993_v54, 4 }
  0xac   :  { %v670_v47 = vpack.c.bf16 %v645_v40, %v644_v4  ;;  %8873 = vmatmul.mubr.msk.bf16.gmra.mrb[16].mxu0 %vm686_vm1, %v669_v1  ;;  %1273 = vperm.xlu1 %10127, %v10414_v12   ;;  %v11012_v4 = vsel %vm443_vm0, %v430_v62, %v431_v15 }
  0xad   :  { %1285 = vperm.xlu0 %10128, %v10443_v17   ;;  %v11001_v11 = vpop.permute.xlu1 %573  ;;  %v11003_v51 = vpop.permute.xlu0 %569  ;;  %16589 = vst [vmem:[#allocation69_spill] sm:$0xff] %v11012_v4  ;;  %v433_v17 = vrot.slane %v10998_v8, 4 }
  0xae   :  { %16587 = vst [vmem:[#allocation67_spill] sm:$0xff] %v11001_v11  ;;  %16588 = vst [vmem:[#allocation68_spill] sm:$0xff] %v11003_v51  ;;  %v647_v1 = vmul.f32 %v11001_v11, %v10980_v49  ;;  %v646_v40 = vmul.f32 %v11003_v51, %v10984_v59  ;;  %8876 = vmatprep.mubr.msk.bf16.mxu0 %vm686_vm1, %v670_v47  ;;  %v11024_v11 = vld [vmem:[%s15908_s0 + $0xd8] sm:$0xff]  ;;  %v11029_v47 = vld [vmem:[%s15908_s0 + $0xe0] sm:$0xff]  ;;  %v11046_v49 = vsel %vm443_vm0, %v431_v15, %v432_v9 }
  0xaf   :  { %16591 = vst [vmem:[#allocation71_spill] sm:$0xff] %v11029_v47  ;;  %v11042_v51 = vsel %vm443_vm0, %v432_v9, %v433_v17  ;;  %16595 = vst [vmem:[#allocation75_spill] sm:$0xff] %v11046_v49  ;;  %v435_v59 = vrot.slane %v11029_v47, 4 }
  0xb0   :  { %v671_v58 = vpack.c.bf16 %v647_v1, %v646_v40  ;;  %1281 = vperm.xlu1 %10127, %v10426_v14   ;;  %16594 = vst [vmem:[#allocation74_spill] sm:$0xff] %v11042_v51 }
  0xb1   :  { %1293 = vperm.xlu0 %10128, %v10455_v19   ;;  %v11032_v13 = vpop.permute.xlu1 %581  ;;  %v11034_v62 = vpop.permute.xlu0 %577  ;;  %v434_v19 = vrot.slane %v11024_v11, 4 }
  0xb2   :  { %16592 = vst [vmem:[#allocation72_spill] sm:$0xff] %v11032_v13  ;;  %16593 = vst [vmem:[#allocation73_spill] sm:$0xff] %v11034_v62  ;;  %v649_v1 = vmul.f32 %v11032_v13, %v11012_v4  ;;  %v648_v40 = vmul.f32 %v11034_v62, %v11016_v55  ;;  %v11055_v62 = vld [vmem:[%s15908_s0 + $0xe8] sm:$0xff]  ;;  %v11060_v13 = vld [vmem:[%s15908_s0 + $0xf0] sm:$0xff] }
  0xb3   :  { %16596 = vst [vmem:[#allocation76_spill] sm:$0xff] %v11060_v13  ;;  %v11078_v4 = vsel %vm443_vm0, %v433_v17, %v434_v19  ;;  %v437_v55 = vrot.slane %v11060_v13, 4 }
  0xb4   :  { %v672_v8 = vpack.c.bf16 %v649_v1, %v648_v40  ;;  %8877 = vmatmul.mubr.msk.bf16.gmra.mrb[20].mxu0 %vm686_vm1, %v671_v58  ;;  %1289 = vperm.xlu1 %10127, %v10438_v16   ;;  %v11074_v40 = vsel %vm443_vm0, %v434_v19, %v435_v59  ;;  %16600 = vst [vmem:[#allocation80_spill] sm:$0xff] %v11078_v4 }
  0xb5   :  { %1301 = vperm.xlu0 %10128, %v10472_v22   ;;  %v11063_v15 = vpop.permute.xlu1 %589  ;;  %v11065_v9 = vpop.permute.xlu0 %585  ;;  %16599 = vst [vmem:[#allocation79_spill] sm:$0xff] %v11074_v40  ;;  %v436_v22 = vrot.slane %v11055_v62, 4 }
  0xb6   :  { %16597 = vst [vmem:[#allocation77_spill] sm:$0xff] %v11063_v15  ;;  %16598 = vst [vmem:[#allocation78_spill] sm:$0xff] %v11065_v9  ;;  %v651_v58 = vmul.f32 %v11063_v15, %v11042_v51  ;;  %v650_v1 = vmul.f32 %v11065_v9, %v11046_v49  ;;  %8880 = vmatprep.mubr.msk.bf16.mxu0 %vm686_vm1, %v672_v8  ;;  %v11086_v15 = vld [vmem:[%s15908_s0 + $0xf8] sm:$0xff]  ;;  %v11091_v8 = vld [vmem:[%s15908_s0 + $0x100] sm:$0xff] }
  0xb7   :  { %v11104_v9 = vsel %vm443_vm0, %v436_v22, %v437_v55  ;;  %v11108_v51 = vsel %vm443_vm0, %v435_v59, %v436_v22  ;;  %v439_v49 = vrot.slane %v11091_v8, 4 }
  0xb8   :  { %v673_v47 = vpack.c.bf16 %v651_v58, %v650_v1  ;;  %1297 = vperm.xlu1 %10127, %v10450_v18   ;;  %16603 = vst [vmem:[#allocation83_spill] sm:$0xff] %v11104_v9  ;;  %16604 = vst [vmem:[#allocation84_spill] sm:$0xff] %v11108_v51 }
  0xb9   :  { %1309 = vperm.xlu0 %10128, %v10485_v24   ;;  %v11094_v17 = vpop.permute.xlu1 %597  ;;  %v11096_v19 = vpop.permute.xlu0 %593  ;;  %v438_v24 = vrot.slane %v11086_v15, 4 }
  0xba   :  { %16601 = vst [vmem:[#allocation81_spill] sm:$0xff] %v11094_v17  ;;  %16602 = vst [vmem:[#allocation82_spill] sm:$0xff] %v11096_v19  ;;  %v653_v58 = vmul.f32 %v11094_v17, %v11074_v40  ;;  %v652_v1 = vmul.f32 %v11096_v19, %v11078_v4  ;;  %v11117_v19 = vld [vmem:[%s15908_s0 + $0x108] sm:$0xff]  ;;  %v108_v4 = vrot.slane %v10782_v48, 3 }
  0xbc   :  { %v674_v13 = vpack.c.bf16 %v653_v58, %v652_v1  ;;  %8881 = vmatmul.mubr.msk.bf16.gmra.mrb[24].mxu0 %vm686_vm1, %v673_v47  ;;  %1305 = vperm.xlu1 %10127, %v10467_v21   ;;  %v11131_v47 = vsel %vm443_vm0, %v438_v24, %v439_v49  ;;  %v11135_v1 = vsel %vm443_vm0, %v437_v55, %v438_v24  ;;  %v16611_v55 = vrot.slane %v10600_v41, 4 }
  0xbd   :  { %1317 = vperm.xlu0 %10128, %v10497_v26   ;;  %v11120_v17 = vpop.permute.xlu1 %605  ;;  %v11122_v59 = vpop.permute.xlu0 %601  ;;  %16607 = vst [vmem:[#allocation87_spill] sm:$0xff] %v11131_v47  ;;  %16608 = vst [vmem:[#allocation88_spill] sm:$0xff] %v11135_v1  ;;  %v440_v26 = vrot.slane %v11117_v19, 4 }
  0xbe   :  { %16605 = vst [vmem:[#allocation85_spill] sm:$0xff] %v11120_v17  ;;  %16606 = vst [vmem:[#allocation86_spill] sm:$0xff] %v11122_v59  ;;  %v655_v22 = vmul.f32 %v11120_v17, %v11104_v9  ;;  %v654_v58 = vmul.f32 %v11122_v59, %v11108_v51  ;;  %8884 = vmatprep.mubr.msk.bf16.mxu0 %vm686_vm1, %v674_v13 }
  0xbf   :  { %v11152_v24 = vsel %vm443_vm0, %v440_v26, %v16611_v55 }
  0xc0   :  { %v675_v40 = vpack.c.bf16 %v655_v22, %v654_v58  ;;  %1313 = vperm.xlu1 %10127, %v10480_v23   ;;  %16612 = vst [vmem:[#allocation91_spill] sm:$0xff] %v11152_v24  ;;  %v11156_v22 = vsel %vm443_vm0, %v439_v49, %v440_v26  ;;  %v131_v58 = vrot.slane %v10605_v42, 3  ;;  %v97_v26 = vrot.slane %v10619_v45, 3 }
  0xc1   :  { %1325 = vperm.xlu0 %10128, %v10509_v28   ;;  %v11140_v17 = vpop.permute.xlu1 %613  ;;  %v11142_v59 = vpop.permute.xlu0 %609  ;;  %16613 = vst [vmem:[#allocation92_spill] sm:$0xff] %v11156_v22  ;;  %v96_v28 = vrot.slane %v10614_v44, 3 }
  0xc2   :  { %16609 = vst [vmem:[#allocation89_spill] sm:$0xff] %v11140_v17  ;;  %16610 = vst [vmem:[#allocation90_spill] sm:$0xff] %v11142_v59  ;;  %v657_v13 = vmul.f32 %v11140_v17, %v11131_v47  ;;  %v656_v9 = vmul.f32 %v11142_v59, %v11135_v1  ;;  %v16011_v59 = vrot.slane %v10600_v41, 3  ;;  %v16637_v47 = vld [vmem:[#allocation28_spill] sm:$0xff]  ;;  %v10307_v1 = vmov 3  }
  0xc4   :  { %v676_v51 = vpack.c.bf16 %v657_v13, %v656_v9  ;;  %8885 = vmatmul.mubr.msk.bf16.gmra.mrb[28].mxu0 %vm686_vm1, %v675_v40  ;;  %1321 = vperm.xlu1 %10127, %v10492_v25   ;;  %v11176_v25 = vsel %vm134_vm2, %v131_v58, %v96_v28  ;;  %v98_v13 = vrot.slane %v10624_v46, 3 }
  0xc5   :  { %1333 = vperm.xlu0 %10128, %v10521_v30   ;;  %v11165_v55 = vpop.permute.xlu1 %621  ;;  %v11167_v17 = vpop.permute.xlu0 %617  ;;  %16616 = vst [vmem:[#allocation95_spill] sm:$0xff] %v11176_v25  ;;  %v11183_v30 = vsel %vm134_vm2, %v16011_v59, %v131_v58  ;;  %v11200_v58 = vsel %vm134_vm2, %v96_v28, %v97_v26  ;;  %v100_v59 = vrot.slane %v10642_v53, 3 }
  0xc6   :  { %16614 = vst [vmem:[#allocation93_spill] sm:$0xff] %v11165_v55  ;;  %16615 = vst [vmem:[#allocation94_spill] sm:$0xff] %v11167_v17  ;;  %v659_v49 = vmul.f32 %v11165_v55, %v11152_v24  ;;  %v658_v9 = vmul.f32 %v11167_v17, %v11156_v22  ;;  %8888 = vmatprep.mubr.msk.bf16.mxu0 %vm686_vm1, %v676_v51  ;;  %v104_v17 = vrot.slane %v10712_v61, 3  ;;  %v16633_v24 = vld [vmem:[#allocation10_spill] sm:$0xff]  ;;  %v106_v22 = vrot.slane %v16637_v47, 3 }
  0xc7   :  { %16617 = vst [vmem:[#allocation96_spill] sm:$0xff] %v11183_v30  ;;  %16620 = vst [vmem:[#allocation99_spill] sm:$0xff] %v11200_v58 }
  0xc8   :  { %v677_v40 = vpack.c.bf16 %v659_v49, %v658_v9  ;;  %1329 = vperm.xlu1 %10127, %v10504_v27   ;;  %v99_v9 = vrot.slane %v10637_v52, 3 }
  0xc9   :  { %1341 = vperm.xlu0 %10128, %v10533_v32   ;;  %v11204_v32 = vsel %vm134_vm2, %v97_v26, %v98_v13 }
  0xca   :  { %v11188_v51 = vpop.permute.xlu1 %178  ;;  %v11190_v55 = vpop.permute.xlu0 %173  ;;  %16621 = vst [vmem:[#allocation100_spill] sm:$0xff] %v11204_v32  ;;  %v11221_v26 = vsel %vm134_vm2, %v98_v13, %v99_v9 }
  0xcb   :  { %16618 = vst [vmem:[#allocation97_spill] sm:$0xff] %v11188_v51  ;;  %16619 = vst [vmem:[#allocation98_spill] sm:$0xff] %v11190_v55  ;;  %v352_v49 = vmul.f32 %v11188_v51, %v11176_v25  ;;  %v351_v27 = vmul.f32 %v11190_v55, %v11183_v30  ;;  %v16653_v30 = vld [vmem:[#allocation2_spill] sm:$0xff] }
  0xcc   :  { %8889 = vmatmul.mubr.msk.bf16.gmra.mrb[32].mxu0 %vm686_vm1, %v677_v40  ;;  %1337 = vperm.xlu1 %10127, %v10516_v29   ;;  %16624 = vst [vmem:[#allocation103_spill] sm:$0xff] %v11221_v26 }
  0xcd   :  { %v387_v51 = vpack.c.bf16 %v352_v49, %v351_v27  ;;  %1349 = vperm.xlu0 %10128, %v10545_v34   ;;  %v11225_v34 = vsel %vm134_vm2, %v99_v9, %v100_v59  ;;  %v101_v49 = vrot.slane %v10675_v63, 3  ;;  %v102_v27 = vrot.slane %v10680_v0, 3 }
  0xce   :  { %v11209_v55 = vpop.permute.xlu1 %183  ;;  %v11211_v40 = vpop.permute.xlu0 %188  ;;  %16625 = vst [vmem:[#allocation104_spill] sm:$0xff] %v11225_v34 }
  0xcf   :  { %16622 = vst [vmem:[#allocation101_spill] sm:$0xff] %v11209_v55  ;;  %16623 = vst [vmem:[#allocation102_spill] sm:$0xff] %v11211_v40  ;;  %v353_v29 = vmul.f32 %v11209_v55, %v11200_v58  ;;  %v354_v28 = vmul.f32 %v11211_v40, %v11204_v32  ;;  %8894 = vmatprep.mubr.msk.bf16.mxu0 %vm686_vm1, %v387_v51 }
  0xd0   :  { %1345 = vperm.xlu1 %10127, %v10528_v31   ;;  %v11237_v31 = vld [vmem:[%s15907_s2 + $0x18] sm:$0xff]  }
  0xd1   :  { %v388_v55 = vpack.c.bf16 %v354_v28, %v353_v29  ;;  %1357 = vperm.xlu0 %10128, %v10557_v36   ;;  %v11247_v36 = vsel %vm134_vm2, %v100_v59, %v101_v49  ;;  %v11251_v29 = vsel %vm134_vm2, %v101_v49, %v102_v27  ;;  %v103_v28 = vrot.slane %v10707_v39, 3 }
  0xd2   :  { %v11230_v40 = vpop.permute.xlu1 %193  ;;  %v11232_v51 = vpop.permute.xlu0 %198  ;;  %16628 = vst [vmem:[#allocation107_spill] sm:$0xff] %v11247_v36  ;;  %16629 = vst [vmem:[#allocation108_spill] sm:$0xff] %v11251_v29 }
  0xd3   :  { %16626 = vst [vmem:[#allocation105_spill] sm:$0xff] %v11230_v40  ;;  %16627 = vst [vmem:[#allocation106_spill] sm:$0xff] %v11232_v51  ;;  %v355_v13 = vmul.f32 %v11230_v40, %v11221_v26  ;;  %v356_v9 = vmul.f32 %v11232_v51, %v11225_v34  ;;  %v16630_v51 = vld [vmem:[#allocation24_spill] sm:$0xff]  ;;  %v10309_v26 = vmov 5  }
  0xd4   :  { %8895 = vmatmul.mubr.msk.bf16.vlgmr.msra.gmra.mrb[0].mxu0 %vm686_vm1, %v388_v55  ;;  %1353 = vperm.xlu1 %10127, %v10540_v33  }
  0xd5   :  { %v389_v40 = vpack.c.bf16 %v356_v9, %v355_v13  ;;  %1365 = vperm.xlu0 %10128, %v10569_v38   ;;  %8931 = vmatpush3.bf16.msra.mxu0 %v16630_v51  ;;  %v11270_v38 = vsel %vm134_vm2, %v102_v27, %v103_v28  ;;  %v11274_v51 = vsel %vm134_vm2, %v103_v28, %v104_v17  ;;  %v16636_v13 = vld [vmem:[#allocation27_spill] sm:$0xff] }
  0xd6   :  { %v11257_v55 = vpop.permute.xlu1 %203  ;;  %v11259_v33 = vpop.permute.xlu0 %208  ;;  %8968 = vmatprep.subr.bf16.mxu0 %v11237_v31  ;;  %16634 = vst [vmem:[#allocation10_spill] sm:$0xff] %v11270_v38  ;;  %16635 = vst [vmem:[#allocation110_spill] sm:$0xff] %v11274_v51  ;;  %v105_v9 = vrot.slane %v16636_v13, 3 }
  0xd7   :  { %16631 = vst [vmem:[#allocation24_spill] sm:$0xff] %v11257_v55  ;;  %16632 = vst [vmem:[#allocation109_spill] sm:$0xff] %v11259_v33  ;;  %v357_v59 = vmul.f32 %v11257_v55, %v11247_v36  ;;  %v358_v49 = vmul.f32 %v11259_v33, %v11251_v29  ;;  %8898 = vmatprep.mubr.msk.bf16.mxu0 %vm686_vm1, %v389_v40  ;;  %v16640_v33 = vld [vmem:[#allocation11_spill] sm:$0xff] }
  0xd8   :  { %1361 = vperm.xlu1 %10127, %v16633_v24  }
  0xd9   :  { %v390_v55 = vpack.c.bf16 %v358_v49, %v357_v59  ;;  %10129 = vset.pattern.permute.xlu0 %v10307_v1  ;;  %v11291_v59 = vsel %vm134_vm2, %v104_v17, %v105_v9  ;;  %v107_v49 = vrot.slane %v10777_v56, 3 }
  0xda   :  { %1775 = vperm.xlu0 %10129, %v10356_v2   ;;  %v11279_v40 = vpop.permute.xlu1 %213  ;;  %v11281_v24 = vpop.permute.xlu0 %218  ;;  %16641 = vst [vmem:[#allocation11_spill] sm:$0xff] %v11291_v59  ;;  %v11295_v2 = vsel %vm134_vm2, %v105_v9, %v106_v22 }
  0xdb   :  { %16638 = vst [vmem:[#allocation27_spill] sm:$0xff] %v11279_v40  ;;  %16639 = vst [vmem:[#allocation28_spill] sm:$0xff] %v11281_v24  ;;  %v359_v27 = vmul.f32 %v11279_v40, %v11270_v38  ;;  %v360_v28 = vmul.f32 %v11281_v24, %v11274_v51  ;;  %v11311_v9 = vsel %vm134_vm2, %v106_v22, %v107_v49  ;;  %v11687_v38 = vld [vmem:[%s15906_s1 + $0xf0] sm:$0xff] }
  0xdc   :  { %8899 = vmatmul.mubr.msk.bf16.gmra.mrb[4].mxu0 %vm686_vm1, %v390_v55  ;;  %1369 = vperm.xlu1 %10127, %v16640_v33   ;;  %16642 = vst [vmem:[#allocation111_spill] sm:$0xff] %v11295_v2  ;;  %16645 = vst [vmem:[#allocation114_spill] sm:$0xff] %v11311_v9 }
  0xdd   :  { %v391_v40 = vpack.c.bf16 %v360_v28, %v359_v27  ;;  %v109_v27 = vrot.slane %v10807_v60, 3  ;;  %v110_v28 = vrot.slane %v10812_v37, 3 }
  0xde   :  { %1787 = vperm.xlu0 %10129, %v10363_v3   ;;  %v11300_v24 = vpop.permute.xlu1 %223  ;;  %v11302_v55 = vpop.permute.xlu0 %228  ;;  %v11315_v3 = vsel %vm134_vm2, %v107_v49, %v108_v4 }
  0xdf   :  { %16643 = vst [vmem:[#allocation112_spill] sm:$0xff] %v11300_v24  ;;  %16644 = vst [vmem:[#allocation113_spill] sm:$0xff] %v11302_v55  ;;  %v361_v33 = vmul.f32 %v11300_v24, %v11291_v59  ;;  %v362_v17 = vmul.f32 %v11302_v55, %v11295_v2  ;;  %8902 = vmatprep.mubr.msk.bf16.mxu0 %vm686_vm1, %v391_v40  ;;  %v16647_v24 = vld [vmem:[#allocation3_spill] sm:$0xff]  ;;  %v11332_v49 = vsel %vm134_vm2, %v108_v4, %v109_v27 }
  0xe0   :  { %10130 = vset.pattern.permute.xlu1 %v10307_v1  ;;  %16646 = vst [vmem:[#allocation115_spill] sm:$0xff] %v11315_v3  ;;  %16650 = vst [vmem:[#allocation117_spill] sm:$0xff] %v11332_v49 }
  0xe1   :  { %v392_v58 = vpack.c.bf16 %v362_v17, %v361_v33  ;;  %1779 = vperm.xlu1 %10130, %v16647_v24   ;;  %v11336_v24 = vsel %vm134_vm2, %v109_v27, %v110_v28  ;;  %v16652_v33 = vld [vmem:[#allocation41_spill] sm:$0xff] }
  0xe2   :  { %1795 = vperm.xlu0 %10129, %v10375_v5   ;;  %v11321_v55 = vpop.permute.xlu1 %233  ;;  %v11323_v1 = vpop.permute.xlu0 %238  ;;  %16651 = vst [vmem:[#allocation118_spill] sm:$0xff] %v11336_v24  ;;  %v111_v5 = vrot.slane %v10838_v57, 3  ;;  %v112_v17 = vrot.slane %v16652_v33, 3 }
  0xe3   :  { %16648 = vst [vmem:[#allocation3_spill] sm:$0xff] %v11321_v55  ;;  %16649 = vst [vmem:[#allocation116_spill] sm:$0xff] %v11323_v1  ;;  %v363_v22 = vmul.f32 %v11321_v55, %v11311_v9  ;;  %v364_v40 = vmul.f32 %v11323_v1, %v11315_v3  ;;  %v16659_v9 = vld [vmem:[#allocation4_spill] sm:$0xff] }
  0xe4   :  { %8903 = vmatmul.mubr.msk.bf16.gmra.mrb[8].mxu0 %vm686_vm1, %v392_v58  ;;  %v11353_v1 = vsel %vm134_vm2, %v110_v28, %v111_v5 }
  0xe5   :  { %v393_v25 = vpack.c.bf16 %v364_v40, %v363_v22  ;;  %1783 = vperm.xlu1 %10130, %v16653_v30   ;;  %16656 = vst [vmem:[#allocation119_spill] sm:$0xff] %v11353_v1  ;;  %v11357_v30 = vsel %vm134_vm2, %v111_v5, %v112_v17  ;;  %v16658_v22 = vld [vmem:[#allocation46_spill] sm:$0xff] }
  0xe6   :  { %1803 = vperm.xlu0 %10129, %v10387_v7   ;;  %v11342_v55 = vpop.permute.xlu1 %243  ;;  %v11344_v58 = vpop.permute.xlu0 %248  ;;  %16657 = vst [vmem:[#allocation120_spill] sm:$0xff] %v11357_v30  ;;  %v113_v7 = vrot.slane %v10869_v50, 3  ;;  %v114_v40 = vrot.slane %v16658_v22, 3 }
  0xe7   :  { %16654 = vst [vmem:[#allocation41_spill] sm:$0xff] %v11342_v55  ;;  %16655 = vst [vmem:[#allocation2_spill] sm:$0xff] %v11344_v58  ;;  %v365_v4 = vmul.f32 %v11342_v55, %v11332_v49  ;;  %v366_v27 = vmul.f32 %v11344_v58, %v11336_v24  ;;  %8906 = vmatprep.mubr.msk.bf16.mxu0 %vm686_vm1, %v393_v25  ;;  %v16665_v49 = vld [vmem:[#allocation5_spill] sm:$0xff] }
  0xe8   :  { %v11374_v55 = vsel %vm134_vm2, %v112_v17, %v113_v7 }
  0xe9   :  { %v394_v3 = vpack.c.bf16 %v366_v27, %v365_v4  ;;  %1791 = vperm.xlu1 %10130, %v16659_v9   ;;  %16662 = vst [vmem:[#allocation121_spill] sm:$0xff] %v11374_v55  ;;  %v11378_v9 = vsel %vm134_vm2, %v113_v7, %v114_v40  ;;  %v16664_v4 = vld [vmem:[#allocation51_spill] sm:$0xff] }
  0xea   :  { %1811 = vperm.xlu0 %10129, %v10402_v10   ;;  %v11363_v58 = vpop.permute.xlu1 %253  ;;  %v11365_v25 = vpop.permute.xlu0 %258  ;;  %16663 = vst [vmem:[#allocation122_spill] sm:$0xff] %v11378_v9  ;;  %v115_v10 = vrot.slane %v10900_v35, 3  ;;  %v116_v27 = vrot.slane %v16664_v4, 3 }
  0xeb   :  { %16660 = vst [vmem:[#allocation46_spill] sm:$0xff] %v11363_v58  ;;  %16661 = vst [vmem:[#allocation4_spill] sm:$0xff] %v11365_v25  ;;  %v367_v28 = vmul.f32 %v11363_v58, %v11353_v1  ;;  %v368_v5 = vmul.f32 %v11365_v25, %v11357_v30  ;;  %v16671_v1 = vld [vmem:[#allocation6_spill] sm:$0xff] }
  0xec   :  { %8907 = vmatmul.mubr.msk.bf16.gmra.mrb[12].mxu0 %vm686_vm1, %v394_v3  ;;  %v11395_v25 = vsel %vm134_vm2, %v114_v40, %v115_v10 }
  0xed   :  { %v395_v24 = vpack.c.bf16 %v368_v5, %v367_v28  ;;  %1799 = vperm.xlu1 %10130, %v16665_v49   ;;  %16668 = vst [vmem:[#allocation123_spill] sm:$0xff] %v11395_v25  ;;  %v11399_v49 = vsel %vm134_vm2, %v115_v10, %v116_v27  ;;  %v16670_v28 = vld [vmem:[#allocation56_spill] sm:$0xff] }
  0xee   :  { %1819 = vperm.xlu0 %10129, %v10414_v12   ;;  %v11384_v58 = vpop.permute.xlu1 %263  ;;  %v11386_v3 = vpop.permute.xlu0 %268  ;;  %16669 = vst [vmem:[#allocation124_spill] sm:$0xff] %v11399_v49  ;;  %v117_v12 = vrot.slane %v10931_v20, 3  ;;  %v118_v5 = vrot.slane %v16670_v28, 3 }
  0xef   :  { %16666 = vst [vmem:[#allocation51_spill] sm:$0xff] %v11384_v58  ;;  %16667 = vst [vmem:[#allocation5_spill] sm:$0xff] %v11386_v3  ;;  %v369_v17 = vmul.f32 %v11384_v58, %v11374_v55  ;;  %v370_v7 = vmul.f32 %v11386_v3, %v11378_v9  ;;  %8910 = vmatprep.mubr.msk.bf16.mxu0 %vm686_vm1, %v395_v24  ;;  %v16677_v55 = vld [vmem:[#allocation7_spill] sm:$0xff] }
  0xf0   :  { %v11416_v58 = vsel %vm134_vm2, %v116_v27, %v117_v12 }
  0xf1   :  { %v396_v30 = vpack.c.bf16 %v370_v7, %v369_v17  ;;  %1807 = vperm.xlu1 %10130, %v16671_v1   ;;  %16674 = vst [vmem:[#allocation125_spill] sm:$0xff] %v11416_v58  ;;  %v11420_v1 = vsel %vm134_vm2, %v117_v12, %v118_v5  ;;  %v16676_v17 = vld [vmem:[#allocation61_spill] sm:$0xff] }
  0xf2   :  { %1827 = vperm.xlu0 %10129, %v10426_v14   ;;  %v11405_v3 = vpop.permute.xlu1 %273  ;;  %v11407_v24 = vpop.permute.xlu0 %278  ;;  %16675 = vst [vmem:[#allocation126_spill] sm:$0xff] %v11420_v1  ;;  %v119_v14 = vrot.slane %v10962_v6, 3  ;;  %v120_v7 = vrot.slane %v16676_v17, 3 }
  0xf3   :  { %16672 = vst [vmem:[#allocation56_spill] sm:$0xff] %v11405_v3  ;;  %16673 = vst [vmem:[#allocation6_spill] sm:$0xff] %v11407_v24  ;;  %v371_v40 = vmul.f32 %v11405_v3, %v11395_v25  ;;  %v372_v10 = vmul.f32 %v11407_v24, %v11399_v49  ;;  %v16683_v25 = vld [vmem:[#allocation8_spill] sm:$0xff] }
  0xf4   :  { %8911 = vmatmul.mubr.msk.bf16.gmra.mrb[16].mxu0 %vm686_vm1, %v396_v30  ;;  %v11437_v24 = vsel %vm134_vm2, %v118_v5, %v119_v14 }
  0xf5   :  { %v397_v9 = vpack.c.bf16 %v372_v10, %v371_v40  ;;  %1815 = vperm.xlu1 %10130, %v16677_v55   ;;  %16680 = vst [vmem:[#allocation127_spill] sm:$0xff] %v11437_v24  ;;  %v11441_v55 = vsel %vm134_vm2, %v119_v14, %v120_v7  ;;  %v16682_v40 = vld [vmem:[#allocation66_spill] sm:$0xff] }
  0xf6   :  { %1835 = vperm.xlu0 %10129, %v10438_v16   ;;  %v11426_v3 = vpop.permute.xlu1 %283  ;;  %v11428_v30 = vpop.permute.xlu0 %288  ;;  %16681 = vst [vmem:[#allocation128_spill] sm:$0xff] %v11441_v55  ;;  %v121_v16 = vrot.slane %v10993_v54, 3  ;;  %v122_v10 = vrot.slane %v16682_v40, 3 }
  0xf7   :  { %16678 = vst [vmem:[#allocation61_spill] sm:$0xff] %v11426_v3  ;;  %16679 = vst [vmem:[#allocation7_spill] sm:$0xff] %v11428_v30  ;;  %v373_v27 = vmul.f32 %v11426_v3, %v11416_v58  ;;  %v374_v12 = vmul.f32 %v11428_v30, %v11420_v1  ;;  %8914 = vmatprep.mubr.msk.bf16.mxu0 %vm686_vm1, %v397_v9  ;;  %v16689_v58 = vld [vmem:[#allocation9_spill] sm:$0xff] }
  0xf8   :  { %v11458_v3 = vsel %vm134_vm2, %v120_v7, %v121_v16 }
  0xf9   :  { %v398_v49 = vpack.c.bf16 %v374_v12, %v373_v27  ;;  %1823 = vperm.xlu1 %10130, %v16683_v25   ;;  %16686 = vst [vmem:[#allocation129_spill] sm:$0xff] %v11458_v3  ;;  %v11462_v25 = vsel %vm134_vm2, %v121_v16, %v122_v10  ;;  %v16688_v27 = vld [vmem:[#allocation71_spill] sm:$0xff] }
  0xfa   :  { %1843 = vperm.xlu0 %10129, %v10450_v18   ;;  %v11447_v30 = vpop.permute.xlu1 %293  ;;  %v11449_v9 = vpop.permute.xlu0 %298  ;;  %16687 = vst [vmem:[#allocation130_spill] sm:$0xff] %v11462_v25  ;;  %v123_v18 = vrot.slane %v11024_v11, 3  ;;  %v124_v12 = vrot.slane %v16688_v27, 3 }
  0xfb   :  { %16684 = vst [vmem:[#allocation66_spill] sm:$0xff] %v11447_v30  ;;  %16685 = vst [vmem:[#allocation8_spill] sm:$0xff] %v11449_v9  ;;  %v375_v5 = vmul.f32 %v11447_v30, %v11437_v24  ;;  %v376_v14 = vmul.f32 %v11449_v9, %v11441_v55 }
  0xfc   :  { %8915 = vmatmul.mubr.msk.bf16.gmra.mrb[20].mxu0 %vm686_vm1, %v398_v49  ;;  %v11479_v9 = vsel %vm134_vm2, %v122_v10, %v123_v18 }
  0xfd   :  { %v399_v1 = vpack.c.bf16 %v376_v14, %v375_v5  ;;  %1831 = vperm.xlu1 %10130, %v16689_v58   ;;  %16692 = vst [vmem:[#allocation131_spill] sm:$0xff] %v11479_v9  ;;  %v11483_v58 = vsel %vm134_vm2, %v123_v18, %v124_v12  ;;  %v16694_v5 = vld [vmem:[#allocation76_spill] sm:$0xff] }
  0xfe   :  { %1851 = vperm.xlu0 %10129, %v10467_v21   ;;  %v11468_v30 = vpop.permute.xlu1 %303  ;;  %v11470_v49 = vpop.permute.xlu0 %308  ;;  %16693 = vst [vmem:[#allocation132_spill] sm:$0xff] %v11483_v58  ;;  %v125_v21 = vrot.slane %v11055_v62, 3  ;;  %v126_v14 = vrot.slane %v16694_v5, 3 }
  0xff   :  { %16690 = vst [vmem:[#allocation71_spill] sm:$0xff] %v11468_v30  ;;  %16691 = vst [vmem:[#allocation9_spill] sm:$0xff] %v11470_v49  ;;  %v377_v7 = vmul.f32 %v11468_v30, %v11458_v3  ;;  %v378_v16 = vmul.f32 %v11470_v49, %v11462_v25  ;;  %8918 = vmatprep.mubr.msk.bf16.mxu0 %vm686_vm1, %v399_v1  ;;  %v11490_v30 = vld [vmem:[%s15906_s1 + $0x80] sm:$0xff]  ;;  %v128_v25 = vrot.slane %v11091_v8, 3 }
 0x101   :  { %v400_v55 = vpack.c.bf16 %v378_v16, %v377_v7  ;;  %1839 = vperm.xlu1 %10130, %v11490_v30   ;;  %v11505_v7 = vsel %vm134_vm2, %v124_v12, %v125_v21  ;;  %v11509_v16 = vsel %vm134_vm2, %v125_v21, %v126_v14 }
 0x102   :  { %1859 = vperm.xlu0 %10129, %v10480_v23   ;;  %v11494_v1 = vpop.permute.xlu1 %313  ;;  %v11496_v10 = vpop.permute.xlu0 %318  ;;  %16697 = vst [vmem:[#allocation134_spill] sm:$0xff] %v11505_v7  ;;  %16698 = vst [vmem:[#allocation135_spill] sm:$0xff] %v11509_v16  ;;  %v127_v23 = vrot.slane %v11086_v15, 3 }
 0x103   :  { %16695 = vst [vmem:[#allocation76_spill] sm:$0xff] %v11494_v1  ;;  %16696 = vst [vmem:[#allocation133_spill] sm:$0xff] %v11496_v10  ;;  %v379_v18 = vmul.f32 %v11494_v1, %v11479_v9  ;;  %v380_v49 = vmul.f32 %v11496_v10, %v11483_v58  ;;  %v11516_v1 = vld [vmem:[%s15906_s1 + $0x90] sm:$0xff]  ;;  %v129_v9 = vrot.slane %v11117_v19, 3 }
 0x104   :  { %8919 = vmatmul.mubr.msk.bf16.gmra.mrb[24].mxu0 %vm686_vm1, %v400_v55  ;;  %v11522_v55 = vld [vmem:[%s15906_s1 + $0xb8] sm:$0xff]  ;;  %v11536_v10 = vsel %vm134_vm2, %v126_v14, %v127_v23  ;;  %v11540_v58 = vsel %vm134_vm2, %v127_v23, %v128_v25 }
 0x105   :  { %v401_v3 = vpack.c.bf16 %v380_v49, %v379_v18  ;;  %1847 = vperm.xlu1 %10130, %v11516_v1   ;;  %16701 = vst [vmem:[#allocation138_spill] sm:$0xff] %v11536_v10  ;;  %16702 = vst [vmem:[#allocation139_spill] sm:$0xff] %v11540_v58 }
 0x106   :  { %1867 = vperm.xlu0 %10129, %v11522_v55   ;;  %v11525_v12 = vpop.permute.xlu1 %323  ;;  %v11527_v21 = vpop.permute.xlu0 %328 }
 0x107   :  { %16699 = vst [vmem:[#allocation136_spill] sm:$0xff] %v11525_v12  ;;  %16700 = vst [vmem:[#allocation137_spill] sm:$0xff] %v11527_v21  ;;  %v381_v49 = vmul.f32 %v11525_v12, %v11505_v7  ;;  %v382_v18 = vmul.f32 %v11527_v21, %v11509_v16  ;;  %8922 = vmatprep.mubr.msk.bf16.mxu0 %vm686_vm1, %v401_v3  ;;  %v11546_v12 = vld [vmem:[%s15906_s1 + $0xa0] sm:$0xff]  ;;  %v11552_v3 = vld [vmem:[%s15906_s1 + $0xc8] sm:$0xff]  ;;  %v11566_v21 = vsel %vm134_vm2, %v128_v25, %v129_v9 }
 0x108   :  { %16705 = vst [vmem:[#allocation142_spill] sm:$0xff] %v11566_v21  ;;  %v16706_v16 = vrot.slane %v10600_v41, 3  ;;  %v11585_v25 = vld [vmem:[%s15906_s1 + $0xd8] sm:$0xff] }
 0x109   :  { %v402_v24 = vpack.c.bf16 %v382_v18, %v381_v49  ;;  %1855 = vperm.xlu1 %10130, %v11546_v12  }
 0x10a   :  { %1875 = vperm.xlu0 %10129, %v11552_v3   ;;  %v11555_v14 = vpop.permute.xlu1 %333  ;;  %v11557_v23 = vpop.permute.xlu0 %338  ;;  %v11572_v7 = vsel %vm134_vm2, %v129_v9, %v16706_v16 }
 0x10b   :  { %16703 = vst [vmem:[#allocation140_spill] sm:$0xff] %v11555_v14  ;;  %16704 = vst [vmem:[#allocation141_spill] sm:$0xff] %v11557_v23  ;;  %v383_v49 = vmul.f32 %v11555_v14, %v11536_v10  ;;  %v384_v18 = vmul.f32 %v11557_v23, %v11540_v58  ;;  %v11577_v14 = vld [vmem:[%s15906_s1 + $0xb0] sm:$0xff]  ;;  %v1190_v23 = vrot.slane %v10605_v42, 5  ;;  %v11602_v58 = vld [vmem:[%s15906_s1 + $0xc0] sm:$0xff]  ;;  %v16710_v10 = vrot.slane %v10600_v41, 5 }
 0x10c   :  { %8923 = vmatmul.mubr.msk.bf16.gmra.mrb[28].mxu0 %vm686_vm1, %v402_v24  ;;  %16707 = vst [vmem:[#allocation143_spill] sm:$0xff] %v11572_v7 }
 0x10d   :  { %v403_v2 = vpack.c.bf16 %v384_v18, %v383_v49  ;;  %1863 = vperm.xlu1 %10130, %v11577_v14   ;;  %v1155_v49 = vrot.slane %v10614_v44, 5  ;;  %v11609_v44 = vsel %vm1191_vm3, %v16710_v10, %v1190_v23 }
 0x10e   :  { %1883 = vperm.xlu0 %10129, %v11585_v25   ;;  %v11588_v9 = vpop.permute.xlu1 %343  ;;  %v11590_v16 = vpop.permute.xlu0 %348  ;;  %16711 = vst [vmem:[#allocation146_spill] sm:$0xff] %v11609_v44 }
 0x10f   :  { %16708 = vst [vmem:[#allocation144_spill] sm:$0xff] %v11588_v9  ;;  %16709 = vst [vmem:[#allocation145_spill] sm:$0xff] %v11590_v16  ;;  %v385_v18 = vmul.f32 %v11588_v9, %v11566_v21  ;;  %v386_v42 = vmul.f32 %v11590_v16, %v11572_v7  ;;  %8926 = vmatprep.mubr.msk.bf16.mxu0 %vm686_vm1, %v403_v2  ;;  %v11614_v16 = vld [vmem:[%s15906_s1 + $0xe8] sm:$0xff]  ;;  %v11619_v2 = vsel %vm1191_vm3, %v1190_v23, %v1155_v49  ;;  %v11633_v7 = vld [vmem:[%s15906_s1 + $0xd0] sm:$0xff] }
 0x110   :  { %16712 = vst [vmem:[#allocation147_spill] sm:$0xff] %v11619_v2  ;;  %v1156_v23 = vrot.slane %v10619_v45, 5  ;;  %v1157_v21 = vrot.slane %v10624_v46, 5  ;;  %v11657_v45 = vld [vmem:[%s15906_s1 + $0xe0] sm:$0xff] }
 0x111   :  { %v404_v24 = vpack.c.bf16 %v386_v42, %v385_v18  ;;  %1871 = vperm.xlu1 %10130, %v11602_v58  }
 0x112   :  { %1891 = vperm.xlu0 %10129, %v11614_v16   ;;  %v11651_v59 = vsel %vm1191_vm3, %v1155_v49, %v1156_v23  ;;  %v11662_v46 = vsel %vm1191_vm3, %v1156_v23, %v1157_v21  ;;  %v11668_v49 = vld [vmem:[%s15906_s1 + $0x108] sm:$0xff] }
 0x113   :  { %v11621_v18 = vpop.permute.xlu1 %1229  ;;  %16717 = vst [vmem:[#allocation152_spill] sm:$0xff] %v11651_v59  ;;  %16718 = vst [vmem:[#allocation153_spill] sm:$0xff] %v11662_v46 }
 0x114   :  { %16713 = vst [vmem:[#allocation148_spill] sm:$0xff] %v11621_v18  ;;  %v1372_v42 = vmul.f32 %v11621_v18, %v11609_v44  ;;  %v11625_v9 = vpop.permute.xlu0 %1233  ;;  %8927 = vmatmul.mubr.msk.bf16.gmra.mrb[32].mxu0 %vm686_vm1, %v404_v24  ;;  %v11641_v18 = vld [vmem:[%s15906_s1 + $0xf8] sm:$0xff] }
 0x115   :  { %16714 = vst [vmem:[#allocation149_spill] sm:$0xff] %v11625_v9  ;;  %v1373_v10 = vmul.f32 %v11625_v9, %v11619_v2  ;;  %1879 = vperm.xlu1 %10130, %v11633_v7   ;;  %v1158_v2 = vrot.slane %v10637_v52, 5  ;;  %v1159_v52 = vrot.slane %v10642_v53, 5 }
 0x116   :  { %1899 = vperm.xlu0 %10129, %v11641_v18  }
 0x117   :  { %v1408_v24 = vpack.c.bf16 %v1373_v10, %v1372_v42  ;;  %v11644_v9 = vpop.permute.xlu1 %1237  ;;  %v11673_v42 = vsel %vm1191_vm3, %v1157_v21, %v1158_v2  ;;  %v11692_v21 = vsel %vm1191_vm3, %v1158_v2, %v1159_v52 }
 0x118   :  { %16715 = vst [vmem:[#allocation150_spill] sm:$0xff] %v11644_v9  ;;  %v11647_v44 = vpop.permute.xlu0 %1245  ;;  %16719 = vst [vmem:[#allocation154_spill] sm:$0xff] %v11673_v42  ;;  %v1374_v23 = vmul.f32 %v11644_v9, %v11651_v59 }
 0x119   :  { %16716 = vst [vmem:[#allocation151_spill] sm:$0xff] %v11647_v44  ;;  %8932 = vmatprep.mubr.msk.bf16.mxu0 %vm686_vm1, %v1408_v24  ;;  %1887 = vperm.xlu1 %10130, %v11657_v45   ;;  %v1160_v24 = vrot.slane %v10675_v63, 5  ;;  %16722 = vst [vmem:[#allocation157_spill] sm:$0xff] %v11692_v21  ;;  %v1161_v63 = vrot.slane %v10680_v0, 5  ;;  %v1376_v9 = vmul.f32 %v11647_v44, %v11673_v42  ;;  %v11723_v42 = vld [vmem:[%s15906_s1 + $0x100] sm:$0xff] }
 0x11a   :  { %1907 = vperm.xlu0 %10129, %v11668_v49  }
 0x11b   :  { %v11675_v10 = vpop.permute.xlu1 %1241  ;;  %v11710_v2 = vsel %vm1191_vm3, %v1159_v52, %v1160_v24  ;;  %v11728_v52 = vsel %vm1191_vm3, %v1160_v24, %v1161_v63  ;;  %v11742_v24 = vld [vmem:[%s15906_s1 + $0x8] sm:$0xff] }
 0x11c   :  { %16720 = vst [vmem:[#allocation155_spill] sm:$0xff] %v11675_v10  ;;  %v1375_v53 = vmul.f32 %v11675_v10, %v11662_v46  ;;  %v11682_v51 = vpop.permute.xlu0 %1253  ;;  %v11700_v10 = vld [vmem:[%s15906_s1 + $0x118] sm:$0xff]  ;;  %v11706_v46 = vld [vmem:[%s15907_s2 + $0x20] sm:$0xff]   ;;  %16723 = vst [vmem:[#allocation158_spill] sm:$0xff] %v11710_v2 }
 0x11d   :  { %16721 = vst [vmem:[#allocation156_spill] sm:$0xff] %v11682_v51  ;;  %1895 = vperm.xlu1 %10130, %v11687_v38   ;;  %16726 = vst [vmem:[#allocation161_spill] sm:$0xff] %v11728_v52 }
 0x11e   :  { %v1409_v59 = vpack.c.bf16 %v1375_v53, %v1374_v23  ;;  %1915 = vperm.xlu0 %10129, %v11700_v10   ;;  %v1162_v23 = vrot.slane %v10707_v39, 5  ;;  %v1163_v39 = vrot.slane %v10712_v61, 5 }
 0x11f   :  { %v11712_v0 = vpop.permute.xlu1 %1249 }
 0x120   :  { %16724 = vst [vmem:[#allocation159_spill] sm:$0xff] %v11712_v0  ;;  %v1377_v53 = vmul.f32 %v11712_v0, %v11692_v21  ;;  %v11717_v44 = vpop.permute.xlu0 %1261  ;;  %8933 = vmatmul.mubr.msk.bf16.vlgmr.msra.gmra.mrb[0].mxu0 %vm686_vm1, %v1409_v59  ;;  %v1378_v0 = vmul.f32 %v11682_v51, %v11710_v2  ;;  %v10308_v59 = vmov 4   ;;  %v11737_v29 = vsel %vm1191_vm3, %v1161_v63, %v1162_v23  ;;  %v11756_v63 = vld [vmem:[%s15906_s1 + $0x110] sm:$0xff]  ;;  %v11773_v2 = vld [vmem:[%s15906_s1 + $0x20] sm:$0xff] }
 0x121   :  { %16725 = vst [vmem:[#allocation160_spill] sm:$0xff] %v11717_v44  ;;  %1903 = vperm.xlu1 %10130, %v11723_v42   ;;  %8969 = vmatpush3.bf16.msra.mxu0 %v11237_v31  ;;  %16727 = vst [vmem:[#allocation162_spill] sm:$0xff] %v11737_v29  ;;  %v1164_v31 = vrot.slane %v16636_v13, 5  ;;  %v11761_v51 = vsel %vm1191_vm3, %v1162_v23, %v1163_v39  ;;  %v1165_v13 = vrot.slane %v16637_v47, 5 }
 0x122   :  { %v1410_v21 = vpack.c.bf16 %v1377_v53, %v1376_v9  ;;  %10132 = vset.pattern.permute.xlu0 %v10308_v59  ;;  %9006 = vmatprep.subr.bf16.mxu0 %v11706_v46  ;;  %16730 = vst [vmem:[#allocation165_spill] sm:$0xff] %v11756_v63  ;;  %16731 = vst [vmem:[#allocation166_spill] sm:$0xff] %v11761_v51 }
 0x123   :  { %2252 = vperm.xlu0 %10132, %v11742_v24   ;;  %v11745_v61 = vpop.permute.xlu1 %1257 }
 0x124   :  { %16728 = vst [vmem:[#allocation163_spill] sm:$0xff] %v11745_v61  ;;  %v1379_v9 = vmul.f32 %v11745_v61, %v11728_v52  ;;  %v11750_v53 = vpop.permute.xlu0 %1269  ;;  %8936 = vmatprep.mubr.msk.bf16.mxu0 %vm686_vm1, %v1410_v21  ;;  %v1380_v61 = vmul.f32 %v11717_v44, %v11737_v29  ;;  %v11768_v21 = vsel %vm1191_vm3, %v1163_v39, %v1164_v31  ;;  %v11793_v29 = vld [vmem:[%s15906_s1] sm:$0xff] }
 0x125   :  { %16729 = vst [vmem:[#allocation164_spill] sm:$0xff] %v11750_v53  ;;  %1911 = vperm.xlu1 %10130, %v11756_v63   ;;  %16732 = vst [vmem:[#allocation167_spill] sm:$0xff] %v11768_v21  ;;  %v11786_v39 = vsel %vm1191_vm3, %v1164_v31, %v1165_v13 }
 0x126   :  { %v1411_v52 = vpack.c.bf16 %v1379_v9, %v1378_v0  ;;  %v1166_v0 = vrot.slane %v10777_v56, 5  ;;  %16735 = vst [vmem:[#allocation170_spill] sm:$0xff] %v11786_v39  ;;  %v1382_v9 = vmul.f32 %v11750_v53, %v11768_v21  ;;  %16736 = vst [vmem:[#allocation171_spill] sm:$0xff] %v11793_v29  ;;  %v11799_v56 = vld [vmem:[%s15906_s1 + $0x30] sm:$0xff]  ;;  %v1168_v53 = vrot.slane %v10807_v60, 5 }
 0x127   :  { %2264 = vperm.xlu0 %10132, %v11773_v2   ;;  %v11776_v36 = vpop.permute.xlu1 %1265 }
 0x128   :  { %16733 = vst [vmem:[#allocation168_spill] sm:$0xff] %v11776_v36  ;;  %v1381_v47 = vmul.f32 %v11776_v36, %v11761_v51  ;;  %v11780_v23 = vpop.permute.xlu0 %1277  ;;  %8937 = vmatmul.mubr.msk.bf16.gmra.mrb[4].mxu0 %vm686_vm1, %v1411_v52 }
 0x129   :  { %16734 = vst [vmem:[#allocation169_spill] sm:$0xff] %v11780_v23  ;;  %10131 = vset.pattern.permute.xlu1 %v10308_v59  ;;  %v1167_v59 = vrot.slane %v10782_v48, 5  ;;  %v11822_v48 = vld [vmem:[%s15906_s1 + $0x10] sm:$0xff] }
 0x12a   :  { %v1412_v44 = vpack.c.bf16 %v1381_v47, %v1380_v61  ;;  %2248 = vperm.xlu1 %10131, %v11793_v29   ;;  %v11812_v47 = vsel %vm1191_vm3, %v1165_v13, %v1166_v0  ;;  %v1169_v13 = vrot.slane %v10812_v37, 5 }
 0x12b   :  { %2272 = vperm.xlu0 %10132, %v11799_v56   ;;  %v11802_v52 = vpop.permute.xlu1 %1273  ;;  %16739 = vst [vmem:[#allocation174_spill] sm:$0xff] %v11812_v47  ;;  %v11817_v36 = vsel %vm1191_vm3, %v1166_v0, %v1167_v59  ;;  %v1384_v0 = vmul.f32 %v11780_v23, %v11812_v47  ;;  %v11853_v23 = vld [vmem:[%s15906_s1 + $0x18] sm:$0xff] }
 0x12c   :  { %16737 = vst [vmem:[#allocation172_spill] sm:$0xff] %v11802_v52  ;;  %v1383_v61 = vmul.f32 %v11802_v52, %v11786_v39  ;;  %v11807_v31 = vpop.permute.xlu0 %1285  ;;  %8940 = vmatprep.mubr.msk.bf16.mxu0 %vm686_vm1, %v1412_v44  ;;  %16740 = vst [vmem:[#allocation175_spill] sm:$0xff] %v11817_v36  ;;  %v11828_v44 = vld [vmem:[%s15906_s1 + $0x40] sm:$0xff]  ;;  %v11843_v52 = vsel %vm1191_vm3, %v1167_v59, %v1168_v53  ;;  %v1170_v39 = vrot.slane %v10838_v57, 5 }
 0x12d   :  { %16738 = vst [vmem:[#allocation173_spill] sm:$0xff] %v11807_v31  ;;  %16743 = vst [vmem:[#allocation178_spill] sm:$0xff] %v11843_v52  ;;  %v11848_v51 = vsel %vm1191_vm3, %v1168_v53, %v1169_v13  ;;  %v1171_v53 = vrot.slane %v16652_v33, 5  ;;  %v1386_v59 = vmul.f32 %v11807_v31, %v11843_v52  ;;  %v11884_v31 = vld [vmem:[%s15906_s1 + $0x28] sm:$0xff] }
 0x12e   :  { %v1413_v21 = vpack.c.bf16 %v1383_v61, %v1382_v9  ;;  %2256 = vperm.xlu1 %10131, %v11822_v48   ;;  %16744 = vst [vmem:[#allocation179_spill] sm:$0xff] %v11848_v51  ;;  %16745 = vst [vmem:[#allocation180_spill] sm:$0xff] %v11853_v23 }
 0x12f   :  { %2280 = vperm.xlu0 %10132, %v11828_v44   ;;  %v11831_v60 = vpop.permute.xlu1 %1281  ;;  %v11879_v47 = vsel %vm1191_vm3, %v1170_v39, %v1171_v53  ;;  %16750 = vst [vmem:[#allocation185_spill] sm:$0xff] %v11884_v31 }
 0x130   :  { %16741 = vst [vmem:[#allocation176_spill] sm:$0xff] %v11831_v60  ;;  %v1385_v9 = vmul.f32 %v11831_v60, %v11817_v36  ;;  %v11838_v61 = vpop.permute.xlu0 %1293  ;;  %8941 = vmatmul.mubr.msk.bf16.gmra.mrb[8].mxu0 %vm686_vm1, %v1413_v21  ;;  %v11859_v21 = vld [vmem:[%s15906_s1 + $0x50] sm:$0xff]  ;;  %v11874_v60 = vsel %vm1191_vm3, %v1169_v13, %v1170_v39  ;;  %v1172_v36 = vrot.slane %v10869_v50, 5  ;;  %16749 = vst [vmem:[#allocation184_spill] sm:$0xff] %v11879_v47  ;;  %v1173_v39 = vrot.slane %v16658_v22, 5 }
 0x131   :  { %16742 = vst [vmem:[#allocation177_spill] sm:$0xff] %v11838_v61  ;;  %16748 = vst [vmem:[#allocation183_spill] sm:$0xff] %v11874_v60  ;;  %v1388_v13 = vmul.f32 %v11838_v61, %v11874_v60  ;;  %v11915_v61 = vld [vmem:[%s15906_s1 + $0x38] sm:$0xff] }
 0x132   :  { %v1414_v37 = vpack.c.bf16 %v1385_v9, %v1384_v0  ;;  %2260 = vperm.xlu1 %10131, %v11853_v23   ;;  %v11910_v52 = vsel %vm1191_vm3, %v1172_v36, %v1173_v39  ;;  %16755 = vst [vmem:[#allocation190_spill] sm:$0xff] %v11915_v61 }
 0x133   :  { %2288 = vperm.xlu0 %10132, %v11859_v21   ;;  %v11862_v57 = vpop.permute.xlu1 %1289  ;;  %16754 = vst [vmem:[#allocation189_spill] sm:$0xff] %v11910_v52 }
 0x134   :  { %16746 = vst [vmem:[#allocation181_spill] sm:$0xff] %v11862_v57  ;;  %v1387_v0 = vmul.f32 %v11862_v57, %v11848_v51  ;;  %v11869_v9 = vpop.permute.xlu0 %1301  ;;  %8944 = vmatprep.mubr.msk.bf16.mxu0 %vm686_vm1, %v1414_v37  ;;  %v11890_v37 = vld [vmem:[%s15906_s1 + $0x60] sm:$0xff]  ;;  %v11905_v57 = vsel %vm1191_vm3, %v1171_v53, %v1172_v36  ;;  %v1174_v51 = vrot.slane %v10900_v35, 5  ;;  %v1175_v36 = vrot.slane %v16664_v4, 5 }
 0x135   :  { %16747 = vst [vmem:[#allocation182_spill] sm:$0xff] %v11869_v9  ;;  %16753 = vst [vmem:[#allocation188_spill] sm:$0xff] %v11905_v57  ;;  %v1390_v53 = vmul.f32 %v11869_v9, %v11905_v57  ;;  %v11946_v9 = vld [vmem:[%s15906_s1 + $0x48] sm:$0xff] }
 0x136   :  { %v1415_v33 = vpack.c.bf16 %v1387_v0, %v1386_v59  ;;  %2268 = vperm.xlu1 %10131, %v11884_v31   ;;  %v11941_v60 = vsel %vm1191_vm3, %v1174_v51, %v1175_v36  ;;  %16760 = vst [vmem:[#allocation195_spill] sm:$0xff] %v11946_v9 }
 0x137   :  { %2296 = vperm.xlu0 %10132, %v11890_v37   ;;  %v11893_v50 = vpop.permute.xlu1 %1297  ;;  %16759 = vst [vmem:[#allocation194_spill] sm:$0xff] %v11941_v60 }
 0x138   :  { %16751 = vst [vmem:[#allocation186_spill] sm:$0xff] %v11893_v50  ;;  %v1389_v59 = vmul.f32 %v11893_v50, %v11879_v47  ;;  %v11900_v0 = vpop.permute.xlu0 %1309  ;;  %8945 = vmatmul.mubr.msk.bf16.gmra.mrb[12].mxu0 %vm686_vm1, %v1415_v33  ;;  %v11921_v33 = vld [vmem:[%s15906_s1 + $0x70] sm:$0xff]  ;;  %v11936_v50 = vsel %vm1191_vm3, %v1173_v39, %v1174_v51  ;;  %v1176_v47 = vrot.slane %v10931_v20, 5  ;;  %v1177_v39 = vrot.slane %v16670_v28, 5 }
 0x139   :  { %16752 = vst [vmem:[#allocation187_spill] sm:$0xff] %v11900_v0  ;;  %16758 = vst [vmem:[#allocation193_spill] sm:$0xff] %v11936_v50  ;;  %v1392_v20 = vmul.f32 %v11900_v0, %v11936_v50  ;;  %v11972_v0 = vld [vmem:[%s15906_s1 + $0x58] sm:$0xff] }
 0x13a   :  { %v1416_v22 = vpack.c.bf16 %v1389_v59, %v1388_v13  ;;  %2276 = vperm.xlu1 %10131, %v11915_v61   ;;  %16765 = vst [vmem:[#allocation200_spill] sm:$0xff] %v11972_v0 }
 0x13b   :  { %2304 = vperm.xlu0 %10132, %v11921_v33   ;;  %v11924_v35 = vpop.permute.xlu1 %1305 }
 0x13c   :  { %16756 = vst [vmem:[#allocation191_spill] sm:$0xff] %v11924_v35  ;;  %v1391_v13 = vmul.f32 %v11924_v35, %v11910_v52  ;;  %v11931_v59 = vpop.permute.xlu0 %1317  ;;  %8948 = vmatprep.mubr.msk.bf16.mxu0 %vm686_vm1, %v1416_v22  ;;  %v1178_v35 = vrot.slane %v10962_v6, 5  ;;  %v11967_v52 = vsel %vm1191_vm3, %v1176_v47, %v1177_v39 }
 0x13d   :  { %16757 = vst [vmem:[#allocation192_spill] sm:$0xff] %v11931_v59  ;;  %16764 = vst [vmem:[#allocation199_spill] sm:$0xff] %v11967_v52 }
 0x13e   :  { %v1417_v4 = vpack.c.bf16 %v1391_v13, %v1390_v53  ;;  %2284 = vperm.xlu1 %10131, %v11946_v9   ;;  %v11962_v13 = vsel %vm1191_vm3, %v1175_v36, %v1176_v47  ;;  %v1179_v36 = vrot.slane %v16676_v17, 5 }
 0x13f   :  { %2312 = vperm.xlu0 %10132, %v11490_v30   ;;  %v11950_v22 = vpop.permute.xlu1 %1313  ;;  %16763 = vst [vmem:[#allocation198_spill] sm:$0xff] %v11962_v13  ;;  %v1394_v6 = vmul.f32 %v11931_v59, %v11962_v13  ;;  %v11998_v59 = vld [vmem:[%s15906_s1 + $0x68] sm:$0xff] }
 0x140   :  { %16761 = vst [vmem:[#allocation196_spill] sm:$0xff] %v11950_v22  ;;  %v1393_v51 = vmul.f32 %v11950_v22, %v11941_v60  ;;  %v11957_v53 = vpop.permute.xlu0 %1325  ;;  %8949 = vmatmul.mubr.msk.bf16.gmra.mrb[16].mxu0 %vm686_vm1, %v1417_v4  ;;  %v1180_v22 = vrot.slane %v10993_v54, 5  ;;  %v11993_v60 = vsel %vm1191_vm3, %v1178_v35, %v1179_v36  ;;  %16770 = vst [vmem:[#allocation205_spill] sm:$0xff] %v11998_v59 }
 0x141   :  { %16762 = vst [vmem:[#allocation197_spill] sm:$0xff] %v11957_v53  ;;  %16769 = vst [vmem:[#allocation204_spill] sm:$0xff] %v11993_v60 }
 0x142   :  { %v1418_v28 = vpack.c.bf16 %v1393_v51, %v1392_v20  ;;  %2292 = vperm.xlu1 %10131, %v11972_v0   ;;  %v11988_v51 = vsel %vm1191_vm3, %v1177_v39, %v1178_v35  ;;  %v1181_v39 = vrot.slane %v16682_v40, 5 }
 0x143   :  { %2320 = vperm.xlu0 %10132, %v11516_v1   ;;  %v11976_v4 = vpop.permute.xlu1 %1321  ;;  %16768 = vst [vmem:[#allocation203_spill] sm:$0xff] %v11988_v51  ;;  %v1396_v54 = vmul.f32 %v11957_v53, %v11988_v51  ;;  %v12024_v53 = vld [vmem:[%s15906_s1 + $0x78] sm:$0xff] }
 0x144   :  { %16766 = vst [vmem:[#allocation201_spill] sm:$0xff] %v11976_v4  ;;  %v1395_v47 = vmul.f32 %v11976_v4, %v11967_v52  ;;  %v11983_v20 = vpop.permute.xlu0 %1333  ;;  %8952 = vmatprep.mubr.msk.bf16.mxu0 %vm686_vm1, %v1418_v28  ;;  %v1182_v4 = vrot.slane %v11024_v11, 5  ;;  %v12019_v52 = vsel %vm1191_vm3, %v1180_v22, %v1181_v39  ;;  %16775 = vst [vmem:[#allocation210_spill] sm:$0xff] %v12024_v53 }
 0x145   :  { %16767 = vst [vmem:[#allocation202_spill] sm:$0xff] %v11983_v20  ;;  %16774 = vst [vmem:[#allocation209_spill] sm:$0xff] %v12019_v52 }
 0x146   :  { %v1419_v17 = vpack.c.bf16 %v1395_v47, %v1394_v6  ;;  %2300 = vperm.xlu1 %10131, %v11998_v59   ;;  %v12014_v47 = vsel %vm1191_vm3, %v1179_v36, %v1180_v22  ;;  %v1183_v36 = vrot.slane %v16688_v27, 5 }
 0x147   :  { %2328 = vperm.xlu0 %10132, %v11546_v12   ;;  %v12002_v28 = vpop.permute.xlu1 %1329  ;;  %16773 = vst [vmem:[#allocation208_spill] sm:$0xff] %v12014_v47  ;;  %v1398_v11 = vmul.f32 %v11983_v20, %v12014_v47  ;;  %v12050_v20 = vld [vmem:[%s15906_s1 + $0x88] sm:$0xff] }
 0x148   :  { %16771 = vst [vmem:[#allocation206_spill] sm:$0xff] %v12002_v28  ;;  %v1397_v35 = vmul.f32 %v12002_v28, %v11993_v60  ;;  %v12009_v6 = vpop.permute.xlu0 %1341  ;;  %8953 = vmatmul.mubr.msk.bf16.gmra.mrb[20].mxu0 %vm686_vm1, %v1419_v17  ;;  %v1184_v28 = vrot.slane %v11055_v62, 5  ;;  %v12045_v60 = vsel %vm1191_vm3, %v1182_v4, %v1183_v36  ;;  %16780 = vst [vmem:[#allocation215_spill] sm:$0xff] %v12050_v20 }
 0x149   :  { %16772 = vst [vmem:[#allocation207_spill] sm:$0xff] %v12009_v6  ;;  %16779 = vst [vmem:[#allocation214_spill] sm:$0xff] %v12045_v60 }
 0x14a   :  { %v1420_v40 = vpack.c.bf16 %v1397_v35, %v1396_v54  ;;  %2308 = vperm.xlu1 %10131, %v12024_v53   ;;  %v12040_v35 = vsel %vm1191_vm3, %v1181_v39, %v1182_v4  ;;  %v1185_v39 = vrot.slane %v16694_v5, 5 }
 0x14b   :  { %2336 = vperm.xlu0 %10132, %v11577_v14   ;;  %v12028_v17 = vpop.permute.xlu1 %1337  ;;  %16778 = vst [vmem:[#allocation213_spill] sm:$0xff] %v12040_v35  ;;  %v1400_v62 = vmul.f32 %v12009_v6, %v12040_v35  ;;  %v12076_v6 = vld [vmem:[%s15906_s1 + $0x98] sm:$0xff]  ;;  %v16794_v35 = vrot.slane %v10600_v41, 5 }
 0x14c   :  { %16776 = vst [vmem:[#allocation211_spill] sm:$0xff] %v12028_v17  ;;  %v1399_v22 = vmul.f32 %v12028_v17, %v12019_v52  ;;  %v12035_v54 = vpop.permute.xlu0 %1349  ;;  %8956 = vmatprep.mubr.msk.bf16.mxu0 %vm686_vm1, %v1420_v40  ;;  %v1186_v17 = vrot.slane %v11086_v15, 5  ;;  %v12071_v52 = vsel %vm1191_vm3, %v1184_v28, %v1185_v39  ;;  %16785 = vst [vmem:[#allocation220_spill] sm:$0xff] %v12076_v6 }
 0x14d   :  { %16777 = vst [vmem:[#allocation212_spill] sm:$0xff] %v12035_v54  ;;  %16784 = vst [vmem:[#allocation219_spill] sm:$0xff] %v12071_v52 }
 0x14e   :  { %v1421_v27 = vpack.c.bf16 %v1399_v22, %v1398_v11  ;;  %2316 = vperm.xlu1 %10131, %v12050_v20   ;;  %v12066_v22 = vsel %vm1191_vm3, %v1183_v36, %v1184_v28  ;;  %v1187_v36 = vrot.slane %v11091_v8, 5 }
 0x14f   :  { %2344 = vperm.xlu0 %10132, %v11602_v58   ;;  %v12054_v40 = vpop.permute.xlu1 %1345  ;;  %16783 = vst [vmem:[#allocation218_spill] sm:$0xff] %v12066_v22  ;;  %v1402_v15 = vmul.f32 %v12035_v54, %v12066_v22  ;;  %v12102_v54 = vld [vmem:[%s15906_s1 + $0xa8] sm:$0xff] }
 0x150   :  { %16781 = vst [vmem:[#allocation216_spill] sm:$0xff] %v12054_v40  ;;  %v1401_v4 = vmul.f32 %v12054_v40, %v12045_v60  ;;  %v12061_v11 = vpop.permute.xlu0 %1357  ;;  %8957 = vmatmul.mubr.msk.bf16.gmra.mrb[24].mxu0 %vm686_vm1, %v1421_v27  ;;  %v1188_v40 = vrot.slane %v11117_v19, 5  ;;  %v12097_v60 = vsel %vm1191_vm3, %v1186_v17, %v1187_v36  ;;  %16790 = vst [vmem:[#allocation225_spill] sm:$0xff] %v12102_v54  ;;  %v12111_v19 = vld [vmem:[%s15908_s0] sm:$0xff] }
 0x151   :  { %16782 = vst [vmem:[#allocation217_spill] sm:$0xff] %v12061_v11  ;;  %16789 = vst [vmem:[#allocation224_spill] sm:$0xff] %v12097_v60 }
 0x152   :  { %v1422_v5 = vpack.c.bf16 %v1401_v4, %v1400_v62  ;;  %2324 = vperm.xlu1 %10131, %v12076_v6   ;;  %v12092_v4 = vsel %vm1191_vm3, %v1185_v39, %v1186_v17  ;;  %v1701_v17 = vrot.slane %v12111_v19, 7  ;;  %v12117_v39 = vld [vmem:[%s15908_s0 + $0x118] sm:$0xff] }
 0x153   :  { %2352 = vperm.xlu0 %10132, %v11633_v7   ;;  %v12080_v27 = vpop.permute.xlu1 %1353  ;;  %16788 = vst [vmem:[#allocation223_spill] sm:$0xff] %v12092_v4 }
 0x154   :  { %16786 = vst [vmem:[#allocation221_spill] sm:$0xff] %v12080_v27  ;;  %v1403_v28 = vmul.f32 %v12080_v27, %v12071_v52  ;;  %v12087_v62 = vpop.permute.xlu0 %1365  ;;  %8960 = vmatprep.mubr.msk.bf16.mxu0 %vm686_vm1, %v1422_v5  ;;  %v12128_v52 = vsel %vm1191_vm3, %v1187_v36, %v1188_v40  ;;  %v16796_v36 = vrot.slane %v12117_v39, 7 }
 0x155   :  { %16787 = vst [vmem:[#allocation222_spill] sm:$0xff] %v12087_v62  ;;  %16792 = vst [vmem:[#allocation227_spill] sm:$0xff] %v12128_v52 }
 0x156   :  { %v1423_v8 = vpack.c.bf16 %v1403_v28, %v1402_v15  ;;  %2332 = vperm.xlu1 %10131, %v12102_v54   ;;  %v1404_v28 = vmul.f32 %v12061_v11, %v12092_v4  ;;  %v12136_v15 = vsel %vm1191_vm3, %v1188_v40, %v16794_v35  ;;  %v1406_v35 = vmul.f32 %v12087_v62, %v12128_v52 }
 0x157   :  { %2360 = vperm.xlu0 %10132, %v11657_v45   ;;  %v12106_v5 = vpop.permute.xlu1 %1361  ;;  %16795 = vst [vmem:[#allocation229_spill] sm:$0xff] %v12136_v15 }
 0x158   :  { %16791 = vst [vmem:[#allocation226_spill] sm:$0xff] %v12106_v5  ;;  %v1405_v27 = vmul.f32 %v12106_v5, %v12097_v60  ;;  %8961 = vmatmul.mubr.msk.bf16.gmra.mrb[28].mxu0 %vm686_vm1, %v1423_v8  ;;  %v12142_v5 = vld [vmem:[%s15908_s0 + $0x8] sm:$0xff]  ;;  %v1773_v60 = vsel %vm1737_vm4, %v16796_v36, %v1701_v17  ;;  %v12165_v36 = vld [vmem:[%s15908_s0 + $0x18] sm:$0xff] }
 0x159   :  { %v12130_v22 = vpop.permute.xlu0 %1775  ;;  %v1702_v8 = vrot.slane %v12142_v5, 7  ;;  %v1704_v4 = vrot.slane %v12165_v36, 7 }
 0x15a   :  { %16793 = vst [vmem:[#allocation228_spill] sm:$0xff] %v12130_v22  ;;  %v1424_v11 = vpack.c.bf16 %v1405_v27, %v1404_v28  ;;  %2340 = vperm.xlu1 %10131, %v11522_v55   ;;  %v12159_v27 = vld [vmem:[%s15908_s0 + $0x10] sm:$0xff] }
 0x15b   :  { %2368 = vperm.xlu0 %10132, %v11687_v38   ;;  %v12150_v41 = vpop.permute.xlu1 %1369  ;;  %v1703_v28 = vrot.slane %v12159_v27, 7 }
 0x15c   :  { %16797 = vst [vmem:[#allocation230_spill] sm:$0xff] %v12150_v41  ;;  %v1407_v40 = vmul.f32 %v12150_v41, %v12136_v15  ;;  %8964 = vmatprep.mubr.msk.bf16.mxu0 %vm686_vm1, %v1424_v11  ;;  %v1772_v41 = vsel %vm1737_vm4, %v1701_v17, %v1702_v8  ;;  %v1918_v15 = vmul.f32 %v12130_v22, %v1773_v60  ;;  %v12183_v11 = vld [vmem:[%s15908_s0 + $0x20] sm:$0xff]  ;;  %v12189_v17 = vld [vmem:[%s15908_s0 + $0x28] sm:$0xff] }
 0x15d   :  { %v12169_v62 = vpop.permute.xlu0 %1787  ;;  %v1770_v47 = vsel %vm1737_vm4, %v1703_v28, %v1704_v4  ;;  %v1706_v60 = vrot.slane %v12189_v17, 7  ;;  %v1771_v13 = vsel %vm1737_vm4, %v1702_v8, %v1703_v28  ;;  %v12214_v8 = vld [vmem:[%s15908_s0 + $0x38] sm:$0xff] }
 0x15e   :  { %16798 = vst [vmem:[#allocation231_spill] sm:$0xff] %v12169_v62  ;;  %v1425_v52 = vpack.c.bf16 %v1407_v40, %v1406_v35  ;;  %2348 = vperm.xlu1 %10131, %v11552_v3   ;;  %v1705_v35 = vrot.slane %v12183_v11, 7  ;;  %v1921_v50 = vmul.f32 %v12169_v62, %v1770_v47  ;;  %v1708_v47 = vrot.slane %v12214_v8, 7 }
 0x15f   :  { %2376 = vperm.xlu0 %10132, %v11723_v42  }
 0x160   :  { %v12178_v51 = vpop.permute.xlu1 %1779  ;;  %8965 = vmatmul.mubr.msk.bf16.gmra.mrb[32].mxu0 %vm686_vm1, %v1425_v52  ;;  %v1768_v34 = vsel %vm1737_vm4, %v1705_v35, %v1706_v60  ;;  %v12208_v52 = vld [vmem:[%s15908_s0 + $0x30] sm:$0xff] }
 0x161   :  { %16799 = vst [vmem:[#allocation232_spill] sm:$0xff] %v12178_v51  ;;  %v1919_v40 = vmul.f32 %v12178_v51, %v1772_v41  ;;  %v12194_v22 = vpop.permute.xlu0 %1795  ;;  %v1707_v41 = vrot.slane %v12208_v52, 7 }
 0x162   :  { %16800 = vst [vmem:[#allocation233_spill] sm:$0xff] %v12194_v22  ;;  %2356 = vperm.xlu1 %10131, %v11585_v25   ;;  %v1923_v62 = vmul.f32 %v12194_v22, %v1768_v34 }
 0x163   :  { %v1954_v57 = vpack.c.bf16 %v1919_v40, %v1918_v15  ;;  %2384 = vperm.xlu0 %10132, %v11756_v63   ;;  %v1769_v40 = vsel %vm1737_vm4, %v1704_v4, %v1705_v35  ;;  %v12228_v63 = vld [vmem:[%s15907_s2 + $0x28] sm:$0xff]   ;;  %v12238_v4 = vld [vmem:[%s15908_s0 + $0x40] sm:$0xff] }
 0x164   :  { %v12203_v32 = vpop.permute.xlu1 %1783  ;;  %16804 = vst [vmem:[#allocation237_spill] sm:$0xff] %v12238_v4  ;;  %v1709_v34 = vrot.slane %v12238_v4, 7 }
 0x165   :  { %16801 = vst [vmem:[#allocation234_spill] sm:$0xff] %v12203_v32  ;;  %v1920_v15 = vmul.f32 %v12203_v32, %v1771_v13  ;;  %v12218_v28 = vpop.permute.xlu0 %1803  ;;  %8970 = vmatprep.mubr.msk.bf16.mxu0 %vm686_vm1, %v1954_v57  ;;  %v1766_v13 = vsel %vm1737_vm4, %v1707_v41, %v1708_v47  ;;  %v1767_v32 = vsel %vm1737_vm4, %v1706_v60, %v1707_v41  ;;  %v12275_v60 = vld [vmem:[%s15908_s0 + $0x58] sm:$0xff] }
 0x166   :  { %16802 = vst [vmem:[#allocation235_spill] sm:$0xff] %v12218_v28  ;;  %2364 = vperm.xlu1 %10131, %v11614_v16   ;;  %v1712_v41 = vrot.slane %v12275_v60, 7 }
 0x167   :  { %v1955_v51 = vpack.c.bf16 %v1921_v50, %v1920_v15  ;;  %10133 = vset.pattern.permute.xlu0 %v10309_v26  ;;  %v12244_v50 = vld [vmem:[%s15908_s0 + $0x48] sm:$0xff] }
 0x168   :  { %2794 = vperm.xlu0 %10133, %v11793_v29   ;;  %v12233_v57 = vpop.permute.xlu1 %1791  ;;  %16805 = vst [vmem:[#allocation238_spill] sm:$0xff] %v12244_v50  ;;  %v1710_v35 = vrot.slane %v12244_v50, 7  ;;  %v1925_v29 = vmul.f32 %v12218_v28, %v1766_v13 }
 0x169   :  { %16803 = vst [vmem:[#allocation236_spill] sm:$0xff] %v12233_v57  ;;  %v1922_v15 = vmul.f32 %v12233_v57, %v1769_v40  ;;  %v12248_v22 = vpop.permute.xlu0 %1811  ;;  %8971 = vmatmul.mubr.msk.bf16.vlgmr.msra.gmra.mrb[0].mxu0 %vm686_vm1, %v1955_v51 }
 0x16a   :  { %16806 = vst [vmem:[#allocation239_spill] sm:$0xff] %v12248_v22  ;;  %2372 = vperm.xlu1 %10131, %v11641_v18   ;;  %9007 = vmatpush3.bf16.msra.mxu0 %v11706_v46  ;;  %v1764_v50 = vsel %vm1737_vm4, %v1709_v34, %v1710_v35  ;;  %v12269_v46 = vld [vmem:[%s15908_s0 + $0x50] sm:$0xff] }
 0x16b   :  { %v1956_v4 = vpack.c.bf16 %v1923_v62, %v1922_v15  ;;  %9044 = vmatprep.subr.bf16.mxu0 %v12228_v63  ;;  %v1711_v62 = vrot.slane %v12269_v46, 7  ;;  %v1927_v13 = vmul.f32 %v12248_v22, %v1764_v50 }
 0x16c   :  { %2806 = vperm.xlu0 %10133, %v11853_v23   ;;  %v12260_v40 = vpop.permute.xlu1 %1799 }
 0x16d   :  { %16807 = vst [vmem:[#allocation240_spill] sm:$0xff] %v12260_v40  ;;  %v1924_v51 = vmul.f32 %v12260_v40, %v1767_v32  ;;  %v12263_v57 = vpop.permute.xlu0 %1819  ;;  %8974 = vmatprep.mubr.msk.bf16.mxu0 %vm686_vm1, %v1956_v4  ;;  %v1765_v32 = vsel %vm1737_vm4, %v1708_v47, %v1709_v34  ;;  %v1762_v23 = vsel %vm1737_vm4, %v1711_v62, %v1712_v41  ;;  %v12294_v47 = vld [vmem:[%s15908_s0 + $0x60] sm:$0xff]  ;;  %v12300_v34 = vld [vmem:[%s15908_s0 + $0x68] sm:$0xff] }
 0x16e   :  { %16808 = vst [vmem:[#allocation241_spill] sm:$0xff] %v12263_v57  ;;  %2380 = vperm.xlu1 %10131, %v11668_v49   ;;  %16811 = vst [vmem:[#allocation244_spill] sm:$0xff] %v12300_v34  ;;  %v1714_v50 = vrot.slane %v12300_v34, 7 }
 0x16f   :  { %v1957_v4 = vpack.c.bf16 %v1925_v29, %v1924_v51  ;;  %v1713_v29 = vrot.slane %v12294_v47, 7  ;;  %v1763_v51 = vsel %vm1737_vm4, %v1710_v35, %v1711_v62  ;;  %v12319_v35 = vld [vmem:[%s15908_s0 + $0x70] sm:$0xff] }
 0x170   :  { %2814 = vperm.xlu0 %10133, %v11884_v31   ;;  %v12283_v15 = vpop.permute.xlu1 %1807 }
 0x171   :  { %16809 = vst [vmem:[#allocation242_spill] sm:$0xff] %v12283_v15  ;;  %v1926_v28 = vmul.f32 %v12283_v15, %v1765_v32  ;;  %v12286_v40 = vpop.permute.xlu0 %1827  ;;  %8975 = vmatmul.mubr.msk.bf16.gmra.mrb[4].mxu0 %vm686_vm1, %v1957_v4  ;;  %v1929_v15 = vmul.f32 %v12263_v57, %v1762_v23  ;;  %v1760_v34 = vsel %vm1737_vm4, %v1713_v29, %v1714_v50  ;;  %v12325_v23 = vld [vmem:[%s15908_s0 + $0x78] sm:$0xff] }
 0x172   :  { %16810 = vst [vmem:[#allocation243_spill] sm:$0xff] %v12286_v40  ;;  %2388 = vperm.xlu1 %10131, %v11700_v10   ;;  %v1716_v62 = vrot.slane %v12325_v23, 7  ;;  %v1931_v57 = vmul.f32 %v12286_v40, %v1760_v34 }
 0x173   :  { %v1958_v32 = vpack.c.bf16 %v1927_v13, %v1926_v28  ;;  %v1715_v28 = vrot.slane %v12319_v35, 7  ;;  %v1761_v13 = vsel %vm1737_vm4, %v1712_v41, %v1713_v29 }
 0x174   :  { %2822 = vperm.xlu0 %10133, %v11915_v61   ;;  %v12307_v4 = vpop.permute.xlu1 %1815 }
 0x175   :  { %16812 = vst [vmem:[#allocation245_spill] sm:$0xff] %v12307_v4  ;;  %v1928_v22 = vmul.f32 %v12307_v4, %v1763_v51  ;;  %v12311_v31 = vpop.permute.xlu0 %1835  ;;  %8978 = vmatprep.mubr.msk.bf16.mxu0 %vm686_vm1, %v1958_v32  ;;  %v1759_v34 = vsel %vm1737_vm4, %v1714_v50, %v1715_v28 }
 0x176   :  { %16813 = vst [vmem:[#allocation246_spill] sm:$0xff] %v12311_v31  ;;  %10134 = vset.pattern.permute.xlu1 %v10309_v26  ;;  %v1758_v26 = vsel %vm1737_vm4, %v1715_v28, %v1716_v62 }
 0x177   :  { %v1959_v51 = vpack.c.bf16 %v1929_v15, %v1928_v22  ;;  %2798 = vperm.xlu1 %10134, %v11742_v24   ;;  %v12344_v22 = vld [vmem:[%s15908_s0 + $0x80] sm:$0xff]  ;;  %v12350_v15 = vld [vmem:[%s15908_s0 + $0x88] sm:$0xff] }
 0x178   :  { %2830 = vperm.xlu0 %10133, %v11946_v9   ;;  %v12332_v32 = vpop.permute.xlu1 %1823  ;;  %v1717_v41 = vrot.slane %v12344_v22, 7  ;;  %16816 = vst [vmem:[#allocation249_spill] sm:$0xff] %v12350_v15  ;;  %v1718_v29 = vrot.slane %v12350_v15, 7 }
 0x179   :  { %16814 = vst [vmem:[#allocation247_spill] sm:$0xff] %v12332_v32  ;;  %v1930_v4 = vmul.f32 %v12332_v32, %v1761_v13  ;;  %v12336_v61 = vpop.permute.xlu0 %1843  ;;  %8979 = vmatmul.mubr.msk.bf16.gmra.mrb[8].mxu0 %vm686_vm1, %v1959_v51  ;;  %v1933_v32 = vmul.f32 %v12311_v31, %v1758_v26 }
 0x17a   :  { %16815 = vst [vmem:[#allocation248_spill] sm:$0xff] %v12336_v61  ;;  %v1756_v15 = vsel %vm1737_vm4, %v1717_v41, %v1718_v29  ;;  %v1757_v26 = vsel %vm1737_vm4, %v1716_v62, %v1717_v41 }
 0x17b   :  { %v1960_v13 = vpack.c.bf16 %v1931_v57, %v1930_v4  ;;  %2802 = vperm.xlu1 %10134, %v11822_v48   ;;  %v12369_v57 = vld [vmem:[%s15908_s0 + $0x90] sm:$0xff]  ;;  %v12375_v4 = vld [vmem:[%s15908_s0 + $0x98] sm:$0xff]  ;;  %v1935_v31 = vmul.f32 %v12336_v61, %v1756_v15 }
 0x17c   :  { %2838 = vperm.xlu0 %10133, %v11972_v0   ;;  %v12357_v51 = vpop.permute.xlu1 %1831  ;;  %v1719_v50 = vrot.slane %v12369_v57, 7  ;;  %16819 = vst [vmem:[#allocation252_spill] sm:$0xff] %v12375_v4  ;;  %v1720_v28 = vrot.slane %v12375_v4, 7 }
 0x17d   :  { %16817 = vst [vmem:[#allocation250_spill] sm:$0xff] %v12357_v51  ;;  %v1932_v40 = vmul.f32 %v12357_v51, %v1759_v34  ;;  %v12361_v9 = vpop.permute.xlu0 %1851  ;;  %8982 = vmatprep.mubr.msk.bf16.mxu0 %vm686_vm1, %v1960_v13 }
 0x17e   :  { %16818 = vst [vmem:[#allocation251_spill] sm:$0xff] %v12361_v9  ;;  %v1754_v4 = vsel %vm1737_vm4, %v1719_v50, %v1720_v28  ;;  %v1755_v15 = vsel %vm1737_vm4, %v1718_v29, %v1719_v50 }
 0x17f   :  { %v1961_v34 = vpack.c.bf16 %v1933_v32, %v1932_v40  ;;  %2810 = vperm.xlu1 %10134, %v11773_v2   ;;  %v12394_v40 = vld [vmem:[%s15908_s0 + $0xa0] sm:$0xff]  ;;  %v12400_v32 = vld [vmem:[%s15908_s0 + $0xa8] sm:$0xff] }
 0x180   :  { %2846 = vperm.xlu0 %10133, %v11998_v59   ;;  %v12382_v13 = vpop.permute.xlu1 %1839  ;;  %v1721_v62 = vrot.slane %v12394_v40, 7  ;;  %16822 = vst [vmem:[#allocation255_spill] sm:$0xff] %v12400_v32  ;;  %v1722_v41 = vrot.slane %v12400_v32, 7 }
 0x181   :  { %16820 = vst [vmem:[#allocation253_spill] sm:$0xff] %v12382_v13  ;;  %v1934_v51 = vmul.f32 %v12382_v13, %v1757_v26  ;;  %v12386_v0 = vpop.permute.xlu0 %1859  ;;  %8983 = vmatmul.mubr.msk.bf16.gmra.mrb[12].mxu0 %vm686_vm1, %v1961_v34  ;;  %v1937_v13 = vmul.f32 %v12361_v9, %v1754_v4 }
 0x182   :  { %16821 = vst [vmem:[#allocation254_spill] sm:$0xff] %v12386_v0  ;;  %v1752_v32 = vsel %vm1737_vm4, %v1721_v62, %v1722_v41  ;;  %v1753_v4 = vsel %vm1737_vm4, %v1720_v28, %v1721_v62 }
 0x183   :  { %v1962_v26 = vpack.c.bf16 %v1935_v31, %v1934_v51  ;;  %2818 = vperm.xlu1 %10134, %v11799_v56   ;;  %v12419_v31 = vld [vmem:[%s15908_s0 + $0xb0] sm:$0xff]  ;;  %v12425_v51 = vld [vmem:[%s15908_s0 + $0xb8] sm:$0xff]  ;;  %v1939_v9 = vmul.f32 %v12386_v0, %v1752_v32 }
 0x184   :  { %2854 = vperm.xlu0 %10133, %v12024_v53   ;;  %v12407_v34 = vpop.permute.xlu1 %1847  ;;  %v1723_v29 = vrot.slane %v12419_v31, 7  ;;  %16825 = vst [vmem:[#allocation258_spill] sm:$0xff] %v12425_v51  ;;  %v1724_v50 = vrot.slane %v12425_v51, 7 }
 0x185   :  { %16823 = vst [vmem:[#allocation256_spill] sm:$0xff] %v12407_v34  ;;  %v1936_v61 = vmul.f32 %v12407_v34, %v1755_v15  ;;  %v12411_v59 = vpop.permute.xlu0 %1867  ;;  %8986 = vmatprep.mubr.msk.bf16.mxu0 %vm686_vm1, %v1962_v26 }
 0x186   :  { %16824 = vst [vmem:[#allocation257_spill] sm:$0xff] %v12411_v59  ;;  %v1750_v51 = vsel %vm1737_vm4, %v1723_v29, %v1724_v50  ;;  %v1751_v32 = vsel %vm1737_vm4, %v1722_v41, %v1723_v29 }
 0x187   :  { %v1963_v15 = vpack.c.bf16 %v1937_v13, %v1936_v61  ;;  %2826 = vperm.xlu1 %10134, %v11828_v44   ;;  %v12444_v61 = vld [vmem:[%s15908_s0 + $0xc0] sm:$0xff]  ;;  %v12450_v13 = vld [vmem:[%s15908_s0 + $0xc8] sm:$0xff] }
 0x188   :  { %2862 = vperm.xlu0 %10133, %v12050_v20   ;;  %v12432_v26 = vpop.permute.xlu1 %1855  ;;  %v1725_v28 = vrot.slane %v12444_v61, 7  ;;  %16828 = vst [vmem:[#allocation261_spill] sm:$0xff] %v12450_v13  ;;  %v1726_v62 = vrot.slane %v12450_v13, 7 }
 0x189   :  { %16826 = vst [vmem:[#allocation259_spill] sm:$0xff] %v12432_v26  ;;  %v1938_v34 = vmul.f32 %v12432_v26, %v1753_v4  ;;  %v12436_v53 = vpop.permute.xlu0 %1875  ;;  %8987 = vmatmul.mubr.msk.bf16.gmra.mrb[16].mxu0 %vm686_vm1, %v1963_v15  ;;  %v1941_v26 = vmul.f32 %v12411_v59, %v1750_v51 }
 0x18a   :  { %16827 = vst [vmem:[#allocation260_spill] sm:$0xff] %v12436_v53  ;;  %v1748_v13 = vsel %vm1737_vm4, %v1725_v28, %v1726_v62  ;;  %v1749_v51 = vsel %vm1737_vm4, %v1724_v50, %v1725_v28 }
 0x18b   :  { %v1964_v4 = vpack.c.bf16 %v1939_v9, %v1938_v34  ;;  %2834 = vperm.xlu1 %10134, %v11859_v21   ;;  %v12469_v9 = vld [vmem:[%s15908_s0 + $0xd0] sm:$0xff]  ;;  %v12475_v34 = vld [vmem:[%s15908_s0 + $0xd8] sm:$0xff]  ;;  %v1943_v59 = vmul.f32 %v12436_v53, %v1748_v13 }
 0x18c   :  { %2870 = vperm.xlu0 %10133, %v12076_v6   ;;  %v12457_v15 = vpop.permute.xlu1 %1863  ;;  %v1727_v41 = vrot.slane %v12469_v9, 7  ;;  %16831 = vst [vmem:[#allocation264_spill] sm:$0xff] %v12475_v34  ;;  %v1728_v29 = vrot.slane %v12475_v34, 7 }
 0x18d   :  { %16829 = vst [vmem:[#allocation262_spill] sm:$0xff] %v12457_v15  ;;  %v1940_v0 = vmul.f32 %v12457_v15, %v1751_v32  ;;  %v12461_v20 = vpop.permute.xlu0 %1883  ;;  %8990 = vmatprep.mubr.msk.bf16.mxu0 %vm686_vm1, %v1964_v4 }
 0x18e   :  { %16830 = vst [vmem:[#allocation263_spill] sm:$0xff] %v12461_v20  ;;  %v1746_v34 = vsel %vm1737_vm4, %v1727_v41, %v1728_v29  ;;  %v1747_v13 = vsel %vm1737_vm4, %v1726_v62, %v1727_v41  ;;  %v12525_v62 = vld [vmem:[%s15908_s0 + $0xf8] sm:$0xff] }
 0x18f   :  { %v1965_v32 = vpack.c.bf16 %v1941_v26, %v1940_v0  ;;  %2842 = vperm.xlu1 %10134, %v11890_v37   ;;  %v12494_v0 = vld [vmem:[%s15908_s0 + $0xe0] sm:$0xff]  ;;  %v12500_v26 = vld [vmem:[%s15908_s0 + $0xe8] sm:$0xff]  ;;  %16837 = vst [vmem:[#allocation270_spill] sm:$0xff] %v12525_v62 }
 0x190   :  { %2878 = vperm.xlu0 %10133, %v12102_v54   ;;  %v12482_v4 = vpop.permute.xlu1 %1871  ;;  %v1729_v50 = vrot.slane %v12494_v0, 7  ;;  %16834 = vst [vmem:[#allocation267_spill] sm:$0xff] %v12500_v26  ;;  %v1730_v28 = vrot.slane %v12500_v26, 7 }
 0x191   :  { %16832 = vst [vmem:[#allocation265_spill] sm:$0xff] %v12482_v4  ;;  %v1942_v15 = vmul.f32 %v12482_v4, %v1749_v51  ;;  %v12486_v6 = vpop.permute.xlu0 %1891  ;;  %8991 = vmatmul.mubr.msk.bf16.gmra.mrb[20].mxu0 %vm686_vm1, %v1965_v32  ;;  %v1945_v4 = vmul.f32 %v12461_v20, %v1746_v34 }
 0x192   :  { %16833 = vst [vmem:[#allocation266_spill] sm:$0xff] %v12486_v6  ;;  %v1744_v26 = vsel %vm1737_vm4, %v1729_v50, %v1730_v28  ;;  %v1745_v41 = vsel %vm1737_vm4, %v1728_v29, %v1729_v50 }
 0x193   :  { %v1966_v51 = vpack.c.bf16 %v1943_v59, %v1942_v15  ;;  %2850 = vperm.xlu1 %10134, %v11921_v33   ;;  %v12519_v59 = vld [vmem:[%s15908_s0 + $0xf0] sm:$0xff]  ;;  %v1732_v15 = vrot.slane %v12525_v62, 7 }
 0x194   :  { %2886 = vperm.xlu0 %10133, %v11522_v55   ;;  %v12507_v32 = vpop.permute.xlu1 %1879  ;;  %v1731_v55 = vrot.slane %v12519_v59, 7 }
 0x195   :  { %16835 = vst [vmem:[#allocation268_spill] sm:$0xff] %v12507_v32  ;;  %v1944_v53 = vmul.f32 %v12507_v32, %v1747_v13  ;;  %v12511_v54 = vpop.permute.xlu0 %1899  ;;  %8994 = vmatprep.mubr.msk.bf16.mxu0 %vm686_vm1, %v1966_v51  ;;  %v1947_v51 = vmul.f32 %v12486_v6, %v1744_v26 }
 0x196   :  { %16836 = vst [vmem:[#allocation269_spill] sm:$0xff] %v12511_v54  ;;  %v1742_v62 = vsel %vm1737_vm4, %v1731_v55, %v1732_v15 }
 0x197   :  { %v1967_v34 = vpack.c.bf16 %v1945_v4, %v1944_v53  ;;  %2858 = vperm.xlu1 %10134, %v11490_v30   ;;  %v12544_v53 = vld [vmem:[%s15908_s0 + $0x100] sm:$0xff]  ;;  %v1743_v4 = vsel %vm1737_vm4, %v1730_v28, %v1731_v55 }
 0x198   :  { %2894 = vperm.xlu0 %10133, %v11552_v3   ;;  %v12532_v13 = vpop.permute.xlu1 %1887  ;;  %v1733_v30 = vrot.slane %v12544_v53, 7  ;;  %v12550_v3 = vld [vmem:[%s15908_s0 + $0x108] sm:$0xff] }
 0x199   :  { %16838 = vst [vmem:[#allocation271_spill] sm:$0xff] %v12532_v13  ;;  %v1946_v20 = vmul.f32 %v12532_v13, %v1745_v41  ;;  %v12536_v32 = vpop.permute.xlu0 %1907  ;;  %8995 = vmatmul.mubr.msk.bf16.gmra.mrb[24].mxu0 %vm686_vm1, %v1967_v34  ;;  %v1734_v29 = vrot.slane %v12550_v3, 7  ;;  %v1949_v41 = vmul.f32 %v12511_v54, %v1742_v62 }
 0x19a   :  { %16839 = vst [vmem:[#allocation272_spill] sm:$0xff] %v12536_v32 }
 0x19b   :  { %v1968_v50 = vpack.c.bf16 %v1947_v51, %v1946_v20  ;;  %2866 = vperm.xlu1 %10134, %v11516_v1   ;;  %v1740_v6 = vsel %vm1737_vm4, %v1733_v30, %v1734_v29  ;;  %v12569_v20 = vld [vmem:[%s15908_s0 + $0x110] sm:$0xff] }
 0x19c   :  { %2902 = vperm.xlu0 %10133, %v11585_v25   ;;  %v12557_v26 = vpop.permute.xlu1 %1895  ;;  %v1735_v1 = vrot.slane %v12569_v20, 7  ;;  %v1741_v25 = vsel %vm1737_vm4, %v1732_v15, %v1733_v30  ;;  %v1951_v62 = vmul.f32 %v12536_v32, %v1740_v6  ;;  %v16266_v32 = vmov 7  }
 0x19d   :  { %16840 = vst [vmem:[#allocation273_spill] sm:$0xff] %v12557_v26  ;;  %v1948_v34 = vmul.f32 %v12557_v26, %v1743_v4  ;;  %v12561_v13 = vpop.permute.xlu0 %1915  ;;  %8998 = vmatprep.mubr.msk.bf16.mxu0 %vm686_vm1, %v1968_v50  ;;  %v16843_v4 = vrot.slane %v12117_v39, 7  ;;  %v12916_v26 = vld [vmem:[%s15906_s1 + $0x18] sm:$0xff] }
 0x19e   :  { %16841 = vst [vmem:[#allocation274_spill] sm:$0xff] %v12561_v13 }
 0x19f   :  { %v1969_v28 = vpack.c.bf16 %v1949_v41, %v1948_v34  ;;  %2874 = vperm.xlu1 %10134, %v11546_v12   ;;  %v1738_v50 = vsel %vm1737_vm4, %v1735_v1, %v16843_v4  ;;  %v1739_v12 = vsel %vm1737_vm4, %v1734_v29, %v1735_v1 }
 0x1a0   :  { %2910 = vperm.xlu0 %10133, %v11614_v16   ;;  %v12576_v55 = vpop.permute.xlu1 %1903  ;;  %v1953_v6 = vmul.f32 %v12561_v13, %v1738_v50  ;;  %v12833_v13 = vld [vmem:[%s15906_s1 + $0x100] sm:$0xff] }
 0x1a1   :  { %16842 = vst [vmem:[#allocation275_spill] sm:$0xff] %v12576_v55  ;;  %v1950_v51 = vmul.f32 %v12576_v55, %v1741_v25  ;;  %8999 = vmatmul.mubr.msk.bf16.gmra.mrb[28].mxu0 %vm686_vm1, %v1969_v28  ;;  %v12877_v55 = vld [vmem:[%s15906_s1 + $0xc8] sm:$0xff] }
 0x1a2   :  { %v12585_v54 = vpop.permute.xlu0 %2252 }
 0x1a3   :  { %16844 = vst [vmem:[#allocation276_spill] sm:$0xff] %v12585_v54  ;;  %v1970_v15 = vpack.c.bf16 %v1951_v62, %v1950_v51  ;;  %2882 = vperm.xlu1 %10134, %v11577_v14   ;;  %v2392_v29 = vmul.f32 %v12142_v5, %v12585_v54  ;;  %v2721_v54 = vrot.slane %v12142_v5, 1 }
 0x1a4   :  { %2918 = vperm.xlu0 %10133, %v11641_v18   ;;  %v12591_v16 = vpop.permute.xlu1 %1911 }
 0x1a5   :  { %16845 = vst [vmem:[#allocation277_spill] sm:$0xff] %v12591_v16  ;;  %v1952_v30 = vmul.f32 %v12591_v16, %v1739_v12  ;;  %9002 = vmatprep.mubr.msk.bf16.mxu0 %vm686_vm1, %v1970_v15 }
 0x1a6   :  { %v12596_v41 = vpop.permute.xlu0 %2264 }
 0x1a7   :  { %16846 = vst [vmem:[#allocation278_spill] sm:$0xff] %v12596_v41  ;;  %v1971_v34 = vpack.c.bf16 %v1953_v6, %v1952_v30  ;;  %2890 = vperm.xlu1 %10134, %v11602_v58   ;;  %v2395_v4 = vmul.f32 %v12183_v11, %v12596_v41 }
 0x1a8   :  { %2926 = vperm.xlu0 %10133, %v11668_v49   ;;  %v10310_v49 = vmov 6  }
 0x1a9   :  { %v12602_v14 = vpop.permute.xlu1 %2248  ;;  %9003 = vmatmul.mubr.msk.bf16.gmra.mrb[32].mxu0 %vm686_vm1, %v1971_v34 }
 0x1aa   :  { %16847 = vst [vmem:[#allocation279_spill] sm:$0xff] %v12602_v14  ;;  %v2391_v18 = vmul.f32 %v12111_v19, %v12602_v14  ;;  %v12607_v1 = vpop.permute.xlu0 %2272  ;;  %v2722_v14 = vrot.slane %v12159_v27, 1 }
 0x1ab   :  { %16848 = vst [vmem:[#allocation280_spill] sm:$0xff] %v12607_v1  ;;  %2898 = vperm.xlu1 %10134, %v11633_v7  }
 0x1ac   :  { %v2427_v25 = vpack.c.bf16 %v2392_v29, %v2391_v18  ;;  %2934 = vperm.xlu0 %10133, %v11700_v10  }
 0x1ad   :  { %v12611_v58 = vpop.permute.xlu1 %2256 }
 0x1ae   :  { %16849 = vst [vmem:[#allocation281_spill] sm:$0xff] %v12611_v58  ;;  %v12613_v28 = vpop.permute.xlu0 %2280  ;;  %9008 = vmatprep.mubr.msk.bf16.mxu0 %vm686_vm1, %v2427_v25  ;;  %v2393_v7 = vmul.f32 %v12159_v27, %v12611_v58  ;;  %v2724_v27 = vrot.slane %v12183_v11, 1 }
 0x1af   :  { %16850 = vst [vmem:[#allocation282_spill] sm:$0xff] %v12613_v28  ;;  %2906 = vperm.xlu1 %10134, %v11657_v45  }
 0x1b0   :  { %10136 = vset.pattern.permute.xlu0 %v10310_v49 }
 0x1b1   :  { %3271 = vperm.xlu0 %10136, %v11742_v24   ;;  %v12618_v62 = vpop.permute.xlu1 %2260  ;;  %v12632_v24 = vld [vmem:[%s15907_s2 + $0x30] sm:$0xff]  }
 0x1b2   :  { %16851 = vst [vmem:[#allocation283_spill] sm:$0xff] %v12618_v62  ;;  %v2394_v10 = vmul.f32 %v12165_v36, %v12618_v62  ;;  %v12624_v51 = vpop.permute.xlu0 %2288 }
 0x1b3   :  { %16852 = vst [vmem:[#allocation284_spill] sm:$0xff] %v12624_v51  ;;  %2914 = vperm.xlu1 %10134, %v11687_v38   ;;  %v2397_v38 = vmul.f32 %v12208_v52, %v12607_v1 }
 0x1b4   :  { %v2428_v45 = vpack.c.bf16 %v2394_v10, %v2393_v7 }
 0x1b5   :  { %3283 = vperm.xlu0 %10136, %v11773_v2   ;;  %v12635_v50 = vpop.permute.xlu1 %2268 }
 0x1b6   :  { %16853 = vst [vmem:[#allocation285_spill] sm:$0xff] %v12635_v50  ;;  %v2396_v12 = vmul.f32 %v12189_v17, %v12635_v50  ;;  %v12639_v15 = vpop.permute.xlu0 %2296  ;;  %9009 = vmatmul.mubr.msk.bf16.vlgmr.msra.gmra.mrb[0].mxu0 %vm686_vm1, %v2428_v45  ;;  %v16862_v45 = vld [vmem:[#allocation171_spill] sm:$0xff] }
 0x1b7   :  { %16854 = vst [vmem:[#allocation286_spill] sm:$0xff] %v12639_v15  ;;  %2922 = vperm.xlu1 %10134, %v11723_v42   ;;  %9045 = vmatpush3.bf16.msra.mxu0 %v12228_v63  ;;  %v16857_v42 = vld [vmem:[#allocation165_spill] sm:$0xff] }
 0x1b8   :  { %v2429_v6 = vpack.c.bf16 %v2396_v12, %v2395_v4  ;;  %9082 = vmatprep.subr.bf16.mxu0 %v12632_v24  ;;  %v16858_v63 = vld [vmem:[#allocation237_spill] sm:$0xff] }
 0x1b9   :  { %3291 = vperm.xlu0 %10136, %v11799_v56   ;;  %v12648_v2 = vpop.permute.xlu1 %2276  ;;  %v2399_v29 = vmul.f32 %v16858_v63, %v12613_v28  ;;  %v16860_v56 = vld [vmem:[#allocation238_spill] sm:$0xff] }
 0x1ba   :  { %16855 = vst [vmem:[#allocation287_spill] sm:$0xff] %v12648_v2  ;;  %v2398_v30 = vmul.f32 %v12214_v8, %v12648_v2  ;;  %v12652_v34 = vpop.permute.xlu0 %2304  ;;  %9012 = vmatprep.mubr.msk.bf16.mxu0 %vm686_vm1, %v2429_v6 }
 0x1bb   :  { %16856 = vst [vmem:[#allocation288_spill] sm:$0xff] %v12652_v34  ;;  %2930 = vperm.xlu1 %10134, %v16857_v42   ;;  %v16866_v42 = vld [vmem:[#allocation244_spill] sm:$0xff] }
 0x1bc   :  { %v2430_v18 = vpack.c.bf16 %v2398_v30, %v2397_v38 }
 0x1bd   :  { %3299 = vperm.xlu0 %10136, %v11828_v44   ;;  %v12659_v25 = vpop.permute.xlu1 %2284  ;;  %v2401_v44 = vmul.f32 %v12269_v46, %v12624_v51 }
 0x1be   :  { %16859 = vst [vmem:[#allocation165_spill] sm:$0xff] %v12659_v25  ;;  %v2400_v7 = vmul.f32 %v16860_v56, %v12659_v25  ;;  %v12663_v10 = vpop.permute.xlu0 %2312  ;;  %9013 = vmatmul.mubr.msk.bf16.gmra.mrb[4].mxu0 %vm686_vm1, %v2430_v18 }
 0x1bf   :  { %16861 = vst [vmem:[#allocation237_spill] sm:$0xff] %v12663_v10  ;;  %10135 = vset.pattern.permute.xlu1 %v10310_v49 }
 0x1c0   :  { %v2431_v4 = vpack.c.bf16 %v2400_v7, %v2399_v29  ;;  %3267 = vperm.xlu1 %10135, %v16862_v45   ;;  %v16868_v45 = vld [vmem:[#allocation180_spill] sm:$0xff] }
 0x1c1   :  { %3307 = vperm.xlu0 %10136, %v11859_v21   ;;  %v12668_v12 = vpop.permute.xlu1 %2292  ;;  %v2403_v21 = vmul.f32 %v12294_v47, %v12639_v15  ;;  %v16871_v15 = vld [vmem:[#allocation185_spill] sm:$0xff] }
 0x1c2   :  { %16863 = vst [vmem:[#allocation238_spill] sm:$0xff] %v12668_v12  ;;  %v2402_v38 = vmul.f32 %v12275_v60, %v12668_v12  ;;  %v12674_v6 = vpop.permute.xlu0 %2320  ;;  %9016 = vmatprep.mubr.msk.bf16.mxu0 %vm686_vm1, %v2431_v4 }
 0x1c3   :  { %16864 = vst [vmem:[#allocation171_spill] sm:$0xff] %v12674_v6 }
 0x1c4   :  { %v2432_v30 = vpack.c.bf16 %v2402_v38, %v2401_v44  ;;  %3275 = vperm.xlu1 %10135, %v11822_v48  }
 0x1c5   :  { %3315 = vperm.xlu0 %10136, %v11890_v37   ;;  %v12679_v49 = vpop.permute.xlu1 %2300  ;;  %v2405_v37 = vmul.f32 %v12319_v35, %v12652_v34 }
 0x1c6   :  { %16865 = vst [vmem:[#allocation289_spill] sm:$0xff] %v12679_v49  ;;  %v2404_v29 = vmul.f32 %v16866_v42, %v12679_v49  ;;  %v12685_v18 = vpop.permute.xlu0 %2328  ;;  %9017 = vmatmul.mubr.msk.bf16.gmra.mrb[8].mxu0 %vm686_vm1, %v2432_v30  ;;  %v12703_v30 = vld [vmem:[%s15906_s1 + $0x80] sm:$0xff] }
 0x1c7   :  { %16867 = vst [vmem:[#allocation244_spill] sm:$0xff] %v12685_v18 }
 0x1c8   :  { %v2433_v7 = vpack.c.bf16 %v2404_v29, %v2403_v21  ;;  %3279 = vperm.xlu1 %10135, %v16868_v45   ;;  %v2407_v21 = vmul.f32 %v12344_v22, %v12663_v10  ;;  %v16873_v29 = vld [vmem:[#allocation249_spill] sm:$0xff]  ;;  %v2409_v10 = vmul.f32 %v12369_v57, %v12674_v6  ;;  %v2411_v6 = vmul.f32 %v12394_v40, %v12685_v18 }
 0x1c9   :  { %3323 = vperm.xlu0 %10136, %v11921_v33   ;;  %v12690_v48 = vpop.permute.xlu1 %2308 }
 0x1ca   :  { %16869 = vst [vmem:[#allocation180_spill] sm:$0xff] %v12690_v48  ;;  %v2406_v4 = vmul.f32 %v12325_v23, %v12690_v48  ;;  %v12696_v44 = vpop.permute.xlu0 %2336  ;;  %9020 = vmatprep.mubr.msk.bf16.mxu0 %vm686_vm1, %v2433_v7  ;;  %v16875_v7 = vld [vmem:[#allocation190_spill] sm:$0xff] }
 0x1cb   :  { %16870 = vst [vmem:[#allocation290_spill] sm:$0xff] %v12696_v44  ;;  %v2413_v18 = vmul.f32 %v12419_v31, %v12696_v44 }
 0x1cc   :  { %v2434_v38 = vpack.c.bf16 %v2406_v4, %v2405_v37  ;;  %3287 = vperm.xlu1 %10135, %v16871_v15   ;;  %v12719_v37 = vld [vmem:[%s15906_s1 + $0x90] sm:$0xff] }
 0x1cd   :  { %3331 = vperm.xlu0 %10136, %v12703_v30   ;;  %v12706_v33 = vpop.permute.xlu1 %2316 }
 0x1ce   :  { %16872 = vst [vmem:[#allocation185_spill] sm:$0xff] %v12706_v33  ;;  %v2408_v45 = vmul.f32 %v16873_v29, %v12706_v33  ;;  %v12712_v34 = vpop.permute.xlu0 %2344  ;;  %9021 = vmatmul.mubr.msk.bf16.gmra.mrb[12].mxu0 %vm686_vm1, %v2434_v38  ;;  %v16877_v33 = vld [vmem:[#allocation252_spill] sm:$0xff] }
 0x1cf   :  { %16874 = vst [vmem:[#allocation249_spill] sm:$0xff] %v12712_v34  ;;  %v2415_v44 = vmul.f32 %v12444_v61, %v12712_v34 }
 0x1d0   :  { %v2435_v15 = vpack.c.bf16 %v2408_v45, %v2407_v21  ;;  %3295 = vperm.xlu1 %10135, %v16875_v7   ;;  %v16879_v21 = vld [vmem:[#allocation195_spill] sm:$0xff]  ;;  %v12735_v45 = vld [vmem:[%s15906_s1 + $0xa0] sm:$0xff] }
 0x1d1   :  { %3339 = vperm.xlu0 %10136, %v12719_v37   ;;  %v12722_v4 = vpop.permute.xlu1 %2324 }
 0x1d2   :  { %16876 = vst [vmem:[#allocation190_spill] sm:$0xff] %v12722_v4  ;;  %v2410_v48 = vmul.f32 %v16877_v33, %v12722_v4  ;;  %v12728_v51 = vpop.permute.xlu0 %2352  ;;  %9024 = vmatprep.mubr.msk.bf16.mxu0 %vm686_vm1, %v2435_v15  ;;  %v16881_v4 = vld [vmem:[#allocation255_spill] sm:$0xff]  ;;  %v12751_v15 = vld [vmem:[%s15906_s1 + $0xb0] sm:$0xff] }
 0x1d3   :  { %16878 = vst [vmem:[#allocation252_spill] sm:$0xff] %v12728_v51  ;;  %v2417_v34 = vmul.f32 %v12469_v9, %v12728_v51 }
 0x1d4   :  { %v2436_v38 = vpack.c.bf16 %v2410_v48, %v2409_v10  ;;  %3303 = vperm.xlu1 %10135, %v16879_v21   ;;  %v16883_v48 = vld [vmem:[#allocation200_spill] sm:$0xff] }
 0x1d5   :  { %3347 = vperm.xlu0 %10136, %v12735_v45   ;;  %v12738_v7 = vpop.permute.xlu1 %2332 }
 0x1d6   :  { %16880 = vst [vmem:[#allocation195_spill] sm:$0xff] %v12738_v7  ;;  %v2412_v49 = vmul.f32 %v16881_v4, %v12738_v7  ;;  %v12744_v12 = vpop.permute.xlu0 %2360  ;;  %9025 = vmatmul.mubr.msk.bf16.gmra.mrb[16].mxu0 %vm686_vm1, %v2436_v38  ;;  %v16885_v7 = vld [vmem:[#allocation258_spill] sm:$0xff] }
 0x1d7   :  { %16882 = vst [vmem:[#allocation255_spill] sm:$0xff] %v12744_v12  ;;  %v12767_v38 = vld [vmem:[%s15906_s1 + $0xc0] sm:$0xff]  ;;  %v2419_v51 = vmul.f32 %v12494_v0, %v12744_v12 }
 0x1d8   :  { %v2437_v10 = vpack.c.bf16 %v2412_v49, %v2411_v6  ;;  %3311 = vperm.xlu1 %10135, %v16883_v48   ;;  %v16887_v49 = vld [vmem:[#allocation205_spill] sm:$0xff] }
 0x1d9   :  { %3355 = vperm.xlu0 %10136, %v12751_v15   ;;  %v12754_v21 = vpop.permute.xlu1 %2340 }
 0x1da   :  { %16884 = vst [vmem:[#allocation200_spill] sm:$0xff] %v12754_v21  ;;  %v2414_v28 = vmul.f32 %v16885_v7, %v12754_v21  ;;  %v12760_v1 = vpop.permute.xlu0 %2368  ;;  %9028 = vmatprep.mubr.msk.bf16.mxu0 %vm686_vm1, %v2437_v10  ;;  %v16889_v21 = vld [vmem:[#allocation261_spill] sm:$0xff]  ;;  %v12783_v10 = vld [vmem:[%s15906_s1 + $0xd0] sm:$0xff] }
 0x1db   :  { %16886 = vst [vmem:[#allocation258_spill] sm:$0xff] %v12760_v1  ;;  %v2421_v12 = vmul.f32 %v12519_v59, %v12760_v1 }
 0x1dc   :  { %v2438_v6 = vpack.c.bf16 %v2414_v28, %v2413_v18  ;;  %3319 = vperm.xlu1 %10135, %v16887_v49   ;;  %v16891_v18 = vld [vmem:[#allocation210_spill] sm:$0xff] }
 0x1dd   :  { %3363 = vperm.xlu0 %10136, %v12767_v38   ;;  %v12770_v48 = vpop.permute.xlu1 %2348 }
 0x1de   :  { %16888 = vst [vmem:[#allocation205_spill] sm:$0xff] %v12770_v48  ;;  %v2416_v25 = vmul.f32 %v16889_v21, %v12770_v48  ;;  %v12776_v2 = vpop.permute.xlu0 %2376  ;;  %9029 = vmatmul.mubr.msk.bf16.gmra.mrb[20].mxu0 %vm686_vm1, %v2438_v6  ;;  %v16893_v48 = vld [vmem:[#allocation264_spill] sm:$0xff]  ;;  %v12799_v6 = vld [vmem:[%s15906_s1 + $0xe0] sm:$0xff] }
 0x1df   :  { %16890 = vst [vmem:[#allocation261_spill] sm:$0xff] %v12776_v2 }
 0x1e0   :  { %v2439_v28 = vpack.c.bf16 %v2416_v25, %v2415_v44  ;;  %3327 = vperm.xlu1 %10135, %v16891_v18   ;;  %v16895_v44 = vld [vmem:[#allocation215_spill] sm:$0xff] }
 0x1e1   :  { %3371 = vperm.xlu0 %10136, %v12783_v10   ;;  %v12786_v49 = vpop.permute.xlu1 %2356 }
 0x1e2   :  { %16892 = vst [vmem:[#allocation210_spill] sm:$0xff] %v12786_v49  ;;  %v2418_v41 = vmul.f32 %v16893_v48, %v12786_v49  ;;  %v12792_v58 = vpop.permute.xlu0 %2384  ;;  %9032 = vmatprep.mubr.msk.bf16.mxu0 %vm686_vm1, %v2439_v28  ;;  %v16897_v49 = vld [vmem:[#allocation267_spill] sm:$0xff]  ;;  %v16899_v28 = vld [vmem:[#allocation220_spill] sm:$0xff] }
 0x1e3   :  { %16894 = vst [vmem:[#allocation264_spill] sm:$0xff] %v12792_v58 }
 0x1e4   :  { %v2440_v25 = vpack.c.bf16 %v2418_v41, %v2417_v34  ;;  %3335 = vperm.xlu1 %10135, %v16895_v44   ;;  %v12815_v44 = vld [vmem:[%s15906_s1 + $0xf0] sm:$0xff] }
 0x1e5   :  { %3379 = vperm.xlu0 %10136, %v12799_v6   ;;  %v12802_v18 = vpop.permute.xlu1 %2364 }
 0x1e6   :  { %16896 = vst [vmem:[#allocation215_spill] sm:$0xff] %v12802_v18  ;;  %v2420_v50 = vmul.f32 %v16897_v49, %v12802_v18  ;;  %9033 = vmatmul.mubr.msk.bf16.gmra.mrb[24].mxu0 %vm686_vm1, %v2440_v25  ;;  %v16901_v18 = vld [vmem:[#allocation270_spill] sm:$0xff] }
 0x1e7   :  { %v12809_v41 = vpop.permute.xlu0 %2794 }
 0x1e8   :  { %16898 = vst [vmem:[#allocation267_spill] sm:$0xff] %v12809_v41  ;;  %v2441_v34 = vpack.c.bf16 %v2420_v50, %v2419_v51  ;;  %3343 = vperm.xlu1 %10135, %v16899_v28   ;;  %v16903_v28 = vld [vmem:[#allocation225_spill] sm:$0xff] }
 0x1e9   :  { %3387 = vperm.xlu0 %10136, %v12815_v44   ;;  %v12818_v62 = vpop.permute.xlu1 %2372 }
 0x1ea   :  { %16900 = vst [vmem:[#allocation220_spill] sm:$0xff] %v12818_v62  ;;  %v2422_v25 = vmul.f32 %v16901_v18, %v12818_v62  ;;  %9036 = vmatprep.mubr.msk.bf16.mxu0 %vm686_vm1, %v2441_v34  ;;  %v2423_v34 = vmul.f32 %v12544_v53, %v12776_v2  ;;  %v16906_v2 = vrot.slane %v12111_v19, 1 }
 0x1eb   :  { %v12825_v51 = vpop.permute.xlu0 %2806 }
 0x1ec   :  { %16902 = vst [vmem:[#allocation270_spill] sm:$0xff] %v12825_v51  ;;  %v2442_v50 = vpack.c.bf16 %v2422_v25, %v2421_v12  ;;  %3351 = vperm.xlu1 %10135, %v16903_v28   ;;  %v12849_v28 = vld [vmem:[%s15906_s1 + $0xb8] sm:$0xff]  ;;  %v2791_v62 = vsel %vm2756_vm5, %v16906_v2, %v2721_v54 }
 0x1ed   :  { %3395 = vperm.xlu0 %10136, %v12833_v13   ;;  %v12836_v1 = vpop.permute.xlu1 %2380  ;;  %v2937_v11 = vmul.f32 %v12809_v41, %v2791_v62 }
 0x1ee   :  { %16904 = vst [vmem:[#allocation225_spill] sm:$0xff] %v12836_v1  ;;  %v2424_v12 = vmul.f32 %v12550_v3, %v12836_v1  ;;  %9037 = vmatmul.mubr.msk.bf16.gmra.mrb[28].mxu0 %vm686_vm1, %v2442_v50  ;;  %v2723_v1 = vrot.slane %v12165_v36, 1  ;;  %v12861_v50 = vld [vmem:[%s15906_s1 + $0x110] sm:$0xff] }
 0x1ef   :  { %v12844_v5 = vpop.permute.xlu0 %2814 }
 0x1f0   :  { %16905 = vst [vmem:[#allocation291_spill] sm:$0xff] %v12844_v5  ;;  %v2443_v25 = vpack.c.bf16 %v2424_v12, %v2423_v34  ;;  %3359 = vperm.xlu1 %10135, %v12849_v28   ;;  %v2425_v12 = vmul.f32 %v12569_v20, %v12792_v58  ;;  %v2790_v58 = vsel %vm2756_vm5, %v2721_v54, %v2722_v14 }
 0x1f1   :  { %3403 = vperm.xlu0 %10136, %v12861_v50   ;;  %v12864_v34 = vpop.permute.xlu1 %2388 }
 0x1f2   :  { %16907 = vst [vmem:[#allocation292_spill] sm:$0xff] %v12864_v34  ;;  %v2426_v16 = vmul.f32 %v12117_v39, %v12864_v34  ;;  %9040 = vmatprep.mubr.msk.bf16.mxu0 %vm686_vm1, %v2443_v25  ;;  %v2788_v39 = vsel %vm2756_vm5, %v2723_v1, %v2724_v27  ;;  %v2726_v25 = vrot.slane %v12208_v52, 1  ;;  %v2789_v52 = vsel %vm2756_vm5, %v2722_v14, %v2723_v1 }
 0x1f3   :  { %v12872_v36 = vpop.permute.xlu0 %2822  ;;  %v2940_v41 = vmul.f32 %v12825_v51, %v2788_v39 }
 0x1f4   :  { %16908 = vst [vmem:[#allocation293_spill] sm:$0xff] %v12872_v36  ;;  %v2444_v2 = vpack.c.bf16 %v2426_v16, %v2425_v12  ;;  %3367 = vperm.xlu1 %10135, %v12877_v55   ;;  %v2725_v16 = vrot.slane %v12189_v17, 1  ;;  %v12891_v12 = vld [vmem:[%s15906_s1] sm:$0xff]  ;;  %v12903_v17 = vld [vmem:[%s15906_s1 + $0xd8] sm:$0xff] }
 0x1f5   :  { %10137 = vset.pattern.permute.xlu0 %v16266_v32  ;;  %16909 = vst [vmem:[#allocation294_spill] sm:$0xff] %v12891_v12 }
 0x1f6   :  { %3740 = vperm.xlu0 %10137, %v12891_v12   ;;  %v12894_v54 = vpop.permute.xlu1 %2798  ;;  %9041 = vmatmul.mubr.msk.bf16.gmra.mrb[32].mxu0 %vm686_vm1, %v2444_v2  ;;  %v2786_v2 = vsel %vm2756_vm5, %v2725_v16, %v2726_v25 }
 0x1f7   :  { %16910 = vst [vmem:[#allocation295_spill] sm:$0xff] %v12894_v54  ;;  %v2938_v62 = vmul.f32 %v12894_v54, %v2790_v58  ;;  %v12898_v32 = vpop.permute.xlu0 %2830  ;;  %v2727_v58 = vrot.slane %v12214_v8, 1  ;;  %v2728_v54 = vrot.slane %v16858_v63, 1  ;;  %v12928_v8 = vld [vmem:[%s15906_s1 + $0xe8] sm:$0xff]  ;;  %v2787_v63 = vsel %vm2756_vm5, %v2724_v27, %v2725_v16 }
 0x1f8   :  { %16911 = vst [vmem:[#allocation296_spill] sm:$0xff] %v12898_v32  ;;  %3375 = vperm.xlu1 %10135, %v12903_v17   ;;  %v2729_v16 = vrot.slane %v16860_v56, 1 }
 0x1f9   :  { %v2973_v34 = vpack.c.bf16 %v2938_v62, %v2937_v11  ;;  %v2942_v11 = vmul.f32 %v12844_v5, %v2786_v2  ;;  %v12937_v62 = vld [vmem:[%s15907_s2 + $0x38] sm:$0xff]   ;;  %v2730_v2 = vrot.slane %v12269_v46, 1  ;;  %v2785_v5 = vsel %vm2756_vm5, %v2726_v25, %v2727_v58 }
 0x1fa   :  { %3752 = vperm.xlu0 %10137, %v12916_v26   ;;  %v12919_v12 = vpop.permute.xlu1 %2802  ;;  %v12969_v46 = vld [vmem:[%s15906_s1 + $0x38] sm:$0xff]  ;;  %v2731_v25 = vrot.slane %v12275_v60, 1 }
 0x1fb   :  { %16912 = vst [vmem:[#allocation297_spill] sm:$0xff] %v12919_v12  ;;  %v2939_v14 = vmul.f32 %v12919_v12, %v2789_v52  ;;  %v12922_v1 = vpop.permute.xlu0 %2838  ;;  %9046 = vmatprep.mubr.msk.bf16.mxu0 %vm686_vm1, %v2973_v34  ;;  %v2784_v34 = vsel %vm2756_vm5, %v2727_v58, %v2728_v54  ;;  %v12944_v52 = vld [vmem:[%s15906_s1 + $0x28] sm:$0xff]  ;;  %v2732_v58 = vrot.slane %v12294_v47, 1 }
 0x1fc   :  { %3383 = vperm.xlu1 %10135, %v12928_v8  }
 0x1fd   :  { %v2974_v39 = vpack.c.bf16 %v2940_v41, %v2939_v14  ;;  %v12958_v14 = vld [vmem:[%s15906_s1 + $0xf8] sm:$0xff] }
 0x1fe   :  { %3760 = vperm.xlu0 %10137, %v12944_v52   ;;  %v12947_v12 = vpop.permute.xlu1 %2810 }
 0x1ff   :  { %16913 = vst [vmem:[#allocation298_spill] sm:$0xff] %v12947_v12  ;;  %v2941_v27 = vmul.f32 %v12947_v12, %v2787_v63  ;;  %v12950_v41 = vpop.permute.xlu0 %2846  ;;  %9047 = vmatmul.mubr.msk.bf16.vlgmr.msra.gmra.mrb[0].mxu0 %vm686_vm1, %v2974_v39  ;;  %v2944_v63 = vmul.f32 %v12872_v36, %v2784_v34 }
 0x200   :  { %16914 = vst [vmem:[#allocation299_spill] sm:$0xff] %v12950_v41  ;;  %3391 = vperm.xlu1 %10135, %v12958_v14   ;;  %9083 = vmatpush3.bf16.msra.mxu0 %v12632_v24  ;;  %v2782_v24 = vsel %vm2756_vm5, %v2729_v16, %v2730_v2 }
 0x201   :  { %v2975_v12 = vpack.c.bf16 %v2942_v11, %v2941_v27  ;;  %9120 = vmatprep.subr.bf16.mxu0 %v12937_v62  ;;  %v12985_v11 = vld [vmem:[%s15906_s1 + $0x108] sm:$0xff]  ;;  %v2946_v47 = vmul.f32 %v12898_v32, %v2782_v24  ;;  %v2781_v24 = vsel %vm2756_vm5, %v2730_v2, %v2731_v25 }
 0x202   :  { %3768 = vperm.xlu0 %10137, %v12969_v46   ;;  %v12972_v56 = vpop.permute.xlu1 %2818 }
 0x203   :  { %16915 = vst [vmem:[#allocation300_spill] sm:$0xff] %v12972_v56  ;;  %v2943_v39 = vmul.f32 %v12972_v56, %v2785_v5  ;;  %v12975_v51 = vpop.permute.xlu0 %2854  ;;  %9050 = vmatprep.mubr.msk.bf16.mxu0 %vm686_vm1, %v2975_v12  ;;  %v2783_v5 = vsel %vm2756_vm5, %v2728_v54, %v2729_v16  ;;  %v12993_v12 = vld [vmem:[%s15906_s1 + $0x48] sm:$0xff]  ;;  %v2780_v54 = vsel %vm2756_vm5, %v2731_v25, %v2732_v58  ;;  %v2733_v16 = vrot.slane %v16866_v42, 1 }
 0x204   :  { %16916 = vst [vmem:[#allocation301_spill] sm:$0xff] %v12975_v51  ;;  %3399 = vperm.xlu1 %10135, %v12985_v11   ;;  %v2735_v25 = vrot.slane %v12325_v23, 1 }
 0x205   :  { %v2976_v34 = vpack.c.bf16 %v2944_v63, %v2943_v39  ;;  %v2734_v63 = vrot.slane %v12319_v35, 1  ;;  %v13010_v39 = vld [vmem:[%s15906_s1 + $0x118] sm:$0xff]  ;;  %v2948_v35 = vmul.f32 %v12922_v1, %v2780_v54  ;;  %v2779_v36 = vsel %vm2756_vm5, %v2732_v58, %v2733_v16  ;;  %v13038_v54 = vld [vmem:[%s15906_s1 + $0x8] sm:$0xff] }
 0x206   :  { %3776 = vperm.xlu0 %10137, %v12993_v12   ;;  %v12996_v60 = vpop.permute.xlu1 %2826 }
 0x207   :  { %16917 = vst [vmem:[#allocation302_spill] sm:$0xff] %v12996_v60  ;;  %v2945_v27 = vmul.f32 %v12996_v60, %v2783_v5  ;;  %v13000_v56 = vpop.permute.xlu0 %2862  ;;  %9051 = vmatmul.mubr.msk.bf16.gmra.mrb[4].mxu0 %vm686_vm1, %v2976_v34  ;;  %v13018_v34 = vld [vmem:[%s15906_s1 + $0x58] sm:$0xff]  ;;  %v2778_v2 = vsel %vm2756_vm5, %v2733_v16, %v2734_v63 }
 0x208   :  { %16918 = vst [vmem:[#allocation303_spill] sm:$0xff] %v13000_v56  ;;  %3407 = vperm.xlu1 %10135, %v13010_v39   ;;  %16919 = vst [vmem:[#allocation304_spill] sm:$0xff] %v13018_v34 }
 0x209   :  { %v2977_v5 = vpack.c.bf16 %v2946_v47, %v2945_v27  ;;  %v2736_v47 = vrot.slane %v12344_v22, 1  ;;  %v16922_v27 = vmov 7   ;;  %v2950_v22 = vmul.f32 %v12950_v41, %v2778_v2  ;;  %v13063_v2 = vld [vmem:[%s15906_s1 + $0x10] sm:$0xff] }
 0x20a   :  { %3784 = vperm.xlu0 %10137, %v13018_v34   ;;  %v13021_v42 = vpop.permute.xlu1 %2834 }
 0x20b   :  { %16920 = vst [vmem:[#allocation305_spill] sm:$0xff] %v13021_v42  ;;  %v2947_v32 = vmul.f32 %v13021_v42, %v2781_v24  ;;  %v13025_v60 = vpop.permute.xlu0 %2870  ;;  %9054 = vmatprep.mubr.msk.bf16.mxu0 %vm686_vm1, %v2977_v5  ;;  %v13044_v24 = vld [vmem:[%s15906_s1 + $0x68] sm:$0xff]  ;;  %v2776_v16 = vsel %vm2756_vm5, %v2735_v25, %v2736_v47  ;;  %v2737_v5 = vrot.slane %v16873_v29, 1 }
 0x20c   :  { %16921 = vst [vmem:[#allocation306_spill] sm:$0xff] %v13025_v60  ;;  %10138 = vset.pattern.permute.xlu1 %v16922_v27  ;;  %v2777_v27 = vsel %vm2756_vm5, %v2734_v63, %v2735_v25 }
 0x20d   :  { %v2978_v34 = vpack.c.bf16 %v2948_v35, %v2947_v32  ;;  %3744 = vperm.xlu1 %10138, %v13038_v54   ;;  %v2738_v35 = vrot.slane %v12369_v57, 1  ;;  %v2952_v57 = vmul.f32 %v12975_v51, %v2776_v16  ;;  %v2775_v41 = vsel %vm2756_vm5, %v2736_v47, %v2737_v5  ;;  %v13088_v16 = vld [vmem:[%s15906_s1 + $0x20] sm:$0xff] }
 0x20e   :  { %3792 = vperm.xlu0 %10137, %v13044_v24   ;;  %v13047_v23 = vpop.permute.xlu1 %2842 }
 0x20f   :  { %16923 = vst [vmem:[#allocation307_spill] sm:$0xff] %v13047_v23  ;;  %v2949_v32 = vmul.f32 %v13047_v23, %v2779_v36  ;;  %v13051_v58 = vpop.permute.xlu0 %2878  ;;  %9055 = vmatmul.mubr.msk.bf16.gmra.mrb[8].mxu0 %vm686_vm1, %v2978_v34  ;;  %v13069_v36 = vld [vmem:[%s15906_s1 + $0x78] sm:$0xff]  ;;  %v2774_v25 = vsel %vm2756_vm5, %v2737_v5, %v2738_v35 }
 0x210   :  { %16924 = vst [vmem:[#allocation308_spill] sm:$0xff] %v13051_v58 }
 0x211   :  { %v2979_v42 = vpack.c.bf16 %v2950_v22, %v2949_v32  ;;  %3748 = vperm.xlu1 %10138, %v13063_v2   ;;  %v2739_v22 = vrot.slane %v16877_v33, 1  ;;  %v2740_v32 = vrot.slane %v12394_v40, 1  ;;  %v2954_v40 = vmul.f32 %v13000_v56, %v2774_v25  ;;  %v13113_v25 = vld [vmem:[%s15906_s1 + $0x30] sm:$0xff] }
 0x212   :  { %3800 = vperm.xlu0 %10137, %v13069_v36   ;;  %v13072_v29 = vpop.permute.xlu1 %2850 }
 0x213   :  { %16925 = vst [vmem:[#allocation309_spill] sm:$0xff] %v13072_v29  ;;  %v2951_v63 = vmul.f32 %v13072_v29, %v2777_v27  ;;  %v13076_v34 = vpop.permute.xlu0 %2886  ;;  %9058 = vmatprep.mubr.msk.bf16.mxu0 %vm686_vm1, %v2979_v42  ;;  %v13094_v42 = vld [vmem:[%s15906_s1 + $0x88] sm:$0xff]  ;;  %v2772_v27 = vsel %vm2756_vm5, %v2739_v22, %v2740_v32  ;;  %v2773_v29 = vsel %vm2756_vm5, %v2738_v35, %v2739_v22 }
 0x214   :  { %16926 = vst [vmem:[#allocation310_spill] sm:$0xff] %v13076_v34 }
 0x215   :  { %v2980_v23 = vpack.c.bf16 %v2952_v57, %v2951_v63  ;;  %3756 = vperm.xlu1 %10138, %v13088_v16   ;;  %v2741_v57 = vrot.slane %v16881_v4, 1  ;;  %v2742_v63 = vrot.slane %v12419_v31, 1  ;;  %v2956_v31 = vmul.f32 %v13025_v60, %v2772_v27  ;;  %v13138_v27 = vld [vmem:[%s15906_s1 + $0x40] sm:$0xff] }
 0x216   :  { %3808 = vperm.xlu0 %10137, %v13094_v42   ;;  %v13097_v33 = vpop.permute.xlu1 %2858 }
 0x217   :  { %16927 = vst [vmem:[#allocation311_spill] sm:$0xff] %v13097_v33  ;;  %v2953_v47 = vmul.f32 %v13097_v33, %v2775_v41  ;;  %v13101_v5 = vpop.permute.xlu0 %2894  ;;  %9059 = vmatmul.mubr.msk.bf16.gmra.mrb[12].mxu0 %vm686_vm1, %v2980_v23  ;;  %v13119_v41 = vld [vmem:[%s15906_s1 + $0x98] sm:$0xff]  ;;  %v2770_v22 = vsel %vm2756_vm5, %v2741_v57, %v2742_v63  ;;  %v2771_v56 = vsel %vm2756_vm5, %v2740_v32, %v2741_v57 }
 0x218   :  { %16928 = vst [vmem:[#allocation312_spill] sm:$0xff] %v13101_v5 }
 0x219   :  { %v2981_v51 = vpack.c.bf16 %v2954_v40, %v2953_v47  ;;  %3764 = vperm.xlu1 %10138, %v13113_v25   ;;  %v2743_v40 = vrot.slane %v16885_v7, 1  ;;  %v2744_v47 = vrot.slane %v12444_v61, 1  ;;  %v2958_v61 = vmul.f32 %v13051_v58, %v2770_v22  ;;  %v13163_v22 = vld [vmem:[%s15906_s1 + $0x50] sm:$0xff] }
 0x21a   :  { %3816 = vperm.xlu0 %10137, %v13119_v41   ;;  %v13122_v4 = vpop.permute.xlu1 %2866 }
 0x21b   :  { %16929 = vst [vmem:[#allocation313_spill] sm:$0xff] %v13122_v4  ;;  %v2955_v23 = vmul.f32 %v13122_v4, %v2773_v29  ;;  %v13126_v35 = vpop.permute.xlu0 %2902  ;;  %9062 = vmatprep.mubr.msk.bf16.mxu0 %vm686_vm1, %v2981_v51  ;;  %v13144_v51 = vld [vmem:[%s15906_s1 + $0xa8] sm:$0xff]  ;;  %v2768_v57 = vsel %vm2756_vm5, %v2743_v40, %v2744_v47  ;;  %v2769_v4 = vsel %vm2756_vm5, %v2742_v63, %v2743_v40  ;;  %v2747_v40 = vrot.slane %v16893_v48, 1 }
 0x21c   :  { %16930 = vst [vmem:[#allocation314_spill] sm:$0xff] %v13126_v35 }
 0x21d   :  { %v2982_v33 = vpack.c.bf16 %v2956_v31, %v2955_v23  ;;  %3772 = vperm.xlu1 %10138, %v13138_v27   ;;  %v2745_v31 = vrot.slane %v16889_v21, 1  ;;  %v2746_v23 = vrot.slane %v12469_v9, 1 }
 0x21e   :  { %3824 = vperm.xlu0 %10137, %v13144_v51   ;;  %v13147_v7 = vpop.permute.xlu1 %2874 }
 0x21f   :  { %16931 = vst [vmem:[#allocation315_spill] sm:$0xff] %v13147_v7  ;;  %v2957_v29 = vmul.f32 %v13147_v7, %v2771_v56  ;;  %v13151_v32 = vpop.permute.xlu0 %2910  ;;  %9063 = vmatmul.mubr.msk.bf16.gmra.mrb[16].mxu0 %vm686_vm1, %v2982_v33  ;;  %v2960_v33 = vmul.f32 %v13076_v34, %v2768_v57  ;;  %v2766_v63 = vsel %vm2756_vm5, %v2745_v31, %v2746_v23  ;;  %v13183_v57 = vld [vmem:[%s15906_s1 + $0x60] sm:$0xff]  ;;  %v17171_v7 = vld [vmem:[#allocation23_spill] sm:$0xff] }
 0x220   :  { %16932 = vst [vmem:[#allocation316_spill] sm:$0xff] %v13151_v32 }
 0x221   :  { %v2983_v60 = vpack.c.bf16 %v2958_v61, %v2957_v29  ;;  %3780 = vperm.xlu1 %10138, %v13163_v22   ;;  %v2748_v61 = vrot.slane %v12494_v0, 1  ;;  %v2767_v29 = vsel %vm2756_vm5, %v2744_v47, %v2745_v31  ;;  %v2749_v31 = vrot.slane %v16897_v49, 1 }
 0x222   :  { %3832 = vperm.xlu0 %10137, %v12849_v28   ;;  %v13167_v56 = vpop.permute.xlu1 %2882 }
 0x223   :  { %16933 = vst [vmem:[#allocation317_spill] sm:$0xff] %v13167_v56  ;;  %v2959_v21 = vmul.f32 %v13167_v56, %v2769_v4  ;;  %v13171_v9 = vpop.permute.xlu0 %2918  ;;  %9066 = vmatprep.mubr.msk.bf16.mxu0 %vm686_vm1, %v2983_v60  ;;  %v2962_v4 = vmul.f32 %v13101_v5, %v2766_v63  ;;  %v2764_v47 = vsel %vm2756_vm5, %v2747_v40, %v2748_v61  ;;  %v13203_v63 = vld [vmem:[%s15906_s1 + $0x70] sm:$0xff] }
 0x224   :  { %16934 = vst [vmem:[#allocation318_spill] sm:$0xff] %v13171_v9 }
 0x225   :  { %v2984_v58 = vpack.c.bf16 %v2960_v33, %v2959_v21  ;;  %3788 = vperm.xlu1 %10138, %v13183_v57   ;;  %v2750_v33 = vrot.slane %v12519_v59, 1  ;;  %v2765_v21 = vsel %vm2756_vm5, %v2746_v23, %v2747_v40  ;;  %v2751_v40 = vrot.slane %v16901_v18, 1 }
 0x226   :  { %3840 = vperm.xlu0 %10137, %v12877_v55   ;;  %v13187_v60 = vpop.permute.xlu1 %2890 }
 0x227   :  { %16935 = vst [vmem:[#allocation319_spill] sm:$0xff] %v13187_v60  ;;  %v2961_v48 = vmul.f32 %v13187_v60, %v2767_v29  ;;  %v13191_v0 = vpop.permute.xlu0 %2926  ;;  %9067 = vmatmul.mubr.msk.bf16.gmra.mrb[20].mxu0 %vm686_vm1, %v2984_v58  ;;  %v2964_v29 = vmul.f32 %v13126_v35, %v2764_v47  ;;  %v2762_v23 = vsel %vm2756_vm5, %v2749_v31, %v2750_v33 }
 0x228   :  { %16936 = vst [vmem:[#allocation320_spill] sm:$0xff] %v13191_v0 }
 0x229   :  { %v2985_v56 = vpack.c.bf16 %v2962_v4, %v2961_v48  ;;  %3796 = vperm.xlu1 %10138, %v13203_v63   ;;  %v2752_v4 = vrot.slane %v12544_v53, 1  ;;  %v2763_v48 = vsel %vm2756_vm5, %v2748_v61, %v2749_v31  ;;  %v2753_v53 = vrot.slane %v12550_v3, 1 }
 0x22a   :  { %3848 = vperm.xlu0 %10137, %v12903_v17   ;;  %v13207_v58 = vpop.permute.xlu1 %2898  ;;  %v2754_v61 = vrot.slane %v12569_v20, 1  ;;  %v10267_v20 = vld [vmem:[%s15908_s0 + $0x118] sm:$0xff] }
 0x22b   :  { %16937 = vst [vmem:[#allocation321_spill] sm:$0xff] %v13207_v58  ;;  %v2963_v49 = vmul.f32 %v13207_v58, %v2765_v21  ;;  %v13211_v59 = vpop.permute.xlu0 %2934  ;;  %9070 = vmatprep.mubr.msk.bf16.mxu0 %vm686_vm1, %v2985_v56  ;;  %v2966_v21 = vmul.f32 %v13151_v32, %v2762_v23  ;;  %v2760_v18 = vsel %vm2756_vm5, %v2751_v40, %v2752_v4  ;;  %v17163_v32 = vld [vmem:[#allocation18_spill] sm:$0xff] }
 0x22c   :  { %16938 = vst [vmem:[#allocation322_spill] sm:$0xff] %v13211_v59  ;;  %v2758_v3 = vsel %vm2756_vm5, %v2753_v53, %v2754_v61 }
 0x22d   :  { %v2986_v5 = vpack.c.bf16 %v2964_v29, %v2963_v49  ;;  %3804 = vperm.xlu1 %10138, %v12703_v30   ;;  %v2761_v29 = vsel %vm2756_vm5, %v2750_v33, %v2751_v40  ;;  %v2755_v33 = vrot.slane %v10267_v20, 1  ;;  %v16944_v20 = vrot.slane %v12111_v19, 1 }
 0x22e   :  { %3856 = vperm.xlu0 %10137, %v12928_v8   ;;  %v13222_v47 = vpop.permute.xlu1 %2906 }
 0x22f   :  { %16939 = vst [vmem:[#allocation323_spill] sm:$0xff] %v13222_v47  ;;  %v2965_v56 = vmul.f32 %v13222_v47, %v2763_v48  ;;  %9071 = vmatmul.mubr.msk.bf16.gmra.mrb[24].mxu0 %vm686_vm1, %v2986_v5  ;;  %v2968_v5 = vmul.f32 %v13171_v9, %v2760_v18 }
 0x230   :  { %v13231_v31 = vpop.permute.xlu0 %3271 }
 0x231   :  { %16940 = vst [vmem:[#allocation324_spill] sm:$0xff] %v13231_v31  ;;  %v2987_v49 = vpack.c.bf16 %v2966_v21, %v2965_v56  ;;  %3812 = vperm.xlu1 %10138, %v12719_v37   ;;  %v2759_v21 = vsel %vm2756_vm5, %v2752_v4, %v2753_v53  ;;  %v2757_v4 = vsel %vm2756_vm5, %v2754_v61, %v2755_v33 }
 0x232   :  { %3864 = vperm.xlu0 %10137, %v12958_v14   ;;  %v13237_v23 = vpop.permute.xlu1 %2914 }
 0x233   :  { %16941 = vst [vmem:[#allocation325_spill] sm:$0xff] %v13237_v23  ;;  %v2967_v48 = vmul.f32 %v13237_v23, %v2761_v29  ;;  %9074 = vmatprep.mubr.msk.bf16.mxu0 %vm686_vm1, %v2987_v49  ;;  %v2970_v29 = vmul.f32 %v13191_v0, %v2758_v3  ;;  %v2792_v23 = vsel %vm2756_vm5, %v2755_v33, %v16944_v20  ;;  %v10312_v33 = vmov 8  }
 0x234   :  { %v13247_v40 = vpop.permute.xlu0 %3283 }
 0x235   :  { %16942 = vst [vmem:[#allocation326_spill] sm:$0xff] %v13247_v40  ;;  %v2988_v56 = vpack.c.bf16 %v2968_v5, %v2967_v48  ;;  %3820 = vperm.xlu1 %10138, %v12735_v45   ;;  %v2972_v48 = vmul.f32 %v13211_v59, %v2792_v23  ;;  %v16950_v23 = vld [vmem:[#allocation100_spill] sm:$0xff] }
 0x236   :  { %3872 = vperm.xlu0 %10137, %v12985_v11   ;;  %v13253_v18 = vpop.permute.xlu1 %2922 }
 0x237   :  { %16943 = vst [vmem:[#allocation327_spill] sm:$0xff] %v13253_v18  ;;  %v2969_v49 = vmul.f32 %v13253_v18, %v2759_v21  ;;  %9075 = vmatmul.mubr.msk.bf16.gmra.mrb[28].mxu0 %vm686_vm1, %v2988_v56  ;;  %v16948_v56 = vld [vmem:[#allocation103_spill] sm:$0xff] }
 0x238   :  { %v13262_v9 = vpop.permute.xlu0 %3291  ;;  %v3411_v61 = vmul.f32 %v13231_v31, %v16948_v56  ;;  %v16954_v56 = vld [vmem:[#allocation107_spill] sm:$0xff] }
 0x239   :  { %16945 = vst [vmem:[#allocation328_spill] sm:$0xff] %v13262_v9  ;;  %v2989_v53 = vpack.c.bf16 %v2970_v29, %v2969_v49  ;;  %3828 = vperm.xlu1 %10138, %v12751_v15  }
 0x23a   :  { %3880 = vperm.xlu0 %10137, %v13010_v39   ;;  %v13268_v5 = vpop.permute.xlu1 %2930 }
 0x23b   :  { %16946 = vst [vmem:[#allocation329_spill] sm:$0xff] %v13268_v5  ;;  %v2971_v3 = vmul.f32 %v13268_v5, %v2757_v4  ;;  %9078 = vmatprep.mubr.msk.bf16.mxu0 %vm686_vm1, %v2989_v53 }
 0x23c   :  { %v13273_v19 = vpop.permute.xlu0 %3299  ;;  %v17487_v43 = vld [vmem:[#allocation326_spill] sm:$0xff] }
 0x23d   :  { %16947 = vst [vmem:[#allocation330_spill] sm:$0xff] %v13273_v19  ;;  %v2990_v21 = vpack.c.bf16 %v2972_v48, %v2971_v3  ;;  %3836 = vperm.xlu1 %10138, %v12767_v38   ;;  %v16953_v3 = vld [vmem:[#allocation104_spill] sm:$0xff] }
 0x23e   :  { %10140 = vset.pattern.permute.xlu0 %v10312_v33 }
 0x23f   :  { %4217 = vperm.xlu0 %10140, %v13038_v54   ;;  %v13279_v29 = vpop.permute.xlu1 %3267  ;;  %9079 = vmatmul.mubr.msk.bf16.gmra.mrb[32].mxu0 %vm686_vm1, %v2990_v21 }
 0x240   :  { %16949 = vst [vmem:[#allocation103_spill] sm:$0xff] %v13279_v29  ;;  %v3410_v49 = vmul.f32 %v13279_v29, %v16950_v23  ;;  %v13284_v20 = vpop.permute.xlu0 %3307 }
 0x241   :  { %16951 = vst [vmem:[#allocation100_spill] sm:$0xff] %v13284_v20  ;;  %3844 = vperm.xlu1 %10138, %v12783_v10  }
 0x242   :  { %v3446_v4 = vpack.c.bf16 %v3411_v61, %v3410_v49 }
 0x243   :  { %4229 = vperm.xlu0 %10140, %v13088_v16   ;;  %v13288_v53 = vpop.permute.xlu1 %3275  ;;  %v16956_v16 = vld [vmem:[#allocation108_spill] sm:$0xff] }
 0x244   :  { %v13290_v48 = vpop.permute.xlu0 %3315  ;;  %9084 = vmatprep.mubr.msk.bf16.mxu0 %vm686_vm1, %v3446_v4  ;;  %v3412_v21 = vmul.f32 %v13288_v53, %v16953_v3  ;;  %v3414_v49 = vmul.f32 %v13247_v40, %v16956_v16  ;;  %v16958_v3 = vld [vmem:[#allocation10_spill] sm:$0xff]  ;;  %v16962_v40 = vld [vmem:[#allocation11_spill] sm:$0xff] }
 0x245   :  { %16952 = vst [vmem:[#allocation331_spill] sm:$0xff] %v13290_v48  ;;  %3852 = vperm.xlu1 %10138, %v12799_v6  }
 0x247   :  { %4237 = vperm.xlu0 %10140, %v13113_v25   ;;  %v13295_v54 = vpop.permute.xlu1 %3279  ;;  %v13309_v25 = vld [vmem:[%s15907_s2 + $0x40] sm:$0xff]  }
 0x248   :  { %v3413_v61 = vmul.f32 %v13295_v54, %v16954_v56  ;;  %v13301_v23 = vpop.permute.xlu0 %3323 }
 0x249   :  { %16955 = vst [vmem:[#allocation104_spill] sm:$0xff] %v13301_v23  ;;  %3860 = vperm.xlu1 %10138, %v12815_v44  }
 0x24a   :  { %v3447_v4 = vpack.c.bf16 %v3413_v61, %v3412_v21 }
 0x24b   :  { %4245 = vperm.xlu0 %10140, %v13138_v27   ;;  %v13312_v31 = vpop.permute.xlu1 %3287  ;;  %v16961_v27 = vld [vmem:[#allocation110_spill] sm:$0xff] }
 0x24c   :  { %16957 = vst [vmem:[#allocation107_spill] sm:$0xff] %v13312_v31  ;;  %v3415_v56 = vmul.f32 %v13312_v31, %v16958_v3  ;;  %v13316_v29 = vpop.permute.xlu0 %3331  ;;  %9085 = vmatmul.mubr.msk.bf16.vlgmr.msra.gmra.mrb[0].mxu0 %vm686_vm1, %v3447_v4  ;;  %v3416_v16 = vmul.f32 %v13262_v9, %v16961_v27 }
 0x24d   :  { %16959 = vst [vmem:[#allocation108_spill] sm:$0xff] %v13316_v29  ;;  %3868 = vperm.xlu1 %10138, %v12833_v13   ;;  %9121 = vmatpush3.bf16.msra.mxu0 %v12937_v62 }
 0x24e   :  { %v3448_v21 = vpack.c.bf16 %v3415_v56, %v3414_v49  ;;  %9158 = vmatprep.subr.bf16.mxu0 %v13309_v25  ;;  %v16966_v56 = vld [vmem:[#allocation114_spill] sm:$0xff] }
 0x24f   :  { %4253 = vperm.xlu0 %10140, %v13163_v22   ;;  %v13323_v61 = vpop.permute.xlu1 %3295  ;;  %v16965_v22 = vld [vmem:[#allocation111_spill] sm:$0xff] }
 0x250   :  { %16960 = vst [vmem:[#allocation10_spill] sm:$0xff] %v13323_v61  ;;  %v3417_v3 = vmul.f32 %v13323_v61, %v16962_v40  ;;  %v13329_v31 = vpop.permute.xlu0 %3339  ;;  %9088 = vmatprep.mubr.msk.bf16.mxu0 %vm686_vm1, %v3448_v21  ;;  %v3418_v4 = vmul.f32 %v13273_v19, %v16965_v22  ;;  %v16968_v21 = vld [vmem:[#allocation294_spill] sm:$0xff]  ;;  %v16971_v61 = vld [vmem:[#allocation117_spill] sm:$0xff] }
 0x251   :  { %16963 = vst [vmem:[#allocation110_spill] sm:$0xff] %v13329_v31  ;;  %3876 = vperm.xlu1 %10138, %v12861_v50  }
 0x252   :  { %v3449_v62 = vpack.c.bf16 %v3417_v3, %v3416_v16 }
 0x253   :  { %4261 = vperm.xlu0 %10140, %v13183_v57   ;;  %v13334_v49 = vpop.permute.xlu1 %3303  ;;  %v16970_v57 = vld [vmem:[#allocation115_spill] sm:$0xff] }
 0x254   :  { %16964 = vst [vmem:[#allocation11_spill] sm:$0xff] %v13334_v49  ;;  %v3419_v27 = vmul.f32 %v13334_v49, %v16966_v56  ;;  %v13340_v9 = vpop.permute.xlu0 %3347  ;;  %9089 = vmatmul.mubr.msk.bf16.gmra.mrb[4].mxu0 %vm686_vm1, %v3449_v62  ;;  %v3420_v3 = vmul.f32 %v13284_v20, %v16970_v57  ;;  %v16979_v57 = vld [vmem:[#allocation121_spill] sm:$0xff] }
 0x255   :  { %16967 = vst [vmem:[#allocation111_spill] sm:$0xff] %v13340_v9  ;;  %10139 = vset.pattern.permute.xlu1 %v10312_v33 }
 0x256   :  { %v3450_v40 = vpack.c.bf16 %v3419_v27, %v3418_v4  ;;  %4213 = vperm.xlu1 %10139, %v16968_v21   ;;  %v16975_v4 = vld [vmem:[#allocation119_spill] sm:$0xff] }
 0x257   :  { %4269 = vperm.xlu0 %10140, %v13203_v63   ;;  %v13345_v16 = vpop.permute.xlu1 %3311  ;;  %v16974_v63 = vld [vmem:[#allocation118_spill] sm:$0xff] }
 0x258   :  { %16969 = vst [vmem:[#allocation114_spill] sm:$0xff] %v13345_v16  ;;  %v3421_v22 = vmul.f32 %v13345_v16, %v16971_v61  ;;  %v13351_v19 = vpop.permute.xlu0 %3355  ;;  %9092 = vmatprep.mubr.msk.bf16.mxu0 %vm686_vm1, %v3450_v40  ;;  %v3422_v62 = vmul.f32 %v13290_v48, %v16974_v63 }
 0x259   :  { %16972 = vst [vmem:[#allocation294_spill] sm:$0xff] %v13351_v19 }
 0x25a   :  { %v3451_v56 = vpack.c.bf16 %v3421_v22, %v3420_v3  ;;  %4221 = vperm.xlu1 %10139, %v13063_v2  }
 0x25b   :  { %4277 = vperm.xlu0 %10140, %v12703_v30   ;;  %v13356_v33 = vpop.permute.xlu1 %3319  ;;  %v16978_v30 = vld [vmem:[#allocation120_spill] sm:$0xff] }
 0x25c   :  { %16973 = vst [vmem:[#allocation115_spill] sm:$0xff] %v13356_v33  ;;  %v3423_v27 = vmul.f32 %v13356_v33, %v16975_v4  ;;  %v13362_v21 = vpop.permute.xlu0 %3363  ;;  %9093 = vmatmul.mubr.msk.bf16.gmra.mrb[8].mxu0 %vm686_vm1, %v3451_v56  ;;  %v3424_v40 = vmul.f32 %v13301_v23, %v16978_v30 }
 0x25d   :  { %16976 = vst [vmem:[#allocation117_spill] sm:$0xff] %v13362_v21 }
 0x25e   :  { %v3452_v61 = vpack.c.bf16 %v3423_v27, %v3422_v62  ;;  %4225 = vperm.xlu1 %10139, %v12916_v26   ;;  %v16983_v62 = vld [vmem:[#allocation123_spill] sm:$0xff] }
 0x25f   :  { %4285 = vperm.xlu0 %10140, %v12719_v37   ;;  %v13367_v2 = vpop.permute.xlu1 %3327  ;;  %v16982_v37 = vld [vmem:[#allocation122_spill] sm:$0xff] }
 0x260   :  { %16977 = vst [vmem:[#allocation118_spill] sm:$0xff] %v13367_v2  ;;  %v3425_v3 = vmul.f32 %v13367_v2, %v16979_v57  ;;  %v13373_v22 = vpop.permute.xlu0 %3371  ;;  %9096 = vmatprep.mubr.msk.bf16.mxu0 %vm686_vm1, %v3452_v61  ;;  %v3426_v56 = vmul.f32 %v13316_v29, %v16982_v37 }
 0x261   :  { %16980 = vst [vmem:[#allocation119_spill] sm:$0xff] %v13373_v22 }
 0x262   :  { %v3453_v63 = vpack.c.bf16 %v3425_v3, %v3424_v40  ;;  %4233 = vperm.xlu1 %10139, %v12944_v52   ;;  %v16987_v40 = vld [vmem:[#allocation125_spill] sm:$0xff] }
 0x263   :  { %4293 = vperm.xlu0 %10140, %v12735_v45   ;;  %v13378_v26 = vpop.permute.xlu1 %3335  ;;  %v16986_v45 = vld [vmem:[#allocation124_spill] sm:$0xff] }
 0x264   :  { %16981 = vst [vmem:[#allocation120_spill] sm:$0xff] %v13378_v26  ;;  %v3427_v4 = vmul.f32 %v13378_v26, %v16983_v62  ;;  %v13384_v27 = vpop.permute.xlu0 %3379  ;;  %9097 = vmatmul.mubr.msk.bf16.gmra.mrb[12].mxu0 %vm686_vm1, %v3453_v63  ;;  %v3428_v61 = vmul.f32 %v13329_v31, %v16986_v45 }
 0x265   :  { %16984 = vst [vmem:[#allocation121_spill] sm:$0xff] %v13384_v27 }
 0x266   :  { %v3454_v30 = vpack.c.bf16 %v3427_v4, %v3426_v56  ;;  %4241 = vperm.xlu1 %10139, %v12969_v46   ;;  %v16991_v56 = vld [vmem:[#allocation127_spill] sm:$0xff] }
 0x267   :  { %4301 = vperm.xlu0 %10140, %v12751_v15   ;;  %v13389_v52 = vpop.permute.xlu1 %3343  ;;  %v16990_v15 = vld [vmem:[#allocation126_spill] sm:$0xff] }
 0x268   :  { %16985 = vst [vmem:[#allocation122_spill] sm:$0xff] %v13389_v52  ;;  %v3429_v57 = vmul.f32 %v13389_v52, %v16987_v40  ;;  %v13395_v3 = vpop.permute.xlu0 %3387  ;;  %9100 = vmatprep.mubr.msk.bf16.mxu0 %vm686_vm1, %v3454_v30  ;;  %v3430_v63 = vmul.f32 %v13340_v9, %v16990_v15  ;;  %v16993_v40 = vld [vmem:[#allocation304_spill] sm:$0xff] }
 0x269   :  { %16988 = vst [vmem:[#allocation123_spill] sm:$0xff] %v13395_v3 }
 0x26a   :  { %v3455_v37 = vpack.c.bf16 %v3429_v57, %v3428_v61  ;;  %4249 = vperm.xlu1 %10139, %v12993_v12   ;;  %v16996_v61 = vld [vmem:[#allocation129_spill] sm:$0xff] }
 0x26b   :  { %4309 = vperm.xlu0 %10140, %v12767_v38   ;;  %v13400_v46 = vpop.permute.xlu1 %3351  ;;  %v16995_v38 = vld [vmem:[#allocation128_spill] sm:$0xff] }
 0x26c   :  { %16989 = vst [vmem:[#allocation124_spill] sm:$0xff] %v13400_v46  ;;  %v3431_v62 = vmul.f32 %v13400_v46, %v16991_v56  ;;  %v13406_v4 = vpop.permute.xlu0 %3395  ;;  %9101 = vmatmul.mubr.msk.bf16.gmra.mrb[16].mxu0 %vm686_vm1, %v3455_v37  ;;  %v3432_v30 = vmul.f32 %v13351_v19, %v16995_v38 }
 0x26d   :  { %16992 = vst [vmem:[#allocation125_spill] sm:$0xff] %v13406_v4 }
 0x26e   :  { %v3456_v45 = vpack.c.bf16 %v3431_v62, %v3430_v63  ;;  %4257 = vperm.xlu1 %10139, %v16993_v40   ;;  %v17000_v62 = vld [vmem:[#allocation131_spill] sm:$0xff] }
 0x26f   :  { %4317 = vperm.xlu0 %10140, %v12783_v10   ;;  %v13411_v12 = vpop.permute.xlu1 %3359  ;;  %v16999_v10 = vld [vmem:[#allocation130_spill] sm:$0xff] }
 0x270   :  { %16994 = vst [vmem:[#allocation126_spill] sm:$0xff] %v13411_v12  ;;  %v3433_v57 = vmul.f32 %v13411_v12, %v16996_v61  ;;  %v13417_v15 = vpop.permute.xlu0 %3403  ;;  %9104 = vmatprep.mubr.msk.bf16.mxu0 %vm686_vm1, %v3456_v45  ;;  %v3434_v63 = vmul.f32 %v13362_v21, %v16999_v10 }
 0x271   :  { %16997 = vst [vmem:[#allocation127_spill] sm:$0xff] %v13417_v15 }
 0x272   :  { %v3457_v56 = vpack.c.bf16 %v3433_v57, %v3432_v30  ;;  %4265 = vperm.xlu1 %10139, %v13044_v24   ;;  %v17004_v30 = vld [vmem:[#allocation134_spill] sm:$0xff] }
 0x273   :  { %4325 = vperm.xlu0 %10140, %v12799_v6   ;;  %v13422_v37 = vpop.permute.xlu1 %3367  ;;  %v17003_v6 = vld [vmem:[#allocation132_spill] sm:$0xff] }
 0x274   :  { %16998 = vst [vmem:[#allocation304_spill] sm:$0xff] %v13422_v37  ;;  %v3435_v40 = vmul.f32 %v13422_v37, %v17000_v62  ;;  %9105 = vmatmul.mubr.msk.bf16.gmra.mrb[20].mxu0 %vm686_vm1, %v3457_v56  ;;  %v3436_v45 = vmul.f32 %v13373_v22, %v17003_v6  ;;  %v17007_v62 = vld [vmem:[#allocation138_spill] sm:$0xff] }
 0x275   :  { %v13429_v38 = vpop.permute.xlu0 %3740 }
 0x276   :  { %17001 = vst [vmem:[#allocation128_spill] sm:$0xff] %v13429_v38  ;;  %v3458_v61 = vpack.c.bf16 %v3435_v40, %v3434_v63  ;;  %4273 = vperm.xlu1 %10139, %v13069_v36  }
 0x277   :  { %4333 = vperm.xlu0 %10140, %v12815_v44   ;;  %v13433_v24 = vpop.permute.xlu1 %3375  ;;  %v17006_v44 = vld [vmem:[#allocation135_spill] sm:$0xff] }
 0x278   :  { %17002 = vst [vmem:[#allocation129_spill] sm:$0xff] %v13433_v24  ;;  %v3437_v57 = vmul.f32 %v13433_v24, %v17004_v30  ;;  %9108 = vmatprep.mubr.msk.bf16.mxu0 %vm686_vm1, %v3458_v61  ;;  %v3438_v63 = vmul.f32 %v13384_v27, %v17006_v44  ;;  %v17011_v30 = vld [vmem:[#allocation142_spill] sm:$0xff] }
 0x279   :  { %v13440_v10 = vpop.permute.xlu0 %3752 }
 0x27a   :  { %v3459_v56 = vpack.c.bf16 %v3437_v57, %v3436_v45  ;;  %4281 = vperm.xlu1 %10139, %v13094_v42  }
 0x27b   :  { %4341 = vperm.xlu0 %10140, %v12833_v13   ;;  %v13444_v36 = vpop.permute.xlu1 %3383  ;;  %v17010_v13 = vld [vmem:[#allocation139_spill] sm:$0xff] }
 0x27c   :  { %17005 = vst [vmem:[#allocation130_spill] sm:$0xff] %v13444_v36  ;;  %v3439_v40 = vmul.f32 %v13444_v36, %v17007_v62  ;;  %9109 = vmatmul.mubr.msk.bf16.gmra.mrb[24].mxu0 %vm686_vm1, %v3459_v56  ;;  %v3440_v45 = vmul.f32 %v13395_v3, %v17010_v13  ;;  %v17015_v62 = vld [vmem:[#allocation96_spill] sm:$0xff] }
 0x27d   :  { %v13451_v6 = vpop.permute.xlu0 %3760 }
 0x27e   :  { %17008 = vst [vmem:[#allocation131_spill] sm:$0xff] %v13451_v6  ;;  %v3460_v61 = vpack.c.bf16 %v3439_v40, %v3438_v63  ;;  %4289 = vperm.xlu1 %10139, %v13119_v41   ;;  %v17014_v41 = vld [vmem:[#allocation143_spill] sm:$0xff] }
 0x27f   :  { %4349 = vperm.xlu0 %10140, %v12861_v50   ;;  %v13455_v42 = vpop.permute.xlu1 %3391  ;;  %v3442_v50 = vmul.f32 %v13406_v4, %v17014_v41 }
 0x280   :  { %17009 = vst [vmem:[#allocation132_spill] sm:$0xff] %v13455_v42  ;;  %v3441_v57 = vmul.f32 %v13455_v42, %v17011_v30  ;;  %9112 = vmatprep.mubr.msk.bf16.mxu0 %vm686_vm1, %v3460_v61 }
 0x281   :  { %v13462_v44 = vpop.permute.xlu0 %3768 }
 0x282   :  { %17012 = vst [vmem:[#allocation134_spill] sm:$0xff] %v13462_v44  ;;  %v3461_v56 = vpack.c.bf16 %v3441_v57, %v3440_v45  ;;  %4297 = vperm.xlu1 %10139, %v13144_v51   ;;  %v17018_v45 = vld [vmem:[#allocation95_spill] sm:$0xff] }
 0x283   :  { %v13465_v63 = vpop.permute.xlu1 %3399  ;;  %v3444_v51 = vmul.f32 %v13417_v15, %v17018_v45  ;;  %v17019_v57 = vld [vmem:[#allocation99_spill] sm:$0xff] }
 0x284   :  { %17013 = vst [vmem:[#allocation135_spill] sm:$0xff] %v13465_v63  ;;  %v3443_v40 = vmul.f32 %v13465_v63, %v17015_v62  ;;  %9113 = vmatmul.mubr.msk.bf16.gmra.mrb[28].mxu0 %vm686_vm1, %v3461_v56  ;;  %v17021_v56 = vld [vmem:[#allocation16_spill] sm:$0xff] }
 0x285   :  { %v13472_v13 = vpop.permute.xlu0 %3776 }
 0x286   :  { %17016 = vst [vmem:[#allocation138_spill] sm:$0xff] %v13472_v13  ;;  %v3462_v30 = vpack.c.bf16 %v3443_v40, %v3442_v50  ;;  %4305 = vperm.xlu1 %10139, %v12849_v28   ;;  %v3883_v50 = vmul.f32 %v13429_v38, %v17021_v56  ;;  %v17023_v28 = vld [vmem:[#allocation21_spill] sm:$0xff] }
 0x287   :  { %v13475_v61 = vpop.permute.xlu1 %3407  ;;  %v17030_v38 = vld [vmem:[#allocation25_spill] sm:$0xff] }
 0x288   :  { %17017 = vst [vmem:[#allocation139_spill] sm:$0xff] %v13475_v61  ;;  %v3445_v3 = vmul.f32 %v13475_v61, %v17019_v57  ;;  %9116 = vmatprep.mubr.msk.bf16.mxu0 %vm686_vm1, %v3462_v30  ;;  %v17025_v30 = vld [vmem:[#allocation26_spill] sm:$0xff] }
 0x289   :  { %v13482_v41 = vpop.permute.xlu0 %3784  ;;  %v3886_v57 = vmul.f32 %v13440_v10, %v17025_v30 }
 0x28a   :  { %17020 = vst [vmem:[#allocation142_spill] sm:$0xff] %v13482_v41  ;;  %v3463_v62 = vpack.c.bf16 %v3445_v3, %v3444_v51  ;;  %4313 = vperm.xlu1 %10139, %v12877_v55   ;;  %v17026_v55 = vld [vmem:[#allocation20_spill] sm:$0xff] }
 0x28c   :  { %v13487_v40 = vpop.permute.xlu1 %3744  ;;  %9117 = vmatmul.mubr.msk.bf16.gmra.mrb[32].mxu0 %vm686_vm1, %v3463_v62 }
 0x28d   :  { %17022 = vst [vmem:[#allocation143_spill] sm:$0xff] %v13487_v40  ;;  %v3884_v45 = vmul.f32 %v13487_v40, %v17023_v28  ;;  %v13492_v15 = vpop.permute.xlu0 %3792  ;;  %v17029_v40 = vld [vmem:[#allocation32_spill] sm:$0xff] }
 0x28e   :  { %17024 = vst [vmem:[#allocation96_spill] sm:$0xff] %v13492_v15  ;;  %4321 = vperm.xlu1 %10139, %v12903_v17   ;;  %v3888_v17 = vmul.f32 %v13451_v6, %v17029_v40 }
 0x28f   :  { %v3919_v3 = vpack.c.bf16 %v3884_v45, %v3883_v50 }
 0x290   :  { %v13497_v51 = vpop.permute.xlu1 %3748 }
 0x291   :  { %v3885_v56 = vmul.f32 %v13497_v51, %v17026_v55  ;;  %v13501_v61 = vpop.permute.xlu0 %3800  ;;  %9122 = vmatprep.mubr.msk.bf16.mxu0 %vm686_vm1, %v3919_v3  ;;  %v17034_v55 = vld [vmem:[#allocation31_spill] sm:$0xff] }
 0x292   :  { %17027 = vst [vmem:[#allocation95_spill] sm:$0xff] %v13501_v61  ;;  %4329 = vperm.xlu1 %10139, %v12928_v8   ;;  %v17033_v8 = vld [vmem:[#allocation36_spill] sm:$0xff] }
 0x293   :  { %v3920_v62 = vpack.c.bf16 %v3886_v57, %v3885_v56  ;;  %v3890_v57 = vmul.f32 %v13462_v44, %v17033_v8  ;;  %v17104_v44 = vld [vmem:[#allocation167_spill] sm:$0xff] }
 0x294   :  { %v13505_v28 = vpop.permute.xlu1 %3756 }
 0x295   :  { %17028 = vst [vmem:[#allocation99_spill] sm:$0xff] %v13505_v28  ;;  %v3887_v50 = vmul.f32 %v13505_v28, %v17030_v38  ;;  %v13511_v45 = vpop.permute.xlu0 %3808  ;;  %9123 = vmatmul.mubr.msk.bf16.vlgmr.msra.gmra.mrb[0].mxu0 %vm686_vm1, %v3920_v62 }
 0x296   :  { %17031 = vst [vmem:[#allocation16_spill] sm:$0xff] %v13511_v45  ;;  %4337 = vperm.xlu1 %10139, %v12958_v14   ;;  %9159 = vmatpush3.bf16.msra.mxu0 %v13309_v25  ;;  %v17037_v14 = vld [vmem:[#allocation40_spill] sm:$0xff] }
 0x297   :  { %v3921_v30 = vpack.c.bf16 %v3888_v17, %v3887_v50  ;;  %v3892_v25 = vmul.f32 %v13472_v13, %v17037_v14  ;;  %v17038_v17 = vld [vmem:[#allocation35_spill] sm:$0xff]  ;;  %v17045_v13 = vld [vmem:[#allocation50_spill] sm:$0xff] }
 0x298   :  { %v13516_v3 = vpop.permute.xlu1 %3764 }
 0x299   :  { %17032 = vst [vmem:[#allocation21_spill] sm:$0xff] %v13516_v3  ;;  %v3889_v40 = vmul.f32 %v13516_v3, %v17034_v55  ;;  %v13522_v56 = vpop.permute.xlu0 %3816  ;;  %9126 = vmatprep.mubr.msk.bf16.mxu0 %vm686_vm1, %v3921_v30  ;;  %v17041_v30 = vld [vmem:[#allocation45_spill] sm:$0xff] }
 0x29a   :  { %17035 = vst [vmem:[#allocation26_spill] sm:$0xff] %v13522_v56  ;;  %4345 = vperm.xlu1 %10139, %v12985_v11   ;;  %v3894_v11 = vmul.f32 %v13482_v41, %v17041_v30 }
 0x29b   :  { %v3922_v38 = vpack.c.bf16 %v3890_v57, %v3889_v40  ;;  %v17042_v57 = vld [vmem:[#allocation39_spill] sm:$0xff] }
 0x29c   :  { %v13526_v62 = vpop.permute.xlu1 %3772 }
 0x29d   :  { %17036 = vst [vmem:[#allocation20_spill] sm:$0xff] %v13526_v62  ;;  %v3891_v50 = vmul.f32 %v13526_v62, %v17038_v17  ;;  %v13532_v6 = vpop.permute.xlu0 %3824  ;;  %9127 = vmatmul.mubr.msk.bf16.gmra.mrb[4].mxu0 %vm686_vm1, %v3922_v38  ;;  %v3896_v38 = vmul.f32 %v13492_v15, %v17045_v13  ;;  %v17103_v62 = vld [vmem:[#allocation166_spill] sm:$0xff] }
 0x29e   :  { %17039 = vst [vmem:[#allocation32_spill] sm:$0xff] %v13532_v6  ;;  %4353 = vperm.xlu1 %10139, %v13010_v39   ;;  %v17046_v39 = vld [vmem:[#allocation44_spill] sm:$0xff] }
 0x29f   :  { %v3923_v8 = vpack.c.bf16 %v3892_v25, %v3891_v50 }
 0x2a0   :  { %v13536_v55 = vpop.permute.xlu1 %3780 }
 0x2a1   :  { %17040 = vst [vmem:[#allocation25_spill] sm:$0xff] %v13536_v55  ;;  %v3893_v40 = vmul.f32 %v13536_v55, %v17042_v57  ;;  %v13542_v3 = vpop.permute.xlu0 %3832  ;;  %9130 = vmatprep.mubr.msk.bf16.mxu0 %vm686_vm1, %v3923_v8  ;;  %v17049_v57 = vld [vmem:[#allocation55_spill] sm:$0xff]  ;;  %v17050_v8 = vld [vmem:[#allocation49_spill] sm:$0xff] }
 0x2a2   :  { %17043 = vst [vmem:[#allocation36_spill] sm:$0xff] %v13542_v3  ;;  %v3898_v55 = vmul.f32 %v13501_v61, %v17049_v57 }
 0x2a3   :  { %v3924_v14 = vpack.c.bf16 %v3894_v11, %v3893_v40 }
 0x2a4   :  { %v13545_v17 = vpop.permute.xlu1 %3788 }
 0x2a5   :  { %17044 = vst [vmem:[#allocation31_spill] sm:$0xff] %v13545_v17  ;;  %v3895_v25 = vmul.f32 %v13545_v17, %v17046_v39  ;;  %v13551_v50 = vpop.permute.xlu0 %3840  ;;  %9131 = vmatmul.mubr.msk.bf16.gmra.mrb[8].mxu0 %vm686_vm1, %v3924_v14  ;;  %v17053_v39 = vld [vmem:[#allocation60_spill] sm:$0xff]  ;;  %v17054_v14 = vld [vmem:[#allocation54_spill] sm:$0xff] }
 0x2a6   :  { %17047 = vst [vmem:[#allocation40_spill] sm:$0xff] %v13551_v50  ;;  %v3900_v17 = vmul.f32 %v13511_v45, %v17053_v39 }
 0x2a7   :  { %v3925_v30 = vpack.c.bf16 %v3896_v38, %v3895_v25 }
 0x2a8   :  { %v13554_v41 = vpop.permute.xlu1 %3796 }
 0x2a9   :  { %17048 = vst [vmem:[#allocation35_spill] sm:$0xff] %v13554_v41  ;;  %v3897_v11 = vmul.f32 %v13554_v41, %v17050_v8  ;;  %v13560_v40 = vpop.permute.xlu0 %3848  ;;  %9134 = vmatprep.mubr.msk.bf16.mxu0 %vm686_vm1, %v3925_v30  ;;  %v17057_v8 = vld [vmem:[#allocation65_spill] sm:$0xff]  ;;  %v17058_v30 = vld [vmem:[#allocation59_spill] sm:$0xff] }
 0x2aa   :  { %17051 = vst [vmem:[#allocation45_spill] sm:$0xff] %v13560_v40  ;;  %v3902_v41 = vmul.f32 %v13522_v56, %v17057_v8 }
 0x2ab   :  { %v3926_v13 = vpack.c.bf16 %v3898_v55, %v3897_v11 }
 0x2ac   :  { %v13563_v15 = vpop.permute.xlu1 %3804 }
 0x2ad   :  { %17052 = vst [vmem:[#allocation39_spill] sm:$0xff] %v13563_v15  ;;  %v3899_v38 = vmul.f32 %v13563_v15, %v17054_v14  ;;  %v13569_v25 = vpop.permute.xlu0 %3856  ;;  %9135 = vmatmul.mubr.msk.bf16.gmra.mrb[12].mxu0 %vm686_vm1, %v3926_v13  ;;  %v17061_v14 = vld [vmem:[#allocation70_spill] sm:$0xff]  ;;  %v17062_v13 = vld [vmem:[#allocation64_spill] sm:$0xff] }
 0x2ae   :  { %17055 = vst [vmem:[#allocation50_spill] sm:$0xff] %v13569_v25  ;;  %v3904_v15 = vmul.f32 %v13532_v6, %v17061_v14 }
 0x2af   :  { %v3927_v57 = vpack.c.bf16 %v3900_v17, %v3899_v38 }
 0x2b0   :  { %v13572_v61 = vpop.permute.xlu1 %3812 }
 0x2b1   :  { %17056 = vst [vmem:[#allocation44_spill] sm:$0xff] %v13572_v61  ;;  %v3901_v55 = vmul.f32 %v13572_v61, %v17058_v30  ;;  %v13578_v11 = vpop.permute.xlu0 %3864  ;;  %9138 = vmatprep.mubr.msk.bf16.mxu0 %vm686_vm1, %v3927_v57  ;;  %v17065_v30 = vld [vmem:[#allocation75_spill] sm:$0xff]  ;;  %v17066_v57 = vld [vmem:[#allocation69_spill] sm:$0xff] }
 0x2b2   :  { %17059 = vst [vmem:[#allocation55_spill] sm:$0xff] %v13578_v11  ;;  %v3906_v61 = vmul.f32 %v13542_v3, %v17065_v30 }
 0x2b3   :  { %v3928_v39 = vpack.c.bf16 %v3902_v41, %v3901_v55 }
 0x2b4   :  { %v13581_v45 = vpop.permute.xlu1 %3820 }
 0x2b5   :  { %17060 = vst [vmem:[#allocation49_spill] sm:$0xff] %v13581_v45  ;;  %v3903_v17 = vmul.f32 %v13581_v45, %v17062_v13  ;;  %v13587_v38 = vpop.permute.xlu0 %3872  ;;  %9139 = vmatmul.mubr.msk.bf16.gmra.mrb[16].mxu0 %vm686_vm1, %v3928_v39  ;;  %v17069_v13 = vld [vmem:[#allocation80_spill] sm:$0xff]  ;;  %v17070_v39 = vld [vmem:[#allocation74_spill] sm:$0xff] }
 0x2b6   :  { %17063 = vst [vmem:[#allocation60_spill] sm:$0xff] %v13587_v38  ;;  %v3908_v45 = vmul.f32 %v13551_v50, %v17069_v13 }
 0x2b7   :  { %v3929_v8 = vpack.c.bf16 %v3904_v15, %v3903_v17 }
 0x2b8   :  { %v13590_v56 = vpop.permute.xlu1 %3828 }
 0x2b9   :  { %17064 = vst [vmem:[#allocation54_spill] sm:$0xff] %v13590_v56  ;;  %v3905_v41 = vmul.f32 %v13590_v56, %v17066_v57  ;;  %v13596_v55 = vpop.permute.xlu0 %3880  ;;  %9142 = vmatprep.mubr.msk.bf16.mxu0 %vm686_vm1, %v3929_v8  ;;  %v17073_v57 = vld [vmem:[#allocation84_spill] sm:$0xff]  ;;  %v17074_v8 = vld [vmem:[#allocation79_spill] sm:$0xff] }
 0x2ba   :  { %17067 = vst [vmem:[#allocation65_spill] sm:$0xff] %v13596_v55  ;;  %v3910_v56 = vmul.f32 %v13560_v40, %v17073_v57 }
 0x2bb   :  { %v3930_v14 = vpack.c.bf16 %v3906_v61, %v3905_v41 }
 0x2bc   :  { %v13599_v6 = vpop.permute.xlu1 %3836 }
 0x2bd   :  { %17068 = vst [vmem:[#allocation59_spill] sm:$0xff] %v13599_v6  ;;  %v3907_v15 = vmul.f32 %v13599_v6, %v17070_v39  ;;  %9143 = vmatmul.mubr.msk.bf16.gmra.mrb[20].mxu0 %vm686_vm1, %v3930_v14  ;;  %v17077_v39 = vld [vmem:[#allocation88_spill] sm:$0xff]  ;;  %v17078_v6 = vld [vmem:[#allocation83_spill] sm:$0xff] }
 0x2be   :  { %v13606_v17 = vpop.permute.xlu0 %4217  ;;  %v3912_v14 = vmul.f32 %v13569_v25, %v17077_v39  ;;  %v17084_v25 = vld [vmem:[#allocation14_spill] sm:$0xff] }
 0x2bf   :  { %17071 = vst [vmem:[#allocation70_spill] sm:$0xff] %v13606_v17  ;;  %v3931_v30 = vpack.c.bf16 %v3908_v45, %v3907_v15 }
 0x2c0   :  { %v13608_v3 = vpop.permute.xlu1 %3844 }
 0x2c1   :  { %17072 = vst [vmem:[#allocation64_spill] sm:$0xff] %v13608_v3  ;;  %v3909_v61 = vmul.f32 %v13608_v3, %v17074_v8  ;;  %9146 = vmatprep.mubr.msk.bf16.mxu0 %vm686_vm1, %v3931_v30  ;;  %v17081_v8 = vld [vmem:[#allocation92_spill] sm:$0xff]  ;;  %v17082_v3 = vld [vmem:[#allocation87_spill] sm:$0xff] }
 0x2c2   :  { %v13615_v41 = vpop.permute.xlu0 %4229  ;;  %v3914_v30 = vmul.f32 %v13578_v11, %v17081_v8  ;;  %v17088_v11 = vld [vmem:[#allocation15_spill] sm:$0xff] }
 0x2c3   :  { %17075 = vst [vmem:[#allocation75_spill] sm:$0xff] %v13615_v41  ;;  %v3932_v13 = vpack.c.bf16 %v3910_v56, %v3909_v61 }
 0x2c4   :  { %v13617_v50 = vpop.permute.xlu1 %3852 }
 0x2c5   :  { %17076 = vst [vmem:[#allocation69_spill] sm:$0xff] %v13617_v50  ;;  %v3911_v45 = vmul.f32 %v13617_v50, %v17078_v6  ;;  %9147 = vmatmul.mubr.msk.bf16.gmra.mrb[24].mxu0 %vm686_vm1, %v3932_v13  ;;  %v3916_v6 = vmul.f32 %v13587_v38, %v17084_v25 }
 0x2c6   :  { %v13624_v57 = vpop.permute.xlu0 %4237 }
 0x2c7   :  { %v3933_v15 = vpack.c.bf16 %v3912_v14, %v3911_v45  ;;  %17079 = vst [vmem:[#allocation80_spill] sm:$0xff] %v13624_v57  ;;  %v17086_v14 = vld [vmem:[#allocation91_spill] sm:$0xff] }
 0x2c8   :  { %v13626_v40 = vpop.permute.xlu1 %3860 }
 0x2c9   :  { %17080 = vst [vmem:[#allocation74_spill] sm:$0xff] %v13626_v40  ;;  %v3913_v56 = vmul.f32 %v13626_v40, %v17082_v3  ;;  %9150 = vmatprep.mubr.msk.bf16.mxu0 %vm686_vm1, %v3933_v15  ;;  %v3918_v3 = vmul.f32 %v13596_v55, %v17088_v11  ;;  %v17089_v15 = vld [vmem:[#allocation17_spill] sm:$0xff]  ;;  %v17091_v40 = vld [vmem:[#allocation154_spill] sm:$0xff] }
 0x2ca   :  { %v13637_v13 = vpop.permute.xlu0 %4245  ;;  %v4357_v38 = vmul.f32 %v13606_v17, %v17091_v40  ;;  %v17096_v40 = vld [vmem:[#allocation158_spill] sm:$0xff] }
 0x2cb   :  { %v3934_v61 = vpack.c.bf16 %v3914_v30, %v3913_v56  ;;  %17085 = vst [vmem:[#allocation79_spill] sm:$0xff] %v13637_v13 }
 0x2cc   :  { %v13633_v39 = vpop.permute.xlu1 %3868 }
 0x2cd   :  { %17083 = vst [vmem:[#allocation84_spill] sm:$0xff] %v13633_v39  ;;  %v3915_v45 = vmul.f32 %v13633_v39, %v17086_v14  ;;  %9151 = vmatmul.mubr.msk.bf16.gmra.mrb[28].mxu0 %vm686_vm1, %v3934_v61  ;;  %v17093_v61 = vld [vmem:[#allocation153_spill] sm:$0xff] }
 0x2ce   :  { %v13649_v56 = vpop.permute.xlu0 %4253 }
 0x2cf   :  { %v3935_v50 = vpack.c.bf16 %v3916_v6, %v3915_v45  ;;  %17090 = vst [vmem:[#allocation83_spill] sm:$0xff] %v13649_v56 }
 0x2d0   :  { %v13642_v8 = vpop.permute.xlu1 %3876 }
 0x2d1   :  { %17087 = vst [vmem:[#allocation88_spill] sm:$0xff] %v13642_v8  ;;  %v3917_v30 = vmul.f32 %v13642_v8, %v17089_v15  ;;  %9154 = vmatprep.mubr.msk.bf16.mxu0 %vm686_vm1, %v3935_v50 }
 0x2d2   :  { %v13658_v11 = vpop.permute.xlu0 %4261 }
 0x2d3   :  { %v3936_v25 = vpack.c.bf16 %v3918_v3, %v3917_v30  ;;  %17094 = vst [vmem:[#allocation87_spill] sm:$0xff] %v13658_v11  ;;  %v17095_v3 = vld [vmem:[#allocation157_spill] sm:$0xff] }
 0x2d5   :  { %v13653_v14 = vpop.permute.xlu1 %4213  ;;  %9155 = vmatmul.mubr.msk.bf16.gmra.mrb[32].mxu0 %vm686_vm1, %v3936_v25 }
 0x2d6   :  { %17092 = vst [vmem:[#allocation92_spill] sm:$0xff] %v13653_v14  ;;  %v4356_v6 = vmul.f32 %v13653_v14, %v17093_v61  ;;  %v13669_v17 = vpop.permute.xlu0 %4269 }
 0x2d7   :  { %17097 = vst [vmem:[#allocation14_spill] sm:$0xff] %v13669_v17 }
 0x2d8   :  { %v4392_v45 = vpack.c.bf16 %v4357_v38, %v4356_v6  ;;  %v17099_v38 = vld [vmem:[#allocation161_spill] sm:$0xff]  ;;  %v17100_v6 = vld [vmem:[#allocation162_spill] sm:$0xff] }
 0x2d9   :  { %v13660_v55 = vpop.permute.xlu1 %4221  ;;  %v4360_v61 = vmul.f32 %v13615_v41, %v17099_v38  ;;  %v17106_v41 = vld [vmem:[#allocation170_spill] sm:$0xff] }
 0x2da   :  { %9160 = vmatprep.mubr.msk.bf16.mxu0 %vm686_vm1, %v4392_v45  ;;  %v4358_v15 = vmul.f32 %v13660_v55, %v17095_v3  ;;  %v13678_v39 = vpop.permute.xlu0 %4277 }
 0x2db   :  { %17101 = vst [vmem:[#allocation15_spill] sm:$0xff] %v13678_v39 }
 0x2dd   :  { %v13663_v50 = vpop.permute.xlu1 %4225 }
 0x2de   :  { %v4359_v30 = vmul.f32 %v13663_v50, %v17096_v40  ;;  %v4362_v40 = vmul.f32 %v13624_v57, %v17103_v62  ;;  %v17110_v57 = vld [vmem:[#allocation175_spill] sm:$0xff] }
 0x2e0   :  { %v4393_v25 = vpack.c.bf16 %v4359_v30, %v4358_v15 }
 0x2e1   :  { %v13671_v8 = vpop.permute.xlu1 %4233 }
 0x2e2   :  { %17098 = vst [vmem:[#allocation91_spill] sm:$0xff] %v13671_v8  ;;  %v4361_v14 = vmul.f32 %v13671_v8, %v17100_v6  ;;  %9161 = vmatmul.mubr.msk.bf16.vlgmr.msra.gmra.mrb[0].mxu0 %vm686_vm1, %v4393_v25  ;;  %v4364_v6 = vmul.f32 %v13637_v13, %v17106_v41  ;;  %v17107_v25 = vld [vmem:[#allocation174_spill] sm:$0xff] }
 0x2e4   :  { %v4394_v45 = vpack.c.bf16 %v4361_v14, %v4360_v61  ;;  %v13694_v61 = vpop.permute.xlu0 %4285 }
 0x2e5   :  { %v13680_v3 = vpop.permute.xlu1 %4241  ;;  %17108 = vst [vmem:[#allocation153_spill] sm:$0xff] %v13694_v61 }
 0x2e6   :  { %17102 = vst [vmem:[#allocation17_spill] sm:$0xff] %v13680_v3  ;;  %v4363_v15 = vmul.f32 %v13680_v3, %v17104_v44  ;;  %9164 = vmatprep.mubr.msk.bf16.mxu0 %vm686_vm1, %v4394_v45  ;;  %v4366_v44 = vmul.f32 %v13649_v56, %v17110_v57  ;;  %v17111_v45 = vld [vmem:[#allocation178_spill] sm:$0xff]  ;;  %v17117_v56 = vld [vmem:[#allocation184_spill] sm:$0xff] }
 0x2e8   :  { %v4395_v30 = vpack.c.bf16 %v4363_v15, %v4362_v40  ;;  %v13703_v41 = vpop.permute.xlu0 %4293 }
 0x2e9   :  { %v13687_v38 = vpop.permute.xlu1 %4249  ;;  %17112 = vst [vmem:[#allocation158_spill] sm:$0xff] %v13703_v41 }
 0x2ea   :  { %17105 = vst [vmem:[#allocation154_spill] sm:$0xff] %v13687_v38  ;;  %v4365_v14 = vmul.f32 %v13687_v38, %v17107_v25  ;;  %9165 = vmatmul.mubr.msk.bf16.gmra.mrb[4].mxu0 %vm686_vm1, %v4395_v30  ;;  %v17114_v25 = vld [vmem:[#allocation179_spill] sm:$0xff] }
 0x2eb   :  { %v4368_v30 = vmul.f32 %v13658_v11, %v17114_v25  ;;  %v17115_v38 = vld [vmem:[#allocation183_spill] sm:$0xff]  ;;  %v17121_v11 = vld [vmem:[#allocation189_spill] sm:$0xff] }
 0x2ec   :  { %v4396_v8 = vpack.c.bf16 %v4365_v14, %v4364_v6 }
 0x2ed   :  { %v13696_v62 = vpop.permute.xlu1 %4257 }
 0x2ee   :  { %17109 = vst [vmem:[#allocation157_spill] sm:$0xff] %v13696_v62  ;;  %v4367_v40 = vmul.f32 %v13696_v62, %v17111_v45  ;;  %9168 = vmatprep.mubr.msk.bf16.mxu0 %vm686_vm1, %v4396_v8  ;;  %v4370_v45 = vmul.f32 %v13669_v17, %v17117_v56  ;;  %v17118_v8 = vld [vmem:[#allocation188_spill] sm:$0xff] }
 0x2f0   :  { %v4397_v15 = vpack.c.bf16 %v4367_v40, %v4366_v44  ;;  %v13719_v40 = vpop.permute.xlu0 %4301 }
 0x2f1   :  { %v13705_v13 = vpop.permute.xlu1 %4265  ;;  %17119 = vst [vmem:[#allocation166_spill] sm:$0xff] %v13719_v40 }
 0x2f2   :  { %17113 = vst [vmem:[#allocation161_spill] sm:$0xff] %v13705_v13  ;;  %v4369_v6 = vmul.f32 %v13705_v13, %v17115_v38  ;;  %9169 = vmatmul.mubr.msk.bf16.gmra.mrb[8].mxu0 %vm686_vm1, %v4397_v15  ;;  %v4372_v38 = vmul.f32 %v13678_v39, %v17121_v11  ;;  %v17122_v15 = vld [vmem:[#allocation193_spill] sm:$0xff]  ;;  %v17128_v39 = vld [vmem:[#allocation199_spill] sm:$0xff] }
 0x2f4   :  { %v4398_v14 = vpack.c.bf16 %v4369_v6, %v4368_v30  ;;  %v13728_v56 = vpop.permute.xlu0 %4309 }
 0x2f5   :  { %v13712_v57 = vpop.permute.xlu1 %4273  ;;  %17123 = vst [vmem:[#allocation170_spill] sm:$0xff] %v13728_v56 }
 0x2f6   :  { %17116 = vst [vmem:[#allocation162_spill] sm:$0xff] %v13712_v57  ;;  %v4371_v44 = vmul.f32 %v13712_v57, %v17118_v8  ;;  %9172 = vmatprep.mubr.msk.bf16.mxu0 %vm686_vm1, %v4398_v14  ;;  %v17125_v8 = vld [vmem:[#allocation194_spill] sm:$0xff] }
 0x2f7   :  { %v4374_v14 = vmul.f32 %v13694_v61, %v17125_v8  ;;  %v17126_v57 = vld [vmem:[#allocation198_spill] sm:$0xff]  ;;  %v17132_v61 = vld [vmem:[#allocation204_spill] sm:$0xff] }
 0x2f8   :  { %v4399_v62 = vpack.c.bf16 %v4371_v44, %v4370_v45 }
 0x2f9   :  { %v13721_v25 = vpop.permute.xlu1 %4281 }
 0x2fa   :  { %17120 = vst [vmem:[#allocation167_spill] sm:$0xff] %v13721_v25  ;;  %v4373_v30 = vmul.f32 %v13721_v25, %v17122_v15  ;;  %9173 = vmatmul.mubr.msk.bf16.gmra.mrb[12].mxu0 %vm686_vm1, %v4399_v62  ;;  %v4376_v15 = vmul.f32 %v13703_v41, %v17128_v39  ;;  %v17129_v62 = vld [vmem:[#allocation203_spill] sm:$0xff] }
 0x2fc   :  { %v4400_v6 = vpack.c.bf16 %v4373_v30, %v4372_v38  ;;  %v13744_v30 = vpop.permute.xlu0 %4317 }
 0x2fd   :  { %v13730_v17 = vpop.permute.xlu1 %4289  ;;  %17130 = vst [vmem:[#allocation178_spill] sm:$0xff] %v13744_v30 }
 0x2fe   :  { %17124 = vst [vmem:[#allocation174_spill] sm:$0xff] %v13730_v17  ;;  %v4375_v45 = vmul.f32 %v13730_v17, %v17126_v57  ;;  %9176 = vmatprep.mubr.msk.bf16.mxu0 %vm686_vm1, %v4400_v6  ;;  %v4378_v57 = vmul.f32 %v13719_v40, %v17132_v61  ;;  %v17133_v6 = vld [vmem:[#allocation208_spill] sm:$0xff]  ;;  %v17139_v40 = vld [vmem:[#allocation214_spill] sm:$0xff] }
 0x300   :  { %v4401_v44 = vpack.c.bf16 %v4375_v45, %v4374_v14  ;;  %v13753_v39 = vpop.permute.xlu0 %4325 }
 0x301   :  { %v13737_v11 = vpop.permute.xlu1 %4297  ;;  %17134 = vst [vmem:[#allocation183_spill] sm:$0xff] %v13753_v39 }
 0x302   :  { %17127 = vst [vmem:[#allocation175_spill] sm:$0xff] %v13737_v11  ;;  %v4377_v38 = vmul.f32 %v13737_v11, %v17129_v62  ;;  %9177 = vmatmul.mubr.msk.bf16.gmra.mrb[16].mxu0 %vm686_vm1, %v4401_v44  ;;  %v17136_v62 = vld [vmem:[#allocation209_spill] sm:$0xff] }
 0x303   :  { %v4380_v44 = vmul.f32 %v13728_v56, %v17136_v62  ;;  %v17137_v11 = vld [vmem:[#allocation213_spill] sm:$0xff]  ;;  %v17143_v56 = vld [vmem:[#allocation219_spill] sm:$0xff] }
 0x304   :  { %v4402_v25 = vpack.c.bf16 %v4377_v38, %v4376_v15 }
 0x305   :  { %v13746_v8 = vpop.permute.xlu1 %4305 }
 0x306   :  { %17131 = vst [vmem:[#allocation179_spill] sm:$0xff] %v13746_v8  ;;  %v4379_v14 = vmul.f32 %v13746_v8, %v17133_v6  ;;  %9180 = vmatprep.mubr.msk.bf16.mxu0 %vm686_vm1, %v4402_v25  ;;  %v4382_v6 = vmul.f32 %v13744_v30, %v17139_v40  ;;  %v17140_v25 = vld [vmem:[#allocation218_spill] sm:$0xff] }
 0x308   :  { %v4403_v45 = vpack.c.bf16 %v4379_v14, %v4378_v57  ;;  %v13769_v14 = vpop.permute.xlu0 %4333 }
 0x309   :  { %v13755_v41 = vpop.permute.xlu1 %4313  ;;  %17141 = vst [vmem:[#allocation189_spill] sm:$0xff] %v13769_v14 }
 0x30a   :  { %17135 = vst [vmem:[#allocation184_spill] sm:$0xff] %v13755_v41  ;;  %v4381_v15 = vmul.f32 %v13755_v41, %v17137_v11  ;;  %9181 = vmatmul.mubr.msk.bf16.gmra.mrb[20].mxu0 %vm686_vm1, %v4403_v45  ;;  %v4384_v11 = vmul.f32 %v13753_v39, %v17143_v56  ;;  %v17144_v45 = vld [vmem:[#allocation223_spill] sm:$0xff]  ;;  %v17150_v39 = vld [vmem:[#allocation229_spill] sm:$0xff] }
 0x30c   :  { %v4404_v38 = vpack.c.bf16 %v4381_v15, %v4380_v44  ;;  %v13778_v40 = vpop.permute.xlu0 %4341 }
 0x30d   :  { %v13762_v61 = vpop.permute.xlu1 %4321  ;;  %17145 = vst [vmem:[#allocation194_spill] sm:$0xff] %v13778_v40 }
 0x30e   :  { %17138 = vst [vmem:[#allocation188_spill] sm:$0xff] %v13762_v61  ;;  %v4383_v57 = vmul.f32 %v13762_v61, %v17140_v25  ;;  %9184 = vmatprep.mubr.msk.bf16.mxu0 %vm686_vm1, %v4404_v38  ;;  %v17147_v25 = vld [vmem:[#allocation224_spill] sm:$0xff]  ;;  %v17148_v61 = vld [vmem:[#allocation227_spill] sm:$0xff] }
 0x30f   :  { %v4386_v38 = vmul.f32 %v13769_v14, %v17147_v25  ;;  %v17154_v14 = vld [vmem:[#allocation147_spill] sm:$0xff] }
 0x310   :  { %v4405_v8 = vpack.c.bf16 %v4383_v57, %v4382_v6 }
 0x311   :  { %v13771_v62 = vpop.permute.xlu1 %4329 }
 0x312   :  { %17142 = vst [vmem:[#allocation193_spill] sm:$0xff] %v13771_v62  ;;  %v4385_v44 = vmul.f32 %v13771_v62, %v17144_v45  ;;  %9185 = vmatmul.mubr.msk.bf16.gmra.mrb[24].mxu0 %vm686_vm1, %v4405_v8  ;;  %v4388_v45 = vmul.f32 %v13778_v40, %v17150_v39  ;;  %v17151_v8 = vld [vmem:[#allocation146_spill] sm:$0xff]  ;;  %v10150_v39 = vld [vmem:[%s15909_s4 + $0x8] sm:$0xff]  }
 0x313   :  { %9196 = vmatprep.subr.bf16.mxu1 %v10150_v39 }
 0x314   :  { %v4406_v15 = vpack.c.bf16 %v4385_v44, %v4384_v11  ;;  %v13794_v44 = vpop.permute.xlu0 %4349  ;;  %9197 = vmatpush3.bf16.msra.mxu1 %v10150_v39 }
 0x315   :  { %v13780_v30 = vpop.permute.xlu1 %4337  ;;  %17152 = vst [vmem:[#allocation203_spill] sm:$0xff] %v13794_v44 }
 0x316   :  { %17146 = vst [vmem:[#allocation198_spill] sm:$0xff] %v13780_v30  ;;  %v4387_v6 = vmul.f32 %v13780_v30, %v17148_v61  ;;  %9188 = vmatprep.mubr.msk.bf16.mxu0 %vm686_vm1, %v4406_v15  ;;  %v4390_v61 = vmul.f32 %v13794_v44, %v17154_v14  ;;  %v17155_v15 = vld [vmem:[#allocation152_spill] sm:$0xff] }
 0x318   :  { %v4407_v57 = vpack.c.bf16 %v4387_v6, %v4386_v38 }
 0x319   :  { %v13787_v56 = vpop.permute.xlu1 %4345 }
 0x31a   :  { %17149 = vst [vmem:[#allocation199_spill] sm:$0xff] %v13787_v56  ;;  %v4389_v11 = vmul.f32 %v13787_v56, %v17151_v8  ;;  %9189 = vmatmul.mubr.msk.bf16.gmra.mrb[28].mxu0 %vm686_vm1, %v4407_v57  ;;  %v13810_v57 = vld [vmem:[%s15909_s4] sm:$0xff]  }
 0x31b   :  { %9234 = vmatprep.subr.bf16.mxu1 %v13810_v57 }
 0x31c   :  { %v4408_v62 = vpack.c.bf16 %v4389_v11, %v4388_v45  ;;  %v13816_v11 = vld [vmem:[%s15910_s3] ss:$0 sm:$0xff] }
 0x31d   :  { %v13796_v25 = vpop.permute.xlu1 %4353 }
 0x31e   :  { %17153 = vst [vmem:[#allocation204_spill] sm:$0xff] %v13796_v25  ;;  %v4391_v38 = vmul.f32 %v13796_v25, %v17155_v15  ;;  %9192 = vmatprep.mubr.msk.bf16.mxu0 %vm686_vm1, %v4408_v62 }
 0x320   :  { %v4409_v6 = vpack.c.bf16 %v4391_v38, %v4390_v61 }
 0x322   :  { %9193 = vmatmul.mubr.msk.bf16.gmra.mrb[32].mxu0 %vm686_vm1, %v4409_v6 }
 0x3b5   :  { %v9162_v14 = vpop.f32.mrb[0].mxu0 }
 0x3b6   :  { %v4506_v45 = vpop.f32.mrb[1].mxu0  ;;  %v4694_v52 = vadd.f32 %v9162_v14, %v13816_v11 }
 0x3b7   :  { %v9163_v8 = vpop.f32.mrb[2].mxu0  ;;  %v4692_v23 = vadd.f32 %v13816_v11, %v4506_v45 }
 0x3b8   :  { %v4509_v62 = vpop.f32.mrb[3].mxu0  ;;  %v4695_v61 = vadd.f32 %v9163_v8, %v13816_v11  ;;  %v13926_v20 = vmax.f32 %v4694_v52, 0.0 }
 0x3b9   :  { %v4693_v46 = vadd.f32 %v13816_v11, %v4509_v62  ;;  %v13928_v33 = vmax.f32 %v4692_v23, 0.0 }
 0x3ba   :  { %v13822_v25 = vmax.f32 %v4695_v61, 0.0 }
 0x3bb   :  { %v13924_v2 = vmax.f32 %v4693_v46, 0.0  ;;  %v4892_v45 = vrot.slane %v13928_v33, 4 }
 0x3bc   :  { %v16373_v17 = vrot.slane %v13822_v25, 4 }
 0x3bd   :  { %v9166_v15 = vpop.f32.mrb[4].mxu0  ;;  %v4893_v49 = vrot.slane %v13924_v2, 4 }
 0x3be   :  { %v4522_v38 = vpop.f32.mrb[5].mxu0 }
 0x3bf   :  { %v4696_v6 = vadd.f32 %v13816_v11, %v4522_v38  ;;  %v13820_v39 = vpop.f32.mrb[6].mxu0 }
 0x3c0   :  { %v4525_v44 = vpop.f32.mrb[7].mxu0 }
 0x3c1   :  { %v13824_v56 = vmax.f32 %v4696_v6, 0.0  ;;  %v4697_v40 = vadd.f32 %v13816_v11, %v4525_v44 }
 0x3c3   :  { %v13827_v30 = vmax.f32 %v4697_v40, 0.0  ;;  %v4896_v41 = vrot.slane %v13824_v56, 4  ;;  %v4768_v63 = vrot.slane %v13824_v56, 3 }
 0x3c5   :  { %v13831_v8 = vpop.f32.mrb[8].mxu0  ;;  %v16377_v13 = vrot.slane %v13827_v30, 4  ;;  %v13838_v61 = vsel %vm443_vm0, %v16373_v17, %v4896_v41  ;;  %v16386_v4 = vrot.slane %v13827_v30, 3 }
 0x3c6   :  { %v4538_v38 = vpop.f32.mrb[9].mxu0  ;;  %v13850_v3 = vmul.f32 %v13838_v61, %v13497_v51  ;;  %v4702_v60 = vadd.f32 %v13831_v8, %v13816_v11 }
 0x3c7   :  { %v13840_v6 = vpop.f32.mrb[10].mxu0  ;;  %v13846_v40 = vsel %vm443_vm0, %v4896_v41, %v16377_v13  ;;  %v16382_v13 = vrot.slane %v13822_v25, 3  ;;  %v13877_v17 = vsel %vm134_vm2, %v4768_v63, %v16386_v4  ;;  %v4700_v46 = vadd.f32 %v13816_v11, %v4538_v38 }
 0x3c8   :  { %v4541_v44 = vpop.f32.mrb[11].mxu0  ;;  %17156 = vst [vmem:[#allocation208_spill] sm:$0xff] %v13850_v3  ;;  %v13854_v28 = vmul.f32 %v13846_v40, %v13440_v10 }
 0x3c9   :  { %v13871_v10 = vsel %vm134_vm2, %v16382_v13, %v4768_v63  ;;  %v4701_v35 = vadd.f32 %v13816_v11, %v4541_v44  ;;  %v17169_v44 = vld [vmem:[#allocation19_spill] sm:$0xff] }
 0x3ca   :  { %17157 = vst [vmem:[#allocation209_spill] sm:$0xff] %v13854_v28  ;;  %v13881_v3 = vmul.f32 %v13871_v10, %v13288_v53  ;;  %v13885_v28 = vmul.f32 %v13877_v17, %v13295_v54 }
 0x3cc   :  { %17158 = vst [vmem:[#allocation213_spill] sm:$0xff] %v13881_v3  ;;  %17159 = vst [vmem:[#allocation214_spill] sm:$0xff] %v13885_v28  ;;  %v4894_v3 = vrot.slane %v13926_v20, 4  ;;  %v4698_v28 = vadd.f32 %v9166_v15, %v13816_v11  ;;  %v13953_v15 = vsel %vm443_vm0, %v4892_v45, %v4893_v49 }
 0x3cd   :  { %v13860_v42 = vpop.f32.mrb[12].mxu0  ;;  %17161 = vst [vmem:[#allocation219_spill] sm:$0xff] %v13953_v15 }
 0x3ce   :  { %v4554_v41 = vpop.f32.mrb[13].mxu0  ;;  %v13949_v0 = vsel %vm443_vm0, %v4893_v49, %v4894_v3  ;;  %v13955_v38 = vmax.f32 %v4698_v28, 0.0 }
 0x3cf   :  { %v13863_v22 = vpop.f32.mrb[14].mxu0  ;;  %17160 = vst [vmem:[#allocation218_spill] sm:$0xff] %v13949_v0  ;;  %v4967_v47 = vmul.f32 %v13949_v0, %v17163_v32  ;;  %v17170_v0 = vld [vmem:[#allocation22_spill] sm:$0xff] }
 0x3d0   :  { %v13865_v51 = vpop.f32.mrb[15].mxu0 }
 0x3d5   :  { %v13887_v36 = vpop.f32.mrb[16].mxu0 }
 0x3d6   :  { %v13891_v27 = vpop.f32.mrb[17].mxu0 }
 0x3d7   :  { %v13893_v24 = vpop.f32.mrb[18].mxu0 }
 0x3d8   :  { %v13895_v19 = vpop.f32.mrb[19].mxu0 }
 0x3dd   :  { %v13897_v63 = vpop.f32.mrb[20].mxu0 }
 0x3de   :  { %v13899_v4 = vpop.f32.mrb[21].mxu0 }
 0x3df   :  { %v13901_v53 = vpop.f32.mrb[22].mxu0 }
 0x3e0   :  { %v13903_v37 = vpop.f32.mrb[23].mxu0 }
 0x3e5   :  { %v13905_v54 = vpop.f32.mrb[24].mxu0 }
 0x3e6   :  { %v13907_v21 = vpop.f32.mrb[25].mxu0 }
 0x3e7   :  { %v13909_v12 = vpop.f32.mrb[26].mxu0 }
 0x3e8   :  { %v13911_v13 = vpop.f32.mrb[27].mxu0 }
 0x3ed   :  { %v13913_v31 = vpop.f32.mrb[28].mxu0 }
 0x3ee   :  { %v13916_v9 = vpop.f32.mrb[29].mxu0 }
 0x3ef   :  { %v13920_v26 = vpop.f32.mrb[30].mxu0 }
 0x3f0   :  { %v13922_v29 = vpop.f32.mrb[31].mxu0 }
 0x3f5   :  { %v9194_v48 = vpop.f32.mrb[32].mxu0 }
 0x3f6   :  { %v4726_v16 = vadd.f32 %v9194_v48, %v13816_v11  ;;  %v13931_v62 = vpop.f32.mrb[33].mxu0  ;;  %v4699_v48 = vadd.f32 %v13820_v39, %v13816_v11  ;;  %v17162_v39 = vld [vmem:[#allocation12_spill] sm:$0xff] }
 0x3f7   :  { %v9195_v14 = vpop.f32.mrb[34].mxu0 }
 0x3f8   :  { %v13938_v52 = vmax.f32 %v4726_v16, 0.0  ;;  %v4727_v23 = vadd.f32 %v9195_v14, %v13816_v11  ;;  %v13941_v59 = vpop.f32.mrb[35].mxu0  ;;  %v13957_v16 = vmax.f32 %v4700_v46, 0.0  ;;  %v13961_v58 = vmax.f32 %v4699_v48, 0.0 }
 0x3f9   :  { %v17166_v46 = vrot.slane %v13822_v25, 4 }
 0x3fa   :  { %v13945_v5 = vmax.f32 %v4727_v23, 0.0  ;;  %v16415_v14 = vrot.slane %v13938_v52, 4  ;;  %v4966_v23 = vmul.f32 %v13953_v15, %v17162_v39  ;;  %v17168_v39 = vld [vmem:[#allocation13_spill] sm:$0xff]  ;;  %v4900_v34 = vrot.slane %v13957_v16, 4 }
 0x3fb   :  { %v13982_v48 = vsel %vm443_vm0, %v4894_v3, %v17166_v46 }
 0x3fc   :  { %v4927_v18 = vrot.slane %v13945_v5, 4  ;;  %17167 = vst [vmem:[#allocation227_spill] sm:$0xff] %v13982_v48  ;;  %v5001_v46 = vpack.c.bf16 %v4967_v47, %v4966_v23  ;;  %v14011_v47 = vld [vmem:[%s15909_s4 + $0x10] sm:$0xff]  }
 0x3fe   :  { %v13972_v49 = vsel %vm443_vm0, %v16415_v14, %v4927_v18  ;;  %v13976_v28 = vsel %vm443_vm0, %v4927_v18, %v4892_v45  ;;  %v4969_v14 = vmul.f32 %v13838_v61, %v17170_v0  ;;  %v4704_v18 = vadd.f32 %v13816_v11, %v4554_v41 }
 0x3ff   :  { %17164 = vst [vmem:[#allocation223_spill] sm:$0xff] %v13972_v49  ;;  %17165 = vst [vmem:[#allocation224_spill] sm:$0xff] %v13976_v28  ;;  %v4964_v32 = vmul.f32 %v13972_v49, %v17168_v39  ;;  %v4965_v15 = vmul.f32 %v13976_v28, %v17169_v44  ;;  %v4898_v45 = vrot.slane %v13955_v38, 4  ;;  %v4968_v39 = vmul.f32 %v13982_v48, %v17171_v7 }
 0x400   :  { %v4703_v44 = vadd.f32 %v13840_v6, %v13816_v11  ;;  %v13999_v28 = vmax.f32 %v4701_v35, 0.0  ;;  %v17172_v0 = vrot.slane %v13827_v30, 4  ;;  %v4899_v61 = vrot.slane %v13961_v58, 4 }
 0x401   :  { %v5000_v3 = vpack.c.bf16 %v4965_v15, %v4964_v32  ;;  %v5002_v7 = vpack.c.bf16 %v4969_v14, %v4968_v39  ;;  %v14014_v41 = vmax.f32 %v4702_v60, 0.0  ;;  %v14016_v35 = vmax.f32 %v4704_v18, 0.0  ;;  %v17175_v15 = vld [vmem:[#allocation30_spill] sm:$0xff]  ;;  %v17176_v32 = vld [vmem:[#allocation29_spill] sm:$0xff] }
 0x402   :  { %v14005_v8 = vsel %vm443_vm0, %v17172_v0, %v4898_v45  ;;  %v14021_v6 = vsel %vm443_vm0, %v4899_v61, %v4900_v34  ;;  %v4970_v23 = vmul.f32 %v13846_v40, %v17175_v15  ;;  %v14029_v60 = vmax.f32 %v4703_v44, 0.0 }
 0x403   :  { %17173 = vst [vmem:[#allocation229_spill] sm:$0xff] %v14005_v8  ;;  %9198 = vmatprep.mubr.msk.bf16.mxu1 %vm686_vm1, %v5000_v3  ;;  %17174 = vst [vmem:[#allocation146_spill] sm:$0xff] %v14021_v6  ;;  %v4971_v14 = vmul.f32 %v14005_v8, %v17176_v32  ;;  %v14033_v18 = vsel %vm443_vm0, %v4898_v45, %v4899_v61  ;;  %v4901_v3 = vrot.slane %v13999_v28, 4  ;;  %v4902_v44 = vrot.slane %v14014_v41, 4 }
 0x404   :  { %9199 = vmatmul.mubr.msk.bf16.vlgmr.msra.gmra.mrb[0].mxu1 %vm686_vm1, %v5001_v46  ;;  %17177 = vst [vmem:[#allocation147_spill] sm:$0xff] %v14033_v18  ;;  %v17178_v46 = vld [vmem:[#allocation33_spill] sm:$0xff]  ;;  %v4708_v40 = vadd.f32 %v13816_v11, %v13891_v27  ;;  %v4904_v0 = vrot.slane %v14016_v35, 4  ;;  %v4706_v45 = vadd.f32 %v13860_v42, %v13816_v11 }
 0x405   :  { %9235 = vmatpush3.bf16.msra.mxu1 %v13810_v57  ;;  %9202 = vmatprep.mubr.msk.bf16.mxu1 %vm686_vm1, %v5002_v7  ;;  %v4705_v57 = vadd.f32 %v13816_v11, %v13865_v51  ;;  %v4973_v39 = vmul.f32 %v14021_v6, %v17178_v46  ;;  %v5003_v61 = vpack.c.bf16 %v4971_v14, %v4970_v23  ;;  %v17179_v7 = vld [vmem:[#allocation34_spill] sm:$0xff]  ;;  %v4903_v46 = vrot.slane %v14029_v60, 4 }
 0x406   :  { %9272 = vmatprep.subr.bf16.mxu1 %v14011_v47  ;;  %v4972_v15 = vmul.f32 %v14033_v18, %v17179_v7  ;;  %v4707_v51 = vadd.f32 %v13863_v22, %v13816_v11  ;;  %v14053_v32 = vsel %vm443_vm0, %v4901_v3, %v4902_v44  ;;  %v14057_v27 = vsel %vm443_vm0, %v4900_v34, %v4901_v3  ;;  %v17183_v7 = vld [vmem:[#allocation38_spill] sm:$0xff]  ;;  %v17184_v3 = vld [vmem:[#allocation37_spill] sm:$0xff] }
 0x407   :  { %17180 = vst [vmem:[#allocation152_spill] sm:$0xff] %v14053_v32  ;;  %17181 = vst [vmem:[#allocation12_spill] sm:$0xff] %v14057_v27  ;;  %v14060_v49 = vmax.f32 %v4705_v57, 0.0  ;;  %v14062_v23 = vmax.f32 %v4708_v40, 0.0  ;;  %v14067_v22 = vsel %vm443_vm0, %v4903_v46, %v4904_v0  ;;  %v14069_v14 = vmax.f32 %v4706_v45, 0.0 }
 0x408   :  { %v5004_v42 = vpack.c.bf16 %v4973_v39, %v4972_v15  ;;  %17182 = vst [vmem:[#allocation18_spill] sm:$0xff] %v14067_v22  ;;  %v4974_v34 = vmul.f32 %v14057_v27, %v17183_v7  ;;  %v4975_v57 = vmul.f32 %v14053_v32, %v17184_v3  ;;  %v14076_v6 = vmax.f32 %v4707_v51, 0.0  ;;  %v17187_v32 = vld [vmem:[#allocation43_spill] sm:$0xff] }
 0x409   :  { %v14080_v39 = vsel %vm443_vm0, %v4902_v44, %v4903_v46  ;;  %v4709_v40 = vadd.f32 %v13816_v11, %v13895_v19  ;;  %v4905_v15 = vrot.slane %v14060_v49, 4  ;;  %v4908_v7 = vrot.slane %v14062_v23, 4 }
 0x40a   :  { %17185 = vst [vmem:[#allocation13_spill] sm:$0xff] %v14080_v39  ;;  %v16426_v51 = vrot.slane %v13822_v25, 5  ;;  %v5498_v3 = vrot.slane %v13824_v56, 5  ;;  %v4710_v44 = vadd.f32 %v13887_v36, %v13816_v11  ;;  %v5005_v46 = vpack.c.bf16 %v4975_v57, %v4974_v34 }
 0x40b   :  { %v4976_v19 = vmul.f32 %v14080_v39, %v17187_v32  ;;  %v16428_v18 = vrot.slane %v13827_v30, 5  ;;  %v14107_v36 = vmax.f32 %v4709_v40, 0.0  ;;  %v17194_v39 = vld [vmem:[#allocation47_spill] sm:$0xff]  ;;  %v4780_v48 = vrot.slane %v14062_v23, 3 }
 0x40c   :  { %9203 = vmatmul.mubr.msk.bf16.gmra.mrb[4].mxu1 %vm686_vm1, %v5003_v61  ;;  %v17186_v61 = vld [vmem:[#allocation42_spill] sm:$0xff]  ;;  %v14104_v27 = vsel %vm1191_vm3, %v16426_v51, %v5498_v3 }
 0x40d   :  { %9206 = vmatprep.mubr.msk.bf16.mxu1 %vm686_vm1, %v5004_v42  ;;  %v4977_v45 = vmul.f32 %v14067_v22, %v17186_v61  ;;  %v4712_v42 = vadd.f32 %v13816_v11, %v13899_v4  ;;  %v4906_v61 = vrot.slane %v14069_v14, 4  ;;  %v4711_v22 = vadd.f32 %v13893_v24, %v13816_v11 }
 0x40e   :  { %v4907_v4 = vrot.slane %v14076_v6, 4  ;;  %v14115_v24 = vsel %vm443_vm0, %v4904_v0, %v4905_v15  ;;  %v14128_v40 = vsel %vm1191_vm3, %v5498_v3, %v16428_v18  ;;  %v14135_v0 = vmul.f32 %v14104_v27, %v13660_v55 }
 0x40f   :  { %v5006_v34 = vpack.c.bf16 %v4977_v45, %v4976_v19  ;;  %v14111_v32 = vsel %vm443_vm0, %v4905_v15, %v4906_v61  ;;  %17189 = vst [vmem:[#allocation22_spill] sm:$0xff] %v14115_v24  ;;  %v14117_v57 = vmax.f32 %v4712_v42, 0.0  ;;  %v14130_v45 = vmax.f32 %v4710_v44, 0.0 }
 0x410   :  { %17188 = vst [vmem:[#allocation19_spill] sm:$0xff] %v14111_v32  ;;  %v14122_v51 = vsel %vm443_vm0, %v4907_v4, %v4908_v7  ;;  %17191 = vst [vmem:[#allocation30_spill] sm:$0xff] %v14135_v0  ;;  %v14139_v15 = vmul.f32 %v14128_v40, %v13663_v50  ;;  %v14141_v42 = vmax.f32 %v4711_v22, 0.0  ;;  %v4979_v3 = vmul.f32 %v14111_v32, %v17194_v39 }
 0x411   :  { %17190 = vst [vmem:[#allocation23_spill] sm:$0xff] %v14122_v51  ;;  %v14149_v44 = vsel %vm443_vm0, %v4906_v61, %v4907_v4  ;;  %v4713_v55 = vadd.f32 %v13816_v11, %v13903_v37  ;;  %v4909_v50 = vrot.slane %v14107_v36, 4  ;;  %v4912_v39 = vrot.slane %v14117_v57, 4  ;;  %v17197_v4 = vld [vmem:[#allocation53_spill] sm:$0xff] }
 0x412   :  { %17192 = vst [vmem:[#allocation29_spill] sm:$0xff] %v14139_v15  ;;  %17195 = vst [vmem:[#allocation33_spill] sm:$0xff] %v14149_v44  ;;  %v4714_v61 = vadd.f32 %v13897_v63, %v13816_v11  ;;  %v4980_v32 = vmul.f32 %v14149_v44, %v17197_v4  ;;  %v4910_v37 = vrot.slane %v14130_v45, 4  ;;  %v17205_v15 = vld [vmem:[#allocation63_spill] sm:$0xff]  ;;  %v4773_v44 = vrot.slane %v13999_v28, 3 }
 0x413   :  { %v14169_v22 = vmax.f32 %v4713_v55, 0.0  ;;  %v14177_v63 = vsel %vm443_vm0, %v4908_v7, %v4909_v50  ;;  %v17202_v55 = vld [vmem:[#allocation57_spill] sm:$0xff] }
 0x414   :  { %9207 = vmatmul.mubr.msk.bf16.gmra.mrb[8].mxu1 %vm686_vm1, %v5005_v46  ;;  %v17193_v46 = vld [vmem:[#allocation48_spill] sm:$0xff]  ;;  %17199 = vst [vmem:[#allocation38_spill] sm:$0xff] %v14177_v63 }
 0x415   :  { %9210 = vmatprep.mubr.msk.bf16.mxu1 %vm686_vm1, %v5006_v34  ;;  %v4978_v19 = vmul.f32 %v14115_v24, %v17193_v46  ;;  %v17196_v34 = vld [vmem:[#allocation52_spill] sm:$0xff]  ;;  %v4716_v46 = vadd.f32 %v13816_v11, %v13907_v21  ;;  %v4911_v24 = vrot.slane %v14141_v42, 4  ;;  %v14173_v21 = vsel %vm443_vm0, %v4909_v50, %v4910_v37 }
 0x416   :  { %v4981_v18 = vmul.f32 %v14122_v51, %v17196_v34  ;;  %v4715_v34 = vadd.f32 %v13901_v53, %v13816_v11  ;;  %17198 = vst [vmem:[#allocation34_spill] sm:$0xff] %v14173_v21  ;;  %v4983_v7 = vmul.f32 %v14173_v21, %v17202_v55  ;;  %v4718_v55 = vadd.f32 %v13905_v54, %v13816_v11 }
 0x417   :  { %v5007_v51 = vpack.c.bf16 %v4979_v3, %v4978_v19  ;;  %v14179_v4 = vmax.f32 %v4716_v46, 0.0  ;;  %v14184_v53 = vsel %vm443_vm0, %v4911_v24, %v4912_v39  ;;  %v14186_v19 = vmax.f32 %v4714_v61, 0.0  ;;  %v17204_v46 = vld [vmem:[#allocation62_spill] sm:$0xff] }
 0x418   :  { %v5008_v0 = vpack.c.bf16 %v4981_v18, %v4980_v32  ;;  %17200 = vst [vmem:[#allocation37_spill] sm:$0xff] %v14184_v53  ;;  %v14189_v18 = vmax.f32 %v4715_v34, 0.0  ;;  %v17201_v32 = vld [vmem:[#allocation58_spill] sm:$0xff]  ;;  %v14197_v50 = vsel %vm443_vm0, %v4910_v37, %v4911_v24  ;;  %v4985_v61 = vmul.f32 %v14184_v53, %v17204_v46 }
 0x419   :  { %v4982_v3 = vmul.f32 %v14177_v63, %v17201_v32  ;;  %17203 = vst [vmem:[#allocation42_spill] sm:$0xff] %v14197_v50  ;;  %v4720_v34 = vadd.f32 %v13816_v11, %v13916_v9  ;;  %v4916_v32 = vrot.slane %v14179_v4, 4  ;;  %v4984_v24 = vmul.f32 %v14197_v50, %v17205_v15 }
 0x41a   :  { %v4914_v37 = vrot.slane %v14186_v19, 4  ;;  %v4915_v46 = vrot.slane %v14189_v18, 4 }
 0x41b   :  { %v5009_v21 = vpack.c.bf16 %v4983_v7, %v4982_v3  ;;  %v5010_v63 = vpack.c.bf16 %v4985_v61, %v4984_v24  ;;  %v14225_v15 = vmax.f32 %v4720_v34, 0.0  ;;  %v14232_v3 = vmax.f32 %v4718_v55, 0.0  ;;  %v17210_v24 = vld [vmem:[#allocation67_spill] sm:$0xff]  ;;  %v17212_v34 = vld [vmem:[#allocation72_spill] sm:$0xff] }
 0x41c   :  { %9211 = vmatmul.mubr.msk.bf16.gmra.mrb[12].mxu1 %vm686_vm1, %v5007_v51  ;;  %v4717_v51 = vadd.f32 %v13816_v11, %v13911_v13  ;;  %v4719_v13 = vadd.f32 %v13909_v12, %v13816_v11  ;;  %v14230_v12 = vsel %vm443_vm0, %v4915_v46, %v4916_v32 }
 0x41d   :  { %9214 = vmatprep.mubr.msk.bf16.mxu1 %vm686_vm1, %v5008_v0  ;;  %v4913_v0 = vrot.slane %v14169_v22, 4  ;;  %17208 = vst [vmem:[#allocation47_spill] sm:$0xff] %v14230_v12  ;;  %v4989_v55 = vmul.f32 %v14230_v12, %v17212_v34 }
 0x41e   :  { %v14215_v53 = vmax.f32 %v4717_v51, 0.0  ;;  %v14235_v7 = vmax.f32 %v4719_v13, 0.0  ;;  %v17209_v51 = vld [vmem:[#allocation68_spill] sm:$0xff]  ;;  %v4724_v13 = vadd.f32 %v13816_v11, %v13931_v62 }
 0x41f   :  { %v14219_v9 = vsel %vm443_vm0, %v4913_v0, %v4914_v37  ;;  %v14223_v54 = vsel %vm443_vm0, %v4912_v39, %v4913_v0  ;;  %v14243_v0 = vsel %vm443_vm0, %v4914_v37, %v4915_v46  ;;  %v4918_v46 = vrot.slane %v14232_v3, 4 }
 0x420   :  { %17206 = vst [vmem:[#allocation43_spill] sm:$0xff] %v14219_v9  ;;  %17207 = vst [vmem:[#allocation48_spill] sm:$0xff] %v14223_v54  ;;  %v4986_v61 = vmul.f32 %v14223_v54, %v17209_v51  ;;  %v4987_v39 = vmul.f32 %v14219_v9, %v17210_v24  ;;  %v4920_v51 = vrot.slane %v14225_v15, 4  ;;  %v4722_v24 = vadd.f32 %v13913_v31, %v13816_v11  ;;  %v17213_v9 = vld [vmem:[#allocation73_spill] sm:$0xff] }
 0x421   :  { %17211 = vst [vmem:[#allocation52_spill] sm:$0xff] %v14243_v0  ;;  %v4988_v37 = vmul.f32 %v14243_v0, %v17213_v9  ;;  %v4919_v34 = vrot.slane %v14235_v7, 4  ;;  %v14271_v9 = vmax.f32 %v4724_v13, 0.0  ;;  %v17220_v13 = vld [vmem:[#allocation81_spill] sm:$0xff]  ;;  %v17221_v0 = vld [vmem:[#allocation82_spill] sm:$0xff] }
 0x422   :  { %v5011_v54 = vpack.c.bf16 %v4987_v39, %v4986_v61  ;;  %v14278_v61 = vmax.f32 %v4722_v24, 0.0 }
 0x423   :  { %v5012_v50 = vpack.c.bf16 %v4989_v55, %v4988_v37  ;;  %v17218_v37 = vld [vmem:[#allocation77_spill] sm:$0xff] }
 0x424   :  { %9215 = vmatmul.mubr.msk.bf16.gmra.mrb[16].mxu1 %vm686_vm1, %v5009_v21  ;;  %v4721_v21 = vadd.f32 %v13816_v11, %v13922_v29  ;;  %v4723_v29 = vadd.f32 %v13920_v26, %v13816_v11  ;;  %v14276_v26 = vsel %vm443_vm0, %v4919_v34, %v4920_v51 }
 0x425   :  { %9218 = vmatprep.mubr.msk.bf16.mxu1 %vm686_vm1, %v5010_v63  ;;  %v4917_v63 = vrot.slane %v14215_v53, 4  ;;  %17216 = vst [vmem:[#allocation57_spill] sm:$0xff] %v14276_v26  ;;  %v4993_v24 = vmul.f32 %v14276_v26, %v17220_v13  ;;  %v17229_v26 = vld [vmem:[#allocation90_spill] sm:$0xff] }
 0x426   :  { %v14261_v12 = vmax.f32 %v4721_v21, 0.0  ;;  %v14281_v39 = vmax.f32 %v4723_v29, 0.0  ;;  %v17217_v21 = vld [vmem:[#allocation78_spill] sm:$0xff]  ;;  %v4924_v29 = vrot.slane %v14271_v9, 4 }
 0x427   :  { %v14265_v62 = vsel %vm443_vm0, %v4917_v63, %v4918_v46  ;;  %v14269_v31 = vsel %vm443_vm0, %v4916_v32, %v4917_v63  ;;  %v14289_v63 = vsel %vm443_vm0, %v4918_v46, %v4919_v34 }
 0x428   :  { %17214 = vst [vmem:[#allocation53_spill] sm:$0xff] %v14265_v62  ;;  %17215 = vst [vmem:[#allocation58_spill] sm:$0xff] %v14269_v31  ;;  %v4990_v55 = vmul.f32 %v14269_v31, %v17217_v21  ;;  %v4991_v32 = vmul.f32 %v14265_v62, %v17218_v37  ;;  %v4992_v21 = vmul.f32 %v14289_v63, %v17221_v0  ;;  %v4922_v31 = vrot.slane %v14278_v61, 4 }
 0x429   :  { %17219 = vst [vmem:[#allocation62_spill] sm:$0xff] %v14289_v63  ;;  %v4923_v62 = vrot.slane %v14281_v39, 4 }
 0x42a   :  { %v5013_v37 = vpack.c.bf16 %v4991_v32, %v4990_v55  ;;  %v5014_v34 = vpack.c.bf16 %v4993_v24, %v4992_v21  ;;  %v17225_v55 = vld [vmem:[#allocation86_spill] sm:$0xff] }
 0x42b   :  { %v14314_v0 = vsel %vm443_vm0, %v4923_v62, %v4924_v29  ;;  %v14323_v24 = vsel %vm443_vm0, %v4922_v31, %v4923_v62 }
 0x42c   :  { %9219 = vmatmul.mubr.msk.bf16.gmra.mrb[20].mxu1 %vm686_vm1, %v5011_v54  ;;  %v4725_v54 = vadd.f32 %v13816_v11, %v13941_v59  ;;  %17224 = vst [vmem:[#allocation67_spill] sm:$0xff] %v14314_v0  ;;  %17227 = vst [vmem:[#allocation72_spill] sm:$0xff] %v14323_v24 }
 0x42d   :  { %9222 = vmatprep.mubr.msk.bf16.mxu1 %vm686_vm1, %v5012_v50  ;;  %v4921_v50 = vrot.slane %v14261_v12, 4 }
 0x42e   :  { %v14301_v46 = vmax.f32 %v4725_v54, 0.0  ;;  %v17226_v54 = vld [vmem:[#allocation85_spill] sm:$0xff] }
 0x42f   :  { %v14305_v59 = vsel %vm443_vm0, %v4921_v50, %v4922_v31  ;;  %v14309_v11 = vsel %vm443_vm0, %v4920_v51, %v4921_v50  ;;  %v17228_v51 = vld [vmem:[#allocation89_spill] sm:$0xff] }
 0x430   :  { %17222 = vst [vmem:[#allocation63_spill] sm:$0xff] %v14305_v59  ;;  %17223 = vst [vmem:[#allocation68_spill] sm:$0xff] %v14309_v11  ;;  %v4994_v32 = vmul.f32 %v14309_v11, %v17225_v55  ;;  %v4995_v13 = vmul.f32 %v14305_v59, %v17226_v54  ;;  %v4997_v50 = vmul.f32 %v14314_v0, %v17228_v51  ;;  %v4925_v21 = vrot.slane %v14301_v46, 4  ;;  %v17236_v51 = vld [vmem:[#allocation93_spill] sm:$0xff] }
 0x431   :  { %v4764_v55 = vrot.slane %v13928_v33, 3  ;;  %v16448_v11 = vrot.slane %v13938_v52, 3  ;;  %v17230_v59 = vrot.slane %v13938_v52, 4  ;;  %v4766_v0 = vrot.slane %v13926_v20, 3 }
 0x432   :  { %v5015_v63 = vpack.c.bf16 %v4995_v13, %v4994_v32  ;;  %v14341_v31 = vsel %vm443_vm0, %v4924_v29, %v4925_v21 }
 0x433   :  { %v14337_v62 = vsel %vm443_vm0, %v4925_v21, %v17230_v59  ;;  %17232 = vst [vmem:[#allocation78_spill] sm:$0xff] %v14341_v31  ;;  %v17235_v59 = vld [vmem:[#allocation94_spill] sm:$0xff] }
 0x434   :  { %9223 = vmatmul.mubr.msk.bf16.gmra.mrb[24].mxu1 %vm686_vm1, %v5013_v37  ;;  %v4799_v37 = vrot.slane %v13945_v5, 3  ;;  %17231 = vst [vmem:[#allocation73_spill] sm:$0xff] %v14337_v62  ;;  %v4998_v13 = vmul.f32 %v14341_v31, %v17235_v59  ;;  %v4999_v29 = vmul.f32 %v14337_v62, %v17236_v51  ;;  %v17240_v51 = vld [vmem:[#allocation101_spill] sm:$0xff]  ;;  %v4771_v31 = vrot.slane %v13961_v58, 3 }
 0x435   :  { %9226 = vmatprep.mubr.msk.bf16.mxu1 %vm686_vm1, %v5014_v34  ;;  %v4996_v34 = vmul.f32 %v14323_v24, %v17229_v26 }
 0x436   :  { %v14348_v26 = vsel %vm134_vm2, %v16448_v11, %v4799_v37  ;;  %v14352_v32 = vsel %vm134_vm2, %v4799_v37, %v4764_v55  ;;  %v5017_v37 = vpack.c.bf16 %v4999_v29, %v4998_v13  ;;  %v17242_v13 = vrot.slane %v13822_v25, 3 }
 0x437   :  { %v5016_v54 = vpack.c.bf16 %v4997_v50, %v4996_v34  ;;  %17233 = vst [vmem:[#allocation77_spill] sm:$0xff] %v14348_v26  ;;  %17234 = vst [vmem:[#allocation81_spill] sm:$0xff] %v14352_v32  ;;  %v17237_v50 = vld [vmem:[#allocation98_spill] sm:$0xff]  ;;  %v17238_v34 = vld [vmem:[#allocation97_spill] sm:$0xff] }
 0x438   :  { %v4836_v21 = vmul.f32 %v14348_v26, %v17237_v50  ;;  %v4837_v11 = vmul.f32 %v14352_v32, %v17238_v34  ;;  %v17241_v34 = vld [vmem:[#allocation102_spill] sm:$0xff]  ;;  %v17258_v32 = vld [vmem:[#allocation3_spill] sm:$0xff]  ;;  %v4778_v26 = vrot.slane %v14069_v14, 3 }
 0x43a   :  { %v4872_v24 = vpack.c.bf16 %v4837_v11, %v4836_v21  ;;  %v17243_v11 = vld [vmem:[#allocation106_spill] sm:$0xff]  ;;  %v17244_v21 = vld [vmem:[#allocation105_spill] sm:$0xff] }
 0x43b   :  { %v4841_v29 = vmul.f32 %v13871_v10, %v17243_v11 }
 0x43c   :  { %9227 = vmatmul.mubr.msk.bf16.gmra.mrb[28].mxu1 %vm686_vm1, %v5015_v63  ;;  %v4765_v63 = vrot.slane %v13924_v2, 3 }
 0x43d   :  { %9230 = vmatprep.mubr.msk.bf16.mxu1 %vm686_vm1, %v5016_v54 }
 0x43e   :  { %v14367_v54 = vsel %vm134_vm2, %v4764_v55, %v4765_v63  ;;  %v14371_v59 = vsel %vm134_vm2, %v4765_v63, %v4766_v0  ;;  %v14383_v55 = vsel %vm134_vm2, %v4766_v0, %v17242_v13  ;;  %v4772_v63 = vrot.slane %v13957_v16, 3 }
 0x43f   :  { %17239 = vst [vmem:[#allocation82_spill] sm:$0xff] %v14367_v54  ;;  %v4838_v50 = vmul.f32 %v14367_v54, %v17240_v51  ;;  %v4839_v62 = vmul.f32 %v14371_v59, %v17241_v34  ;;  %v14395_v34 = vld [vmem:[%s15909_s4 + $0x18] sm:$0xff]   ;;  %v17245_v13 = vrot.slane %v13827_v30, 3 }
 0x440   :  { %v14406_v11 = vsel %vm134_vm2, %v4771_v31, %v4772_v63 }
 0x441   :  { %v4873_v51 = vpack.c.bf16 %v4839_v62, %v4838_v50  ;;  %17246 = vst [vmem:[#allocation86_spill] sm:$0xff] %v14406_v11  ;;  %v17247_v62 = vld [vmem:[#allocation24_spill] sm:$0xff] }
 0x442   :  { %v4842_v50 = vmul.f32 %v13877_v17, %v17247_v62  ;;  %v4774_v17 = vrot.slane %v14014_v41, 3 }
 0x444   :  { %9231 = vmatmul.mubr.msk.bf16.gmra.mrb[32].mxu1 %vm686_vm1, %v5017_v37  ;;  %v4770_v37 = vrot.slane %v13955_v38, 3 }
 0x445   :  { %9236 = vmatprep.mubr.msk.bf16.mxu1 %vm686_vm1, %v4872_v24  ;;  %v4840_v24 = vmul.f32 %v14383_v55, %v17244_v21 }
 0x446   :  { %v14401_v10 = vsel %vm134_vm2, %v17245_v13, %v4770_v37 }
 0x447   :  { %v4874_v0 = vpack.c.bf16 %v4841_v29, %v4840_v24  ;;  %v17248_v29 = vld [vmem:[#allocation109_spill] sm:$0xff]  ;;  %v14416_v24 = vsel %vm134_vm2, %v4770_v37, %v4771_v31  ;;  %v14429_v31 = vsel %vm134_vm2, %v4773_v44, %v4774_v17  ;;  %v14433_v37 = vsel %vm134_vm2, %v4772_v63, %v4773_v44  ;;  %v17257_v44 = vld [vmem:[#allocation116_spill] sm:$0xff] }
 0x448   :  { %v4843_v21 = vmul.f32 %v14401_v10, %v17248_v29  ;;  %v4775_v29 = vrot.slane %v14029_v60, 3  ;;  %17251 = vst [vmem:[#allocation85_spill] sm:$0xff] %v14429_v31  ;;  %17252 = vst [vmem:[#allocation89_spill] sm:$0xff] %v14433_v37 }
 0x44a   :  { %v4875_v62 = vpack.c.bf16 %v4843_v21, %v4842_v50  ;;  %v17254_v50 = vld [vmem:[#allocation112_spill] sm:$0xff] }
 0x44b   :  { %v4846_v21 = vmul.f32 %v14433_v37, %v17254_v50 }
 0x44c   :  { %9237 = vmatmul.mubr.msk.bf16.vlgmr.msra.gmra.mrb[0].mxu1 %vm686_vm1, %v4873_v51  ;;  %v17249_v51 = vld [vmem:[#allocation28_spill] sm:$0xff] }
 0x44d   :  { %9273 = vmatpush3.bf16.msra.mxu1 %v14011_v47  ;;  %9240 = vmatprep.mubr.msk.bf16.mxu1 %vm686_vm1, %v4874_v0  ;;  %v4845_v13 = vmul.f32 %v14406_v11, %v17249_v51  ;;  %v4776_v47 = vrot.slane %v14016_v35, 3  ;;  %v17250_v0 = vld [vmem:[#allocation27_spill] sm:$0xff]  ;;  %v4779_v11 = vrot.slane %v14076_v6, 3 }
 0x44e   :  { %9310 = vmatprep.subr.bf16.mxu1 %v14395_v34  ;;  %v4844_v8 = vmul.f32 %v14416_v24, %v17250_v0  ;;  %v14447_v0 = vsel %vm134_vm2, %v4774_v17, %v4775_v29 }
 0x44f   :  { %v14438_v51 = vsel %vm134_vm2, %v4775_v29, %v4776_v47  ;;  %17256 = vst [vmem:[#allocation94_spill] sm:$0xff] %v14447_v0 }
 0x450   :  { %v4876_v54 = vpack.c.bf16 %v4845_v13, %v4844_v8  ;;  %17253 = vst [vmem:[#allocation90_spill] sm:$0xff] %v14438_v51  ;;  %v17255_v8 = vld [vmem:[#allocation113_spill] sm:$0xff]  ;;  %v4849_v63 = vmul.f32 %v14438_v51, %v17257_v44  ;;  %v14468_v44 = vsel %vm134_vm2, %v4779_v11, %v4780_v48  ;;  %v4784_v51 = vrot.slane %v14117_v57, 3 }
 0x451   :  { %v4847_v13 = vmul.f32 %v14429_v31, %v17255_v8  ;;  %17261 = vst [vmem:[#allocation97_spill] sm:$0xff] %v14468_v44  ;;  %v4782_v31 = vrot.slane %v14130_v45, 3 }
 0x453   :  { %v4877_v50 = vpack.c.bf16 %v4847_v13, %v4846_v21  ;;  %v17263_v13 = vld [vmem:[#allocation2_spill] sm:$0xff] }
 0x454   :  { %9241 = vmatmul.mubr.msk.bf16.gmra.mrb[4].mxu1 %vm686_vm1, %v4875_v62  ;;  %v4777_v62 = vrot.slane %v14060_v49, 3 }
 0x455   :  { %9244 = vmatprep.mubr.msk.bf16.mxu1 %vm686_vm1, %v4876_v54  ;;  %v4848_v54 = vmul.f32 %v14447_v0, %v17258_v32  ;;  %v17262_v32 = vld [vmem:[#allocation41_spill] sm:$0xff]  ;;  %v17266_v0 = vld [vmem:[#allocation46_spill] sm:$0xff] }
 0x456   :  { %v14459_v17 = vsel %vm134_vm2, %v4777_v62, %v4778_v26  ;;  %v14463_v29 = vsel %vm134_vm2, %v4776_v47, %v4777_v62  ;;  %v17265_v47 = vld [vmem:[#allocation4_spill] sm:$0xff] }
 0x457   :  { %v4878_v8 = vpack.c.bf16 %v4849_v63, %v4848_v54  ;;  %17259 = vst [vmem:[#allocation93_spill] sm:$0xff] %v14459_v17  ;;  %17260 = vst [vmem:[#allocation98_spill] sm:$0xff] %v14463_v29  ;;  %v4850_v21 = vmul.f32 %v14463_v29, %v17262_v32  ;;  %v4851_v63 = vmul.f32 %v14459_v17, %v17263_v13  ;;  %v4783_v29 = vrot.slane %v14141_v42, 3 }
 0x458   :  { %v14477_v54 = vsel %vm134_vm2, %v4778_v26, %v4779_v11  ;;  %v4853_v62 = vmul.f32 %v14468_v44, %v17265_v47  ;;  %v4788_v44 = vrot.slane %v14179_v4, 3  ;;  %v4786_v17 = vrot.slane %v14186_v19, 3 }
 0x459   :  { %17264 = vst [vmem:[#allocation101_spill] sm:$0xff] %v14477_v54  ;;  %v4879_v32 = vpack.c.bf16 %v4851_v63, %v4850_v21  ;;  %v14498_v47 = vsel %vm134_vm2, %v4783_v29, %v4784_v51  ;;  %v17271_v63 = vld [vmem:[#allocation5_spill] sm:$0xff] }
 0x45a   :  { %17269 = vst [vmem:[#allocation105_spill] sm:$0xff] %v14498_v47 }
 0x45c   :  { %9245 = vmatmul.mubr.msk.bf16.gmra.mrb[8].mxu1 %vm686_vm1, %v4877_v50  ;;  %v4781_v50 = vrot.slane %v14107_v36, 3 }
 0x45d   :  { %9248 = vmatprep.mubr.msk.bf16.mxu1 %vm686_vm1, %v4878_v8  ;;  %v4852_v8 = vmul.f32 %v14477_v54, %v17266_v0  ;;  %v17270_v0 = vld [vmem:[#allocation51_spill] sm:$0xff]  ;;  %v17274_v54 = vld [vmem:[#allocation56_spill] sm:$0xff] }
 0x45e   :  { %v14489_v26 = vsel %vm134_vm2, %v4781_v50, %v4782_v31  ;;  %v14493_v11 = vsel %vm134_vm2, %v4780_v48, %v4781_v50  ;;  %v17273_v48 = vld [vmem:[#allocation6_spill] sm:$0xff] }
 0x45f   :  { %v4880_v13 = vpack.c.bf16 %v4853_v62, %v4852_v8  ;;  %17267 = vst [vmem:[#allocation102_spill] sm:$0xff] %v14489_v26  ;;  %17268 = vst [vmem:[#allocation106_spill] sm:$0xff] %v14493_v11  ;;  %v4854_v21 = vmul.f32 %v14493_v11, %v17270_v0  ;;  %v4855_v62 = vmul.f32 %v14489_v26, %v17271_v63  ;;  %v4787_v11 = vrot.slane %v14189_v18, 3 }
 0x460   :  { %v14507_v8 = vsel %vm134_vm2, %v4782_v31, %v4783_v29  ;;  %v4857_v50 = vmul.f32 %v14498_v47, %v17273_v48  ;;  %v4792_v47 = vrot.slane %v14225_v15, 3  ;;  %v4790_v26 = vrot.slane %v14232_v3, 3 }
 0x461   :  { %17272 = vst [vmem:[#allocation24_spill] sm:$0xff] %v14507_v8  ;;  %v4881_v0 = vpack.c.bf16 %v4855_v62, %v4854_v21  ;;  %v14528_v48 = vsel %vm134_vm2, %v4787_v11, %v4788_v44  ;;  %v17279_v62 = vld [vmem:[#allocation7_spill] sm:$0xff] }
 0x462   :  { %17277 = vst [vmem:[#allocation27_spill] sm:$0xff] %v14528_v48 }
 0x464   :  { %9249 = vmatmul.mubr.msk.bf16.gmra.mrb[12].mxu1 %vm686_vm1, %v4879_v32  ;;  %v4785_v32 = vrot.slane %v14169_v22, 3 }
 0x465   :  { %9252 = vmatprep.mubr.msk.bf16.mxu1 %vm686_vm1, %v4880_v13  ;;  %v4856_v13 = vmul.f32 %v14507_v8, %v17274_v54  ;;  %v17278_v54 = vld [vmem:[#allocation61_spill] sm:$0xff]  ;;  %v17282_v8 = vld [vmem:[#allocation66_spill] sm:$0xff] }
 0x466   :  { %v14519_v31 = vsel %vm134_vm2, %v4785_v32, %v4786_v17  ;;  %v14523_v29 = vsel %vm134_vm2, %v4784_v51, %v4785_v32  ;;  %v17281_v51 = vld [vmem:[#allocation8_spill] sm:$0xff] }
 0x467   :  { %v4882_v63 = vpack.c.bf16 %v4857_v50, %v4856_v13  ;;  %17275 = vst [vmem:[#allocation109_spill] sm:$0xff] %v14519_v31  ;;  %17276 = vst [vmem:[#allocation28_spill] sm:$0xff] %v14523_v29  ;;  %v4858_v21 = vmul.f32 %v14523_v29, %v17278_v54  ;;  %v4859_v50 = vmul.f32 %v14519_v31, %v17279_v62  ;;  %v4791_v29 = vrot.slane %v14235_v7, 3 }
 0x468   :  { %v14537_v13 = vsel %vm134_vm2, %v4786_v17, %v4787_v11  ;;  %v4861_v32 = vmul.f32 %v14528_v48, %v17281_v51  ;;  %v4796_v48 = vrot.slane %v14271_v9, 3  ;;  %v4794_v31 = vrot.slane %v14278_v61, 3 }
 0x469   :  { %17280 = vst [vmem:[#allocation112_spill] sm:$0xff] %v14537_v13  ;;  %v4883_v54 = vpack.c.bf16 %v4859_v50, %v4858_v21  ;;  %v14558_v51 = vsel %vm134_vm2, %v4791_v29, %v4792_v47  ;;  %v17287_v50 = vld [vmem:[#allocation9_spill] sm:$0xff] }
 0x46a   :  { %17285 = vst [vmem:[#allocation3_spill] sm:$0xff] %v14558_v51 }
 0x46c   :  { %9253 = vmatmul.mubr.msk.bf16.gmra.mrb[16].mxu1 %vm686_vm1, %v4881_v0  ;;  %v4789_v0 = vrot.slane %v14215_v53, 3 }
 0x46d   :  { %9256 = vmatprep.mubr.msk.bf16.mxu1 %vm686_vm1, %v4882_v63  ;;  %v4860_v63 = vmul.f32 %v14537_v13, %v17282_v8  ;;  %v17286_v8 = vld [vmem:[#allocation71_spill] sm:$0xff]  ;;  %v17290_v13 = vld [vmem:[#allocation76_spill] sm:$0xff] }
 0x46e   :  { %v14549_v17 = vsel %vm134_vm2, %v4789_v0, %v4790_v26  ;;  %v14553_v11 = vsel %vm134_vm2, %v4788_v44, %v4789_v0  ;;  %v17289_v44 = vld [vmem:[#allocation133_spill] sm:$0xff] }
 0x46f   :  { %v4884_v62 = vpack.c.bf16 %v4861_v32, %v4860_v63  ;;  %17283 = vst [vmem:[#allocation113_spill] sm:$0xff] %v14549_v17  ;;  %17284 = vst [vmem:[#allocation116_spill] sm:$0xff] %v14553_v11  ;;  %v4862_v21 = vmul.f32 %v14553_v11, %v17286_v8  ;;  %v4863_v32 = vmul.f32 %v14549_v17, %v17287_v50  ;;  %v4795_v11 = vrot.slane %v14281_v39, 3 }
 0x470   :  { %v14567_v63 = vsel %vm134_vm2, %v4790_v26, %v4791_v29  ;;  %v4865_v0 = vmul.f32 %v14558_v51, %v17289_v44  ;;  %v5529_v51 = vrot.slane %v13945_v5, 5 }
 0x471   :  { %17288 = vst [vmem:[#allocation41_spill] sm:$0xff] %v14567_v63  ;;  %v4885_v8 = vpack.c.bf16 %v4863_v32, %v4862_v21  ;;  %v14588_v44 = vsel %vm134_vm2, %v4795_v11, %v4796_v48  ;;  %v17295_v32 = vld [vmem:[#allocation137_spill] sm:$0xff] }
 0x472   :  { %17293 = vst [vmem:[#allocation46_spill] sm:$0xff] %v14588_v44 }
 0x474   :  { %9257 = vmatmul.mubr.msk.bf16.gmra.mrb[20].mxu1 %vm686_vm1, %v4883_v54  ;;  %v4793_v54 = vrot.slane %v14261_v12, 3 }
 0x475   :  { %9260 = vmatprep.mubr.msk.bf16.mxu1 %vm686_vm1, %v4884_v62  ;;  %v4864_v62 = vmul.f32 %v14567_v63, %v17290_v13  ;;  %v17294_v13 = vld [vmem:[#allocation136_spill] sm:$0xff] }
 0x476   :  { %v14579_v26 = vsel %vm134_vm2, %v4793_v54, %v4794_v31  ;;  %v14583_v29 = vsel %vm134_vm2, %v4792_v47, %v4793_v54  ;;  %v17297_v47 = vld [vmem:[#allocation141_spill] sm:$0xff]  ;;  %v17298_v63 = vld [vmem:[#allocation140_spill] sm:$0xff] }
 0x477   :  { %v4886_v50 = vpack.c.bf16 %v4865_v0, %v4864_v62  ;;  %17291 = vst [vmem:[#allocation2_spill] sm:$0xff] %v14579_v26  ;;  %17292 = vst [vmem:[#allocation4_spill] sm:$0xff] %v14583_v29  ;;  %v4866_v21 = vmul.f32 %v14583_v29, %v17294_v13  ;;  %v4867_v0 = vmul.f32 %v14579_v26, %v17295_v32  ;;  %v5494_v13 = vrot.slane %v13928_v33, 5 }
 0x478   :  { %v14597_v62 = vsel %vm134_vm2, %v4794_v31, %v4795_v11  ;;  %v4869_v54 = vmul.f32 %v14588_v44, %v17297_v47  ;;  %v16481_v29 = vrot.slane %v13938_v52, 5  ;;  %v17299_v26 = vrot.slane %v13938_v52, 3  ;;  %v17305_v47 = vld [vmem:[#allocation145_spill] sm:$0xff] }
 0x479   :  { %17296 = vst [vmem:[#allocation51_spill] sm:$0xff] %v14597_v62  ;;  %v4887_v17 = vpack.c.bf16 %v4867_v0, %v4866_v21  ;;  %v14626_v21 = vsel %vm1191_vm3, %v5529_v51, %v5494_v13  ;;  %v5496_v44 = vrot.slane %v13926_v20, 5 }
 0x47a   :  { %17303 = vst [vmem:[#allocation61_spill] sm:$0xff] %v14626_v21 }
 0x47c   :  { %9261 = vmatmul.mubr.msk.bf16.gmra.mrb[24].mxu1 %vm686_vm1, %v4885_v8  ;;  %v4797_v8 = vrot.slane %v14301_v46, 3 }
 0x47d   :  { %9264 = vmatprep.mubr.msk.bf16.mxu1 %vm686_vm1, %v4886_v50  ;;  %v4868_v50 = vmul.f32 %v14597_v62, %v17298_v63  ;;  %v14622_v63 = vsel %vm1191_vm3, %v16481_v29, %v5529_v51 }
 0x47e   :  { %v14611_v31 = vsel %vm134_vm2, %v4797_v8, %v17299_v26  ;;  %v14615_v11 = vsel %vm134_vm2, %v4796_v48, %v4797_v8  ;;  %17302 = vst [vmem:[#allocation56_spill] sm:$0xff] %v14622_v63  ;;  %v17304_v26 = vld [vmem:[#allocation144_spill] sm:$0xff] }
 0x47f   :  { %v4888_v32 = vpack.c.bf16 %v4869_v54, %v4868_v50  ;;  %17300 = vst [vmem:[#allocation5_spill] sm:$0xff] %v14611_v31  ;;  %17301 = vst [vmem:[#allocation6_spill] sm:$0xff] %v14615_v11  ;;  %v4870_v0 = vmul.f32 %v14615_v11, %v17304_v26  ;;  %v4871_v48 = vmul.f32 %v14611_v31, %v17305_v47  ;;  %v17306_v54 = vld [vmem:[#allocation148_spill] sm:$0xff]  ;;  %v17307_v50 = vld [vmem:[#allocation149_spill] sm:$0xff]  ;;  %v5899_v31 = vrot.slane %v13824_v56, 7 }
 0x480   :  { %v5566_v8 = vmul.f32 %v14622_v63, %v17306_v54  ;;  %v5567_v29 = vmul.f32 %v14626_v21, %v17307_v50  ;;  %v17310_v47 = vld [vmem:[#allocation150_spill] sm:$0xff]  ;;  %v17311_v50 = vld [vmem:[#allocation155_spill] sm:$0xff]  ;;  %v5503_v63 = vrot.slane %v13999_v28, 5 }
 0x481   :  { %v4889_v51 = vpack.c.bf16 %v4871_v48, %v4870_v0  ;;  %v17312_v0 = vrot.slane %v13822_v25, 5 }
 0x482   :  { %v5602_v62 = vpack.c.bf16 %v5567_v29, %v5566_v8  ;;  %v17314_v29 = vld [vmem:[#allocation159_spill] sm:$0xff] }
 0x483   :  { %v5571_v48 = vmul.f32 %v14104_v27, %v17314_v29  ;;  %v17315_v8 = vld [vmem:[#allocation151_spill] sm:$0xff] }
 0x484   :  { %9265 = vmatmul.mubr.msk.bf16.gmra.mrb[28].mxu1 %vm686_vm1, %v4887_v17  ;;  %v5495_v17 = vrot.slane %v13924_v2, 5 }
 0x485   :  { %9268 = vmatprep.mubr.msk.bf16.mxu1 %vm686_vm1, %v4888_v32 }
 0x486   :  { %v14641_v32 = vsel %vm1191_vm3, %v5494_v13, %v5495_v17  ;;  %v14645_v26 = vsel %vm1191_vm3, %v5495_v17, %v5496_v44  ;;  %v14657_v13 = vsel %vm1191_vm3, %v5496_v44, %v17312_v0  ;;  %v5502_v17 = vrot.slane %v13957_v16, 5 }
 0x487   :  { %17308 = vst [vmem:[#allocation7_spill] sm:$0xff] %v14641_v32  ;;  %17309 = vst [vmem:[#allocation8_spill] sm:$0xff] %v14645_v26  ;;  %v5568_v54 = vmul.f32 %v14641_v32, %v17310_v47  ;;  %v5569_v21 = vmul.f32 %v14645_v26, %v17311_v50  ;;  %v5501_v32 = vrot.slane %v13961_v58, 5  ;;  %v14669_v50 = vld [vmem:[%s15909_s4 + $0x20] sm:$0xff]   ;;  %v17316_v0 = vrot.slane %v13827_v30, 5 }
 0x488   :  { %17313 = vst [vmem:[#allocation66_spill] sm:$0xff] %v14657_v13  ;;  %v5508_v26 = vrot.slane %v14069_v14, 5 }
 0x489   :  { %v5603_v47 = vpack.c.bf16 %v5569_v21, %v5568_v54  ;;  %v14680_v29 = vsel %vm1191_vm3, %v5501_v32, %v5502_v17  ;;  %v17319_v21 = vld [vmem:[#allocation156_spill] sm:$0xff] }
 0x48a   :  { %17318 = vst [vmem:[#allocation9_spill] sm:$0xff] %v14680_v29  ;;  %v5572_v54 = vmul.f32 %v14128_v40, %v17319_v21  ;;  %v5504_v40 = vrot.slane %v14014_v41, 5 }
 0x48c   :  { %9269 = vmatmul.mubr.msk.bf16.gmra.mrb[32].mxu1 %vm686_vm1, %v4889_v51  ;;  %v5500_v51 = vrot.slane %v13955_v38, 5 }
 0x48d   :  { %9274 = vmatprep.mubr.msk.bf16.mxu1 %vm686_vm1, %v5602_v62  ;;  %v5570_v62 = vmul.f32 %v14657_v13, %v17315_v8 }
 0x48e   :  { %v14675_v27 = vsel %vm1191_vm3, %v17316_v0, %v5500_v51 }
 0x48f   :  { %v5604_v44 = vpack.c.bf16 %v5571_v48, %v5570_v62  ;;  %17317 = vst [vmem:[#allocation71_spill] sm:$0xff] %v14675_v27  ;;  %v17320_v48 = vld [vmem:[#allocation163_spill] sm:$0xff]  ;;  %v14690_v62 = vsel %vm1191_vm3, %v5500_v51, %v5501_v32  ;;  %v14703_v32 = vsel %vm1191_vm3, %v5503_v63, %v5504_v40  ;;  %v14707_v51 = vsel %vm1191_vm3, %v5502_v17, %v5503_v63  ;;  %v17330_v63 = vld [vmem:[#allocation176_spill] sm:$0xff] }
 0x490   :  { %v5573_v8 = vmul.f32 %v14675_v27, %v17320_v48  ;;  %17321 = vst [vmem:[#allocation133_spill] sm:$0xff] %v14690_v62  ;;  %v5505_v48 = vrot.slane %v14029_v60, 5  ;;  %17324 = vst [vmem:[#allocation76_spill] sm:$0xff] %v14703_v32 }
 0x491   :  { %17325 = vst [vmem:[#allocation136_spill] sm:$0xff] %v14707_v51 }
 0x492   :  { %v5605_v21 = vpack.c.bf16 %v5573_v8, %v5572_v54  ;;  %v17327_v54 = vld [vmem:[#allocation164_spill] sm:$0xff] }
 0x493   :  { %v5576_v8 = vmul.f32 %v14707_v51, %v17327_v54  ;;  %v5509_v51 = vrot.slane %v14076_v6, 5 }
 0x494   :  { %9275 = vmatmul.mubr.msk.bf16.vlgmr.msra.gmra.mrb[0].mxu1 %vm686_vm1, %v5603_v47  ;;  %v17322_v47 = vld [vmem:[#allocation168_spill] sm:$0xff] }
 0x495   :  { %9311 = vmatpush3.bf16.msra.mxu1 %v14395_v34  ;;  %9278 = vmatprep.mubr.msk.bf16.mxu1 %vm686_vm1, %v5604_v44  ;;  %v5575_v0 = vmul.f32 %v14680_v29, %v17322_v47  ;;  %v5506_v34 = vrot.slane %v14016_v35, 5  ;;  %v17323_v44 = vld [vmem:[#allocation160_spill] sm:$0xff]  ;;  %v5510_v29 = vrot.slane %v14062_v23, 5 }
 0x496   :  { %9348 = vmatprep.subr.bf16.mxu1 %v14669_v50  ;;  %v5574_v13 = vmul.f32 %v14690_v62, %v17323_v44  ;;  %v14721_v44 = vsel %vm1191_vm3, %v5504_v40, %v5505_v48  ;;  %v17331_v62 = vld [vmem:[#allocation169_spill] sm:$0xff] }
 0x497   :  { %v14712_v47 = vsel %vm1191_vm3, %v5505_v48, %v5506_v34  ;;  %17329 = vst [vmem:[#allocation141_spill] sm:$0xff] %v14721_v44 }
 0x498   :  { %v5606_v27 = vpack.c.bf16 %v5575_v0, %v5574_v13  ;;  %17326 = vst [vmem:[#allocation137_spill] sm:$0xff] %v14712_v47  ;;  %v17328_v13 = vld [vmem:[#allocation172_spill] sm:$0xff]  ;;  %v5579_v17 = vmul.f32 %v14712_v47, %v17330_v63  ;;  %v14742_v63 = vsel %vm1191_vm3, %v5509_v51, %v5510_v29  ;;  %v5514_v47 = vrot.slane %v14117_v57, 5 }
 0x499   :  { %v5577_v0 = vmul.f32 %v14703_v32, %v17328_v13  ;;  %17334 = vst [vmem:[#allocation145_spill] sm:$0xff] %v14742_v63  ;;  %v5512_v32 = vrot.slane %v14130_v45, 5 }
 0x49b   :  { %v5607_v54 = vpack.c.bf16 %v5577_v0, %v5576_v8  ;;  %v17336_v0 = vld [vmem:[#allocation181_spill] sm:$0xff] }
 0x49c   :  { %9279 = vmatmul.mubr.msk.bf16.gmra.mrb[4].mxu1 %vm686_vm1, %v5605_v21  ;;  %v5507_v21 = vrot.slane %v14060_v49, 5 }
 0x49d   :  { %9282 = vmatprep.mubr.msk.bf16.mxu1 %vm686_vm1, %v5606_v27  ;;  %v5578_v27 = vmul.f32 %v14721_v44, %v17331_v62  ;;  %v17335_v62 = vld [vmem:[#allocation173_spill] sm:$0xff] }
 0x49e   :  { %v14733_v40 = vsel %vm1191_vm3, %v5507_v21, %v5508_v26  ;;  %v14737_v48 = vsel %vm1191_vm3, %v5506_v34, %v5507_v21  ;;  %v17338_v34 = vld [vmem:[#allocation186_spill] sm:$0xff]  ;;  %v17339_v44 = vld [vmem:[#allocation177_spill] sm:$0xff] }
 0x49f   :  { %v5608_v13 = vpack.c.bf16 %v5579_v17, %v5578_v27  ;;  %17332 = vst [vmem:[#allocation140_spill] sm:$0xff] %v14733_v40  ;;  %17333 = vst [vmem:[#allocation144_spill] sm:$0xff] %v14737_v48  ;;  %v5580_v8 = vmul.f32 %v14737_v48, %v17335_v62  ;;  %v5581_v17 = vmul.f32 %v14733_v40, %v17336_v0  ;;  %v5513_v48 = vrot.slane %v14141_v42, 5 }
 0x4a0   :  { %v14751_v27 = vsel %vm1191_vm3, %v5508_v26, %v5509_v51  ;;  %v5583_v21 = vmul.f32 %v14742_v63, %v17338_v34  ;;  %v5518_v63 = vrot.slane %v14179_v4, 5  ;;  %v5516_v40 = vrot.slane %v14186_v19, 5 }
 0x4a1   :  { %17337 = vst [vmem:[#allocation148_spill] sm:$0xff] %v14751_v27  ;;  %v5609_v62 = vpack.c.bf16 %v5581_v17, %v5580_v8  ;;  %v14772_v34 = vsel %vm1191_vm3, %v5513_v48, %v5514_v47  ;;  %v17344_v17 = vld [vmem:[#allocation191_spill] sm:$0xff] }
 0x4a2   :  { %17342 = vst [vmem:[#allocation155_spill] sm:$0xff] %v14772_v34 }
 0x4a4   :  { %9283 = vmatmul.mubr.msk.bf16.gmra.mrb[8].mxu1 %vm686_vm1, %v5607_v54  ;;  %v5511_v54 = vrot.slane %v14107_v36, 5 }
 0x4a5   :  { %9286 = vmatprep.mubr.msk.bf16.mxu1 %vm686_vm1, %v5608_v13  ;;  %v5582_v13 = vmul.f32 %v14751_v27, %v17339_v44  ;;  %v17343_v44 = vld [vmem:[#allocation182_spill] sm:$0xff]  ;;  %v17347_v27 = vld [vmem:[#allocation187_spill] sm:$0xff] }
 0x4a6   :  { %v14763_v26 = vsel %vm1191_vm3, %v5511_v54, %v5512_v32  ;;  %v14767_v51 = vsel %vm1191_vm3, %v5510_v29, %v5511_v54  ;;  %v17346_v29 = vld [vmem:[#allocation196_spill] sm:$0xff] }
 0x4a7   :  { %v5610_v0 = vpack.c.bf16 %v5583_v21, %v5582_v13  ;;  %17340 = vst [vmem:[#allocation149_spill] sm:$0xff] %v14763_v26  ;;  %17341 = vst [vmem:[#allocation150_spill] sm:$0xff] %v14767_v51  ;;  %v5584_v8 = vmul.f32 %v14767_v51, %v17343_v44  ;;  %v5585_v21 = vmul.f32 %v14763_v26, %v17344_v17  ;;  %v5517_v51 = vrot.slane %v14189_v18, 5 }
 0x4a8   :  { %v14781_v13 = vsel %vm1191_vm3, %v5512_v32, %v5513_v48  ;;  %v5587_v54 = vmul.f32 %v14772_v34, %v17346_v29  ;;  %v5522_v34 = vrot.slane %v14225_v15, 5  ;;  %v5520_v26 = vrot.slane %v14232_v3, 5 }
 0x4a9   :  { %17345 = vst [vmem:[#allocation159_spill] sm:$0xff] %v14781_v13  ;;  %v5611_v44 = vpack.c.bf16 %v5585_v21, %v5584_v8  ;;  %v14802_v29 = vsel %vm1191_vm3, %v5517_v51, %v5518_v63  ;;  %v17352_v21 = vld [vmem:[#allocation201_spill] sm:$0xff] }
 0x4aa   :  { %17350 = vst [vmem:[#allocation163_spill] sm:$0xff] %v14802_v29 }
 0x4ac   :  { %9287 = vmatmul.mubr.msk.bf16.gmra.mrb[12].mxu1 %vm686_vm1, %v5609_v62  ;;  %v5515_v62 = vrot.slane %v14169_v22, 5 }
 0x4ad   :  { %9290 = vmatprep.mubr.msk.bf16.mxu1 %vm686_vm1, %v5610_v0  ;;  %v5586_v0 = vmul.f32 %v14781_v13, %v17347_v27  ;;  %v17351_v27 = vld [vmem:[#allocation192_spill] sm:$0xff]  ;;  %v17355_v13 = vld [vmem:[#allocation197_spill] sm:$0xff] }
 0x4ae   :  { %v14793_v32 = vsel %vm1191_vm3, %v5515_v62, %v5516_v40  ;;  %v14797_v48 = vsel %vm1191_vm3, %v5514_v47, %v5515_v62  ;;  %v17354_v47 = vld [vmem:[#allocation206_spill] sm:$0xff] }
 0x4af   :  { %v5612_v17 = vpack.c.bf16 %v5587_v54, %v5586_v0  ;;  %17348 = vst [vmem:[#allocation151_spill] sm:$0xff] %v14793_v32  ;;  %17349 = vst [vmem:[#allocation156_spill] sm:$0xff] %v14797_v48  ;;  %v5588_v8 = vmul.f32 %v14797_v48, %v17351_v27  ;;  %v5589_v54 = vmul.f32 %v14793_v32, %v17352_v21  ;;  %v5521_v48 = vrot.slane %v14235_v7, 5 }
 0x4b0   :  { %v14811_v0 = vsel %vm1191_vm3, %v5516_v40, %v5517_v51  ;;  %v5591_v62 = vmul.f32 %v14802_v29, %v17354_v47  ;;  %v5526_v29 = vrot.slane %v14271_v9, 5  ;;  %v5524_v32 = vrot.slane %v14278_v61, 5 }
 0x4b1   :  { %17353 = vst [vmem:[#allocation168_spill] sm:$0xff] %v14811_v0  ;;  %v5613_v27 = vpack.c.bf16 %v5589_v54, %v5588_v8  ;;  %v14832_v47 = vsel %vm1191_vm3, %v5521_v48, %v5522_v34  ;;  %v17360_v54 = vld [vmem:[#allocation211_spill] sm:$0xff] }
 0x4b2   :  { %17358 = vst [vmem:[#allocation172_spill] sm:$0xff] %v14832_v47 }
 0x4b4   :  { %9291 = vmatmul.mubr.msk.bf16.gmra.mrb[16].mxu1 %vm686_vm1, %v5611_v44  ;;  %v5519_v44 = vrot.slane %v14215_v53, 5 }
 0x4b5   :  { %9294 = vmatprep.mubr.msk.bf16.mxu1 %vm686_vm1, %v5612_v17  ;;  %v5590_v17 = vmul.f32 %v14811_v0, %v17355_v13  ;;  %v17359_v13 = vld [vmem:[#allocation202_spill] sm:$0xff]  ;;  %v17363_v0 = vld [vmem:[#allocation207_spill] sm:$0xff] }
 0x4b6   :  { %v14823_v40 = vsel %vm1191_vm3, %v5519_v44, %v5520_v26  ;;  %v14827_v51 = vsel %vm1191_vm3, %v5518_v63, %v5519_v44  ;;  %v17362_v63 = vld [vmem:[#allocation216_spill] sm:$0xff] }
 0x4b7   :  { %v5614_v21 = vpack.c.bf16 %v5591_v62, %v5590_v17  ;;  %17356 = vst [vmem:[#allocation160_spill] sm:$0xff] %v14823_v40  ;;  %17357 = vst [vmem:[#allocation164_spill] sm:$0xff] %v14827_v51  ;;  %v5592_v8 = vmul.f32 %v14827_v51, %v17359_v13  ;;  %v5593_v62 = vmul.f32 %v14823_v40, %v17360_v54  ;;  %v5525_v51 = vrot.slane %v14281_v39, 5 }
 0x4b8   :  { %v14841_v17 = vsel %vm1191_vm3, %v5520_v26, %v5521_v48  ;;  %v5595_v44 = vmul.f32 %v14832_v47, %v17362_v63  ;;  %v16515_v47 = vrot.slane %v13945_v5, 7 }
 0x4b9   :  { %17361 = vst [vmem:[#allocation176_spill] sm:$0xff] %v14841_v17  ;;  %v5615_v13 = vpack.c.bf16 %v5593_v62, %v5592_v8  ;;  %v14862_v63 = vsel %vm1191_vm3, %v5525_v51, %v5526_v29  ;;  %v17368_v62 = vld [vmem:[#allocation221_spill] sm:$0xff] }
 0x4ba   :  { %17366 = vst [vmem:[#allocation181_spill] sm:$0xff] %v14862_v63 }
 0x4bc   :  { %9295 = vmatmul.mubr.msk.bf16.gmra.mrb[20].mxu1 %vm686_vm1, %v5613_v27  ;;  %v5523_v27 = vrot.slane %v14261_v12, 5 }
 0x4bd   :  { %9298 = vmatprep.mubr.msk.bf16.mxu1 %vm686_vm1, %v5614_v21  ;;  %v5594_v21 = vmul.f32 %v14841_v17, %v17363_v0  ;;  %v17367_v0 = vld [vmem:[#allocation212_spill] sm:$0xff]  ;;  %v17371_v17 = vld [vmem:[#allocation217_spill] sm:$0xff] }
 0x4be   :  { %v14853_v26 = vsel %vm1191_vm3, %v5523_v27, %v5524_v32  ;;  %v14857_v48 = vsel %vm1191_vm3, %v5522_v34, %v5523_v27  ;;  %v17370_v34 = vld [vmem:[#allocation226_spill] sm:$0xff] }
 0x4bf   :  { %v5616_v54 = vpack.c.bf16 %v5595_v44, %v5594_v21  ;;  %17364 = vst [vmem:[#allocation169_spill] sm:$0xff] %v14853_v26  ;;  %17365 = vst [vmem:[#allocation173_spill] sm:$0xff] %v14857_v48  ;;  %v5596_v8 = vmul.f32 %v14857_v48, %v17367_v0  ;;  %v5597_v44 = vmul.f32 %v14853_v26, %v17368_v62  ;;  %v5895_v0 = vrot.slane %v13928_v33, 7 }
 0x4c0   :  { %v14871_v21 = vsel %vm1191_vm3, %v5524_v32, %v5525_v51  ;;  %v5599_v27 = vmul.f32 %v14862_v63, %v17370_v34  ;;  %v5896_v48 = vrot.slane %v13924_v2, 7  ;;  %v17372_v26 = vrot.slane %v13938_v52, 5  ;;  %v17376_v34 = vld [vmem:[#allocation230_spill] sm:$0xff] }
 0x4c1   :  { %17369 = vst [vmem:[#allocation186_spill] sm:$0xff] %v14871_v21  ;;  %v5617_v40 = vpack.c.bf16 %v5597_v44, %v5596_v8  ;;  %v17375_v8 = vld [vmem:[#allocation222_spill] sm:$0xff]  ;;  %v5897_v63 = vrot.slane %v13926_v20, 7 }
 0x4c4   :  { %9299 = vmatmul.mubr.msk.bf16.gmra.mrb[24].mxu1 %vm686_vm1, %v5615_v13  ;;  %v5527_v13 = vrot.slane %v14301_v46, 5 }
 0x4c5   :  { %9302 = vmatprep.mubr.msk.bf16.mxu1 %vm686_vm1, %v5616_v54  ;;  %v5598_v54 = vmul.f32 %v14871_v21, %v17371_v17  ;;  %v5966_v17 = vsel %vm1737_vm4, %v16515_v47, %v5895_v0  ;;  %v17378_v47 = vld [vmem:[#allocation232_spill] sm:$0xff] }
 0x4c6   :  { %v14885_v32 = vsel %vm1191_vm3, %v5527_v13, %v17372_v26  ;;  %v14889_v51 = vsel %vm1191_vm3, %v5526_v29, %v5527_v13  ;;  %v5898_v29 = vrot.slane %v13822_v25, 7  ;;  %v17377_v13 = vld [vmem:[#allocation228_spill] sm:$0xff] }
 0x4c7   :  { %v5618_v62 = vpack.c.bf16 %v5599_v27, %v5598_v54  ;;  %17373 = vst [vmem:[#allocation177_spill] sm:$0xff] %v14885_v32  ;;  %17374 = vst [vmem:[#allocation182_spill] sm:$0xff] %v14889_v51  ;;  %v5600_v44 = vmul.f32 %v14889_v51, %v17375_v8  ;;  %v5601_v26 = vmul.f32 %v14885_v32, %v17376_v34  ;;  %v5900_v54 = vrot.slane %v13827_v30, 7 }
 0x4c8   :  { %v5965_v27 = vsel %vm1737_vm4, %v5895_v0, %v5896_v48  ;;  %v5964_v8 = vsel %vm1737_vm4, %v5896_v48, %v5897_v63  ;;  %v5963_v0 = vsel %vm1737_vm4, %v5897_v63, %v5898_v29  ;;  %v5904_v63 = vrot.slane %v13999_v28, 7 }
 0x4c9   :  { %v5968_v21 = vmul.f32 %v5965_v27, %v17378_v47  ;;  %v17380_v47 = vld [vmem:[#allocation231_spill] sm:$0xff]  ;;  %v17381_v27 = vld [vmem:[#allocation233_spill] sm:$0xff]  ;;  %v5901_v51 = vrot.slane %v13955_v38, 7 }
 0x4cc   :  { %9303 = vmatmul.mubr.msk.bf16.gmra.mrb[28].mxu1 %vm686_vm1, %v5617_v40  ;;  %v5967_v40 = vmul.f32 %v5966_v17, %v17377_v13  ;;  %v5961_v17 = vsel %vm1737_vm4, %v5899_v31, %v5900_v54  ;;  %v17379_v13 = vld [vmem:[#allocation234_spill] sm:$0xff] }
 0x4cd   :  { %9306 = vmatprep.mubr.msk.bf16.mxu1 %vm686_vm1, %v5618_v62  ;;  %v5619_v62 = vpack.c.bf16 %v5601_v26, %v5600_v44  ;;  %v5969_v32 = vmul.f32 %v5964_v8, %v17379_v13  ;;  %v5970_v44 = vmul.f32 %v5963_v0, %v17380_v47  ;;  %v5962_v26 = vsel %vm1737_vm4, %v5898_v29, %v5899_v31  ;;  %v14930_v8 = vld [vmem:[%s15909_s4 + $0x28] sm:$0xff]  }
 0x4ce   :  { %v6003_v34 = vpack.c.bf16 %v5968_v21, %v5967_v40  ;;  %v5972_v48 = vmul.f32 %v5961_v17, %v17381_v27  ;;  %v5902_v21 = vrot.slane %v13961_v58, 7  ;;  %v17382_v40 = vld [vmem:[#allocation236_spill] sm:$0xff]  ;;  %v5960_v29 = vsel %vm1737_vm4, %v5900_v54, %v5901_v51  ;;  %v17384_v47 = vld [vmem:[#allocation235_spill] sm:$0xff] }
 0x4cf   :  { %v6004_v11 = vpack.c.bf16 %v5970_v44, %v5969_v32  ;;  %v17383_v32 = vld [vmem:[#allocation240_spill] sm:$0xff]  ;;  %v17385_v27 = vld [vmem:[#allocation239_spill] sm:$0xff]  ;;  %v5908_v54 = vrot.slane %v14060_v49, 7 }
 0x4d0   :  { %v5959_v31 = vsel %vm1737_vm4, %v5901_v51, %v5902_v21  ;;  %v5973_v13 = vmul.f32 %v5960_v29, %v17383_v32 }
 0x4d1   :  { %v5974_v44 = vmul.f32 %v5959_v31, %v17384_v47  ;;  %v17388_v47 = vld [vmem:[#allocation241_spill] sm:$0xff] }
 0x4d4   :  { %9307 = vmatmul.mubr.msk.bf16.gmra.mrb[32].mxu1 %vm686_vm1, %v5619_v62  ;;  %v5971_v62 = vmul.f32 %v5962_v26, %v17382_v40 }
 0x4d5   :  { %9312 = vmatprep.mubr.msk.bf16.mxu1 %vm686_vm1, %v6003_v34  ;;  %v5903_v34 = vrot.slane %v13957_v16, 7 }
 0x4d6   :  { %v6005_v0 = vpack.c.bf16 %v5972_v48, %v5971_v62  ;;  %v17386_v48 = vld [vmem:[#allocation242_spill] sm:$0xff]  ;;  %v6006_v62 = vpack.c.bf16 %v5974_v44, %v5973_v13 }
 0x4d7   :  { %v5957_v17 = vsel %vm1737_vm4, %v5903_v34, %v5904_v63  ;;  %v5958_v26 = vsel %vm1737_vm4, %v5902_v21, %v5903_v34 }
 0x4d8   :  { %v5976_v51 = vmul.f32 %v5957_v17, %v17385_v27  ;;  %v5975_v40 = vmul.f32 %v5958_v26, %v17386_v48  ;;  %v17387_v17 = vld [vmem:[#allocation245_spill] sm:$0xff]  ;;  %v17389_v26 = vld [vmem:[#allocation243_spill] sm:$0xff] }
 0x4d9   :  { %v17390_v48 = vld [vmem:[#allocation247_spill] sm:$0xff] }
 0x4da   :  { %v6007_v29 = vpack.c.bf16 %v5976_v51, %v5975_v40  ;;  %v5910_v51 = vrot.slane %v14076_v6, 7 }
 0x4dc   :  { %9313 = vmatmul.mubr.msk.bf16.vlgmr.msra.gmra.mrb[0].mxu1 %vm686_vm1, %v6004_v11  ;;  %v5906_v11 = vrot.slane %v14029_v60, 7 }
 0x4dd   :  { %9349 = vmatpush3.bf16.msra.mxu1 %v14669_v50  ;;  %9316 = vmatprep.mubr.msk.bf16.mxu1 %vm686_vm1, %v6005_v0  ;;  %v5905_v50 = vrot.slane %v14014_v41, 7  ;;  %v5907_v0 = vrot.slane %v14016_v35, 7 }
 0x4de   :  { %9386 = vmatprep.subr.bf16.mxu1 %v14930_v8 }
 0x4df   :  { %v5955_v31 = vsel %vm1737_vm4, %v5905_v50, %v5906_v11  ;;  %v5956_v21 = vsel %vm1737_vm4, %v5904_v63, %v5905_v50  ;;  %v5953_v34 = vsel %vm1737_vm4, %v5907_v0, %v5908_v54  ;;  %v5954_v44 = vsel %vm1737_vm4, %v5906_v11, %v5907_v0 }
 0x4e0   :  { %v5977_v32 = vmul.f32 %v5956_v21, %v17387_v17  ;;  %v5978_v13 = vmul.f32 %v5955_v31, %v17388_v47  ;;  %v5980_v27 = vmul.f32 %v5953_v34, %v17389_v26  ;;  %v5912_v63 = vrot.slane %v14107_v36, 7  ;;  %v17391_v21 = vld [vmem:[#allocation250_spill] sm:$0xff] }
 0x4e1   :  { %v5979_v40 = vmul.f32 %v5954_v44, %v17390_v48  ;;  %v5909_v50 = vrot.slane %v14069_v14, 7  ;;  %v17392_v17 = vld [vmem:[#allocation246_spill] sm:$0xff]  ;;  %v5914_v26 = vrot.slane %v14141_v42, 7 }
 0x4e3   :  { %v6009_v37 = vpack.c.bf16 %v5980_v27, %v5979_v40  ;;  %v5951_v31 = vsel %vm1737_vm4, %v5909_v50, %v5910_v51  ;;  %v5952_v11 = vsel %vm1737_vm4, %v5908_v54, %v5909_v50  ;;  %v5916_v54 = vrot.slane %v14169_v22, 7  ;;  %v17394_v27 = vld [vmem:[#allocation253_spill] sm:$0xff] }
 0x4e4   :  { %9317 = vmatmul.mubr.msk.bf16.gmra.mrb[4].mxu1 %vm686_vm1, %v6006_v62  ;;  %v6008_v62 = vpack.c.bf16 %v5978_v13, %v5977_v32  ;;  %v5981_v34 = vmul.f32 %v5952_v11, %v17391_v21  ;;  %v5982_v32 = vmul.f32 %v5951_v31, %v17392_v17  ;;  %v17393_v13 = vld [vmem:[#allocation248_spill] sm:$0xff]  ;;  %v5913_v40 = vrot.slane %v14130_v45, 7  ;;  %v17396_v21 = vld [vmem:[#allocation251_spill] sm:$0xff] }
 0x4e5   :  { %9320 = vmatprep.mubr.msk.bf16.mxu1 %vm686_vm1, %v6007_v29  ;;  %v5911_v29 = vrot.slane %v14062_v23, 7  ;;  %v17395_v11 = vld [vmem:[#allocation256_spill] sm:$0xff] }
 0x4e6   :  { %v6010_v50 = vpack.c.bf16 %v5982_v32, %v5981_v34  ;;  %v5947_v31 = vsel %vm1737_vm4, %v5913_v40, %v5914_v26  ;;  %v17397_v32 = vld [vmem:[#allocation254_spill] sm:$0xff] }
 0x4e7   :  { %v5949_v0 = vsel %vm1737_vm4, %v5911_v29, %v5912_v63  ;;  %v5950_v47 = vsel %vm1737_vm4, %v5910_v51, %v5911_v29  ;;  %v5948_v51 = vsel %vm1737_vm4, %v5912_v63, %v5913_v40  ;;  %v5986_v34 = vmul.f32 %v5947_v31, %v17396_v21 }
 0x4e8   :  { %v5984_v44 = vmul.f32 %v5949_v0, %v17393_v13  ;;  %v5983_v48 = vmul.f32 %v5950_v47, %v17394_v27  ;;  %v5985_v0 = vmul.f32 %v5948_v51, %v17395_v11  ;;  %v5918_v13 = vrot.slane %v14189_v18, 7  ;;  %v17399_v51 = vld [vmem:[#allocation262_spill] sm:$0xff]  ;;  %v17400_v11 = vld [vmem:[#allocation257_spill] sm:$0xff] }
 0x4e9   :  { %v5920_v63 = vrot.slane %v14215_v53, 7 }
 0x4ea   :  { %v6012_v40 = vpack.c.bf16 %v5986_v34, %v5985_v0  ;;  %v17401_v34 = vld [vmem:[#allocation260_spill] sm:$0xff] }
 0x4ec   :  { %9321 = vmatmul.mubr.msk.bf16.gmra.mrb[8].mxu1 %vm686_vm1, %v6008_v62  ;;  %v6011_v62 = vpack.c.bf16 %v5984_v44, %v5983_v48  ;;  %v17398_v44 = vld [vmem:[#allocation259_spill] sm:$0xff]  ;;  %v5917_v48 = vrot.slane %v14186_v19, 7 }
 0x4ed   :  { %9324 = vmatprep.mubr.msk.bf16.mxu1 %vm686_vm1, %v6009_v37  ;;  %v5915_v37 = vrot.slane %v14117_v57, 7 }
 0x4ee   :  { %v5943_v31 = vsel %vm1737_vm4, %v5917_v48, %v5918_v13 }
 0x4ef   :  { %v5945_v29 = vsel %vm1737_vm4, %v5915_v37, %v5916_v54  ;;  %v5946_v17 = vsel %vm1737_vm4, %v5914_v26, %v5915_v37  ;;  %v5944_v26 = vsel %vm1737_vm4, %v5916_v54, %v5917_v48  ;;  %v5990_v0 = vmul.f32 %v5943_v31, %v17400_v11 }
 0x4f0   :  { %v5988_v47 = vmul.f32 %v5945_v29, %v17397_v32  ;;  %v5987_v27 = vmul.f32 %v5946_v17, %v17398_v44  ;;  %v5989_v29 = vmul.f32 %v5944_v26, %v17399_v51  ;;  %v5922_v32 = vrot.slane %v14235_v7, 7  ;;  %v17403_v26 = vld [vmem:[#allocation268_spill] sm:$0xff]  ;;  %v17404_v51 = vld [vmem:[#allocation263_spill] sm:$0xff] }
 0x4f1   :  { %v5924_v54 = vrot.slane %v14261_v12, 7 }
 0x4f2   :  { %v6014_v48 = vpack.c.bf16 %v5990_v0, %v5989_v29  ;;  %v17405_v0 = vld [vmem:[#allocation266_spill] sm:$0xff] }
 0x4f4   :  { %9325 = vmatmul.mubr.msk.bf16.gmra.mrb[12].mxu1 %vm686_vm1, %v6010_v50  ;;  %v5919_v50 = vrot.slane %v14179_v4, 7 }
 0x4f5   :  { %9328 = vmatprep.mubr.msk.bf16.mxu1 %vm686_vm1, %v6011_v62  ;;  %v6013_v62 = vpack.c.bf16 %v5988_v47, %v5987_v27  ;;  %v17402_v47 = vld [vmem:[#allocation265_spill] sm:$0xff]  ;;  %v5921_v27 = vrot.slane %v14232_v3, 7 }
 0x4f6   :  { %v5941_v37 = vsel %vm1737_vm4, %v5919_v50, %v5920_v63  ;;  %v5942_v21 = vsel %vm1737_vm4, %v5918_v13, %v5919_v50 }
 0x4f7   :  { %v5992_v17 = vmul.f32 %v5941_v37, %v17401_v34  ;;  %v5991_v44 = vmul.f32 %v5942_v21, %v17402_v47  ;;  %v5939_v31 = vsel %vm1737_vm4, %v5921_v27, %v5922_v32  ;;  %v5940_v13 = vsel %vm1737_vm4, %v5920_v63, %v5921_v27 }
 0x4f8   :  { %v5993_v37 = vmul.f32 %v5940_v13, %v17403_v26  ;;  %v5994_v29 = vmul.f32 %v5939_v31, %v17404_v51  ;;  %v5926_v34 = vrot.slane %v14281_v39, 7  ;;  %v5928_v63 = vrot.slane %v14301_v46, 7  ;;  %v17407_v13 = vld [vmem:[#allocation273_spill] sm:$0xff] }
 0x4f9   :  { %v17408_v26 = vld [vmem:[#allocation269_spill] sm:$0xff] }
 0x4fa   :  { %v6016_v27 = vpack.c.bf16 %v5994_v29, %v5993_v37  ;;  %v17409_v29 = vld [vmem:[#allocation272_spill] sm:$0xff] }
 0x4fc   :  { %9329 = vmatmul.mubr.msk.bf16.gmra.mrb[16].mxu1 %vm686_vm1, %v6012_v40  ;;  %v5923_v40 = vrot.slane %v14225_v15, 7 }
 0x4fd   :  { %9332 = vmatprep.mubr.msk.bf16.mxu1 %vm686_vm1, %v6013_v62  ;;  %v6015_v62 = vpack.c.bf16 %v5992_v17, %v5991_v44  ;;  %v17406_v17 = vld [vmem:[#allocation271_spill] sm:$0xff]  ;;  %v5925_v44 = vrot.slane %v14278_v61, 7 }
 0x4fe   :  { %v5937_v50 = vsel %vm1737_vm4, %v5923_v40, %v5924_v54  ;;  %v5938_v11 = vsel %vm1737_vm4, %v5922_v32, %v5923_v40 }
 0x4ff   :  { %v5996_v21 = vmul.f32 %v5937_v50, %v17405_v0  ;;  %v5995_v47 = vmul.f32 %v5938_v11, %v17406_v17  ;;  %v5935_v31 = vsel %vm1737_vm4, %v5925_v44, %v5926_v34  ;;  %v5936_v32 = vsel %vm1737_vm4, %v5924_v54, %v5925_v44  ;;  %v17410_v0 = vld [vmem:[#allocation275_spill] sm:$0xff] }
 0x500   :  { %v5997_v50 = vmul.f32 %v5936_v32, %v17407_v13  ;;  %v5998_v37 = vmul.f32 %v5935_v31, %v17408_v26  ;;  %v5929_v54 = vrot.slane %v13938_v52, 7  ;;  %v17411_v44 = vrot.slane %v13945_v5, 7  ;;  %v17413_v31 = vld [vmem:[#allocation274_spill] sm:$0xff] }
 0x502   :  { %v6018_v17 = vpack.c.bf16 %v5998_v37, %v5997_v50  ;;  %v17415_v50 = vld [vmem:[#allocation279_spill] sm:$0xff] }
 0x503   :  { %v6296_v26 = vmul.f32 %v13928_v33, %v17415_v50  ;;  %v17423_v50 = vld [vmem:[#allocation282_spill] sm:$0xff] }
 0x504   :  { %9333 = vmatmul.mubr.msk.bf16.gmra.mrb[20].mxu1 %vm686_vm1, %v6014_v48  ;;  %v5927_v48 = vrot.slane %v14271_v9, 7 }
 0x505   :  { %9336 = vmatprep.mubr.msk.bf16.mxu1 %vm686_vm1, %v6015_v62  ;;  %v6017_v62 = vpack.c.bf16 %v5996_v21, %v5995_v47 }
 0x506   :  { %v5933_v40 = vsel %vm1737_vm4, %v5927_v48, %v5928_v63  ;;  %v5934_v51 = vsel %vm1737_vm4, %v5926_v34, %v5927_v48  ;;  %v17412_v34 = vld [vmem:[#allocation277_spill] sm:$0xff] }
 0x507   :  { %v6000_v11 = vmul.f32 %v5933_v40, %v17409_v29  ;;  %v5999_v21 = vmul.f32 %v5934_v51, %v17410_v0  ;;  %v17414_v40 = vld [vmem:[#allocation276_spill] sm:$0xff] }
 0x508   :  { %v6297_v13 = vmul.f32 %v13924_v2, %v17414_v40  ;;  %v17422_v40 = vld [vmem:[#allocation280_spill] sm:$0xff] }
 0x509   :  { %v6019_v47 = vpack.c.bf16 %v6000_v11, %v5999_v21  ;;  %v17417_v11 = vld [vmem:[#allocation285_spill] sm:$0xff] }
 0x50a   :  { %v6332_v51 = vpack.c.bf16 %v6297_v13, %v6296_v26  ;;  %v6301_v0 = vmul.f32 %v13827_v30, %v17417_v11  ;;  %v17418_v21 = vld [vmem:[#allocation281_spill] sm:$0xff]  ;;  %v6302_v13 = vmul.f32 %v13955_v38, %v17422_v40  ;;  %v6304_v26 = vmul.f32 %v13957_v16, %v17423_v50 }
 0x50c   :  { %9337 = vmatmul.mubr.msk.bf16.gmra.mrb[24].mxu1 %vm686_vm1, %v6016_v27  ;;  %v5931_v27 = vsel %vm1737_vm4, %v5929_v54, %v17411_v44 }
 0x50d   :  { %9340 = vmatprep.mubr.msk.bf16.mxu1 %vm686_vm1, %v6017_v62  ;;  %v5932_v62 = vsel %vm1737_vm4, %v5928_v63, %v5929_v54  ;;  %v6002_v32 = vmul.f32 %v5931_v27, %v17413_v31  ;;  %v17416_v63 = vld [vmem:[#allocation283_spill] sm:$0xff]  ;;  %v6298_v54 = vmul.f32 %v13926_v20, %v17418_v21  ;;  %v15084_v27 = vld [vmem:[%s15909_s4 + $0x30] sm:$0xff]   ;;  %v17421_v31 = vld [vmem:[#allocation165_spill] sm:$0xff] }
 0x50e   :  { %v6001_v48 = vmul.f32 %v5932_v62, %v17412_v34  ;;  %v6299_v29 = vmul.f32 %v13822_v25, %v17416_v63  ;;  %v17420_v34 = vld [vmem:[#allocation287_spill] sm:$0xff] }
 0x510   :  { %v6020_v37 = vpack.c.bf16 %v6002_v32, %v6001_v48  ;;  %v6333_v44 = vpack.c.bf16 %v6299_v29, %v6298_v54  ;;  %v6303_v48 = vmul.f32 %v13961_v58, %v17420_v34  ;;  %v6305_v32 = vmul.f32 %v13999_v28, %v17421_v31  ;;  %v17425_v29 = vld [vmem:[#allocation289_spill] sm:$0xff]  ;;  %v17427_v54 = vld [vmem:[#allocation286_spill] sm:$0xff] }
 0x511   :  { %v6309_v11 = vmul.f32 %v14060_v49, %v17425_v29 }
 0x514   :  { %9341 = vmatmul.mubr.msk.bf16.gmra.mrb[28].mxu1 %vm686_vm1, %v6018_v17  ;;  %v17419_v17 = vld [vmem:[#allocation278_spill] sm:$0xff] }
 0x515   :  { %9344 = vmatprep.mubr.msk.bf16.mxu1 %vm686_vm1, %v6019_v47  ;;  %v6300_v47 = vmul.f32 %v13824_v56, %v17419_v17  ;;  %v6308_v17 = vmul.f32 %v14016_v35, %v17427_v54 }
 0x517   :  { %v6334_v62 = vpack.c.bf16 %v6301_v0, %v6300_v47  ;;  %v17426_v0 = vld [vmem:[#allocation284_spill] sm:$0xff] }
 0x518   :  { %v6306_v21 = vmul.f32 %v14014_v41, %v17426_v0 }
 0x51c   :  { %9345 = vmatmul.mubr.msk.bf16.gmra.mrb[32].mxu1 %vm686_vm1, %v6020_v37  ;;  %v6335_v37 = vpack.c.bf16 %v6303_v48, %v6302_v13  ;;  %v17429_v48 = vld [vmem:[#allocation185_spill] sm:$0xff] }
 0x51d   :  { %9350 = vmatprep.mubr.msk.bf16.mxu1 %vm686_vm1, %v6332_v51  ;;  %v6336_v51 = vpack.c.bf16 %v6305_v32, %v6304_v26  ;;  %v6313_v31 = vmul.f32 %v14107_v36, %v17429_v48  ;;  %v17430_v32 = vld [vmem:[#allocation288_spill] sm:$0xff]  ;;  %v17431_v13 = vld [vmem:[#allocation237_spill] sm:$0xff] }
 0x51e   :  { %v6310_v40 = vmul.f32 %v14069_v14, %v17430_v32  ;;  %v6312_v50 = vmul.f32 %v14062_v23, %v17431_v13 }
 0x524   :  { %9351 = vmatmul.mubr.msk.bf16.vlgmr.msra.gmra.mrb[0].mxu1 %vm686_vm1, %v6333_v44  ;;  %v6338_v44 = vpack.c.bf16 %v6309_v11, %v6308_v17  ;;  %v17434_v11 = vld [vmem:[#allocation171_spill] sm:$0xff] }
 0x525   :  { %9387 = vmatpush3.bf16.msra.mxu1 %v14930_v8  ;;  %9354 = vmatprep.mubr.msk.bf16.mxu1 %vm686_vm1, %v6334_v62  ;;  %v17424_v8 = vld [vmem:[#allocation238_spill] sm:$0xff]  ;;  %v17428_v62 = vld [vmem:[#allocation180_spill] sm:$0xff]  ;;  %v6314_v0 = vmul.f32 %v14130_v45, %v17434_v11 }
 0x526   :  { %9424 = vmatprep.subr.bf16.mxu1 %v15084_v27  ;;  %v6307_v63 = vmul.f32 %v14029_v60, %v17424_v8  ;;  %v6311_v34 = vmul.f32 %v14076_v6, %v17428_v62 }
 0x528   :  { %v6337_v47 = vpack.c.bf16 %v6307_v63, %v6306_v21  ;;  %v6339_v26 = vpack.c.bf16 %v6311_v34, %v6310_v40  ;;  %v17433_v63 = vld [vmem:[#allocation195_spill] sm:$0xff]  ;;  %v17435_v21 = vld [vmem:[#allocation244_spill] sm:$0xff]  ;;  %v17437_v34 = vld [vmem:[#allocation205_spill] sm:$0xff] }
 0x529   :  { %v6317_v29 = vmul.f32 %v14169_v22, %v17433_v63  ;;  %v6316_v54 = vmul.f32 %v14117_v57, %v17435_v21  ;;  %v6321_v48 = vmul.f32 %v14215_v53, %v17437_v34  ;;  %v17439_v40 = vld [vmem:[#allocation249_spill] sm:$0xff] }
 0x52a   :  { %v6320_v13 = vmul.f32 %v14179_v4, %v17439_v40  ;;  %v17447_v40 = vld [vmem:[#allocation261_spill] sm:$0xff] }
 0x52c   :  { %9355 = vmatmul.mubr.msk.bf16.gmra.mrb[4].mxu1 %vm686_vm1, %v6335_v37  ;;  %v6340_v37 = vpack.c.bf16 %v6313_v31, %v6312_v50  ;;  %v17438_v31 = vld [vmem:[#allocation290_spill] sm:$0xff] }
 0x52d   :  { %9358 = vmatprep.mubr.msk.bf16.mxu1 %vm686_vm1, %v6336_v51  ;;  %v17432_v51 = vld [vmem:[#allocation190_spill] sm:$0xff]  ;;  %v6318_v32 = vmul.f32 %v14186_v19, %v17438_v31 }
 0x52e   :  { %v6315_v8 = vmul.f32 %v14141_v42, %v17432_v51 }
 0x530   :  { %v6341_v17 = vpack.c.bf16 %v6315_v8, %v6314_v0  ;;  %v17441_v8 = vld [vmem:[#allocation215_spill] sm:$0xff] }
 0x531   :  { %v6325_v63 = vmul.f32 %v14261_v12, %v17441_v8  ;;  %v17443_v0 = vld [vmem:[#allocation255_spill] sm:$0xff] }
 0x532   :  { %v6324_v21 = vmul.f32 %v14225_v15, %v17443_v0  ;;  %v17449_v0 = vld [vmem:[#allocation267_spill] sm:$0xff] }
 0x534   :  { %9359 = vmatmul.mubr.msk.bf16.gmra.mrb[8].mxu1 %vm686_vm1, %v6337_v47  ;;  %v6342_v47 = vpack.c.bf16 %v6317_v29, %v6316_v54  ;;  %v17442_v29 = vld [vmem:[#allocation252_spill] sm:$0xff] }
 0x535   :  { %9362 = vmatprep.mubr.msk.bf16.mxu1 %vm686_vm1, %v6338_v44  ;;  %v17436_v44 = vld [vmem:[#allocation200_spill] sm:$0xff]  ;;  %v6322_v11 = vmul.f32 %v14232_v3, %v17442_v29 }
 0x536   :  { %v6319_v62 = vmul.f32 %v14189_v18, %v17436_v44 }
 0x538   :  { %v6343_v50 = vpack.c.bf16 %v6319_v62, %v6318_v32  ;;  %v17445_v62 = vld [vmem:[#allocation225_spill] sm:$0xff]  ;;  %v6626_v32 = vrot.slane %v13924_v2, 1  ;;  %v17448_v2 = vld [vmem:[#allocation292_spill] sm:$0xff] }
 0x539   :  { %v6329_v34 = vmul.f32 %v14301_v46, %v17445_v62  ;;  %v6331_v29 = vmul.f32 %v13945_v5, %v17448_v2  ;;  %v6628_v62 = vrot.slane %v13822_v25, 1  ;;  %v17452_v25 = vld [vmem:[#allocation270_spill] sm:$0xff]  ;;  %v17455_v2 = vld [vmem:[#allocation297_spill] sm:$0xff] }
 0x53c   :  { %9363 = vmatmul.mubr.msk.bf16.gmra.mrb[12].mxu1 %vm686_vm1, %v6339_v26  ;;  %v6344_v26 = vpack.c.bf16 %v6321_v48, %v6320_v13  ;;  %v17446_v48 = vld [vmem:[#allocation258_spill] sm:$0xff]  ;;  %v6328_v13 = vmul.f32 %v14271_v9, %v17447_v40 }
 0x53d   :  { %9366 = vmatprep.mubr.msk.bf16.mxu1 %vm686_vm1, %v6340_v37  ;;  %v17440_v37 = vld [vmem:[#allocation210_spill] sm:$0xff]  ;;  %v6326_v31 = vmul.f32 %v14278_v61, %v17446_v48  ;;  %v6631_v48 = vrot.slane %v13955_v38, 1 }
 0x53e   :  { %v6323_v51 = vmul.f32 %v14235_v7, %v17440_v37  ;;  %v6627_v37 = vrot.slane %v13926_v20, 1  ;;  %v17453_v38 = vld [vmem:[#allocation298_spill] sm:$0xff] }
 0x540   :  { %v6345_v54 = vpack.c.bf16 %v6323_v51, %v6322_v11  ;;  %v6348_v51 = vpack.c.bf16 %v6329_v34, %v6328_v13  ;;  %v6694_v8 = vsel %vm2756_vm5, %v6626_v32, %v6627_v37  ;;  %v6629_v11 = vrot.slane %v13824_v56, 1 }
 0x544   :  { %9367 = vmatmul.mubr.msk.bf16.gmra.mrb[16].mxu1 %vm686_vm1, %v6341_v17  ;;  %v6346_v17 = vpack.c.bf16 %v6325_v63, %v6324_v21  ;;  %v17450_v21 = vld [vmem:[#allocation295_spill] sm:$0xff] }
 0x545   :  { %9370 = vmatprep.mubr.msk.bf16.mxu1 %vm686_vm1, %v6342_v47  ;;  %v17444_v47 = vld [vmem:[#allocation220_spill] sm:$0xff] }
 0x546   :  { %v6327_v44 = vmul.f32 %v14281_v39, %v17444_v47 }
 0x54c   :  { %9371 = vmatmul.mubr.msk.bf16.gmra.mrb[20].mxu1 %vm686_vm1, %v6343_v50  ;;  %v6347_v50 = vpack.c.bf16 %v6327_v44, %v6326_v31  ;;  %v6630_v44 = vrot.slane %v13827_v30, 1  ;;  %v6693_v30 = vsel %vm2756_vm5, %v6627_v37, %v6628_v62  ;;  %v15200_v37 = vld [vmem:[%s15909_s4 + $0x38] sm:$0xff]  }
 0x54d   :  { %9374 = vmatprep.mubr.msk.bf16.mxu1 %vm686_vm1, %v6344_v26  ;;  %v6625_v26 = vrot.slane %v13928_v33, 1  ;;  %v7030_v33 = vmul.f32 %v14401_v10, %v17487_v43  ;;  %v17493_v10 = vld [vmem:[#allocation89_spill] sm:$0xff] }
 0x54e   :  { %v6690_v56 = vsel %vm2756_vm5, %v6630_v44, %v6631_v48  ;;  %v6691_v40 = vsel %vm2756_vm5, %v6629_v11, %v6630_v44  ;;  %v17457_v44 = vld [vmem:[#allocation302_spill] sm:$0xff] }
 0x54f   :  { %v6695_v63 = vsel %vm2756_vm5, %v6625_v26, %v6626_v32  ;;  %v6692_v32 = vsel %vm2756_vm5, %v6628_v62, %v6629_v11 }
 0x550   :  { %v6697_v20 = vmul.f32 %v6695_v63, %v17449_v0  ;;  %v6700_v13 = vmul.f32 %v6692_v32, %v17452_v25  ;;  %v6633_v63 = vrot.slane %v13957_v16, 1  ;;  %v6634_v0 = vrot.slane %v13999_v28, 1 }
 0x551   :  { %v6637_v32 = vrot.slane %v14016_v35, 1 }
 0x554   :  { %9375 = vmatmul.mubr.msk.bf16.gmra.mrb[24].mxu1 %vm686_vm1, %v6345_v54  ;;  %v6698_v54 = vmul.f32 %v6694_v8, %v17450_v21  ;;  %v6635_v21 = vrot.slane %v14014_v41, 1  ;;  %v17456_v41 = vld [vmem:[#allocation293_spill] sm:$0xff] }
 0x555   :  { %9378 = vmatprep.mubr.msk.bf16.mxu1 %vm686_vm1, %v6346_v17  ;;  %v17451_v17 = vld [vmem:[#allocation264_spill] sm:$0xff] }
 0x556   :  { %v6330_v47 = vmul.f32 %v13938_v52, %v17451_v17  ;;  %v6733_v31 = vpack.c.bf16 %v6698_v54, %v6697_v20  ;;  %v6632_v20 = vrot.slane %v13961_v58, 1  ;;  %v6686_v16 = vsel %vm2756_vm5, %v6634_v0, %v6635_v21 }
 0x557   :  { %v6687_v58 = vsel %vm2756_vm5, %v6633_v63, %v6634_v0 }
 0x558   :  { %v6349_v34 = vpack.c.bf16 %v6331_v29, %v6330_v47  ;;  %v6699_v29 = vmul.f32 %v6693_v30, %v17455_v2  ;;  %v6688_v17 = vsel %vm2756_vm5, %v6632_v20, %v6633_v63  ;;  %v6689_v28 = vsel %vm2756_vm5, %v6631_v48, %v6632_v20 }
 0x559   :  { %v6704_v47 = vmul.f32 %v6688_v17, %v17456_v41  ;;  %v6705_v62 = vmul.f32 %v6687_v58, %v17457_v44  ;;  %v6638_v30 = vrot.slane %v14060_v49, 1  ;;  %v6641_v2 = vrot.slane %v14062_v23, 1  ;;  %v17465_v41 = vld [vmem:[#allocation303_spill] sm:$0xff] }
 0x55a   :  { %v6734_v11 = vpack.c.bf16 %v6700_v13, %v6699_v29  ;;  %v6639_v13 = vrot.slane %v14069_v14, 1  ;;  %v17460_v14 = vld [vmem:[#allocation307_spill] sm:$0xff]  ;;  %v17462_v29 = vld [vmem:[#allocation305_spill] sm:$0xff]  ;;  %v6642_v20 = vrot.slane %v14107_v36, 1  ;;  %v6643_v17 = vrot.slane %v14130_v45, 1 }
 0x55b   :  { %v6683_v35 = vsel %vm2756_vm5, %v6637_v32, %v6638_v30  ;;  %v17463_v36 = vld [vmem:[#allocation301_spill] sm:$0xff]  ;;  %v17464_v45 = vld [vmem:[#allocation311_spill] sm:$0xff]  ;;  %v6645_v44 = vrot.slane %v14117_v57, 1 }
 0x55c   :  { %9379 = vmatmul.mubr.msk.bf16.gmra.mrb[28].mxu1 %vm686_vm1, %v6347_v50  ;;  %v6701_v50 = vmul.f32 %v6691_v40, %v17453_v38  ;;  %v6679_v23 = vsel %vm2756_vm5, %v6641_v2, %v6642_v20 }
 0x55d   :  { %9382 = vmatprep.mubr.msk.bf16.mxu1 %vm686_vm1, %v6348_v51  ;;  %v17454_v51 = vld [vmem:[#allocation291_spill] sm:$0xff] }
 0x55e   :  { %v6702_v8 = vmul.f32 %v6690_v56, %v17454_v51  ;;  %v17459_v56 = vld [vmem:[#allocation300_spill] sm:$0xff]  ;;  %v6709_v51 = vmul.f32 %v6683_v35, %v17460_v14  ;;  %v6649_v35 = vrot.slane %v14179_v4, 1  ;;  %v6650_v14 = vrot.slane %v14215_v53, 1 }
 0x55f   :  { %v6703_v40 = vmul.f32 %v6689_v28, %v17459_v56  ;;  %v6713_v28 = vmul.f32 %v6679_v23, %v17464_v45  ;;  %v6654_v23 = vrot.slane %v14261_v12, 1 }
 0x560   :  { %v6735_v54 = vpack.c.bf16 %v6702_v8, %v6701_v50  ;;  %v6682_v50 = vsel %vm2756_vm5, %v6638_v30, %v6639_v13  ;;  %v17461_v8 = vld [vmem:[#allocation299_spill] sm:$0xff]  ;;  %v6671_v4 = vsel %vm2756_vm5, %v6649_v35, %v6650_v14 }
 0x561   :  { %v6736_v25 = vpack.c.bf16 %v6704_v47, %v6703_v40  ;;  %v6710_v63 = vmul.f32 %v6682_v50, %v17461_v8  ;;  %v6647_v40 = vrot.slane %v14186_v19, 1  ;;  %v17468_v19 = vld [vmem:[#allocation315_spill] sm:$0xff] }
 0x564   :  { %9383 = vmatmul.mubr.msk.bf16.gmra.mrb[32].mxu1 %vm686_vm1, %v6349_v34  ;;  %v17458_v34 = vld [vmem:[#allocation296_spill] sm:$0xff] }
 0x565   :  { %9388 = vmatprep.mubr.msk.bf16.mxu1 %vm686_vm1, %v6733_v31  ;;  %v6706_v31 = vmul.f32 %v6686_v16, %v17458_v34  ;;  %v6739_v16 = vpack.c.bf16 %v6710_v63, %v6709_v51  ;;  %v6648_v51 = vrot.slane %v14189_v18, 1  ;;  %v6651_v63 = vrot.slane %v14232_v3, 1  ;;  %v17471_v18 = vld [vmem:[#allocation310_spill] sm:$0xff]  ;;  %v17472_v3 = vld [vmem:[#allocation319_spill] sm:$0xff] }
 0x567   :  { %v6737_v48 = vpack.c.bf16 %v6706_v31, %v6705_v62  ;;  %v17466_v62 = vld [vmem:[#allocation309_spill] sm:$0xff]  ;;  %v6646_v31 = vrot.slane %v14169_v22, 1  ;;  %v17467_v22 = vld [vmem:[#allocation306_spill] sm:$0xff]  ;;  %v6673_v53 = vsel %vm2756_vm5, %v6647_v40, %v6648_v51 }
 0x569   :  { %v6675_v57 = vsel %vm2756_vm5, %v6645_v44, %v6646_v31 }
 0x56c   :  { %9389 = vmatmul.mubr.msk.bf16.vlgmr.msra.gmra.mrb[0].mxu1 %vm686_vm1, %v6734_v11  ;;  %v6640_v11 = vrot.slane %v14076_v6, 1 }
 0x56d   :  { %9425 = vmatpush3.bf16.msra.mxu1 %v15084_v27  ;;  %9392 = vmatprep.mubr.msk.bf16.mxu1 %vm686_vm1, %v6735_v54  ;;  %v6636_v27 = vrot.slane %v14029_v60, 1 }
 0x56e   :  { %9462 = vmatprep.subr.bf16.mxu1 %v15200_v37  ;;  %v6681_v6 = vsel %vm2756_vm5, %v6639_v13, %v6640_v11 }
 0x56f   :  { %v6684_v38 = vsel %vm2756_vm5, %v6636_v27, %v6637_v32  ;;  %v6685_v49 = vsel %vm2756_vm5, %v6635_v21, %v6636_v27  ;;  %v6680_v21 = vsel %vm2756_vm5, %v6640_v11, %v6641_v2  ;;  %v6711_v34 = vmul.f32 %v6681_v6, %v17466_v62  ;;  %v17477_v62 = vld [vmem:[#allocation316_spill] sm:$0xff] }
 0x570   :  { %v6708_v60 = vmul.f32 %v6684_v38, %v12922_v1  ;;  %v6707_v0 = vmul.f32 %v6685_v49, %v17462_v29  ;;  %v6678_v1 = vsel %vm2756_vm5, %v6642_v20, %v6643_v17  ;;  %v6712_v58 = vmul.f32 %v6680_v21, %v17463_v36  ;;  %v17469_v38 = vld [vmem:[#allocation308_spill] sm:$0xff]  ;;  %v17470_v49 = vld [vmem:[#allocation313_spill] sm:$0xff] }
 0x571   :  { %v6714_v47 = vmul.f32 %v6678_v1, %v17465_v41  ;;  %v6644_v32 = vrot.slane %v14141_v42, 1  ;;  %v6672_v29 = vsel %vm2756_vm5, %v6648_v51, %v6649_v35  ;;  %v6721_v11 = vmul.f32 %v6671_v4, %v17472_v3  ;;  %v17474_v21 = vld [vmem:[#allocation317_spill] sm:$0xff] }
 0x572   :  { %v6738_v54 = vpack.c.bf16 %v6708_v60, %v6707_v0  ;;  %v6740_v56 = vpack.c.bf16 %v6712_v58, %v6711_v34  ;;  %v6670_v0 = vsel %vm2756_vm5, %v6650_v14, %v6651_v63  ;;  %v6720_v20 = vmul.f32 %v6672_v29, %v17471_v18  ;;  %v17482_v35 = vld [vmem:[#allocation325_spill] sm:$0xff]  ;;  %v17484_v29 = vld [vmem:[#allocation322_spill] sm:$0xff] }
 0x573   :  { %v6741_v30 = vpack.c.bf16 %v6714_v47, %v6713_v28  ;;  %v6676_v27 = vsel %vm2756_vm5, %v6644_v32, %v6645_v44  ;;  %v6677_v42 = vsel %vm2756_vm5, %v6643_v17, %v6644_v32  ;;  %v6719_v1 = vmul.f32 %v6673_v53, %v17474_v21  ;;  %v17478_v32 = vld [vmem:[#allocation321_spill] sm:$0xff]  ;;  %v17486_v53 = vld [vmem:[#allocation324_spill] sm:$0xff]  ;;  %v17492_v21 = vld [vmem:[#allocation10_spill] sm:$0xff] }
 0x574   :  { %9393 = vmatmul.mubr.msk.bf16.gmra.mrb[4].mxu1 %vm686_vm1, %v6736_v25  ;;  %v6674_v25 = vsel %vm2756_vm5, %v6646_v31, %v6647_v40  ;;  %v6716_v13 = vmul.f32 %v6676_v27, %v17467_v22  ;;  %v6715_v60 = vmul.f32 %v6677_v42, %v17470_v49  ;;  %v6652_v6 = vrot.slane %v14235_v7, 1  ;;  %v17475_v7 = vld [vmem:[#allocation314_spill] sm:$0xff] }
 0x575   :  { %9396 = vmatprep.mubr.msk.bf16.mxu1 %vm686_vm1, %v6737_v48  ;;  %v6717_v48 = vmul.f32 %v6675_v57, %v17468_v19  ;;  %v6718_v50 = vmul.f32 %v6674_v25, %v17469_v38  ;;  %v6744_v36 = vpack.c.bf16 %v6720_v20, %v6719_v1  ;;  %v6655_v58 = vrot.slane %v14278_v61, 1  ;;  %v17476_v61 = vld [vmem:[#allocation323_spill] sm:$0xff] }
 0x576   :  { %v6742_v8 = vpack.c.bf16 %v6716_v13, %v6715_v60  ;;  %v6669_v12 = vsel %vm2756_vm5, %v6651_v63, %v6652_v6  ;;  %v6657_v31 = vrot.slane %v14271_v9, 1  ;;  %v6658_v40 = vrot.slane %v14301_v46, 1  ;;  %v17479_v46 = vld [vmem:[#allocation318_spill] sm:$0xff]  ;;  %v17483_v63 = vld [vmem:[#allocation329_spill] sm:$0xff] }
 0x577   :  { %v6743_v2 = vpack.c.bf16 %v6718_v50, %v6717_v48  ;;  %v6666_v41 = vsel %vm2756_vm5, %v6654_v23, %v6655_v58  ;;  %v6659_v25 = vrot.slane %v13938_v52, 1  ;;  %v17480_v52 = vld [vmem:[#allocation327_spill] sm:$0xff]  ;;  %v17481_v48 = vld [vmem:[#allocation320_spill] sm:$0xff]  ;;  %v6660_v50 = vrot.slane %v13945_v5, 1 }
 0x578   :  { %v6726_v34 = vmul.f32 %v6666_v41, %v17477_v62  ;;  %v6663_v9 = vsel %vm2756_vm5, %v6657_v31, %v6658_v40  ;;  %v7027_v18 = vmul.f32 %v14383_v55, %v17486_v53  ;;  %v17490_v55 = vld [vmem:[#allocation213_spill] sm:$0xff]  ;;  %v7033_v1 = vmul.f32 %v17493_v10, %v17492_v21  ;;  %v17499_v41 = vld [vmem:[#allocation86_spill] sm:$0xff] }
 0x579   :  { %v6662_v22 = vsel %vm2756_vm5, %v6658_v40, %v6659_v25  ;;  %v6729_v19 = vmul.f32 %v6663_v9, %v17480_v52  ;;  %v6661_v51 = vsel %vm2756_vm5, %v6659_v25, %v6660_v50  ;;  %v17503_v62 = vld [vmem:[#allocation93_spill] sm:$0xff]  ;;  %v17506_v40 = vld [vmem:[#allocation100_spill] sm:$0xff]  ;;  %v17522_v53 = vld [vmem:[#allocation110_spill] sm:$0xff] }
 0x57a   :  { %v6730_v38 = vmul.f32 %v6662_v22, %v17481_v48  ;;  %v17509_v22 = vld [vmem:[#allocation106_spill] sm:$0xff]  ;;  %v17512_v52 = vld [vmem:[#allocation120_spill] sm:$0xff]  ;;  %v17529_v21 = vld [vmem:[#allocation41_spill] sm:$0xff] }
 0x57c   :  { %9397 = vmatmul.mubr.msk.bf16.gmra.mrb[8].mxu1 %vm686_vm1, %v6738_v54  ;;  %v17473_v54 = vld [vmem:[#allocation312_spill] sm:$0xff]  ;;  %v6749_v14 = vpack.c.bf16 %v6730_v38, %v6729_v19 }
 0x57d   :  { %9400 = vmatprep.mubr.msk.bf16.mxu1 %vm686_vm1, %v6739_v16  ;;  %v6722_v17 = vmul.f32 %v6670_v0, %v17473_v54  ;;  %v6653_v16 = vrot.slane %v14225_v15, 1  ;;  %v17485_v0 = vld [vmem:[#allocation103_spill] sm:$0xff]  ;;  %v15350_v54 = vld [vmem:[%s15909_s4 + $0x40] sm:$0xff]   ;;  %v17513_v19 = vld [vmem:[#allocation24_spill] sm:$0xff] }
 0x57e   :  { %v7026_v4 = vmul.f32 %v14371_v59, %v17485_v0  ;;  %v7043_v48 = vmul.f32 %v17513_v19, %v17512_v52  ;;  %v17514_v38 = vld [vmem:[#allocation104_spill] sm:$0xff]  ;;  %v17548_v19 = vld [vmem:[#allocation127_spill] sm:$0xff] }
 0x57f   :  { %v6745_v45 = vpack.c.bf16 %v6722_v17, %v6721_v11  ;;  %v6668_v28 = vsel %vm2756_vm5, %v6652_v6, %v6653_v16  ;;  %v6667_v15 = vsel %vm2756_vm5, %v6653_v16, %v6654_v23  ;;  %v17489_v17 = vld [vmem:[#allocation214_spill] sm:$0xff]  ;;  %v17495_v23 = vld [vmem:[#allocation85_spill] sm:$0xff]  ;;  %v17521_v0 = vld [vmem:[#allocation112_spill] sm:$0xff] }
 0x580   :  { %v6724_v47 = vmul.f32 %v6668_v28, %v17475_v7  ;;  %v6725_v44 = vmul.f32 %v6667_v15, %v17476_v61  ;;  %v7062_v3 = vpack.c.bf16 %v7027_v18, %v7026_v4  ;;  %v17491_v16 = vpack.c.bf16 %v17489_v17, %v17490_v55  ;;  %v17498_v28 = vld [vmem:[#allocation328_spill] sm:$0xff]  ;;  %v17523_v18 = vld [vmem:[#allocation105_spill] sm:$0xff] }
 0x581   :  { %v7032_v15 = vmul.f32 %v17499_v41, %v17498_v28  ;;  %v17527_v17 = vld [vmem:[#allocation113_spill] sm:$0xff] }
 0x582   :  { %v6747_v57 = vpack.c.bf16 %v6726_v34, %v6725_v44  ;;  %v17502_v44 = vld [vmem:[#allocation331_spill] sm:$0xff]  ;;  %v17534_v41 = vld [vmem:[#allocation121_spill] sm:$0xff] }
 0x583   :  { %v7038_v34 = vmul.f32 %v17503_v62, %v17502_v44  ;;  %v17539_v44 = vld [vmem:[#allocation3_spill] sm:$0xff] }
 0x584   :  { %9401 = vmatmul.mubr.msk.bf16.gmra.mrb[12].mxu1 %vm686_vm1, %v6740_v56  ;;  %v6723_v56 = vmul.f32 %v6669_v12, %v17478_v32  ;;  %v7065_v12 = vpack.c.bf16 %v7033_v1, %v7032_v15  ;;  %v17505_v32 = vld [vmem:[#allocation101_spill] sm:$0xff]  ;;  %v17530_v1 = vld [vmem:[#allocation294_spill] sm:$0xff] }
 0x585   :  { %9404 = vmatprep.mubr.msk.bf16.mxu1 %vm686_vm1, %v6741_v30  ;;  %v6656_v30 = vrot.slane %v14281_v39, 1  ;;  %v17535_v15 = vld [vmem:[#allocation2_spill] sm:$0xff] }
 0x586   :  { %v6746_v27 = vpack.c.bf16 %v6724_v47, %v6723_v56  ;;  %v17501_v47 = vld [vmem:[#allocation98_spill] sm:$0xff] }
 0x587   :  { %v6664_v42 = vsel %vm2756_vm5, %v6656_v30, %v6657_v31  ;;  %v6665_v39 = vsel %vm2756_vm5, %v6655_v58, %v6656_v30  ;;  %v17497_v58 = vld [vmem:[#allocation94_spill] sm:$0xff]  ;;  %v17504_v31 = vld [vmem:[#allocation115_spill] sm:$0xff] }
 0x588   :  { %v6728_v13 = vmul.f32 %v6664_v42, %v17479_v46  ;;  %v6727_v49 = vmul.f32 %v6665_v39, %v17482_v35  ;;  %v7039_v56 = vmul.f32 %v17505_v32, %v17504_v31  ;;  %v17507_v30 = vld [vmem:[#allocation90_spill] sm:$0xff]  ;;  %v17510_v39 = vld [vmem:[#allocation108_spill] sm:$0xff] }
 0x589   :  { %v17508_v42 = vld [vmem:[#allocation118_spill] sm:$0xff]  ;;  %v17540_v32 = vld [vmem:[#allocation132_spill] sm:$0xff] }
 0x58a   :  { %v6748_v60 = vpack.c.bf16 %v6728_v13, %v6727_v49  ;;  %v7041_v9 = vmul.f32 %v17509_v22, %v17508_v42  ;;  %v17511_v46 = vld [vmem:[#allocation102_spill] sm:$0xff]  ;;  %v17545_v42 = vld [vmem:[#allocation77_spill] sm:$0xff] }
 0x58b   :  { %v7042_v13 = vmul.f32 %v17511_v46, %v17510_v39  ;;  %v17547_v39 = vld [vmem:[#allocation46_spill] sm:$0xff] }
 0x58c   :  { %9405 = vmatmul.mubr.msk.bf16.gmra.mrb[16].mxu1 %vm686_vm1, %v6742_v8  ;;  %v6696_v8 = vsel %vm2756_vm5, %v6660_v50, %v6625_v26  ;;  %v17488_v26 = vld [vmem:[#allocation107_spill] sm:$0xff]  ;;  %v17515_v50 = vld [vmem:[#allocation97_spill] sm:$0xff] }
 0x58d   :  { %9408 = vmatprep.mubr.msk.bf16.mxu1 %vm686_vm1, %v6743_v2  ;;  %v6731_v2 = vmul.f32 %v6661_v51, %v17483_v63  ;;  %v6732_v5 = vmul.f32 %v6696_v8, %v17484_v29  ;;  %v7031_v11 = vmul.f32 %v14416_v24, %v17488_v26  ;;  %v17494_v24 = vld [vmem:[#allocation330_spill] sm:$0xff]  ;;  %v7040_v35 = vmul.f32 %v17515_v50, %v17514_v38  ;;  %v17517_v51 = vld [vmem:[#allocation28_spill] sm:$0xff]  ;;  %v17518_v63 = vld [vmem:[#allocation111_spill] sm:$0xff] }
 0x58e   :  { %v7034_v6 = vmul.f32 %v17495_v23, %v17494_v24  ;;  %v17525_v26 = vld [vmem:[#allocation116_spill] sm:$0xff]  ;;  %v17531_v24 = vld [vmem:[#allocation27_spill] sm:$0xff] }
 0x58f   :  { %v6750_v20 = vpack.c.bf16 %v6732_v5, %v6731_v2  ;;  %v7064_v59 = vpack.c.bf16 %v7031_v11, %v7030_v33  ;;  %v7069_v49 = vpack.c.bf16 %v7041_v9, %v7040_v35  ;;  %v17519_v2 = vld [vmem:[#allocation109_spill] sm:$0xff]  ;;  %v17520_v5 = vld [vmem:[#allocation124_spill] sm:$0xff]  ;;  %v17524_v33 = vld [vmem:[#allocation126_spill] sm:$0xff]  ;;  %v7048_v23 = vmul.f32 %v17531_v24, %v17530_v1 }
 0x590   :  { %v7046_v29 = vmul.f32 %v17519_v2, %v17518_v63  ;;  %v7047_v4 = vmul.f32 %v17521_v0, %v17520_v5  ;;  %v7049_v11 = vmul.f32 %v17525_v26, %v17524_v33  ;;  %v17546_v9 = vld [vmem:[#allocation123_spill] sm:$0xff]  ;;  %v17550_v50 = vld [vmem:[#allocation128_spill] sm:$0xff]  ;;  %v17551_v35 = vld [vmem:[#allocation218_spill] sm:$0xff] }
 0x591   :  { %v7056_v46 = vmul.f32 %v17547_v39, %v17546_v9  ;;  %v17555_v63 = vld [vmem:[#allocation82_spill] sm:$0xff]  ;;  %v17556_v0 = vld [vmem:[#allocation99_spill] sm:$0xff]  ;;  %v17560_v33 = vld [vmem:[#allocation209_spill] sm:$0xff] }
 0x592   :  { %v7072_v43 = vpack.c.bf16 %v7047_v4, %v7046_v29  ;;  %v17557_v4 = vld [vmem:[#allocation229_spill] sm:$0xff]  ;;  %v17561_v26 = vld [vmem:[#allocation208_spill] sm:$0xff]  ;;  %v17567_v1 = vld [vmem:[#allocation138_spill] sm:$0xff] }
 0x593   :  { %v17568_v24 = vld [vmem:[#allocation13_spill] sm:$0xff]  ;;  %v17584_v9 = vld [vmem:[#allocation42_spill] sm:$0xff] }
 0x594   :  { %9409 = vmatmul.mubr.msk.bf16.gmra.mrb[20].mxu1 %vm686_vm1, %v6744_v36  ;;  %v17496_v36 = vld [vmem:[#allocation11_spill] sm:$0xff] }
 0x595   :  { %9412 = vmatprep.mubr.msk.bf16.mxu1 %vm686_vm1, %v6745_v45  ;;  %v7035_v45 = vmul.f32 %v17497_v58, %v17496_v36  ;;  %v17532_v58 = vld [vmem:[#allocation129_spill] sm:$0xff] }
 0x597   :  { %v7066_v7 = vpack.c.bf16 %v7035_v45, %v7034_v6  ;;  %v7073_v6 = vpack.c.bf16 %v7049_v11, %v7048_v23  ;;  %v17533_v45 = vld [vmem:[#allocation4_spill] sm:$0xff]  ;;  %v17562_v11 = vpack.c.bf16 %v17560_v33, %v17561_v26  ;;  %v7364_v23 = vmul.f32 %v17568_v24, %v17567_v1  ;;  %v17603_v1 = vld [vmem:[#allocation45_spill] sm:$0xff] }
 0x598   :  { %v7053_v28 = vmul.f32 %v17533_v45, %v17532_v58  ;;  %v17599_v26 = vld [vmem:[#allocation40_spill] sm:$0xff] }
 0x599   :  { %v17604_v24 = vld [vmem:[#allocation68_spill] sm:$0xff] }
 0x59c   :  { %9413 = vmatmul.mubr.msk.bf16.gmra.mrb[24].mxu1 %vm686_vm1, %v6746_v27  ;;  %v7036_v27 = vmul.f32 %v17507_v30, %v17506_v40  ;;  %v17542_v30 = vld [vmem:[#allocation125_spill] sm:$0xff] }
 0x59d   :  { %9416 = vmatprep.mubr.msk.bf16.mxu1 %vm686_vm1, %v6747_v57  ;;  %v7068_v57 = vpack.c.bf16 %v7039_v56, %v7038_v34  ;;  %v17541_v56 = vld [vmem:[#allocation6_spill] sm:$0xff] }
 0x59e   :  { %v7057_v40 = vmul.f32 %v17541_v56, %v17540_v32 }
 0x5a4   :  { %9417 = vmatmul.mubr.msk.bf16.gmra.mrb[28].mxu1 %vm686_vm1, %v6748_v60  ;;  %v7070_v60 = vpack.c.bf16 %v7043_v48, %v7042_v13  ;;  %v7077_v13 = vpack.c.bf16 %v7057_v40, %v7056_v46  ;;  %v17549_v48 = vld [vmem:[#allocation81_spill] sm:$0xff]  ;;  %v17579_v40 = vld [vmem:[#allocation95_spill] sm:$0xff] }
 0x5a5   :  { %9420 = vmatprep.mubr.msk.bf16.mxu1 %vm686_vm1, %v6749_v14  ;;  %v17516_v14 = vld [vmem:[#allocation122_spill] sm:$0xff]  ;;  %v7060_v38 = vmul.f32 %v17549_v48, %v17548_v19  ;;  %v17585_v46 = vld [vmem:[#allocation35_spill] sm:$0xff] }
 0x5a6   :  { %v7045_v8 = vmul.f32 %v17517_v51, %v17516_v14  ;;  %v17553_v14 = vld [vmem:[#allocation227_spill] sm:$0xff] }
 0x5ac   :  { %9421 = vmatmul.mubr.msk.bf16.gmra.mrb[32].mxu1 %vm686_vm1, %v6750_v20  ;;  %v7044_v20 = vmul.f32 %v17523_v18, %v17522_v53  ;;  %v7359_v53 = vmul.f32 %v17557_v4, %v17556_v0  ;;  %v17558_v18 = vld [vmem:[#allocation131_spill] sm:$0xff] }
 0x5ad   :  { %9426 = vmatprep.mubr.msk.bf16.mxu1 %vm686_vm1, %v7062_v3 }
 0x5ae   :  { %v7071_v3 = vpack.c.bf16 %v7045_v8, %v7044_v20  ;;  %v17554_v8 = vld [vmem:[#allocation139_spill] sm:$0xff] }
 0x5af   :  { %v7061_v2 = vmul.f32 %v17555_v63, %v17554_v8  ;;  %v17559_v20 = vld [vmem:[#allocation147_spill] sm:$0xff]  ;;  %v17592_v8 = vld [vmem:[#allocation52_spill] sm:$0xff] }
 0x5b1   :  { %v7079_v29 = vpack.c.bf16 %v7061_v2, %v7060_v38  ;;  %v17587_v38 = vld [vmem:[#allocation26_spill] sm:$0xff]  ;;  %v17593_v2 = vld [vmem:[#allocation44_spill] sm:$0xff] }
 0x5b4   :  { %9427 = vmatmul.mubr.msk.bf16.vlgmr.msra.gmra.mrb[0].mxu1 %vm686_vm1, %v17491_v16  ;;  %v17528_v16 = vld [vmem:[#allocation304_spill] sm:$0xff] }
 0x5b5   :  { %9463 = vmatpush3.bf16.msra.mxu1 %v15200_v37  ;;  %9430 = vmatprep.mubr.msk.bf16.mxu1 %vm686_vm1, %v7064_v59  ;;  %v17500_v37 = vld [vmem:[#allocation114_spill] sm:$0xff]  ;;  %v17526_v59 = vld [vmem:[#allocation117_spill] sm:$0xff]  ;;  %v7051_v10 = vmul.f32 %v17529_v21, %v17528_v16  ;;  %v17565_v16 = vld [vmem:[#allocation20_spill] sm:$0xff] }
 0x5b6   :  { %9500 = vmatprep.subr.bf16.mxu1 %v15350_v54  ;;  %v7037_v61 = vmul.f32 %v17501_v47, %v17500_v37  ;;  %v7050_v55 = vmul.f32 %v17527_v17, %v17526_v59  ;;  %v17537_v37 = vld [vmem:[#allocation51_spill] sm:$0xff]  ;;  %v17563_v59 = vld [vmem:[#allocation134_spill] sm:$0xff]  ;;  %v17564_v17 = vld [vmem:[#allocation12_spill] sm:$0xff] }
 0x5b7   :  { %v17566_v21 = vld [vmem:[#allocation152_spill] sm:$0xff] }
 0x5b8   :  { %v7067_v25 = vpack.c.bf16 %v7037_v61, %v7036_v27  ;;  %v7074_v36 = vpack.c.bf16 %v7051_v10, %v7050_v55  ;;  %v17538_v61 = vld [vmem:[#allocation119_spill] sm:$0xff]  ;;  %v17543_v27 = vld [vmem:[#allocation5_spill] sm:$0xff]  ;;  %v7362_v55 = vmul.f32 %v17564_v17, %v17563_v59  ;;  %v7363_v10 = vmul.f32 %v17566_v21, %v17565_v16  ;;  %v17601_v17 = vld [vmem:[#allocation54_spill] sm:$0xff] }
 0x5b9   :  { %v7052_v62 = vmul.f32 %v17539_v44, %v17538_v61  ;;  %v17576_v61 = vld [vmem:[#allocation33_spill] sm:$0xff] }
 0x5bb   :  { %v7075_v34 = vpack.c.bf16 %v7053_v28, %v7052_v62  ;;  %v7395_v28 = vpack.c.bf16 %v7364_v23, %v7363_v10  ;;  %v17577_v62 = vld [vmem:[#allocation25_spill] sm:$0xff]  ;;  %v7382_v23 = vmul.f32 %v17604_v24, %v17603_v1 }
 0x5bc   :  { %9431 = vmatmul.mubr.msk.bf16.gmra.mrb[4].mxu1 %vm686_vm1, %v7065_v12  ;;  %v7054_v12 = vmul.f32 %v17535_v15, %v17534_v41  ;;  %v17572_v41 = vld [vmem:[#allocation22_spill] sm:$0xff] }
 0x5bd   :  { %9434 = vmatprep.mubr.msk.bf16.mxu1 %vm686_vm1, %v7066_v7  ;;  %v17536_v7 = vld [vmem:[#allocation130_spill] sm:$0xff] }
 0x5be   :  { %v7055_v47 = vmul.f32 %v17537_v37, %v17536_v7  ;;  %v17574_v7 = vld [vmem:[#allocation19_spill] sm:$0xff] }
 0x5c0   :  { %v7076_v31 = vpack.c.bf16 %v7055_v47, %v7054_v12  ;;  %v17573_v12 = vld [vmem:[#allocation31_spill] sm:$0xff]  ;;  %v17575_v47 = vld [vmem:[#allocation96_spill] sm:$0xff] }
 0x5c1   :  { %v7367_v37 = vmul.f32 %v17574_v7, %v17573_v12  ;;  %v7368_v44 = vmul.f32 %v17576_v61, %v17575_v47  ;;  %v17611_v47 = vld [vmem:[#allocation55_spill] sm:$0xff]  ;;  %v17612_v61 = vld [vmem:[#allocation78_spill] sm:$0xff] }
 0x5c3   :  { %v7397_v56 = vpack.c.bf16 %v7368_v44, %v7367_v37  ;;  %v7386_v44 = vmul.f32 %v17612_v61, %v17611_v47 }
 0x5c4   :  { %9435 = vmatmul.mubr.msk.bf16.gmra.mrb[8].mxu1 %vm686_vm1, %v7067_v25  ;;  %v7058_v25 = vmul.f32 %v17543_v27, %v17542_v30  ;;  %v17580_v30 = vld [vmem:[#allocation38_spill] sm:$0xff] }
 0x5c5   :  { %9438 = vmatprep.mubr.msk.bf16.mxu1 %vm686_vm1, %v7068_v57  ;;  %v17544_v57 = vld [vmem:[#allocation135_spill] sm:$0xff]  ;;  %v7370_v27 = vmul.f32 %v17580_v30, %v17579_v40  ;;  %v17617_v30 = vld [vmem:[#allocation74_spill] sm:$0xff] }
 0x5c6   :  { %v7059_v22 = vmul.f32 %v17545_v42, %v17544_v57  ;;  %v17582_v57 = vld [vmem:[#allocation34_spill] sm:$0xff] }
 0x5c8   :  { %v7078_v52 = vpack.c.bf16 %v7059_v22, %v7058_v25  ;;  %v17581_v25 = vld [vmem:[#allocation39_spill] sm:$0xff]  ;;  %v17583_v22 = vld [vmem:[#allocation16_spill] sm:$0xff] }
 0x5c9   :  { %v7371_v42 = vmul.f32 %v17582_v57, %v17581_v25  ;;  %v7372_v39 = vmul.f32 %v17584_v9, %v17583_v22  ;;  %v17619_v22 = vld [vmem:[#allocation88_spill] sm:$0xff] }
 0x5ca   :  { %v17620_v9 = vld [vmem:[#allocation224_spill] sm:$0xff] }
 0x5cb   :  { %v7399_v48 = vpack.c.bf16 %v7372_v39, %v7371_v42  ;;  %v7389_v39 = vmul.f32 %v17620_v9, %v17619_v22 }
 0x5cc   :  { %9439 = vmatmul.mubr.msk.bf16.gmra.mrb[12].mxu1 %vm686_vm1, %v7069_v49  ;;  %v7355_v49 = vmul.f32 %v17551_v35, %v17550_v50  ;;  %v17588_v50 = vld [vmem:[#allocation48_spill] sm:$0xff] }
 0x5cd   :  { %9442 = vmatprep.mubr.msk.bf16.mxu1 %vm686_vm1, %v7070_v60  ;;  %v17552_v60 = vld [vmem:[#allocation143_spill] sm:$0xff]  ;;  %v7374_v35 = vmul.f32 %v17588_v50, %v17587_v38  ;;  %v17625_v50 = vld [vmem:[#allocation65_spill] sm:$0xff] }
 0x5ce   :  { %v7356_v51 = vmul.f32 %v17553_v14, %v17552_v60  ;;  %v17590_v60 = vld [vmem:[#allocation43_spill] sm:$0xff] }
 0x5d0   :  { %v7391_v5 = vpack.c.bf16 %v7356_v51, %v7355_v49  ;;  %v17589_v49 = vld [vmem:[#allocation49_spill] sm:$0xff]  ;;  %v17591_v51 = vld [vmem:[#allocation32_spill] sm:$0xff] }
 0x5d1   :  { %v7375_v14 = vmul.f32 %v17590_v60, %v17589_v49  ;;  %v7376_v63 = vmul.f32 %v17592_v8, %v17591_v51  ;;  %v17627_v51 = vld [vmem:[#allocation75_spill] sm:$0xff] }
 0x5d2   :  { %v17628_v8 = vld [vmem:[#allocation71_spill] sm:$0xff] }
 0x5d3   :  { %v7401_v4 = vpack.c.bf16 %v7376_v63, %v7375_v14  ;;  %v7688_v63 = vmul.f32 %v17628_v8, %v17627_v51 }
 0x5d4   :  { %9443 = vmatmul.mubr.msk.bf16.gmra.mrb[16].mxu1 %vm686_vm1, %v7071_v3  ;;  %v7360_v3 = vmul.f32 %v17559_v20, %v17558_v18  ;;  %v17596_v18 = vld [vmem:[#allocation58_spill] sm:$0xff] }
 0x5d5   :  { %9446 = vmatprep.mubr.msk.bf16.mxu1 %vm686_vm1, %v7072_v43 }
 0x5d6   :  { %v7393_v43 = vpack.c.bf16 %v7360_v3, %v7359_v53  ;;  %v17595_v53 = vld [vmem:[#allocation36_spill] sm:$0xff]  ;;  %v17597_v3 = vld [vmem:[#allocation59_spill] sm:$0xff] }
 0x5d7   :  { %v7378_v20 = vmul.f32 %v17596_v18, %v17595_v53  ;;  %v17632_v53 = vld [vmem:[#allocation30_spill] sm:$0xff] }
 0x5dc   :  { %9447 = vmatmul.mubr.msk.bf16.gmra.mrb[20].mxu1 %vm686_vm1, %v7073_v6  ;;  %v17569_v6 = vld [vmem:[#allocation21_spill] sm:$0xff] }
 0x5dd   :  { %9450 = vmatprep.mubr.msk.bf16.mxu1 %vm686_vm1, %v7074_v36  ;;  %v17570_v36 = vld [vmem:[#allocation146_spill] sm:$0xff] }
 0x5de   :  { %v7361_v58 = vmul.f32 %v17570_v36, %v17569_v6  ;;  %v17605_v6 = vld [vmem:[#allocation69_spill] sm:$0xff]  ;;  %v17606_v36 = vld [vmem:[#allocation63_spill] sm:$0xff] }
 0x5e0   :  { %v7394_v45 = vpack.c.bf16 %v7362_v55, %v7361_v58  ;;  %v17602_v55 = vld [vmem:[#allocation47_spill] sm:$0xff]  ;;  %v7383_v58 = vmul.f32 %v17606_v36, %v17605_v6  ;;  %v17643_v6 = vld [vmem:[#allocation144_spill] sm:$0xff] }
 0x5e1   :  { %v7377_v16 = vmul.f32 %v17602_v55, %v17601_v17  ;;  %v17639_v17 = vld [vmem:[#allocation141_spill] sm:$0xff] }
 0x5e3   :  { %v7402_v21 = vpack.c.bf16 %v7378_v20, %v7377_v16  ;;  %v17634_v20 = vld [vmem:[#allocation17_spill] sm:$0xff]  ;;  %v17640_v16 = vld [vmem:[#allocation80_spill] sm:$0xff] }
 0x5e4   :  { %9451 = vmatmul.mubr.msk.bf16.gmra.mrb[24].mxu1 %vm686_vm1, %v7075_v34  ;;  %v17578_v34 = vld [vmem:[#allocation18_spill] sm:$0xff] }
 0x5e5   :  { %9454 = vmatprep.mubr.msk.bf16.mxu1 %vm686_vm1, %v7076_v31  ;;  %v7365_v31 = vmul.f32 %v17578_v34, %v17577_v62  ;;  %v17613_v62 = vld [vmem:[#allocation60_spill] sm:$0xff]  ;;  %v17614_v34 = vld [vmem:[#allocation223_spill] sm:$0xff] }
 0x5ec   :  { %9455 = vmatmul.mubr.msk.bf16.gmra.mrb[28].mxu1 %vm686_vm1, %v7077_v13  ;;  %v17586_v13 = vld [vmem:[#allocation23_spill] sm:$0xff] }
 0x5ed   :  { %9458 = vmatprep.mubr.msk.bf16.mxu1 %vm686_vm1, %v7078_v52  ;;  %v7369_v52 = vmul.f32 %v17586_v13, %v17585_v46  ;;  %v17621_v46 = vld [vmem:[#allocation92_spill] sm:$0xff] }
 0x5ee   :  { %v17622_v13 = vld [vmem:[#allocation8_spill] sm:$0xff] }
 0x5ef   :  { %v7398_v19 = vpack.c.bf16 %v7370_v27, %v7369_v52  ;;  %v17618_v27 = vld [vmem:[#allocation67_spill] sm:$0xff]  ;;  %v7684_v52 = vmul.f32 %v17622_v13, %v17621_v46  ;;  %v17659_v46 = vld [vmem:[#allocation156_spill] sm:$0xff] }
 0x5f0   :  { %v7385_v25 = vmul.f32 %v17618_v27, %v17617_v30  ;;  %v17655_v30 = vld [vmem:[#allocation159_spill] sm:$0xff] }
 0x5f2   :  { %v7406_v57 = vpack.c.bf16 %v7386_v44, %v7385_v25  ;;  %v17650_v44 = vld [vmem:[#allocation162_spill] sm:$0xff] }
 0x5f3   :  { %v17656_v25 = vld [vmem:[#allocation14_spill] sm:$0xff] }
 0x5f4   :  { %9459 = vmatmul.mubr.msk.bf16.gmra.mrb[32].mxu1 %vm686_vm1, %v7079_v29  ;;  %v17594_v29 = vld [vmem:[#allocation37_spill] sm:$0xff] }
 0x5f5   :  { %9464 = vmatprep.mubr.msk.bf16.mxu1 %vm686_vm1, %v7391_v5  ;;  %v7373_v5 = vmul.f32 %v17594_v29, %v17593_v2  ;;  %v17629_v2 = vld [vmem:[#allocation91_spill] sm:$0xff]  ;;  %v17630_v29 = vld [vmem:[#allocation133_spill] sm:$0xff] }
 0x5f7   :  { %v7400_v0 = vpack.c.bf16 %v7374_v35, %v7373_v5  ;;  %v17626_v35 = vld [vmem:[#allocation219_spill] sm:$0xff]  ;;  %v7689_v5 = vmul.f32 %v17630_v29, %v17629_v2  ;;  %v17667_v2 = vld [vmem:[#allocation164_spill] sm:$0xff] }
 0x5f8   :  { %v7390_v49 = vmul.f32 %v17626_v35, %v17625_v50  ;;  %v17663_v50 = vld [vmem:[#allocation168_spill] sm:$0xff] }
 0x5fa   :  { %v7408_v60 = vpack.c.bf16 %v7390_v49, %v7389_v39  ;;  %v17658_v39 = vld [vmem:[#allocation174_spill] sm:$0xff]  ;;  %v17664_v49 = vld [vmem:[#allocation153_spill] sm:$0xff] }
 0x5fb   :  { %v7703_v13 = vmul.f32 %v17659_v46, %v17658_v39 }
 0x5fc   :  { %9465 = vmatmul.mubr.msk.bf16.vlgmr.msra.gmra.mrb[0].mxu1 %vm686_vm1, %v17562_v11  ;;  %v17600_v11 = vld [vmem:[#allocation62_spill] sm:$0xff] }
 0x5fd   :  { %9501 = vmatpush3.bf16.msra.mxu1 %v15350_v54  ;;  %9468 = vmatprep.mubr.msk.bf16.mxu1 %vm686_vm1, %v7393_v43  ;;  %v17571_v54 = vld [vmem:[#allocation142_spill] sm:$0xff]  ;;  %v17598_v43 = vld [vmem:[#allocation53_spill] sm:$0xff]  ;;  %v7380_v59 = vmul.f32 %v17600_v11, %v17599_v26  ;;  %v17637_v26 = vld [vmem:[#allocation76_spill] sm:$0xff] }
 0x5fe   :  { %v7366_v15 = vmul.f32 %v17572_v41, %v17571_v54  ;;  %v7379_v33 = vmul.f32 %v17598_v43, %v17597_v3  ;;  %v17609_v41 = vld [vmem:[#allocation64_spill] sm:$0xff] }
 0x5ff   :  { %v17635_v3 = vld [vmem:[#allocation136_spill] sm:$0xff] }
 0x600   :  { %v7396_v32 = vpack.c.bf16 %v7366_v15, %v7365_v31  ;;  %v7403_v10 = vpack.c.bf16 %v7380_v59, %v7379_v33  ;;  %v17610_v15 = vld [vmem:[#allocation57_spill] sm:$0xff]  ;;  %v7388_v31 = vmul.f32 %v17614_v34, %v17613_v62  ;;  %v7691_v43 = vmul.f32 %v17635_v3, %v17634_v20  ;;  %v17636_v33 = vld [vmem:[#allocation79_spill] sm:$0xff]  ;;  %v17638_v59 = vld [vmem:[#allocation154_spill] sm:$0xff] }
 0x601   :  { %v7381_v12 = vmul.f32 %v17610_v15, %v17609_v41  ;;  %v7692_v11 = vmul.f32 %v17637_v26, %v17636_v33  ;;  %v7693_v55 = vmul.f32 %v17639_v17, %v17638_v59  ;;  %v17647_v41 = vld [vmem:[#allocation148_spill] sm:$0xff]  ;;  %v17651_v62 = vld [vmem:[#allocation150_spill] sm:$0xff]  ;;  %v17675_v17 = vld [vmem:[#allocation173_spill] sm:$0xff] }
 0x602   :  { %v7699_v34 = vmul.f32 %v17651_v62, %v17650_v44  ;;  %v17672_v3 = vld [vmem:[#allocation166_spill] sm:$0xff]  ;;  %v17674_v59 = vld [vmem:[#allocation188_spill] sm:$0xff]  ;;  %v17688_v62 = vld [vmem:[#allocation189_spill] sm:$0xff] }
 0x603   :  { %v7404_v7 = vpack.c.bf16 %v7382_v23, %v7381_v12  ;;  %v7724_v24 = vpack.c.bf16 %v7693_v55, %v7692_v11  ;;  %v17642_v23 = vld [vmem:[#allocation157_spill] sm:$0xff]  ;;  %v17648_v12 = vld [vmem:[#allocation83_spill] sm:$0xff]  ;;  %v7711_v55 = vmul.f32 %v17675_v17, %v17674_v59  ;;  %v10273_v17 = vld [vmem:[%s15908_s0 + $0x20] sm:$0xff] }
 0x604   :  { %9469 = vmatmul.mubr.msk.bf16.gmra.mrb[4].mxu1 %vm686_vm1, %v7394_v45  ;;  %v17607_v45 = vld [vmem:[#allocation50_spill] sm:$0xff]  ;;  %v7695_v36 = vmul.f32 %v17643_v6, %v17642_v23 }
 0x605   :  { %9472 = vmatprep.mubr.msk.bf16.mxu1 %vm686_vm1, %v7395_v28  ;;  %v17608_v28 = vld [vmem:[#allocation72_spill] sm:$0xff]  ;;  %v17680_v6 = vld [vmem:[#allocation178_spill] sm:$0xff] }
 0x606   :  { %v7384_v54 = vmul.f32 %v17608_v28, %v17607_v45  ;;  %v17645_v45 = vld [vmem:[#allocation140_spill] sm:$0xff] }
 0x608   :  { %v7405_v37 = vpack.c.bf16 %v7384_v54, %v7383_v58  ;;  %v17644_v58 = vld [vmem:[#allocation87_spill] sm:$0xff]  ;;  %v17646_v54 = vld [vmem:[#allocation161_spill] sm:$0xff] }
 0x609   :  { %v7696_v28 = vmul.f32 %v17645_v45, %v17644_v58  ;;  %v7697_v15 = vmul.f32 %v17647_v41, %v17646_v54  ;;  %v17682_v54 = vld [vmem:[#allocation198_spill] sm:$0xff] }
 0x60a   :  { %v17683_v41 = vld [vmem:[#allocation182_spill] sm:$0xff] }
 0x60b   :  { %v7726_v61 = vpack.c.bf16 %v7697_v15, %v7696_v28  ;;  %v7715_v15 = vmul.f32 %v17683_v41, %v17682_v54 }
 0x60c   :  { %9473 = vmatmul.mubr.msk.bf16.gmra.mrb[8].mxu1 %vm686_vm1, %v7396_v32  ;;  %v17615_v32 = vld [vmem:[#allocation84_spill] sm:$0xff] }
 0x60d   :  { %9476 = vmatprep.mubr.msk.bf16.mxu1 %vm686_vm1, %v7397_v56  ;;  %v17616_v56 = vld [vmem:[#allocation73_spill] sm:$0xff] }
 0x60e   :  { %v7387_v40 = vmul.f32 %v17616_v56, %v17615_v32  ;;  %v17653_v32 = vld [vmem:[#allocation149_spill] sm:$0xff] }
 0x610   :  { %v7407_v42 = vpack.c.bf16 %v7388_v31, %v7387_v40  ;;  %v17652_v31 = vld [vmem:[#allocation15_spill] sm:$0xff] }
 0x611   :  { %v7700_v56 = vmul.f32 %v17653_v32, %v17652_v31  ;;  %v17654_v40 = vld [vmem:[#allocation167_spill] sm:$0xff] }
 0x612   :  { %v7701_v27 = vmul.f32 %v17655_v30, %v17654_v40  ;;  %v17690_v40 = vld [vmem:[#allocation203_spill] sm:$0xff]  ;;  %v17691_v30 = vld [vmem:[#allocation61_spill] sm:$0xff] }
 0x614   :  { %9477 = vmatmul.mubr.msk.bf16.gmra.mrb[12].mxu1 %vm686_vm1, %v7398_v19  ;;  %v17623_v19 = vld [vmem:[#allocation70_spill] sm:$0xff]  ;;  %v7728_v9 = vpack.c.bf16 %v7701_v27, %v7700_v56  ;;  %v7718_v27 = vmul.f32 %v17691_v30, %v17690_v40  ;;  %v10279_v40 = vld [vmem:[%s15908_s0 + $0x48] sm:$0xff] }
 0x615   :  { %9480 = vmatprep.mubr.msk.bf16.mxu1 %vm686_vm1, %v7399_v48  ;;  %v17624_v48 = vld [vmem:[#allocation66_spill] sm:$0xff] }
 0x616   :  { %v7685_v38 = vmul.f32 %v17624_v48, %v17623_v19  ;;  %v17661_v19 = vld [vmem:[#allocation151_spill] sm:$0xff] }
 0x618   :  { %v7720_v14 = vpack.c.bf16 %v7685_v38, %v7684_v52  ;;  %v17660_v52 = vld [vmem:[#allocation158_spill] sm:$0xff]  ;;  %v17662_v38 = vld [vmem:[#allocation175_spill] sm:$0xff] }
 0x619   :  { %v7704_v48 = vmul.f32 %v17661_v19, %v17660_v52  ;;  %v7705_v35 = vmul.f32 %v17663_v50, %v17662_v38 }
 0x61b   :  { %v7730_v8 = vpack.c.bf16 %v7705_v35, %v7704_v48  ;;  %v10268_v48 = vld [vmem:[%s15908_s0 + $0x10] sm:$0xff] }
 0x61c   :  { %9481 = vmatmul.mubr.msk.bf16.gmra.mrb[16].mxu1 %vm686_vm1, %v7400_v0  ;;  %v7722_v0 = vpack.c.bf16 %v7689_v5, %v7688_v63  ;;  %v17666_v63 = vld [vmem:[#allocation179_spill] sm:$0xff]  ;;  %v17668_v5 = vld [vmem:[#allocation170_spill] sm:$0xff] }
 0x61d   :  { %9484 = vmatprep.mubr.msk.bf16.mxu1 %vm686_vm1, %v7401_v4  ;;  %v17631_v4 = vld [vmem:[#allocation29_spill] sm:$0xff]  ;;  %v7707_v29 = vmul.f32 %v17667_v2, %v17666_v63 }
 0x61e   :  { %v17633_v18 = vpack.c.bf16 %v17631_v4, %v17632_v53  ;;  %v17670_v53 = vld [vmem:[#allocation184_spill] sm:$0xff] }
 0x624   :  { %9485 = vmatmul.mubr.msk.bf16.gmra.mrb[20].mxu1 %vm686_vm1, %v7402_v21  ;;  %v17641_v21 = vld [vmem:[#allocation9_spill] sm:$0xff] }
 0x625   :  { %9488 = vmatprep.mubr.msk.bf16.mxu1 %vm686_vm1, %v7403_v10  ;;  %v7690_v10 = vmul.f32 %v17641_v21, %v17640_v16  ;;  %v17676_v16 = vld [vmem:[#allocation183_spill] sm:$0xff]  ;;  %v17677_v21 = vld [vmem:[#allocation169_spill] sm:$0xff] }
 0x627   :  { %v7723_v1 = vpack.c.bf16 %v7691_v43, %v7690_v10  ;;  %v17673_v43 = vld [vmem:[#allocation163_spill] sm:$0xff]  ;;  %v7712_v10 = vmul.f32 %v17677_v21, %v17676_v16 }
 0x628   :  { %v7706_v33 = vmul.f32 %v17673_v43, %v17672_v3 }
 0x62a   :  { %v7731_v26 = vpack.c.bf16 %v7707_v29, %v7706_v33  ;;  %v10271_v29 = vld [vmem:[%s15908_s0 + $0x8] sm:$0xff]  ;;  %v10272_v33 = vld [vmem:[%s15908_s0 + $0x30] sm:$0xff] }
 0x62c   :  { %9489 = vmatmul.mubr.msk.bf16.gmra.mrb[24].mxu1 %vm686_vm1, %v7404_v7  ;;  %v17649_v7 = vld [vmem:[#allocation137_spill] sm:$0xff] }
 0x62d   :  { %9492 = vmatprep.mubr.msk.bf16.mxu1 %vm686_vm1, %v7405_v37  ;;  %v7694_v37 = vmul.f32 %v17649_v7, %v17648_v12  ;;  %v17684_v12 = vld [vmem:[#allocation194_spill] sm:$0xff]  ;;  %v17685_v7 = vld [vmem:[#allocation177_spill] sm:$0xff] }
 0x62f   :  { %v7725_v47 = vpack.c.bf16 %v7695_v36, %v7694_v37  ;;  %v17681_v36 = vld [vmem:[#allocation172_spill] sm:$0xff]  ;;  %v7716_v37 = vmul.f32 %v17685_v7, %v17684_v12 }
 0x630   :  { %v7710_v58 = vmul.f32 %v17681_v36, %v17680_v6  ;;  %v10276_v12 = vld [vmem:[%s15908_s0 + $0x50] sm:$0xff] }
 0x632   :  { %v7733_v45 = vpack.c.bf16 %v7711_v55, %v7710_v58 }
 0x634   :  { %9493 = vmatmul.mubr.msk.bf16.gmra.mrb[28].mxu1 %vm686_vm1, %v7406_v57  ;;  %v17657_v57 = vld [vmem:[#allocation145_spill] sm:$0xff] }
 0x635   :  { %9496 = vmatprep.mubr.msk.bf16.mxu1 %vm686_vm1, %v7407_v42  ;;  %v7698_v42 = vmul.f32 %v17657_v57, %v17656_v25  ;;  %v17692_v25 = vld [vmem:[#allocation204_spill] sm:$0xff]  ;;  %v17693_v57 = vld [vmem:[#allocation7_spill] sm:$0xff] }
 0x637   :  { %v7727_v22 = vpack.c.bf16 %v7699_v34, %v7698_v42  ;;  %v17689_v34 = vld [vmem:[#allocation181_spill] sm:$0xff]  ;;  %v7719_v42 = vmul.f32 %v17693_v57, %v17692_v25 }
 0x638   :  { %v7714_v31 = vmul.f32 %v17689_v34, %v17688_v62 }
 0x63a   :  { %v7735_v32 = vpack.c.bf16 %v7715_v15, %v7714_v31  ;;  %v10278_v31 = vld [vmem:[%s15908_s0 + $0x58] sm:$0xff] }
 0x63c   :  { %9497 = vmatmul.mubr.msk.bf16.gmra.mrb[32].mxu1 %vm686_vm1, %v7408_v60  ;;  %v17665_v60 = vld [vmem:[#allocation155_spill] sm:$0xff] }
 0x63d   :  { %9502 = vmatprep.mubr.msk.bf16.mxu1 %vm686_vm1, %v7720_v14  ;;  %v7702_v14 = vmul.f32 %v17665_v60, %v17664_v49  ;;  %v10269_v49 = vld [vmem:[%s15908_s0] sm:$0xff] }
 0x63f   :  { %v7729_v51 = vpack.c.bf16 %v7703_v13, %v7702_v14 }
 0x644   :  { %9503 = vmatmul.mubr.msk.bf16.vlgmr.msra.gmra.mrb[0].mxu1 %vm686_vm1, %v17633_v18  ;;  %v17671_v18 = vld [vmem:[#allocation176_spill] sm:$0xff] }
 0x645   :  { %9506 = vmatprep.mubr.msk.bf16.mxu1 %vm686_vm1, %v7722_v0  ;;  %v17669_v0 = vld [vmem:[#allocation160_spill] sm:$0xff]  ;;  %v7709_v20 = vmul.f32 %v17671_v18, %v17670_v53 }
 0x646   :  { %v7708_v4 = vmul.f32 %v17669_v0, %v17668_v5 }
 0x648   :  { %v7732_v11 = vpack.c.bf16 %v7709_v20, %v7708_v4 }
 0x64c   :  { %9507 = vmatmul.mubr.msk.bf16.gmra.mrb[4].mxu1 %vm686_vm1, %v7723_v1  ;;  %v17678_v1 = vld [vmem:[#allocation193_spill] sm:$0xff] }
 0x64d   :  { %9510 = vmatprep.mubr.msk.bf16.mxu1 %vm686_vm1, %v7724_v24  ;;  %v17679_v24 = vld [vmem:[#allocation186_spill] sm:$0xff] }
 0x64e   :  { %v7713_v23 = vmul.f32 %v17679_v24, %v17678_v1 }
 0x650   :  { %v7734_v28 = vpack.c.bf16 %v7713_v23, %v7712_v10  ;;  %v10274_v10 = vld [vmem:[%s15908_s0 + $0x38] sm:$0xff]  ;;  %v10275_v23 = vld [vmem:[%s15908_s0 + $0x28] sm:$0xff] }
 0x654   :  { %9511 = vmatmul.mubr.msk.bf16.gmra.mrb[8].mxu1 %vm686_vm1, %v7725_v47  ;;  %v17686_v47 = vld [vmem:[#allocation199_spill] sm:$0xff] }
 0x655   :  { %9514 = vmatprep.mubr.msk.bf16.mxu1 %vm686_vm1, %v7726_v61  ;;  %v17687_v61 = vld [vmem:[#allocation56_spill] sm:$0xff] }
 0x656   :  { %v7717_v44 = vmul.f32 %v17687_v61, %v17686_v47  ;;  %v10277_v61 = vld [vmem:[%s15908_s0 + $0x40] sm:$0xff] }
 0x658   :  { %v7736_v56 = vpack.c.bf16 %v7717_v44, %v7716_v37 }
 0x65c   :  { %9515 = vmatmul.mubr.msk.bf16.gmra.mrb[12].mxu1 %vm686_vm1, %v7727_v22  ;;  %v7737_v22 = vpack.c.bf16 %v7719_v42, %v7718_v27 }
 0x65d   :  { %9518 = vmatprep.mubr.msk.bf16.mxu1 %vm686_vm1, %v7728_v9  ;;  %v15616_v9 = vld [vmem:[%s15911_s5] ss:$0 sm:$0xff] }
 0x664   :  { %9519 = vmatmul.mubr.msk.bf16.gmra.mrb[16].mxu1 %vm686_vm1, %v7729_v51 }
 0x665   :  { %9522 = vmatprep.mubr.msk.bf16.mxu1 %vm686_vm1, %v7730_v8  ;;  %v10270_v8 = vld [vmem:[%s15908_s0 + $0x18] sm:$0xff] }
 0x66c   :  { %9523 = vmatmul.mubr.msk.bf16.gmra.mrb[20].mxu1 %vm686_vm1, %v7731_v26 }
 0x66d   :  { %9526 = vmatprep.mubr.msk.bf16.mxu1 %vm686_vm1, %v7732_v11 }
 0x674   :  { %9527 = vmatmul.mubr.msk.bf16.gmra.mrb[24].mxu1 %vm686_vm1, %v7733_v45 }
 0x675   :  { %9530 = vmatprep.mubr.msk.bf16.mxu1 %vm686_vm1, %v7734_v28 }
 0x67c   :  { %9531 = vmatmul.mubr.msk.bf16.gmra.mrb[28].mxu1 %vm686_vm1, %v7735_v32 }
 0x67d   :  { %9534 = vmatprep.mubr.msk.bf16.mxu1 %vm686_vm1, %v7736_v56 }
 0x684   :  { %9535 = vmatmul.mubr.msk.bf16.gmra.mrb[32].mxu1 %vm686_vm1, %v7737_v22 }
 0x717   :  { %v9504_v39 = vpop.f32.mrb[0].mxu1 }
 0x718   :  { %v8022_v46 = vadd.f32 %v9504_v39, %v15616_v9  ;;  %v7834_v13 = vpop.f32.mrb[1].mxu1 }
 0x719   :  { %v8020_v52 = vadd.f32 %v15616_v9, %v7834_v13  ;;  %v9505_v19 = vpop.f32.mrb[2].mxu1  ;;  %v10280_v13 = vld [vmem:[%s15908_s0 + $0x70] sm:$0xff] }
 0x71a   :  { %v8058_v38 = vadd.f32 %v10268_v48, %v8022_v46  ;;  %v8023_v50 = vadd.f32 %v9505_v19, %v15616_v9  ;;  %v7837_v35 = vpop.f32.mrb[3].mxu1 }
 0x71b   :  { %v8056_v60 = vadd.f32 %v10269_v49, %v8020_v52  ;;  %v8021_v14 = vadd.f32 %v15616_v9, %v7837_v35 }
 0x71c   :  { %v8094_v51 = vmax.f32 %v8058_v38, 0.0  ;;  %v8059_v63 = vadd.f32 %v10270_v8, %v8023_v50  ;;  %v10281_v38 = vld [vmem:[%s15908_s0 + $0x60] sm:$0xff]  ;;  %v10283_v8 = vld [vmem:[%s15908_s0 + $0x68] sm:$0xff] }
 0x71d   :  { %v8092_v2 = vmax.f32 %v8056_v60, 0.0  ;;  %v8057_v5 = vadd.f32 %v10271_v29, %v8021_v14  ;;  %v10282_v60 = vld [vmem:[%s15908_s0 + $0x78] sm:$0xff] }
 0x71e   :  { %8130 = vst.msk [vmem:[%s15912_s6 + $0x10] sm:$0xff] %vm686_vm1, %v8094_v51  ;;  %v8095_v0 = vmax.f32 %v8059_v63, 0.0 }
 0x71f   :  { %8128 = vst.msk [vmem:[%s15912_s6] sm:$0xff] %vm686_vm1, %v8092_v2  ;;  %v8093_v4 = vmax.f32 %v8057_v5, 0.0  ;;  %v9508_v53 = vpop.f32.mrb[4].mxu1 }
 0x720   :  { %8131 = vst.msk [vmem:[%s15912_s6 + $0x18] sm:$0xff] %vm686_vm1, %v8095_v0  ;;  %v8026_v18 = vadd.f32 %v9508_v53, %v15616_v9  ;;  %v7850_v20 = vpop.f32.mrb[5].mxu1 }
 0x721   :  { %8129 = vst.msk [vmem:[%s15912_s6 + $0x8] sm:$0xff] %vm686_vm1, %v8093_v4  ;;  %v8024_v3 = vadd.f32 %v15616_v9, %v7850_v20  ;;  %v9509_v43 = vpop.f32.mrb[6].mxu1  ;;  %v10284_v20 = vld [vmem:[%s15908_s0 + $0x90] sm:$0xff] }
 0x722   :  { %v8062_v26 = vadd.f32 %v10272_v33, %v8026_v18  ;;  %v8027_v11 = vadd.f32 %v9509_v43, %v15616_v9  ;;  %v7853_v59 = vpop.f32.mrb[7].mxu1 }
 0x723   :  { %v8060_v55 = vadd.f32 %v10273_v17, %v8024_v3  ;;  %v8025_v16 = vadd.f32 %v15616_v9, %v7853_v59 }
 0x724   :  { %v8098_v21 = vmax.f32 %v8062_v26, 0.0  ;;  %v8063_v1 = vadd.f32 %v10274_v10, %v8027_v11  ;;  %v10285_v26 = vld [vmem:[%s15908_s0 + $0x80] sm:$0xff]  ;;  %v10287_v10 = vld [vmem:[%s15908_s0 + $0x88] sm:$0xff] }
 0x725   :  { %v8096_v24 = vmax.f32 %v8060_v55, 0.0  ;;  %v8061_v6 = vadd.f32 %v10275_v23, %v8025_v16  ;;  %v10286_v55 = vld [vmem:[%s15908_s0 + $0x98] sm:$0xff] }
 0x726   :  { %8134 = vst.msk [vmem:[%s15912_s6 + $0x30] sm:$0xff] %vm686_vm1, %v8098_v21  ;;  %v8099_v36 = vmax.f32 %v8063_v1, 0.0 }
 0x727   :  { %8132 = vst.msk [vmem:[%s15912_s6 + $0x20] sm:$0xff] %vm686_vm1, %v8096_v24  ;;  %v8097_v58 = vmax.f32 %v8061_v6, 0.0  ;;  %v9512_v45 = vpop.f32.mrb[8].mxu1 }
 0x728   :  { %8135 = vst.msk [vmem:[%s15912_s6 + $0x38] sm:$0xff] %vm686_vm1, %v8099_v36  ;;  %v8030_v28 = vadd.f32 %v9512_v45, %v15616_v9  ;;  %v7866_v54 = vpop.f32.mrb[9].mxu1 }
 0x729   :  { %8133 = vst.msk [vmem:[%s15912_s6 + $0x28] sm:$0xff] %vm686_vm1, %v8097_v58  ;;  %v8028_v41 = vadd.f32 %v15616_v9, %v7866_v54  ;;  %v9513_v15 = vpop.f32.mrb[10].mxu1  ;;  %v10288_v54 = vld [vmem:[%s15908_s0 + $0xb0] sm:$0xff] }
 0x72a   :  { %v8066_v7 = vadd.f32 %v10276_v12, %v8030_v28  ;;  %v8031_v37 = vadd.f32 %v9513_v15, %v15616_v9  ;;  %v7869_v47 = vpop.f32.mrb[11].mxu1 }
 0x72b   :  { %v8064_v44 = vadd.f32 %v10277_v61, %v8028_v41  ;;  %v8029_v62 = vadd.f32 %v15616_v9, %v7869_v47 }
 0x72c   :  { %v8102_v34 = vmax.f32 %v8066_v7, 0.0  ;;  %v8067_v32 = vadd.f32 %v10278_v31, %v8031_v37  ;;  %v10289_v7 = vld [vmem:[%s15908_s0 + $0xa0] sm:$0xff]  ;;  %v10291_v31 = vld [vmem:[%s15908_s0 + $0xa8] sm:$0xff] }
 0x72d   :  { %v8100_v56 = vmax.f32 %v8064_v44, 0.0  ;;  %v8065_v30 = vadd.f32 %v10279_v40, %v8029_v62  ;;  %v10290_v44 = vld [vmem:[%s15908_s0 + $0xb8] sm:$0xff] }
 0x72e   :  { %8138 = vst.msk [vmem:[%s15912_s6 + $0x50] sm:$0xff] %vm686_vm1, %v8102_v34  ;;  %v8103_v27 = vmax.f32 %v8067_v32, 0.0 }
 0x72f   :  { %8136 = vst.msk [vmem:[%s15912_s6 + $0x40] sm:$0xff] %vm686_vm1, %v8100_v56  ;;  %v8101_v25 = vmax.f32 %v8065_v30, 0.0  ;;  %v9516_v57 = vpop.f32.mrb[12].mxu1 }
 0x730   :  { %8139 = vst.msk [vmem:[%s15912_s6 + $0x58] sm:$0xff] %vm686_vm1, %v8103_v27  ;;  %v8034_v42 = vadd.f32 %v9516_v57, %v15616_v9  ;;  %v7882_v22 = vpop.f32.mrb[13].mxu1 }
 0x731   :  { %8137 = vst.msk [vmem:[%s15912_s6 + $0x48] sm:$0xff] %vm686_vm1, %v8101_v25  ;;  %v8032_v39 = vadd.f32 %v15616_v9, %v7882_v22  ;;  %v9517_v46 = vpop.f32.mrb[14].mxu1  ;;  %v10292_v22 = vld [vmem:[%s15908_s0 + $0xd0] sm:$0xff] }
 0x732   :  { %v8070_v52 = vadd.f32 %v10280_v13, %v8034_v42  ;;  %v8035_v19 = vadd.f32 %v9517_v46, %v15616_v9  ;;  %v7885_v48 = vpop.f32.mrb[15].mxu1 }
 0x733   :  { %v8068_v50 = vadd.f32 %v10281_v38, %v8032_v39  ;;  %v8033_v35 = vadd.f32 %v15616_v9, %v7885_v48 }
 0x734   :  { %v8106_v49 = vmax.f32 %v8070_v52, 0.0  ;;  %v8071_v14 = vadd.f32 %v10282_v60, %v8035_v19  ;;  %v10293_v52 = vld [vmem:[%s15908_s0 + $0xc0] sm:$0xff]  ;;  %v10295_v60 = vld [vmem:[%s15908_s0 + $0xc8] sm:$0xff] }
 0x735   :  { %v8104_v51 = vmax.f32 %v8068_v50, 0.0  ;;  %v8069_v63 = vadd.f32 %v10283_v8, %v8033_v35  ;;  %v10294_v50 = vld [vmem:[%s15908_s0 + $0xd8] sm:$0xff] }
 0x736   :  { %8142 = vst.msk [vmem:[%s15912_s6 + $0x70] sm:$0xff] %vm686_vm1, %v8106_v49  ;;  %v8107_v2 = vmax.f32 %v8071_v14, 0.0 }
 0x737   :  { %8140 = vst.msk [vmem:[%s15912_s6 + $0x60] sm:$0xff] %vm686_vm1, %v8104_v51  ;;  %v8105_v29 = vmax.f32 %v8069_v63, 0.0  ;;  %v9520_v5 = vpop.f32.mrb[16].mxu1 }
 0x738   :  { %8143 = vst.msk [vmem:[%s15912_s6 + $0x78] sm:$0xff] %vm686_vm1, %v8107_v2  ;;  %v8038_v0 = vadd.f32 %v9520_v5, %v15616_v9  ;;  %v7898_v4 = vpop.f32.mrb[17].mxu1 }
 0x739   :  { %8141 = vst.msk [vmem:[%s15912_s6 + $0x68] sm:$0xff] %vm686_vm1, %v8105_v29  ;;  %v8036_v53 = vadd.f32 %v15616_v9, %v7898_v4  ;;  %v9521_v18 = vpop.f32.mrb[18].mxu1  ;;  %v10296_v4 = vld [vmem:[%s15908_s0 + $0xf0] sm:$0xff] }
 0x73a   :  { %v8074_v3 = vadd.f32 %v10284_v20, %v8038_v0  ;;  %v8039_v43 = vadd.f32 %v9521_v18, %v15616_v9  ;;  %v7901_v33 = vpop.f32.mrb[19].mxu1 }
 0x73b   :  { %v8072_v11 = vadd.f32 %v10285_v26, %v8036_v53  ;;  %v8037_v59 = vadd.f32 %v15616_v9, %v7901_v33 }
 0x73c   :  { %v8110_v17 = vmax.f32 %v8074_v3, 0.0  ;;  %v8075_v16 = vadd.f32 %v10286_v55, %v8039_v43  ;;  %v10297_v3 = vld [vmem:[%s15908_s0 + $0xe0] sm:$0xff]  ;;  %v10299_v55 = vld [vmem:[%s15908_s0 + $0xe8] sm:$0xff] }
 0x73d   :  { %v8108_v21 = vmax.f32 %v8072_v11, 0.0  ;;  %v8073_v1 = vadd.f32 %v10287_v10, %v8037_v59  ;;  %v10298_v11 = vld [vmem:[%s15908_s0 + $0xf8] sm:$0xff] }
 0x73e   :  { %8146 = vst.msk [vmem:[%s15912_s6 + $0x90] sm:$0xff] %vm686_vm1, %v8110_v17  ;;  %v8111_v24 = vmax.f32 %v8075_v16, 0.0 }
 0x73f   :  { %8144 = vst.msk [vmem:[%s15912_s6 + $0x80] sm:$0xff] %vm686_vm1, %v8108_v21  ;;  %v8109_v23 = vmax.f32 %v8073_v1, 0.0  ;;  %v9524_v6 = vpop.f32.mrb[20].mxu1 }
 0x740   :  { %8147 = vst.msk [vmem:[%s15912_s6 + $0x98] sm:$0xff] %vm686_vm1, %v8111_v24  ;;  %v8042_v36 = vadd.f32 %v9524_v6, %v15616_v9  ;;  %v7914_v58 = vpop.f32.mrb[21].mxu1 }
 0x741   :  { %8145 = vst.msk [vmem:[%s15912_s6 + $0x88] sm:$0xff] %vm686_vm1, %v8109_v23  ;;  %v8040_v45 = vadd.f32 %v15616_v9, %v7914_v58  ;;  %v9525_v28 = vpop.f32.mrb[22].mxu1  ;;  %v10300_v58 = vld [vmem:[%s15908_s0 + $0x110] sm:$0xff] }
 0x742   :  { %v8078_v41 = vadd.f32 %v10288_v54, %v8042_v36  ;;  %v8043_v15 = vadd.f32 %v9525_v28, %v15616_v9  ;;  %v7917_v12 = vpop.f32.mrb[23].mxu1 }
 0x743   :  { %v8076_v37 = vadd.f32 %v10289_v7, %v8040_v45  ;;  %v8041_v47 = vadd.f32 %v15616_v9, %v7917_v12 }
 0x744   :  { %v8114_v61 = vmax.f32 %v8078_v41, 0.0  ;;  %v8079_v62 = vadd.f32 %v10290_v44, %v8043_v15  ;;  %v10301_v41 = vld [vmem:[%s15908_s0 + $0x100] sm:$0xff]  ;;  %v10303_v44 = vld [vmem:[%s15908_s0 + $0x108] sm:$0xff] }
 0x745   :  { %v8112_v34 = vmax.f32 %v8076_v37, 0.0  ;;  %v8077_v32 = vadd.f32 %v10291_v31, %v8041_v47  ;;  %v10302_v37 = vld [vmem:[%s15908_s0 + $0x118] sm:$0xff] }
 0x746   :  { %8150 = vst.msk [vmem:[%s15912_s6 + $0xb0] sm:$0xff] %vm686_vm1, %v8114_v61  ;;  %v8115_v56 = vmax.f32 %v8079_v62, 0.0 }
 0x747   :  { %8148 = vst.msk [vmem:[%s15912_s6 + $0xa0] sm:$0xff] %vm686_vm1, %v8112_v34  ;;  %v8113_v40 = vmax.f32 %v8077_v32, 0.0  ;;  %v9528_v30 = vpop.f32.mrb[24].mxu1 }
 0x748   :  { %8151 = vst.msk [vmem:[%s15912_s6 + $0xb8] sm:$0xff] %vm686_vm1, %v8115_v56  ;;  %v8046_v27 = vadd.f32 %v9528_v30, %v15616_v9  ;;  %v7930_v25 = vpop.f32.mrb[25].mxu1 }
 0x749   :  { %8149 = vst.msk [vmem:[%s15912_s6 + $0xa8] sm:$0xff] %vm686_vm1, %v8113_v40  ;;  %v8044_v57 = vadd.f32 %v15616_v9, %v7930_v25  ;;  %v9529_v42 = vpop.f32.mrb[26].mxu1 }
 0x74a   :  { %v8082_v39 = vadd.f32 %v10292_v22, %v8046_v27  ;;  %v8047_v46 = vadd.f32 %v9529_v42, %v15616_v9  ;;  %v7933_v13 = vpop.f32.mrb[27].mxu1 }
 0x74b   :  { %v8080_v19 = vadd.f32 %v10293_v52, %v8044_v57  ;;  %v8045_v48 = vadd.f32 %v15616_v9, %v7933_v13 }
 0x74c   :  { %v8118_v38 = vmax.f32 %v8082_v39, 0.0  ;;  %v8083_v35 = vadd.f32 %v10294_v50, %v8047_v46 }
 0x74d   :  { %v8116_v49 = vmax.f32 %v8080_v19, 0.0  ;;  %v8081_v14 = vadd.f32 %v10295_v60, %v8045_v48 }
 0x74e   :  { %8154 = vst.msk [vmem:[%s15912_s6 + $0xd0] sm:$0xff] %vm686_vm1, %v8118_v38  ;;  %v8119_v51 = vmax.f32 %v8083_v35, 0.0 }
 0x74f   :  { %8152 = vst.msk [vmem:[%s15912_s6 + $0xc0] sm:$0xff] %vm686_vm1, %v8116_v49  ;;  %v8117_v8 = vmax.f32 %v8081_v14, 0.0  ;;  %v9532_v63 = vpop.f32.mrb[28].mxu1 }
 0x750   :  { %8155 = vst.msk [vmem:[%s15912_s6 + $0xd8] sm:$0xff] %vm686_vm1, %v8119_v51  ;;  %v8050_v2 = vadd.f32 %v9532_v63, %v15616_v9  ;;  %v7946_v29 = vpop.f32.mrb[29].mxu1 }
 0x751   :  { %8153 = vst.msk [vmem:[%s15912_s6 + $0xc8] sm:$0xff] %vm686_vm1, %v8117_v8  ;;  %v8048_v5 = vadd.f32 %v15616_v9, %v7946_v29  ;;  %v9533_v0 = vpop.f32.mrb[30].mxu1 }
 0x752   :  { %v8086_v53 = vadd.f32 %v10296_v4, %v8050_v2  ;;  %v8051_v18 = vadd.f32 %v9533_v0, %v15616_v9  ;;  %v7949_v20 = vpop.f32.mrb[31].mxu1 }
 0x753   :  { %v8084_v43 = vadd.f32 %v10297_v3, %v8048_v5  ;;  %v8049_v33 = vadd.f32 %v15616_v9, %v7949_v20 }
 0x754   :  { %v8122_v26 = vmax.f32 %v8086_v53, 0.0  ;;  %v8087_v59 = vadd.f32 %v10298_v11, %v8051_v18 }
 0x755   :  { %v8120_v17 = vmax.f32 %v8084_v43, 0.0  ;;  %v8085_v16 = vadd.f32 %v10299_v55, %v8049_v33 }
 0x756   :  { %8158 = vst.msk [vmem:[%s15912_s6 + $0xf0] sm:$0xff] %vm686_vm1, %v8122_v26  ;;  %v8123_v21 = vmax.f32 %v8087_v59, 0.0 }
 0x757   :  { %8156 = vst.msk [vmem:[%s15912_s6 + $0xe0] sm:$0xff] %vm686_vm1, %v8120_v17  ;;  %v8121_v10 = vmax.f32 %v8085_v16, 0.0  ;;  %v9536_v1 = vpop.f32.mrb[32].mxu1 }
 0x758   :  { %8159 = vst.msk [vmem:[%s15912_s6 + $0xf8] sm:$0xff] %vm686_vm1, %v8123_v21  ;;  %v8054_v24 = vadd.f32 %v9536_v1, %v15616_v9  ;;  %v7962_v23 = vpop.f32.mrb[33].mxu1 }
 0x759   :  { %8157 = vst.msk [vmem:[%s15912_s6 + $0xe8] sm:$0xff] %vm686_vm1, %v8121_v10  ;;  %v8052_v6 = vadd.f32 %v15616_v9, %v7962_v23  ;;  %v9537_v36 = vpop.f32.mrb[34].mxu1 }
 0x75a   :  { %v8090_v45 = vadd.f32 %v10300_v58, %v8054_v24  ;;  %v8055_v28 = vadd.f32 %v9537_v36, %v15616_v9  ;;  %v7965_v54 = vpop.f32.mrb[35].mxu1 }
 0x75b   :  { %v8088_v15 = vadd.f32 %v10301_v41, %v8052_v6  ;;  %v8053_v12 = vadd.f32 %v15616_v9, %v7965_v54 }
 0x75c   :  { %v8126_v7 = vmax.f32 %v8090_v45, 0.0  ;;  %v8091_v47 = vadd.f32 %v10302_v37, %v8055_v28 }
 0x75d   :  { %v8124_v61 = vmax.f32 %v8088_v15, 0.0  ;;  %v8089_v62 = vadd.f32 %v10303_v44, %v8053_v12 }
 0x75e   :  { %8162 = vst.msk [vmem:[%s15912_s6 + $0x110] sm:$0xff] %vm686_vm1, %v8126_v7  ;;  %v8127_v34 = vmax.f32 %v8091_v47, 0.0 }
 0x75f   :  { %8160 = vst.msk [vmem:[%s15912_s6 + $0x100] sm:$0xff] %vm686_vm1, %v8124_v61  ;;  %v8125_v9 = vmax.f32 %v8089_v62, 0.0 }
 0x760   :  { %8163 = vst.msk [vmem:[%s15912_s6 + $0x118] sm:$0xff] %vm686_vm1, %v8127_v34 }
 0x761   :  { %8161 = vst.msk [vmem:[%s15912_s6 + $0x108] sm:$0xff] %vm686_vm1, %v8125_v9 }

// kernel: net_forward.7
= control target key start
LH: loop header
LB: loop body
LE: loop exit
PB: predicated region body
PF: predicated region fallthrough
CT: control target
= control target key end

     0   :  { %v1131_v0 = vmov 0   ;;  %vm261_vm0 = vcmask 130048   ;;  %vm846_vm1 = vcmask 261120   ;;  %s1566_s1 = inlined_call_operand.vmem [shape: bf16[400,32], index: 1, kind: input, shape index: {}]   ;;  %s1567_s0 = inlined_call_operand.vmem [shape: bf16[4,32,400], index: 0, kind: input, shape index: {}]   ;;  %s1568_s2 = inlined_call_operand.vmem [shape: f32[1,32], index: 2, kind: input, shape index: {}]   ;;  %s1569_s3 = inlined_call_operand.vmem [shape: f32[32,32], index: 3, kind: output, shape index: {}]  }
   0x1   :  { %317 = vmatprep.subr.bf16.mxu1 %v1131_v0  ;;  %v1156_v1 = vld [vmem:[%s1566_s1 + $0x40] sm:$0xff]   ;;  %v1173_v4 = vld [vmem:[%s1566_s1 + $0x48] sm:$0xff]   ;;  %v1191_v7 = vld [vmem:[%s1566_s1 + $0x50] sm:$0xff]  }
   0x2   :  { %v1161_v2 = vld [vmem:[%s1566_s1 + $0x80] sm:$0xff]   ;;  %945 = vmatprep.subr.bf16.mxu0 %v1156_v1  ;;  %v1180_v5 = vld [vmem:[%s1566_s1 + $0x88] sm:$0xff]   ;;  %v1197_v8 = vld [vmem:[%s1566_s1 + $0x90] sm:$0xff]  }
   0x3   :  { %v1167_v3 = vld [vmem:[%s1566_s1] sm:$0xff]   ;;  %318 = vmatpush1.bf16.msra.mxu1 %v1161_v2  ;;  %v1186_v6 = vld [vmem:[%s1566_s1 + $0x8] sm:$0xff]   ;;  %v1204_v9 = vld [vmem:[%s1566_s1 + $0x10] sm:$0xff]  }
   0x4   :  { %946 = vmatpush3.bf16.msra.mxu0 %v1167_v3  ;;  %319 = vmatprep.subr.bf16.mxu1 %v1131_v0  ;;  %v1210_v10 = vld [vmem:[%s1566_s1 + $0x58] sm:$0xff]   ;;  %v1229_v13 = vld [vmem:[%s1566_s1 + $0x60] sm:$0xff]   ;;  %v1248_v16 = vld [vmem:[%s1566_s1 + $0x68] sm:$0xff]  }
   0x5   :  { %947 = vmatprep.subr.bf16.mxu0 %v1173_v4  ;;  %v1216_v11 = vld [vmem:[%s1566_s1 + $0x98] sm:$0xff]   ;;  %v1235_v14 = vld [vmem:[%s1566_s1 + $0xa0] sm:$0xff]   ;;  %v1254_v17 = vld [vmem:[%s1566_s1 + $0xa8] sm:$0xff]  }
   0x6   :  { %v1223_v12 = vld [vmem:[%s1566_s1 + $0x18] sm:$0xff]   ;;  %v1242_v15 = vld [vmem:[%s1566_s1 + $0x20] sm:$0xff]   ;;  %v1261_v18 = vld [vmem:[%s1566_s1 + $0x28] sm:$0xff]  }
   0x7   :  { %320 = vmatpush1.bf16.msra.mxu1 %v1180_v5  ;;  %v1267_v19 = vld [vmem:[%s1566_s1 + $0x70] sm:$0xff]   ;;  %v1285_v22 = vld [vmem:[%s1566_s1 + $0x78] sm:$0xff]   ;;  %v1316_v28 = vld [vmem:[%s1566_s1 + $0xc0] sm:$0xff]  }
   0x8   :  { %948 = vmatpush3.bf16.msra.mxu0 %v1186_v6  ;;  %321 = vmatprep.subr.bf16.mxu1 %v1131_v0  ;;  %v1272_v20 = vld [vmem:[%s1566_s1 + $0xb0] sm:$0xff]   ;;  %v1295_v24 = vld [vmem:[%s1566_s1 + $0xb8] sm:$0xff]  }
   0x9   :  { %949 = vmatprep.subr.bf16.mxu0 %v1191_v7  ;;  %v1278_v21 = vld [vmem:[%s1566_s1 + $0x30] sm:$0xff]   ;;  %v1088_v25 = vld [vmem:[%s1567_s0 + $0xc] ss:$16 sps:$4 sm:$0xff]   ;;  %v1086_v30 = vld [vmem:[%s1567_s0 + $0x8] ss:$16 sps:$4 sm:$0xff]  }
   0xa   :  { %v1084_v23 = vld [vmem:[%s1567_s0 + $0x4] ss:$16 sps:$4 sm:$0xff]   ;;  %v1305_v26 = vld [vmem:[%s1566_s1 + $0x38] sm:$0xff]   ;;  %888 = vmatprep.mubr.msk.bf16.mxu1 %vm261_vm0, %v1088_v25  ;;  %v1082_v27 = vld [vmem:[%s1567_s0] ss:$16 sps:$4 sm:$0xff]  }
   0xb   :  { %322 = vmatpush1.bf16.msra.mxu1 %v1197_v8  ;;  %300 = vmatprep.mubr.bf16.mxu0 %v1084_v23  ;;  %v1089_v29 = vld [vmem:[%s1567_s0 + $0x24] ss:$16 sps:$4 sm:$0xff]   ;;  %v1092_v31 = vld [vmem:[%s1567_s0 + $0x2c] ss:$16 sps:$4 sm:$0xff]   ;;  %v1091_v32 = vld [vmem:[%s1567_s0 + $0x20] ss:$16 sps:$4 sm:$0xff]  }
   0xc   :  { %950 = vmatpush3.bf16.msra.mxu0 %v1204_v9  ;;  %323 = vmatprep.subr.bf16.mxu1 %v1131_v0  ;;  %v1097_v33 = vld [vmem:[%s1567_s0 + $0x44] ss:$16 sps:$4 sm:$0xff]   ;;  %v1094_v34 = vld [vmem:[%s1567_s0 + $0x28] ss:$16 sps:$4 sm:$0xff]   ;;  %v1100_v35 = vld [vmem:[%s1567_s0 + $0x4c] ss:$16 sps:$4 sm:$0xff]  }
   0xd   :  { %951 = vmatprep.subr.bf16.mxu0 %v1210_v10  ;;  %v1095_v36 = vld [vmem:[%s1567_s0 + $0x40] ss:$16 sps:$4 sm:$0xff]   ;;  %v1101_v37 = vld [vmem:[%s1567_s0 + $0x64] ss:$16 sps:$4 sm:$0xff]   ;;  %v1098_v38 = vld [vmem:[%s1567_s0 + $0x48] ss:$16 sps:$4 sm:$0xff]  }
   0xe   :  { %v1103_v39 = vld [vmem:[%s1567_s0 + $0x60] ss:$16 sps:$4 sm:$0xff]   ;;  %v1104_v40 = vld [vmem:[%s1567_s0 + $0x6c] ss:$16 sps:$4 sm:$0xff]   ;;  %v1109_v41 = vld [vmem:[%s1567_s0 + $0x84] ss:$16 sps:$4 sm:$0xff]  }
   0xf   :  { %324 = vmatpush1.bf16.msra.mxu1 %v1216_v11  ;;  %v1106_v42 = vld [vmem:[%s1567_s0 + $0x68] ss:$16 sps:$4 sm:$0xff]   ;;  %v1112_v43 = vld [vmem:[%s1567_s0 + $0x8c] ss:$16 sps:$4 sm:$0xff]   ;;  %v1107_v44 = vld [vmem:[%s1567_s0 + $0x80] ss:$16 sps:$4 sm:$0xff]  }
  0x10   :  { %952 = vmatpush3.bf16.msra.mxu0 %v1223_v12  ;;  %325 = vmatprep.subr.bf16.mxu1 %v1131_v0  ;;  %v1113_v45 = vld [vmem:[%s1567_s0 + $0xa4] ss:$16 sps:$4 sm:$0xff]   ;;  %v1115_v46 = vld [vmem:[%s1567_s0 + $0xa0] ss:$16 sps:$4 sm:$0xff]   ;;  %v1110_v48 = vld [vmem:[%s1567_s0 + $0x88] ss:$16 sps:$4 sm:$0xff]  }
  0x11   :  { %953 = vmatprep.subr.bf16.mxu0 %v1229_v13  ;;  %v1121_v47 = vld [vmem:[%s1567_s0 + $0xc4] ss:$16 sps:$4 sm:$0xff]   ;;  %v1116_v49 = vld [vmem:[%s1567_s0 + $0xac] ss:$16 sps:$4 sm:$0xff]   ;;  %v1118_v50 = vld [vmem:[%s1567_s0 + $0xa8] ss:$16 sps:$4 sm:$0xff]  }
  0x12   :  { %v1124_v51 = vld [vmem:[%s1567_s0 + $0xcc] ss:$16 sps:$4 sm:$0xff]   ;;  %v1119_v52 = vld [vmem:[%s1567_s0 + $0xc0] ss:$16 sps:$4 sm:$0xff]   ;;  %v1125_v53 = vld [vmem:[%s1567_s0 + $0xe4] ss:$16 sps:$4 sm:$0xff]  }
  0x13   :  { %326 = vmatpush1.bf16.msra.mxu1 %v1235_v14  ;;  %v1127_v54 = vld [vmem:[%s1567_s0 + $0xe0] ss:$16 sps:$4 sm:$0xff]   ;;  %v1122_v55 = vld [vmem:[%s1567_s0 + $0xc8] ss:$16 sps:$4 sm:$0xff]   ;;  %v1128_v56 = vld [vmem:[%s1567_s0 + $0xec] ss:$16 sps:$4 sm:$0xff]  }
  0x14   :  { %954 = vmatpush3.bf16.msra.mxu0 %v1242_v15  ;;  %327 = vmatprep.subr.bf16.mxu1 %v1131_v0  ;;  %v1130_v57 = vld [vmem:[%s1567_s0 + $0xe8] ss:$16 sps:$4 sm:$0xff]  }
  0x15   :  { %955 = vmatprep.subr.bf16.mxu0 %v1248_v16 }
  0x17   :  { %328 = vmatpush1.bf16.msra.mxu1 %v1254_v17 }
  0x18   :  { %956 = vmatpush3.bf16.msra.mxu0 %v1261_v18  ;;  %329 = vmatprep.subr.bf16.mxu1 %v1131_v0 }
  0x19   :  { %957 = vmatprep.subr.bf16.mxu0 %v1267_v19 }
  0x1b   :  { %330 = vmatpush1.bf16.msra.mxu1 %v1272_v20 }
  0x1c   :  { %958 = vmatpush3.bf16.msra.mxu0 %v1278_v21  ;;  %331 = vmatprep.subr.bf16.mxu1 %v1131_v0 }
  0x1d   :  { %959 = vmatprep.subr.bf16.mxu0 %v1285_v22 }
  0x1f   :  { %332 = vmatpush1.bf16.msra.mxu1 %v1295_v24 }
  0x20   :  { %960 = vmatpush3.bf16.msra.mxu0 %v1305_v26  ;;  %333 = vmatprep.subr.bf16.mxu1 %v1131_v0 }
  0x21   :  { %973 = vmatprep.subr.bf16.mxu0 %v1156_v1 }
  0x23   :  { %301 = vmatmul.mubr.bf16.vlgmr.msra.gmra.mrb[0].mxu0 %v1082_v27  ;;  %334 = vmatpush1.bf16.msra.mxu1 %v1316_v28 }
  0x24   :  { %468 = vmatprep.subr.bf16.mxu1 %v1131_v0  ;;  %974 = vmatpush3.bf16.msra.mxu0 %v1167_v3 }
  0x25   :  { %975 = vmatprep.subr.bf16.mxu0 %v1173_v4  ;;  %308 = vmatprep.mubr.bf16.mxu0 %v1089_v29 }
  0x26   :  { %350 = vmatmul.mubr.bf16.vlgmr.msra.gmra.mrb[0].mxu1 %v1086_v30 }
  0x27   :  { %469 = vmatpush1.bf16.msra.mxu1 %v1161_v2  ;;  %889 = vmatprep.mubr.msk.bf16.mxu1 %vm261_vm0, %v1092_v31 }
  0x28   :  { %470 = vmatprep.subr.bf16.mxu1 %v1131_v0  ;;  %976 = vmatpush3.bf16.msra.mxu0 %v1186_v6 }
  0x29   :  { %977 = vmatprep.subr.bf16.mxu0 %v1191_v7 }
  0x2b   :  { %471 = vmatpush1.bf16.msra.mxu1 %v1180_v5  ;;  %309 = vmatmul.mubr.bf16.gmra.mrb[4].mxu0 %v1091_v32 }
  0x2c   :  { %472 = vmatprep.subr.bf16.mxu1 %v1131_v0  ;;  %978 = vmatpush3.bf16.msra.mxu0 %v1204_v9 }
  0x2d   :  { %979 = vmatprep.subr.bf16.mxu0 %v1210_v10  ;;  %451 = vmatprep.mubr.bf16.mxu0 %v1097_v33 }
  0x2e   :  { %358 = vmatmul.mubr.bf16.gmra.mrb[4].mxu1 %v1094_v34 }
  0x2f   :  { %473 = vmatpush1.bf16.msra.mxu1 %v1197_v8  ;;  %906 = vmatprep.mubr.msk.bf16.mxu1 %vm261_vm0, %v1100_v35 }
  0x30   :  { %474 = vmatprep.subr.bf16.mxu1 %v1131_v0  ;;  %980 = vmatpush3.bf16.msra.mxu0 %v1223_v12 }
  0x31   :  { %981 = vmatprep.subr.bf16.mxu0 %v1229_v13 }
  0x33   :  { %475 = vmatpush1.bf16.msra.mxu1 %v1216_v11 }
  0x34   :  { %476 = vmatprep.subr.bf16.mxu1 %v1131_v0  ;;  %982 = vmatpush3.bf16.msra.mxu0 %v1242_v15 }
  0x35   :  { %983 = vmatprep.subr.bf16.mxu0 %v1248_v16 }
  0x37   :  { %477 = vmatpush1.bf16.msra.mxu1 %v1235_v14 }
  0x38   :  { %478 = vmatprep.subr.bf16.mxu1 %v1131_v0  ;;  %984 = vmatpush3.bf16.msra.mxu0 %v1261_v18 }
  0x39   :  { %985 = vmatprep.subr.bf16.mxu0 %v1267_v19 }
  0x3b   :  { %479 = vmatpush1.bf16.msra.mxu1 %v1254_v17 }
  0x3c   :  { %480 = vmatprep.subr.bf16.mxu1 %v1131_v0  ;;  %986 = vmatpush3.bf16.msra.mxu0 %v1278_v21 }
  0x3d   :  { %987 = vmatprep.subr.bf16.mxu0 %v1285_v22 }
  0x3f   :  { %481 = vmatpush1.bf16.msra.mxu1 %v1272_v20 }
  0x40   :  { %482 = vmatprep.subr.bf16.mxu1 %v1131_v0  ;;  %988 = vmatpush3.bf16.msra.mxu0 %v1305_v26 }
  0x41   :  { %1001 = vmatprep.subr.bf16.mxu0 %v1156_v1 }
  0x43   :  { %483 = vmatpush1.bf16.msra.mxu1 %v1295_v24  ;;  %452 = vmatmul.mubr.bf16.vlgmr.msra.gmra.mrb[8].mxu0 %v1095_v36 }
  0x44   :  { %484 = vmatprep.subr.bf16.mxu1 %v1131_v0  ;;  %1002 = vmatpush3.bf16.msra.mxu0 %v1167_v3 }
  0x45   :  { %459 = vmatprep.mubr.bf16.mxu0 %v1101_v37  ;;  %1003 = vmatprep.subr.bf16.mxu0 %v1173_v4 }
  0x47   :  { %485 = vmatpush1.bf16.msra.mxu1 %v1316_v28 }
  0x48   :  { %619 = vmatprep.subr.bf16.mxu1 %v1131_v0  ;;  %1004 = vmatpush3.bf16.msra.mxu0 %v1186_v6 }
  0x49   :  { %1005 = vmatprep.subr.bf16.mxu0 %v1191_v7 }
  0x4a   :  { %501 = vmatmul.mubr.bf16.vlgmr.msra.gmra.mrb[8].mxu1 %v1098_v38 }
  0x4b   :  { %620 = vmatpush1.bf16.msra.mxu1 %v1161_v2  ;;  %460 = vmatmul.mubr.bf16.gmra.mrb[12].mxu0 %v1103_v39 }
  0x4c   :  { %621 = vmatprep.subr.bf16.mxu1 %v1131_v0  ;;  %907 = vmatprep.mubr.msk.bf16.mxu1 %vm261_vm0, %v1104_v40 }
  0x4d   :  { %1006 = vmatpush3.bf16.msra.mxu0 %v1204_v9  ;;  %602 = vmatprep.mubr.bf16.mxu0 %v1109_v41 }
  0x4e   :  { %1007 = vmatprep.subr.bf16.mxu0 %v1210_v10 }
  0x4f   :  { %622 = vmatpush1.bf16.msra.mxu1 %v1180_v5 }
  0x50   :  { %623 = vmatprep.subr.bf16.mxu1 %v1131_v0 }
  0x51   :  { %1008 = vmatpush3.bf16.msra.mxu0 %v1223_v12 }
  0x52   :  { %509 = vmatmul.mubr.bf16.gmra.mrb[12].mxu1 %v1106_v42  ;;  %1009 = vmatprep.subr.bf16.mxu0 %v1229_v13 }
  0x53   :  { %624 = vmatpush1.bf16.msra.mxu1 %v1197_v8  ;;  %924 = vmatprep.mubr.msk.bf16.mxu1 %vm261_vm0, %v1112_v43 }
  0x54   :  { %625 = vmatprep.subr.bf16.mxu1 %v1131_v0 }
  0x55   :  { %1010 = vmatpush3.bf16.msra.mxu0 %v1242_v15 }
  0x56   :  { %1011 = vmatprep.subr.bf16.mxu0 %v1248_v16 }
  0x57   :  { %626 = vmatpush1.bf16.msra.mxu1 %v1216_v11 }
  0x58   :  { %627 = vmatprep.subr.bf16.mxu1 %v1131_v0 }
  0x59   :  { %1012 = vmatpush3.bf16.msra.mxu0 %v1261_v18 }
  0x5a   :  { %1013 = vmatprep.subr.bf16.mxu0 %v1267_v19 }
  0x5b   :  { %628 = vmatpush1.bf16.msra.mxu1 %v1235_v14 }
  0x5c   :  { %629 = vmatprep.subr.bf16.mxu1 %v1131_v0 }
  0x5d   :  { %1014 = vmatpush3.bf16.msra.mxu0 %v1278_v21 }
  0x5e   :  { %1015 = vmatprep.subr.bf16.mxu0 %v1285_v22 }
  0x5f   :  { %630 = vmatpush1.bf16.msra.mxu1 %v1254_v17 }
  0x60   :  { %631 = vmatprep.subr.bf16.mxu1 %v1131_v0 }
  0x61   :  { %1016 = vmatpush3.bf16.msra.mxu0 %v1305_v26 }
  0x62   :  { %1029 = vmatprep.subr.bf16.mxu0 %v1156_v1 }
  0x63   :  { %632 = vmatpush1.bf16.msra.mxu1 %v1272_v20 }
  0x64   :  { %633 = vmatprep.subr.bf16.mxu1 %v1131_v0  ;;  %603 = vmatmul.mubr.bf16.vlgmr.msra.gmra.mrb[16].mxu0 %v1107_v44 }
  0x65   :  { %1030 = vmatpush3.bf16.msra.mxu0 %v1167_v3  ;;  %610 = vmatprep.mubr.bf16.mxu0 %v1113_v45 }
  0x66   :  { %1031 = vmatprep.subr.bf16.mxu0 %v1173_v4 }
  0x67   :  { %634 = vmatpush1.bf16.msra.mxu1 %v1295_v24 }
  0x68   :  { %635 = vmatprep.subr.bf16.mxu1 %v1131_v0 }
  0x69   :  { %1032 = vmatpush3.bf16.msra.mxu0 %v1186_v6 }
  0x6a   :  { %1033 = vmatprep.subr.bf16.mxu0 %v1191_v7 }
  0x6b   :  { %636 = vmatpush1.bf16.msra.mxu1 %v1316_v28 }
  0x6c   :  { %770 = vmatprep.subr.bf16.mxu1 %v1131_v0  ;;  %611 = vmatmul.mubr.bf16.gmra.mrb[20].mxu0 %v1115_v46 }
  0x6d   :  { %1034 = vmatpush3.bf16.msra.mxu0 %v1204_v9  ;;  %753 = vmatprep.mubr.bf16.mxu0 %v1121_v47 }
  0x6e   :  { %652 = vmatmul.mubr.bf16.vlgmr.msra.gmra.mrb[16].mxu1 %v1110_v48  ;;  %1035 = vmatprep.subr.bf16.mxu0 %v1210_v10 }
  0x6f   :  { %771 = vmatpush1.bf16.msra.mxu1 %v1161_v2  ;;  %925 = vmatprep.mubr.msk.bf16.mxu1 %vm261_vm0, %v1116_v49 }
  0x70   :  { %772 = vmatprep.subr.bf16.mxu1 %v1131_v0 }
  0x71   :  { %1036 = vmatpush3.bf16.msra.mxu0 %v1223_v12 }
  0x72   :  { %1037 = vmatprep.subr.bf16.mxu0 %v1229_v13 }
  0x73   :  { %773 = vmatpush1.bf16.msra.mxu1 %v1180_v5 }
  0x74   :  { %774 = vmatprep.subr.bf16.mxu1 %v1131_v0 }
  0x75   :  { %1038 = vmatpush3.bf16.msra.mxu0 %v1242_v15 }
  0x76   :  { %1039 = vmatprep.subr.bf16.mxu0 %v1248_v16  ;;  %660 = vmatmul.mubr.bf16.gmra.mrb[20].mxu1 %v1118_v50 }
  0x77   :  { %775 = vmatpush1.bf16.msra.mxu1 %v1197_v8  ;;  %942 = vmatprep.mubr.msk.bf16.mxu1 %vm261_vm0, %v1124_v51 }
  0x78   :  { %776 = vmatprep.subr.bf16.mxu1 %v1131_v0 }
  0x79   :  { %1040 = vmatpush3.bf16.msra.mxu0 %v1261_v18 }
  0x7a   :  { %1041 = vmatprep.subr.bf16.mxu0 %v1267_v19 }
  0x7b   :  { %777 = vmatpush1.bf16.msra.mxu1 %v1216_v11 }
  0x7c   :  { %778 = vmatprep.subr.bf16.mxu1 %v1131_v0 }
  0x7d   :  { %1042 = vmatpush3.bf16.msra.mxu0 %v1278_v21 }
  0x7e   :  { %1043 = vmatprep.subr.bf16.mxu0 %v1285_v22 }
  0x7f   :  { %779 = vmatpush1.bf16.msra.mxu1 %v1235_v14 }
  0x80   :  { %780 = vmatprep.subr.bf16.mxu1 %v1131_v0 }
  0x81   :  { %1044 = vmatpush3.bf16.msra.mxu0 %v1305_v26 }
  0x83   :  { %781 = vmatpush1.bf16.msra.mxu1 %v1254_v17 }
  0x84   :  { %782 = vmatprep.subr.bf16.mxu1 %v1131_v0  ;;  %754 = vmatmul.mubr.bf16.vlgmr.msra.gmra.mrb[24].mxu0 %v1119_v52 }
  0x85   :  { %761 = vmatprep.mubr.bf16.mxu0 %v1125_v53 }
  0x87   :  { %783 = vmatpush1.bf16.msra.mxu1 %v1272_v20 }
  0x88   :  { %784 = vmatprep.subr.bf16.mxu1 %v1131_v0 }
  0x8b   :  { %785 = vmatpush1.bf16.msra.mxu1 %v1295_v24 }
  0x8c   :  { %786 = vmatprep.subr.bf16.mxu1 %v1131_v0  ;;  %762 = vmatmul.mubr.bf16.gmra.mrb[28].mxu0 %v1127_v54 }
  0x8f   :  { %787 = vmatpush1.bf16.msra.mxu1 %v1316_v28 }
  0x92   :  { %803 = vmatmul.mubr.bf16.vlgmr.msra.gmra.mrb[24].mxu1 %v1122_v55 }
  0x93   :  { %943 = vmatprep.mubr.msk.bf16.mxu1 %vm261_vm0, %v1128_v56 }
  0x9a   :  { %811 = vmatmul.mubr.bf16.gmra.mrb[28].mxu1 %v1130_v57 }
  0xf6   :  { %v961_v58 = vpop.f32.mrb[0].mxu0 }
  0xf7   :  { %v962_v59 = vpop.f32.mrb[1].mxu0 }
  0xf8   :  { %v963_v60 = vadd.f32 %v962_v59, %v961_v58  ;;  %v964_v61 = vpop.f32.mrb[2].mxu0 }
  0xf9   :  { %v965_v62 = vpop.f32.mrb[3].mxu0  ;;  %v351_v63 = vpop.f32.mrb[0].mxu1 }
  0xfa   :  { %v966_v0 = vadd.f32 %v965_v62, %v964_v61  ;;  %v1517_v1 = vadd.f32 %v963_v60, %v351_v63  ;;  %v353_v2 = vpop.f32.mrb[1].mxu1 }
  0xfb   :  { %v354_v3 = vpop.f32.mrb[2].mxu1 }
  0xfc   :  { %v1519_v4 = vadd.f32 %v966_v0, %v354_v3  ;;  %v356_v5 = vpop.f32.mrb[3].mxu1 }
  0xfe   :  { %v967_v6 = vpop.f32.mrb[4].mxu0 }
  0xff   :  { %v968_v7 = vpop.f32.mrb[5].mxu0 }
 0x100   :  { %v969_v8 = vadd.f32 %v968_v7, %v967_v6  ;;  %v970_v9 = vpop.f32.mrb[6].mxu0 }
 0x101   :  { %v359_v10 = vpop.f32.mrb[4].mxu1  ;;  %v971_v11 = vpop.f32.mrb[7].mxu0 }
 0x102   :  { %v1521_v12 = vadd.f32 %v969_v8, %v359_v10  ;;  %v972_v13 = vadd.f32 %v971_v11, %v970_v9  ;;  %v361_v14 = vpop.f32.mrb[5].mxu1 }
 0x103   :  { %v362_v15 = vpop.f32.mrb[6].mxu1 }
 0x104   :  { %v1523_v16 = vadd.f32 %v972_v13, %v362_v15  ;;  %v364_v17 = vpop.f32.mrb[7].mxu1 }
 0x116   :  { %v989_v18 = vpop.f32.mrb[8].mxu0 }
 0x117   :  { %v990_v19 = vpop.f32.mrb[9].mxu0 }
 0x118   :  { %v991_v20 = vadd.f32 %v990_v19, %v989_v18  ;;  %v992_v21 = vpop.f32.mrb[10].mxu0 }
 0x119   :  { %v993_v22 = vpop.f32.mrb[11].mxu0 }
 0x11a   :  { %v994_v23 = vadd.f32 %v993_v22, %v992_v21 }
 0x11d   :  { %v502_v24 = vpop.f32.mrb[8].mxu1 }
 0x11e   :  { %v1525_v25 = vadd.f32 %v991_v20, %v502_v24  ;;  %v504_v26 = vpop.f32.mrb[9].mxu1  ;;  %v995_v27 = vpop.f32.mrb[12].mxu0 }
 0x11f   :  { %v505_v28 = vpop.f32.mrb[10].mxu1  ;;  %v996_v29 = vpop.f32.mrb[13].mxu0 }
 0x120   :  { %v819_v30 = vmax.f32 %v1517_v1, %v1525_v25  ;;  %v1529_v31 = vadd.f32 %v994_v23, %v505_v28  ;;  %v507_v32 = vpop.f32.mrb[11].mxu1  ;;  %v997_v33 = vadd.f32 %v996_v29, %v995_v27  ;;  %v998_v34 = vpop.f32.mrb[14].mxu0  ;;  %v944_v27 = vld [vmem:[%s1568_s2] ss:$0 sm:$0xff] }
 0x121   :  { %v999_v35 = vpop.f32.mrb[15].mxu0 }
 0x122   :  { %v820_v36 = vmax.f32 %v1519_v4, %v1529_v31  ;;  %v1000_v37 = vadd.f32 %v999_v35, %v998_v34 }
 0x125   :  { %v510_v38 = vpop.f32.mrb[12].mxu1 }
 0x126   :  { %v1533_v39 = vadd.f32 %v997_v33, %v510_v38  ;;  %v512_v40 = vpop.f32.mrb[13].mxu1 }
 0x127   :  { %v513_v41 = vpop.f32.mrb[14].mxu1 }
 0x128   :  { %v821_v42 = vmax.f32 %v1521_v12, %v1533_v39  ;;  %v1537_v43 = vadd.f32 %v1000_v37, %v513_v41  ;;  %v515_v44 = vpop.f32.mrb[15].mxu1 }
 0x12a   :  { %v822_v45 = vmax.f32 %v1523_v16, %v1537_v43 }
 0x137   :  { %v1017_v46 = vpop.f32.mrb[16].mxu0 }
 0x138   :  { %v1018_v47 = vpop.f32.mrb[17].mxu0 }
 0x139   :  { %v1019_v48 = vadd.f32 %v1018_v47, %v1017_v46  ;;  %v1020_v49 = vpop.f32.mrb[18].mxu0 }
 0x13a   :  { %v1021_v50 = vpop.f32.mrb[19].mxu0 }
 0x13b   :  { %v1022_v51 = vadd.f32 %v1021_v50, %v1020_v49 }
 0x13f   :  { %v1023_v52 = vpop.f32.mrb[20].mxu0 }
 0x140   :  { %v1024_v53 = vpop.f32.mrb[21].mxu0 }
 0x141   :  { %v653_v54 = vpop.f32.mrb[16].mxu1  ;;  %v1025_v55 = vadd.f32 %v1024_v53, %v1023_v52  ;;  %v1026_v56 = vpop.f32.mrb[22].mxu0 }
 0x142   :  { %v654_v57 = vadd.f32 %v1019_v48, %v653_v54  ;;  %v655_v58 = vpop.f32.mrb[17].mxu1  ;;  %v1027_v59 = vpop.f32.mrb[23].mxu0 }
 0x143   :  { %v656_v60 = vpop.f32.mrb[18].mxu1  ;;  %v1028_v61 = vadd.f32 %v1027_v59, %v1026_v56 }
 0x144   :  { %v657_v62 = vadd.f32 %v1022_v51, %v656_v60  ;;  %v658_v63 = vpop.f32.mrb[19].mxu1 }
 0x149   :  { %v661_v0 = vpop.f32.mrb[20].mxu1 }
 0x14a   :  { %v662_v1 = vadd.f32 %v1025_v55, %v661_v0  ;;  %v663_v2 = vpop.f32.mrb[21].mxu1 }
 0x14b   :  { %v664_v3 = vpop.f32.mrb[22].mxu1 }
 0x14c   :  { %v665_v4 = vadd.f32 %v1028_v61, %v664_v3  ;;  %v666_v5 = vpop.f32.mrb[23].mxu1 }
 0x157   :  { %v1045_v6 = vpop.f32.mrb[24].mxu0 }
 0x158   :  { %v1046_v7 = vpop.f32.mrb[25].mxu0 }
 0x159   :  { %v1047_v8 = vadd.f32 %v1046_v7, %v1045_v6  ;;  %v1048_v9 = vpop.f32.mrb[26].mxu0 }
 0x15a   :  { %v1049_v10 = vpop.f32.mrb[27].mxu0 }
 0x15b   :  { %v1050_v11 = vadd.f32 %v1049_v10, %v1048_v9 }
 0x15f   :  { %v1051_v13 = vpop.f32.mrb[28].mxu0 }
 0x160   :  { %v1052_v14 = vpop.f32.mrb[29].mxu0 }
 0x161   :  { %v1053_v15 = vadd.f32 %v1052_v14, %v1051_v13  ;;  %v1054_v17 = vpop.f32.mrb[30].mxu0 }
 0x162   :  { %v1055_v18 = vpop.f32.mrb[31].mxu0 }
 0x163   :  { %v1056_v19 = vadd.f32 %v1055_v18, %v1054_v17 }
 0x165   :  { %v804_v20 = vpop.f32.mrb[24].mxu1 }
 0x166   :  { %v805_v21 = vadd.f32 %v1047_v8, %v804_v20  ;;  %v806_v22 = vpop.f32.mrb[25].mxu1 }
 0x167   :  { %v807_v23 = vpop.f32.mrb[26].mxu1 }
 0x168   :  { %v823_v24 = vmax.f32 %v654_v57, %v805_v21  ;;  %v808_v25 = vadd.f32 %v1050_v11, %v807_v23  ;;  %v809_v26 = vpop.f32.mrb[27].mxu1 }
 0x16a   :  { %v827_v28 = vmax.f32 %v819_v30, %v823_v24  ;;  %v824_v29 = vmax.f32 %v657_v62, %v808_v25 }
 0x16c   :  { %v838_v31 = vadd.f32 %v944_v27, %v827_v28  ;;  %v828_v32 = vmax.f32 %v820_v36, %v824_v29 }
 0x16d   :  { %v812_v33 = vpop.f32.mrb[28].mxu1 }
 0x16e   :  { %v842_v34 = vmax.f32 %v838_v31, 0.0  ;;  %v839_v35 = vadd.f32 %v944_v27, %v828_v32  ;;  %v813_v37 = vadd.f32 %v1053_v15, %v812_v33  ;;  %v814_v38 = vpop.f32.mrb[29].mxu1 }
 0x16f   :  { %v815_v40 = vpop.f32.mrb[30].mxu1 }
 0x170   :  { %847 = vst.msk [vmem:[%s1569_s3] sm:$0xff] %vm846_vm1, %v842_v34  ;;  %v843_v41 = vmax.f32 %v839_v35, 0.0  ;;  %v825_v44 = vmax.f32 %v662_v1, %v813_v37  ;;  %v816_v46 = vadd.f32 %v1056_v19, %v815_v40  ;;  %v817_v47 = vpop.f32.mrb[31].mxu1 }
 0x172   :  { %848 = vst.msk [vmem:[%s1569_s3 + $0x8] sm:$0xff] %vm846_vm1, %v843_v41  ;;  %v829_v30 = vmax.f32 %v821_v42, %v825_v44  ;;  %v826_v36 = vmax.f32 %v665_v4, %v816_v46 }
 0x174   :  { %v840_v48 = vadd.f32 %v944_v27, %v829_v30  ;;  %v830_v49 = vmax.f32 %v822_v45, %v826_v36 }
 0x176   :  { %v844_v50 = vmax.f32 %v840_v48, 0.0  ;;  %v841_v51 = vadd.f32 %v944_v27, %v830_v49 }
 0x178   :  { %849 = vst.msk [vmem:[%s1569_s3 + $0x10] sm:$0xff] %vm846_vm1, %v844_v50  ;;  %v845_v52 = vmax.f32 %v841_v51, 0.0 }
 0x17a   :  { %850 = vst.msk [vmem:[%s1569_s3 + $0x18] sm:$0xff] %vm846_vm1, %v845_v52 }

// kernel: net_forward.8
= control target key start
LH: loop header
LB: loop body
LE: loop exit
PB: predicated region body
PF: predicated region fallthrough
CT: control target
= control target key end

     0   :  { %v2169_v0 = vmov 1   ;;  %v2170_v8 = vmov 0   ;;  %v2171_v9 = vmov 2   ;;  %v2172_v10 = vmov 3   ;;  %s2843_s1 = inlined_call_operand.vmem [shape: f32[32,9], index: 1, kind: input, shape index: {}]   ;;  %s2844_s2 = inlined_call_operand.vmem [shape: bf16[288,32], index: 2, kind: input, shape index: {}]   ;;  %s2845_s0 = inlined_call_operand.vmem [shape: f32[32,32], index: 0, kind: input, shape index: {}]   ;;  %s2846_s4 = inlined_call_operand.vmem [shape: bf16[288,32], index: 4, kind: input, shape index: {}]   ;;  %s2847_s3 = inlined_call_operand.vmem [shape: f32[1,32], index: 3, kind: input, shape index: {}]   ;;  %s2848_s5 = inlined_call_operand.vmem [shape: f32[1,32], index: 5, kind: input, shape index: {}]   ;;  %s2849_s6 = inlined_call_operand.vmem [shape: f32[32,32], index: 6, kind: output, shape index: {}]  }
   0x1   :  { %2116 = vset.pattern.permute.xlu1 %v2169_v0  ;;  %2115 = vset.pattern.permute.xlu0 %v2169_v0  ;;  %v2216_v1 = vld [vmem:[%s2843_s1 + $0x10] sm:$0xff]  ;;  %v2221_v2 = vld [vmem:[%s2843_s1] sm:$0xff]  ;;  %v2228_v3 = vld [vmem:[%s2843_s1 + $0x18] sm:$0xff]  ;;  %v2173_v11 = vmov 4   ;;  %v2174_v12 = vmov 5   ;;  %v2175_v13 = vmov 6   ;;  %v36_v16 = vlaneseq }
   0x2   :  { %91 = vperm.xlu1 %2116, %v2216_v1   ;;  %83 = vperm.xlu0 %2115, %v2221_v2   ;;  %v29_v4 = vld [vmem:[%s2843_s1 + $0x8] sm:$0xff]  ;;  %v2133_v5 = vld [vmem:[%s2844_s2 + $0x10] sm:$0xff]   ;;  %v2134_v6 = vld [vmem:[%s2844_s2 + $0x18] sm:$0xff]   ;;  %v2176_v14 = vmov 7   ;;  %v2177_v15 = vmov 8   ;;  %vm120_vm2 = vcmask 261120  }
   0x3   :  { %1898 = vmatprep.subr.bf16.mxu0 %v2133_v5  ;;  %v2243_v7 = vld [vmem:[%s2844_s2] sm:$0xff]   ;;  %v2273_v17 = vld [vmem:[%s2845_s0 + $0x8] sm:$0xff]  ;;  %v2275_v18 = vshrl.u32 %v36_v16, 7  ;;  %v2280_v19 = vld [vmem:[%s2845_s0 + $0x10] sm:$0xff] }
   0x4   :  { %1899 = vmatpush3.bf16.msra.mxu0 %v2133_v5  ;;  %2854 = vst [vmem:[#allocation2_spill] sm:$0xff] %v2273_v17  ;;  %2855 = vst [vmem:[#allocation3_spill] sm:$0xff] %v2280_v19  ;;  %v2285_v20 = vld [vmem:[%s2845_s0] sm:$0xff]  ;;  %v2290_v21 = vld [vmem:[%s2845_s0 + $0x18] sm:$0xff]  ;;  %v74_v22 = vrot.slane %v2273_v17, 4  ;;  %v75_v23 = vrot.slane %v2280_v19, 4 }
   0x5   :  { %1900 = vmatprep.subr.bf16.mxu0 %v2134_v6  ;;  %2856 = vst [vmem:[#allocation4_spill] sm:$0xff] %v2285_v20  ;;  %2857 = vst [vmem:[#allocation5_spill] sm:$0xff] %v2290_v21  ;;  %v73_v24 = vrot.slane %v2285_v20, 4  ;;  %v76_v25 = vrot.slane %v2290_v21, 4  ;;  %vm77_vm0 = vcmp.lt.s32.totalorder %v2275_v18, 4  ;;  %v32_v32 = vrot.slane %v2285_v20, 3 }
   0x6   :  { %95 = vperm.xlu1 %2116, %v2228_v3   ;;  %87 = vperm.xlu0 %2115, %v29_v4   ;;  %v2303_v28 = vsel %vm77_vm0, %v74_v22, %v75_v23  ;;  %v33_v33 = vrot.slane %v2273_v17, 3  ;;  %v35_v34 = vrot.slane %v2290_v21, 3  ;;  %vm38_vm1 = vcmp.lt.s32.totalorder %v2275_v18, 5  ;;  %v2136_v45 = vld [vmem:[%s2844_s2 + $0x8] sm:$0xff]   ;;  %v2137_v55 = vld [vmem:[%s2844_s2 + $0x20] sm:$0xff]  }
   0x7   :  { %v2307_v29 = vsel %vm77_vm0, %v76_v25, %v73_v24  ;;  %v2311_v30 = vsel %vm77_vm0, %v75_v23, %v76_v25  ;;  %v2315_v31 = vsel %vm77_vm0, %v73_v24, %v74_v22  ;;  %v34_v48 = vrot.slane %v2280_v19, 3  ;;  %v2138_v5 = vld [vmem:[%s2844_s2 + $0x28] sm:$0xff]  }
   0x8   :  { %1901 = vmatpush3.bf16.msra.mxu0 %v2134_v6  ;;  %v2335_v42 = vsel %vm38_vm1, %v32_v32, %v33_v33  ;;  %v2339_v43 = vsel %vm38_vm1, %v35_v34, %v32_v32  ;;  %v243_v52 = vrot.slane %v2285_v20, 5  ;;  %v246_v53 = vrot.slane %v2290_v21, 5 }
   0x9   :  { %1906 = vmatprep.subr.bf16.mxu0 %v2243_v7  ;;  %v244_v54 = vrot.slane %v2273_v17, 5  ;;  %v2366_v57 = vsel %vm38_vm1, %v33_v33, %v34_v48  ;;  %v2372_v59 = vsel %vm38_vm1, %v34_v48, %v35_v34  ;;  %vm247_vm3 = vcmp.lt.s32.totalorder %v2275_v18, 3  ;;  %v2141_v48 = vld [vmem:[%s2844_s2 + $0x40] sm:$0xff]  }
   0xa   :  { %2118 = vset.pattern.permute.xlu1 %v2170_v8  ;;  %2117 = vset.pattern.permute.xlu0 %v2170_v8  ;;  %v2382_v62 = vsel %vm247_vm3, %v246_v53, %v243_v52  ;;  %v245_v8 = vrot.slane %v2280_v19, 5  ;;  %vm353_vm4 = vcmp.lt.s32.totalorder %v2275_v18, 1  ;;  %vm556_vm5 = vcmp.lt.s32.totalorder %v2275_v18, 7 }
   0xb   :  { %50 = vperm.xlu1 %2118, %v29_v4   ;;  %45 = vperm.xlu0 %2117, %v2221_v2   ;;  %v2386_v63 = vsel %vm247_vm3, %v243_v52, %v244_v54 }
   0xc   :  { %v2421_v16 = vsel %vm247_vm3, %v244_v54, %v245_v8 }
   0xf   :  { %55 = vperm.xlu1 %2118, %v2216_v1   ;;  %60 = vperm.xlu0 %2117, %v2228_v3  }
  0x13   :  { %2119 = vset.pattern.permute.xlu1 %v2171_v9  ;;  %2120 = vset.pattern.permute.xlu0 %v2171_v9  ;;  %v349_v9 = vrot.slane %v2285_v20, 7 }
  0x14   :  { %253 = vperm.xlu1 %2119, %v2221_v2   ;;  %257 = vperm.xlu0 %2120, %v29_v4  }
  0x18   :  { %261 = vperm.xlu1 %2119, %v2216_v1   ;;  %2121 = vset.pattern.permute.xlu0 %v2172_v10 }
  0x19   :  { %359 = vperm.xlu0 %2121, %v2221_v2  }
  0x1c   :  { %265 = vperm.xlu1 %2119, %v2228_v3  }
  0x1d   :  { %371 = vperm.xlu0 %2121, %v2228_v3  }
  0x20   :  { %2122 = vset.pattern.permute.xlu1 %v2172_v10  ;;  %v352_v10 = vrot.slane %v2290_v21, 7 }
  0x21   :  { %363 = vperm.xlu1 %2122, %v29_v4   ;;  %2124 = vset.pattern.permute.xlu0 %v2173_v11 }
  0x22   :  { %460 = vperm.xlu0 %2124, %v29_v4   ;;  %v357_v22 = vsel %vm353_vm4, %v352_v10, %v349_v9 }
  0x25   :  { %367 = vperm.xlu1 %2122, %v2216_v1  }
  0x26   :  { %2125 = vset.pattern.permute.xlu0 %v2174_v12 }
  0x27   :  { %562 = vperm.xlu0 %2125, %v2221_v2  }
  0x29   :  { %2123 = vset.pattern.permute.xlu1 %v2173_v11  ;;  %v2139_v11 = vld [vmem:[%s2844_s2 + $0x30] sm:$0xff]  }
  0x2a   :  { %456 = vperm.xlu1 %2123, %v2221_v2  }
  0x2b   :  { %574 = vperm.xlu0 %2125, %v2228_v3  }
  0x2e   :  { %464 = vperm.xlu1 %2123, %v2216_v1  }
  0x2f   :  { %2128 = vset.pattern.permute.xlu0 %v2175_v13 }
  0x30   :  { %663 = vperm.xlu0 %2128, %v29_v4  }
  0x32   :  { %468 = vperm.xlu1 %2123, %v2228_v3  }
  0x34   :  { %2129 = vset.pattern.permute.xlu0 %v2176_v14 }
  0x35   :  { %756 = vperm.xlu0 %2129, %v2221_v2  }
  0x36   :  { %2126 = vset.pattern.permute.xlu1 %v2174_v12  ;;  %v2412_v12 = vsel %vm247_vm3, %v245_v8, %v246_v53  ;;  %v2143_v8 = vld [vmem:[%s2844_s2 + $0x50] sm:$0xff]  }
  0x37   :  { %566 = vperm.xlu1 %2126, %v29_v4  }
  0x39   :  { %768 = vperm.xlu0 %2129, %v2228_v3  }
  0x3b   :  { %570 = vperm.xlu1 %2126, %v2216_v1  }
  0x3d   :  { %2132 = vset.pattern.permute.xlu0 %v2177_v15 }
  0x3e   :  { %857 = vperm.xlu0 %2132, %v29_v4  }
  0x3f   :  { %2127 = vset.pattern.permute.xlu1 %v2175_v13  ;;  %v350_v13 = vrot.slane %v2273_v17, 7 }
  0x40   :  { %659 = vperm.xlu1 %2127, %v2221_v2  }
  0x41   :  { %v356_v24 = vsel %vm353_vm4, %v349_v9, %v350_v13 }
  0x44   :  { %667 = vperm.xlu1 %2127, %v2216_v1  }
  0x48   :  { %671 = vperm.xlu1 %2127, %v2228_v3  }
  0x4c   :  { %2130 = vset.pattern.permute.xlu1 %v2176_v14 }
  0x4d   :  { %760 = vperm.xlu1 %2130, %v29_v4  }
  0x51   :  { %764 = vperm.xlu1 %2130, %v2216_v1  }
  0x55   :  { %2131 = vset.pattern.permute.xlu1 %v2177_v15 }
  0x56   :  { %853 = vperm.xlu1 %2131, %v2221_v2  }
  0x5a   :  { %861 = vperm.xlu1 %2131, %v2216_v1  }
  0x5e   :  { %865 = vperm.xlu1 %2131, %v2228_v3  }
  0x81   :  { %v2297_v26 = vpop.permute.xlu1 %91  ;;  %v2299_v27 = vpop.permute.xlu0 %83 }
  0x82   :  { %v100_v37 = vmul.f32 %v2297_v26, %v2303_v28  ;;  %v98_v38 = vmul.f32 %v2299_v27, %v2307_v29 }
  0x85   :  { %v2320_v35 = vpop.permute.xlu1 %95  ;;  %v2322_v36 = vpop.permute.xlu0 %87 }
  0x86   :  { %v101_v39 = vmul.f32 %v2320_v35, %v2311_v30  ;;  %v99_v40 = vmul.f32 %v2322_v36, %v2315_v31 }
  0x88   :  { %v103_v41 = vpack.c.bf16 %v101_v39, %v100_v37  ;;  %v102_v44 = vpack.c.bf16 %v99_v40, %v98_v38  ;;  %v2140_v39 = vld [vmem:[%s2844_s2 + $0x38] sm:$0xff]   ;;  %v351_v40 = vrot.slane %v2280_v19, 7 }
  0x8a   :  { %v2344_v46 = vpop.permute.xlu1 %50  ;;  %v2346_v47 = vpop.permute.xlu0 %45  ;;  %1902 = vmatprep.mubr.msk.bf16.mxu0 %vm120_vm2, %v102_v44 }
  0x8b   :  { %v64_v49 = vmul.f32 %v2344_v46, %v2335_v42  ;;  %v63_v50 = vmul.f32 %v2346_v47, %v2339_v43  ;;  %1903 = vmatmul.mubr.msk.bf16.vlgmr.msra.gmra.mrb[0].mxu0 %vm120_vm2, %v103_v41 }
  0x8c   :  { %1907 = vmatpush3.bf16.msra.mxu0 %v2243_v7 }
  0x8d   :  { %v67_v51 = vpack.c.bf16 %v64_v49, %v63_v50  ;;  %1908 = vmatprep.subr.bf16.mxu0 %v2136_v45  ;;  %v355_v49 = vsel %vm353_vm4, %v350_v13, %v351_v40  ;;  %v354_v50 = vsel %vm353_vm4, %v351_v40, %v352_v10  ;;  %v2144_v40 = vld [vmem:[%s2844_s2 + $0x58] sm:$0xff]  }
  0x8e   :  { %v2362_v56 = vpop.permute.xlu1 %55  ;;  %v2368_v58 = vpop.permute.xlu0 %60 }
  0x8f   :  { %1910 = vmatprep.mubr.msk.bf16.mxu0 %vm120_vm2, %v67_v51  ;;  %v65_v60 = vmul.f32 %v2362_v56, %v2366_v57  ;;  %v66_v61 = vmul.f32 %v2368_v58, %v2372_v59 }
  0x90   :  { %1909 = vmatpush3.bf16.msra.mxu0 %v2136_v45 }
  0x91   :  { %1914 = vmatprep.subr.bf16.mxu0 %v2137_v55  ;;  %v68_v4 = vpack.c.bf16 %v66_v61, %v65_v60 }
  0x93   :  { %v2388_v0 = vpop.permute.xlu1 %253  ;;  %v2390_v1 = vpop.permute.xlu0 %257 }
  0x94   :  { %v268_v2 = vmul.f32 %v2388_v0, %v2382_v62  ;;  %v269_v3 = vmul.f32 %v2390_v1, %v2386_v63 }
  0x96   :  { %v272_v6 = vpack.c.bf16 %v269_v3, %v268_v2  ;;  %v2142_v3 = vld [vmem:[%s2844_s2 + $0x48] sm:$0xff]  }
  0x97   :  { %v2399_v7 = vpop.permute.xlu1 %261  ;;  %1911 = vmatmul.mubr.msk.bf16.vlgmr.msra.gmra.mrb[0].mxu0 %vm120_vm2, %v68_v4  ;;  %v553_v4 = vrot.slane %v2273_v17, 1 }
  0x98   :  { %1915 = vmatpush3.bf16.msra.mxu0 %v2137_v55  ;;  %1918 = vmatprep.mubr.msk.bf16.mxu0 %vm120_vm2, %v272_v6  ;;  %v2417_v15 = vpop.permute.xlu0 %359  ;;  %v270_v25 = vmul.f32 %v2399_v7, %v2421_v16  ;;  %v554_v6 = vrot.slane %v2280_v19, 1 }
  0x99   :  { %1916 = vmatprep.subr.bf16.mxu0 %v2138_v5  ;;  %v374_v32 = vmul.f32 %v2417_v15, %v357_v22 }
  0x9a   :  { %v558_v13 = vsel %vm556_vm5, %v553_v4, %v554_v6 }
  0x9b   :  { %v2415_v14 = vpop.permute.xlu1 %265 }
  0x9c   :  { %1917 = vmatpush3.bf16.msra.mxu0 %v2138_v5  ;;  %v271_v23 = vmul.f32 %v2415_v14, %v2412_v12  ;;  %v2435_v38 = vpop.permute.xlu0 %371  ;;  %v552_v5 = vrot.slane %v2285_v20, 1 }
  0x9d   :  { %1922 = vmatprep.subr.bf16.mxu0 %v2139_v11  ;;  %v377_v53 = vmul.f32 %v2435_v38, %v354_v50  ;;  %v2145_v50 = vld [vmem:[%s2844_s2 + $0x60] sm:$0xff]  }
  0x9e   :  { %v273_v34 = vpack.c.bf16 %v271_v23, %v270_v25  ;;  %v559_v10 = vsel %vm556_vm5, %v552_v5, %v553_v4 }
  0xa0   :  { %v2432_v33 = vpop.permute.xlu1 %363 }
  0xa1   :  { %v375_v37 = vmul.f32 %v2432_v33, %v356_v24  ;;  %v2445_v45 = vpop.permute.xlu0 %460 }
  0xa2   :  { %v472_v51 = vmul.f32 %v2445_v45, %v2273_v17 }
  0xa3   :  { %v378_v41 = vpack.c.bf16 %v375_v37, %v374_v32  ;;  %1919 = vmatmul.mubr.msk.bf16.vlgmr.msra.gmra.mrb[0].mxu0 %vm120_vm2, %v273_v34 }
  0xa4   :  { %1923 = vmatpush3.bf16.msra.mxu0 %v2139_v11  ;;  %v2442_v44 = vpop.permute.xlu1 %367 }
  0xa5   :  { %1924 = vmatprep.subr.bf16.mxu0 %v2140_v39  ;;  %1926 = vmatprep.mubr.msk.bf16.mxu0 %vm120_vm2, %v378_v41  ;;  %v376_v52 = vmul.f32 %v2442_v44, %v355_v49 }
  0xa6   :  { %v2480_v11 = vpop.permute.xlu0 %562 }
  0xa7   :  { %v379_v61 = vpack.c.bf16 %v377_v53, %v376_v52  ;;  %v577_v23 = vmul.f32 %v2480_v11, %v559_v10 }
  0xa8   :  { %1925 = vmatpush3.bf16.msra.mxu0 %v2140_v39 }
  0xa9   :  { %v2458_v54 = vpop.permute.xlu1 %456  ;;  %1930 = vmatprep.subr.bf16.mxu0 %v2141_v48 }
  0xaa   :  { %v471_v55 = vmul.f32 %v2458_v54, %v2285_v20  ;;  %v2492_v39 = vpop.permute.xlu0 %574 }
  0xac   :  { %v475_v60 = vpack.c.bf16 %v472_v51, %v471_v55 }
  0xad   :  { %v2462_v2 = vpop.permute.xlu1 %464 }
  0xae   :  { %v473_v25 = vmul.f32 %v2462_v2, %v2280_v19 }
  0xaf   :  { %1927 = vmatmul.mubr.msk.bf16.vlgmr.msra.gmra.mrb[0].mxu0 %vm120_vm2, %v379_v61  ;;  %v2502_v49 = vpop.permute.xlu0 %663 }
  0xb0   :  { %1931 = vmatpush3.bf16.msra.mxu0 %v2141_v48  ;;  %1934 = vmatprep.mubr.msk.bf16.mxu0 %vm120_vm2, %v475_v60  ;;  %v555_v48 = vrot.slane %v2290_v21, 1  ;;  %v675_v60 = vmul.f32 %v2502_v49, %v2366_v57  ;;  %v2147_v57 = vld [vmem:[%s2844_s2 + $0x70] sm:$0xff]  }
  0xb1   :  { %1932 = vmatprep.subr.bf16.mxu0 %v2142_v3  ;;  %v2476_v9 = vpop.permute.xlu1 %468 }
  0xb2   :  { %v474_v22 = vmul.f32 %v2476_v9, %v2290_v21  ;;  %v557_v51 = vsel %vm556_vm5, %v554_v6, %v555_v48  ;;  %v560_v52 = vsel %vm556_vm5, %v555_v48, %v552_v5  ;;  %v2146_v5 = vld [vmem:[%s2844_s2 + $0x68] sm:$0xff]  }
  0xb4   :  { %1933 = vmatpush3.bf16.msra.mxu0 %v2142_v3  ;;  %v476_v34 = vpack.c.bf16 %v474_v22, %v473_v25  ;;  %v580_v3 = vmul.f32 %v2492_v39, %v560_v52  ;;  %v2531_v10 = vpop.permute.xlu0 %756 }
  0xb5   :  { %1938 = vmatprep.subr.bf16.mxu0 %v2143_v8  ;;  %v771_v22 = vmul.f32 %v2531_v10, %v2315_v31  ;;  %v2148_v31 = vld [vmem:[%s2844_s2 + $0x78] sm:$0xff]  }
  0xb6   :  { %v2487_v24 = vpop.permute.xlu1 %566 }
  0xb7   :  { %v578_v32 = vmul.f32 %v2487_v24, %v558_v13 }
  0xb8   :  { %v2545_v48 = vpop.permute.xlu0 %768 }
  0xb9   :  { %v581_v37 = vpack.c.bf16 %v578_v32, %v577_v23 }
  0xba   :  { %v2497_v41 = vpop.permute.xlu1 %570 }
  0xbb   :  { %1935 = vmatmul.mubr.msk.bf16.vlgmr.msra.gmra.mrb[0].mxu0 %vm120_vm2, %v476_v34  ;;  %v579_v61 = vmul.f32 %v2497_v41, %v557_v51 }
  0xbc   :  { %1939 = vmatpush3.bf16.msra.mxu0 %v2143_v8  ;;  %1942 = vmatprep.mubr.msk.bf16.mxu0 %vm120_vm2, %v581_v37 }
  0xbd   :  { %1940 = vmatprep.subr.bf16.mxu0 %v2144_v40  ;;  %v582_v8 = vpack.c.bf16 %v580_v3, %v579_v61 }
  0xbf   :  { %v2511_v53 = vpop.permute.xlu1 %659 }
  0xc0   :  { %v674_v55 = vmul.f32 %v2511_v53, %v2335_v42  ;;  %1941 = vmatpush3.bf16.msra.mxu0 %v2144_v40 }
  0xc1   :  { %1946 = vmatprep.subr.bf16.mxu0 %v2145_v50 }
  0xc2   :  { %v678_v6 = vpack.c.bf16 %v675_v60, %v674_v55  ;;  %v774_v55 = vmul.f32 %v2545_v48, %v2307_v29 }
  0xc3   :  { %v2519_v4 = vpop.permute.xlu1 %667 }
  0xc4   :  { %v676_v23 = vmul.f32 %v2519_v4, %v2372_v59 }
  0xc7   :  { %1943 = vmatmul.mubr.msk.bf16.vlgmr.msra.gmra.mrb[0].mxu0 %vm120_vm2, %v582_v8  ;;  %v2525_v42 = vpop.permute.xlu1 %671  ;;  %v2151_v8 = vld [vmem:[%s2846_s4 + $0x10] sm:$0xff]  }
  0xc8   :  { %1947 = vmatpush3.bf16.msra.mxu0 %v2145_v50  ;;  %1950 = vmatprep.mubr.msk.bf16.mxu0 %vm120_vm2, %v678_v6  ;;  %v677_v25 = vmul.f32 %v2525_v42, %v2339_v43  ;;  %v2552_v43 = vpop.permute.xlu0 %857  ;;  %v2150_v6 = vld [vmem:[%s2844_s2 + $0x88] sm:$0xff]  }
  0xc9   :  { %1948 = vmatprep.subr.bf16.mxu0 %v2146_v5  ;;  %v869_v51 = vmul.f32 %v2552_v43, %v2421_v16  ;;  %1970 = vmatprep.subr.bf16.mxu1 %v2151_v8 }
  0xca   :  { %v679_v40 = vpack.c.bf16 %v677_v25, %v676_v23  ;;  %1971 = vmatpush3.bf16.msra.mxu1 %v2151_v8 }
  0xcc   :  { %1949 = vmatpush3.bf16.msra.mxu0 %v2146_v5  ;;  %v2533_v13 = vpop.permute.xlu1 %760  ;;  %v2152_v5 = vld [vmem:[%s2846_s4 + $0x18] sm:$0xff]  }
  0xcd   :  { %v772_v32 = vmul.f32 %v2533_v13, %v2303_v28  ;;  %1954 = vmatprep.subr.bf16.mxu0 %v2147_v57  ;;  %v2149_v28 = vld [vmem:[%s2844_s2 + $0x80] sm:$0xff]   ;;  %1972 = vmatprep.subr.bf16.mxu1 %v2152_v5 }
  0xce   :  { %1973 = vmatpush3.bf16.msra.mxu1 %v2152_v5 }
  0xcf   :  { %v775_v34 = vpack.c.bf16 %v772_v32, %v771_v22 }
  0xd0   :  { %v2543_v37 = vpop.permute.xlu1 %764 }
  0xd1   :  { %v773_v52 = vmul.f32 %v2543_v37, %v2311_v30 }
  0xd3   :  { %1951 = vmatmul.mubr.msk.bf16.vlgmr.msra.gmra.mrb[0].mxu0 %vm120_vm2, %v679_v40  ;;  %v776_v3 = vpack.c.bf16 %v774_v55, %v773_v52 }
  0xd4   :  { %1955 = vmatpush3.bf16.msra.mxu0 %v2147_v57  ;;  %1958 = vmatprep.mubr.msk.bf16.mxu0 %vm120_vm2, %v775_v34 }
  0xd5   :  { %1956 = vmatprep.subr.bf16.mxu0 %v2148_v31  ;;  %v2557_v59 = vpop.permute.xlu1 %853 }
  0xd6   :  { %v868_v50 = vmul.f32 %v2557_v59, %v2386_v63 }
  0xd8   :  { %1957 = vmatpush3.bf16.msra.mxu0 %v2148_v31  ;;  %v872_v61 = vpack.c.bf16 %v869_v51, %v868_v50 }
  0xd9   :  { %1962 = vmatprep.subr.bf16.mxu0 %v2149_v28  ;;  %v2567_v60 = vpop.permute.xlu1 %861 }
  0xda   :  { %v870_v29 = vmul.f32 %v2567_v60, %v2412_v12  ;;  %v2590_v12 = vld [vmem:[%s2846_s4] sm:$0xff]  }
  0xdb   :  { %1978 = vmatprep.subr.bf16.mxu1 %v2590_v12 }
  0xdd   :  { %v2574_v63 = vpop.permute.xlu1 %865 }
  0xde   :  { %v871_v30 = vmul.f32 %v2574_v63, %v2382_v62  ;;  %v1788_v62 = vld [vmem:[%s2847_s3] ss:$0 sm:$0xff] }
  0xdf   :  { %1959 = vmatmul.mubr.msk.bf16.vlgmr.msra.gmra.mrb[0].mxu0 %vm120_vm2, %v776_v3 }
  0xe0   :  { %1963 = vmatpush3.bf16.msra.mxu0 %v2149_v28  ;;  %1966 = vmatprep.mubr.msk.bf16.mxu0 %vm120_vm2, %v872_v61  ;;  %v873_v16 = vpack.c.bf16 %v871_v30, %v870_v29 }
  0xe1   :  { %1964 = vmatprep.subr.bf16.mxu0 %v2150_v6 }
  0xe4   :  { %1965 = vmatpush3.bf16.msra.mxu0 %v2150_v6 }
  0xeb   :  { %1967 = vmatmul.mubr.msk.bf16.vlgmr.msra.gmra.mrb[0].mxu0 %vm120_vm2, %v873_v16 }
 0x1be   :  { %v1968_v57 = vpop.f32.mrb[0].mxu0 }
 0x1bf   :  { %v958_v22 = vadd.f32 %v1968_v57, %v1788_v62  ;;  %v930_v23 = vpop.f32.mrb[1].mxu0 }
 0x1c0   :  { %v956_v25 = vadd.f32 %v1788_v62, %v930_v23  ;;  %v1969_v32 = vpop.f32.mrb[2].mxu0 }
 0x1c1   :  { %v2596_v34 = vmax.f32 %v958_v22, 0.0  ;;  %v959_v40 = vadd.f32 %v1969_v32, %v1788_v62  ;;  %v933_v31 = vpop.f32.mrb[3].mxu0 }
 0x1c2   :  { %v2598_v28 = vmax.f32 %v956_v25, 0.0  ;;  %v957_v50 = vadd.f32 %v1788_v62, %v933_v31 }
 0x1c3   :  { %v966_v51 = vrot.slane %v2596_v34, 3  ;;  %v1136_v52 = vrot.slane %v2596_v34, 5  ;;  %v2603_v61 = vmax.f32 %v959_v40, 0.0  ;;  %v984_v29 = vrot.slane %v2596_v34, 4 }
 0x1c4   :  { %v2605_v3 = vmax.f32 %v957_v50, 0.0  ;;  %v982_v6 = vrot.slane %v2598_v28, 4  ;;  %v964_v30 = vrot.slane %v2598_v28, 3  ;;  %v1134_v62 = vrot.slane %v2598_v28, 5 }
 0x1c5   :  { %v985_v8 = vrot.slane %v2603_v61, 4  ;;  %v967_v5 = vrot.slane %v2603_v61, 3  ;;  %v1137_v25 = vrot.slane %v2603_v61, 5 }
 0x1c6   :  { %v983_v57 = vrot.slane %v2605_v3, 4  ;;  %v965_v22 = vrot.slane %v2605_v3, 3  ;;  %v1135_v23 = vrot.slane %v2605_v3, 5 }
 0x1c7   :  { %v986_v32 = vsel %vm77_vm0, %v984_v29, %v985_v8  ;;  %v989_v40 = vsel %vm77_vm0, %v985_v8, %v982_v6  ;;  %v971_v31 = vsel %vm38_vm1, %v967_v5, %v964_v30  ;;  %v2626_v50 = vsel %vm38_vm1, %v966_v51, %v967_v5 }
 0x1c8   :  { %v988_v16 = vsel %vm77_vm0, %v982_v6, %v983_v57  ;;  %v990_v55 = vmul.f32 %v989_v40, %v2299_v27  ;;  %v2632_v17 = vmul.f32 %v986_v32, %v2543_v37  ;;  %v2635_v21 = vmul.f32 %v989_v40, %v2545_v48 }
 0x1c9   :  { %v991_v8 = vmul.f32 %v988_v16, %v2322_v36  ;;  %v2639_v20 = vmul.f32 %v988_v16, %v2531_v10  ;;  %v2643_v5 = vsel %vm77_vm0, %v983_v57, %v984_v29  ;;  %v993_v19 = vmul.f32 %v986_v32, %v2320_v35  ;;  %v2154_v57 = vld [vmem:[%s2846_s4 + $0x8] sm:$0xff]  }
 0x1ca   :  { %v1568_v27 = vpack.c.bf16 %v2635_v21, %v2632_v17  ;;  %v992_v37 = vmul.f32 %v2643_v5, %v2297_v26  ;;  %v970_v48 = vsel %vm38_vm1, %v964_v30, %v965_v22  ;;  %v972_v36 = vmul.f32 %v971_v31, %v2346_v47 }
 0x1cb   :  { %v994_v6 = vpack.c.bf16 %v991_v8, %v990_v55  ;;  %v973_v10 = vmul.f32 %v970_v48, %v2344_v46  ;;  %v2655_v16 = vmul.f32 %v971_v31, %v2525_v42  ;;  %v969_v35 = vsel %vm38_vm1, %v965_v22, %v966_v51 }
 0x1cc   :  { %v995_v29 = vpack.c.bf16 %v993_v19, %v992_v37  ;;  %v2663_v26 = vmul.f32 %v969_v35, %v2362_v56  ;;  %v2667_v47 = vmul.f32 %v2626_v50, %v2368_v58  ;;  %v1140_v46 = vsel %vm247_vm3, %v1134_v62, %v1135_v23 }
 0x1cd   :  { %1974 = vmatprep.mubr.msk.bf16.mxu1 %vm120_vm2, %v994_v6  ;;  %v976_v42 = vpack.c.bf16 %v973_v10, %v972_v36  ;;  %v1141_v19 = vsel %vm247_vm3, %v1137_v25, %v1134_v62  ;;  %v2675_v51 = vmul.f32 %v1140_v46, %v2390_v1  ;;  %v1138_v56 = vsel %vm247_vm3, %v1136_v52, %v1137_v25 }
 0x1ce   :  { %1975 = vmatmul.mubr.msk.bf16.vlgmr.msra.gmra.mrb[0].mxu1 %vm120_vm2, %v995_v29  ;;  %v977_v58 = vpack.c.bf16 %v2667_v47, %v2663_v26  ;;  %v1142_v55 = vmul.f32 %v1141_v19, %v2388_v0  ;;  %v2684_v30 = vmul.f32 %v1141_v19, %v2574_v63  ;;  %v1139_v22 = vsel %vm247_vm3, %v1135_v23, %v1136_v52  ;;  %v2155_v0 = vld [vmem:[%s2846_s4 + $0x20] sm:$0xff]  }
 0x1cf   :  { %1979 = vmatpush3.bf16.msra.mxu1 %v2590_v12  ;;  %1982 = vmatprep.mubr.msk.bf16.mxu1 %vm120_vm2, %v976_v42  ;;  %v1144_v1 = vmul.f32 %v1139_v22, %v2399_v7  ;;  %v1145_v62 = vmul.f32 %v1138_v56, %v2415_v14  ;;  %v1223_v25 = vrot.slane %v2598_v28, 7  ;;  %v1224_v32 = vrot.slane %v2605_v3, 7 }
 0x1d0   :  { %1980 = vmatprep.subr.bf16.mxu1 %v2154_v57  ;;  %v1146_v63 = vpack.c.bf16 %v2675_v51, %v1142_v55  ;;  %v1226_v52 = vrot.slane %v2603_v61, 7  ;;  %v2701_v12 = vmul.f32 %v2598_v28, %v2458_v54  ;;  %v2705_v7 = vmul.f32 %v2605_v3, %v2445_v45 }
 0x1d1   :  { %v1147_v14 = vpack.c.bf16 %v1145_v62, %v1144_v1  ;;  %v1229_v23 = vsel %vm353_vm4, %v1223_v25, %v1224_v32  ;;  %v2858_v40 = vrot.slane %v2596_v34, 7  ;;  %v2715_v8 = vmul.f32 %v2596_v34, %v2462_v2  ;;  %v2156_v1 = vld [vmem:[%s2846_s4 + $0x28] sm:$0xff]  }
 0x1d2   :  { %v1230_v54 = vsel %vm353_vm4, %v1226_v52, %v1223_v25  ;;  %v1232_v37 = vmul.f32 %v1229_v23, %v2432_v33  ;;  %v1316_v2 = vpack.c.bf16 %v2705_v7, %v2701_v12  ;;  %v1315_v26 = vmul.f32 %v2603_v61, %v2476_v9 }
 0x1d3   :  { %v1228_v31 = vsel %vm353_vm4, %v1224_v32, %v2858_v40  ;;  %v2859_v45 = vmov %v2858_v40  ;;  %1981 = vmatpush3.bf16.msra.mxu1 %v2154_v57  ;;  %v1231_v10 = vmul.f32 %v1230_v54, %v2417_v15  ;;  %v1393_v33 = vrot.slane %v2598_v28, 1  ;;  %v2862_v40 = vld [vmem:[#allocation3_spill] sm:$0xff] }
 0x1d4   :  { %v1227_v36 = vsel %vm353_vm4, %v2859_v45, %v1226_v52  ;;  %v1233_v6 = vmul.f32 %v1228_v31, %v2442_v44  ;;  %1986 = vmatprep.subr.bf16.mxu1 %v2155_v0  ;;  %v1394_v47 = vrot.slane %v2605_v3, 1  ;;  %v1395_v42 = vrot.slane %v2596_v34, 1  ;;  %v2863_v31 = vld [vmem:[#allocation4_spill] sm:$0xff]  ;;  %v2864_v45 = vld [vmem:[#allocation5_spill] sm:$0xff] }
 0x1d5   :  { %v1234_v29 = vmul.f32 %v1227_v36, %v2435_v38  ;;  %v1482_v44 = vmul.f32 %v970_v48, %v2511_v53  ;;  %v1235_v57 = vpack.c.bf16 %v1232_v37, %v1231_v10  ;;  %v1317_v15 = vpack.c.bf16 %v1315_v26, %v2715_v8  ;;  %v2865_v10 = vld [vmem:[#allocation2_spill] sm:$0xff] }
 0x1d6   :  { %v1483_v38 = vmul.f32 %v969_v35, %v2502_v49  ;;  %v1398_v51 = vsel %vm556_vm5, %v1394_v47, %v1395_v42  ;;  %v1399_v9 = vsel %vm556_vm5, %v1393_v33, %v1394_v47  ;;  %v2860_v28 = vrot.slane %v2603_v61, 1 }
 0x1d7   :  { %v1236_v19 = vpack.c.bf16 %v1234_v29, %v1233_v6  ;;  %v1401_v48 = vmul.f32 %v1399_v9, %v2480_v11  ;;  %v1402_v49 = vmul.f32 %v1398_v51, %v2487_v24  ;;  %v1484_v25 = vmul.f32 %v2626_v50, %v2519_v4  ;;  %v2161_v50 = vld [vmem:[%s2846_s4 + $0x50] sm:$0xff]  }
 0x1d8   :  { %v1397_v3 = vsel %vm556_vm5, %v1395_v42, %v2860_v28  ;;  %v2861_v34 = vmov %v2860_v28  ;;  %v1486_v62 = vpack.c.bf16 %v1483_v38, %v1482_v44  ;;  %v1564_v18 = vmul.f32 %v2643_v5, %v2533_v13  ;;  %v2162_v5 = vld [vmem:[%s2846_s4 + $0x58] sm:$0xff]  }
 0x1d9   :  { %v1400_v53 = vsel %vm556_vm5, %v2861_v34, %v1393_v33  ;;  %v1403_v35 = vmul.f32 %v1397_v3, %v2497_v41  ;;  %v1644_v61 = vmul.f32 %v1140_v46, %v2557_v59  ;;  %v1405_v11 = vpack.c.bf16 %v1402_v49, %v1401_v48  ;;  %v2157_v59 = vld [vmem:[%s2846_s4 + $0x30] sm:$0xff]   ;;  %v2164_v46 = vld [vmem:[%s2846_s4 + $0x68] sm:$0xff]  }
 0x1da   :  { %v1404_v55 = vmul.f32 %v1400_v53, %v2492_v39  ;;  %v1645_v24 = vmul.f32 %v1139_v22, %v2552_v43  ;;  %v1646_v41 = vmul.f32 %v1138_v56, %v2567_v60  ;;  %1983 = vmatmul.mubr.msk.bf16.vlgmr.msra.gmra.mrb[0].mxu1 %vm120_vm2, %v977_v58  ;;  %v1487_v39 = vpack.c.bf16 %v2655_v16, %v1484_v25  ;;  %v2158_v43 = vld [vmem:[%s2846_s4 + $0x38] sm:$0xff]   ;;  %v2160_v60 = vld [vmem:[%s2846_s4 + $0x48] sm:$0xff]   ;;  %v2163_v16 = vld [vmem:[%s2846_s4 + $0x60] sm:$0xff]  }
 0x1db   :  { %v1567_v52 = vpack.c.bf16 %v1564_v18, %v2639_v20  ;;  %1987 = vmatpush3.bf16.msra.mxu1 %v2155_v0  ;;  %1990 = vmatprep.mubr.msk.bf16.mxu1 %vm120_vm2, %v1146_v63  ;;  %v2159_v20 = vld [vmem:[%s2846_s4 + $0x40] sm:$0xff]   ;;  %v2165_v56 = vld [vmem:[%s2846_s4 + $0x70] sm:$0xff]   ;;  %v2166_v58 = vld [vmem:[%s2846_s4 + $0x78] sm:$0xff]  }
 0x1dc   :  { %v1406_v32 = vpack.c.bf16 %v1404_v55, %v1403_v35  ;;  %v1648_v4 = vpack.c.bf16 %v1645_v24, %v1644_v61  ;;  %v1649_v13 = vpack.c.bf16 %v2684_v30, %v1646_v41  ;;  %1988 = vmatprep.subr.bf16.mxu1 %v2156_v1  ;;  %v2167_v30 = vld [vmem:[%s2846_s4 + $0x80] sm:$0xff]   ;;  %v2168_v22 = vld [vmem:[%s2846_s4 + $0x88] sm:$0xff]  }
 0x1dd   :  { %v1825_v0 = vld [vmem:[%s2848_s5] ss:$0 sm:$0xff] }
 0x1df   :  { %1989 = vmatpush3.bf16.msra.mxu1 %v2156_v1 }
 0x1e0   :  { %1994 = vmatprep.subr.bf16.mxu1 %v2157_v59 }
 0x1e6   :  { %1991 = vmatmul.mubr.msk.bf16.vlgmr.msra.gmra.mrb[0].mxu1 %vm120_vm2, %v1147_v14 }
 0x1e7   :  { %1995 = vmatpush3.bf16.msra.mxu1 %v2157_v59  ;;  %1998 = vmatprep.mubr.msk.bf16.mxu1 %vm120_vm2, %v1235_v57 }
 0x1e8   :  { %1996 = vmatprep.subr.bf16.mxu1 %v2158_v43 }
 0x1eb   :  { %1997 = vmatpush3.bf16.msra.mxu1 %v2158_v43 }
 0x1ec   :  { %2002 = vmatprep.subr.bf16.mxu1 %v2159_v20 }
 0x1f2   :  { %1999 = vmatmul.mubr.msk.bf16.vlgmr.msra.gmra.mrb[0].mxu1 %vm120_vm2, %v1236_v19 }
 0x1f3   :  { %2003 = vmatpush3.bf16.msra.mxu1 %v2159_v20  ;;  %2006 = vmatprep.mubr.msk.bf16.mxu1 %vm120_vm2, %v1316_v2 }
 0x1f4   :  { %2004 = vmatprep.subr.bf16.mxu1 %v2160_v60 }
 0x1f7   :  { %2005 = vmatpush3.bf16.msra.mxu1 %v2160_v60 }
 0x1f8   :  { %2010 = vmatprep.subr.bf16.mxu1 %v2161_v50 }
 0x1fe   :  { %2007 = vmatmul.mubr.msk.bf16.vlgmr.msra.gmra.mrb[0].mxu1 %vm120_vm2, %v1317_v15 }
 0x1ff   :  { %2011 = vmatpush3.bf16.msra.mxu1 %v2161_v50  ;;  %2014 = vmatprep.mubr.msk.bf16.mxu1 %vm120_vm2, %v1405_v11 }
 0x200   :  { %2012 = vmatprep.subr.bf16.mxu1 %v2162_v5 }
 0x203   :  { %2013 = vmatpush3.bf16.msra.mxu1 %v2162_v5 }
 0x204   :  { %2018 = vmatprep.subr.bf16.mxu1 %v2163_v16 }
 0x20a   :  { %2015 = vmatmul.mubr.msk.bf16.vlgmr.msra.gmra.mrb[0].mxu1 %vm120_vm2, %v1406_v32 }
 0x20b   :  { %2019 = vmatpush3.bf16.msra.mxu1 %v2163_v16  ;;  %2022 = vmatprep.mubr.msk.bf16.mxu1 %vm120_vm2, %v1486_v62 }
 0x20c   :  { %2020 = vmatprep.subr.bf16.mxu1 %v2164_v46 }
 0x20f   :  { %2021 = vmatpush3.bf16.msra.mxu1 %v2164_v46 }
 0x210   :  { %2026 = vmatprep.subr.bf16.mxu1 %v2165_v56 }
 0x216   :  { %2023 = vmatmul.mubr.msk.bf16.vlgmr.msra.gmra.mrb[0].mxu1 %vm120_vm2, %v1487_v39 }
 0x217   :  { %2027 = vmatpush3.bf16.msra.mxu1 %v2165_v56  ;;  %2030 = vmatprep.mubr.msk.bf16.mxu1 %vm120_vm2, %v1567_v52 }
 0x218   :  { %2028 = vmatprep.subr.bf16.mxu1 %v2166_v58 }
 0x21b   :  { %2029 = vmatpush3.bf16.msra.mxu1 %v2166_v58 }
 0x21c   :  { %2034 = vmatprep.subr.bf16.mxu1 %v2167_v30 }
 0x222   :  { %2031 = vmatmul.mubr.msk.bf16.vlgmr.msra.gmra.mrb[0].mxu1 %vm120_vm2, %v1568_v27 }
 0x223   :  { %2035 = vmatpush3.bf16.msra.mxu1 %v2167_v30  ;;  %2038 = vmatprep.mubr.msk.bf16.mxu1 %vm120_vm2, %v1648_v4 }
 0x224   :  { %2036 = vmatprep.subr.bf16.mxu1 %v2168_v22 }
 0x227   :  { %2037 = vmatpush3.bf16.msra.mxu1 %v2168_v22 }
 0x22e   :  { %2039 = vmatmul.mubr.msk.bf16.vlgmr.msra.gmra.mrb[0].mxu1 %vm120_vm2, %v1649_v13 }
 0x301   :  { %v2040_v63 = vpop.f32.mrb[0].mxu1 }
 0x302   :  { %v1734_v12 = vadd.f32 %v2040_v63, %v1825_v0  ;;  %v1706_v7 = vpop.f32.mrb[1].mxu1 }
 0x303   :  { %v1732_v14 = vadd.f32 %v1825_v0, %v1706_v7  ;;  %v2041_v23 = vpop.f32.mrb[2].mxu1 }
 0x304   :  { %v1738_v17 = vadd.f32 %v1734_v12, %v2862_v40  ;;  %v1735_v21 = vadd.f32 %v2041_v23, %v1825_v0  ;;  %v1709_v27 = vpop.f32.mrb[3].mxu1 }
 0x305   :  { %v1736_v8 = vadd.f32 %v1732_v14, %v2863_v31  ;;  %v1733_v54 = vadd.f32 %v1825_v0, %v1709_v27 }
 0x306   :  { %v1742_v37 = vmax.f32 %v1738_v17, 0.0  ;;  %v1739_v36 = vadd.f32 %v1735_v21, %v2864_v45 }
 0x307   :  { %v1740_v6 = vmax.f32 %v1736_v8, 0.0  ;;  %v1737_v29 = vadd.f32 %v1733_v54, %v2865_v10 }
 0x308   :  { %1746 = vst.msk [vmem:[%s2849_s6 + $0x10] sm:$0xff] %vm120_vm2, %v1742_v37  ;;  %v1743_v2 = vmax.f32 %v1739_v36, 0.0 }
 0x309   :  { %1744 = vst.msk [vmem:[%s2849_s6] sm:$0xff] %vm120_vm2, %v1740_v6  ;;  %v1741_v26 = vmax.f32 %v1737_v29, 0.0 }
 0x30a   :  { %1747 = vst.msk [vmem:[%s2849_s6 + $0x18] sm:$0xff] %vm120_vm2, %v1743_v2 }
 0x30b   :  { %1745 = vst.msk [vmem:[%s2849_s6 + $0x8] sm:$0xff] %vm120_vm2, %v1741_v26 }

// kernel: net_forward.9
= control target key start
LH: loop header
LB: loop body
LE: loop exit
PB: predicated region body
PF: predicated region fallthrough
CT: control target
= control target key end

     0   :  { %v100_v30 = vlaneseq  ;;  %v541_v34 = vmov 1966171168   ;;  %s677_s0 = inlined_call_operand.vmem [shape: bf16[2,512], index: 0, kind: input, shape index: {}]   ;;  %s678_s1 = inlined_call_operand.vmem [shape: bf16[512,10], index: 1, kind: input, shape index: {}]   ;;  %s679_s2 = inlined_call_operand.vmem [shape: f32[1,10], index: 2, kind: input, shape index: {}]   ;;  %s680_s3 = inlined_call_operand.hbm [shape: f32[2,10], index: 3, kind: output, shape index: {}]  }
   0x1   :  { %v485_v0 = vld [vmem:[%s678_s1 + $0x40] sm:$0xff]   ;;  %v489_v4 = vld [vmem:[%s678_s1 + $0x48] sm:$0xff]   ;;  %v493_v8 = vld [vmem:[%s678_s1 + $0x50] sm:$0xff]   ;;  %v98_v35 = vunpack.c.l.s4 %v541_v34 }
   0x2   :  { %v486_v1 = vld [vmem:[%s678_s1 + $0xc0] sm:$0xff]   ;;  %439 = vmatprep.subr.bf16.mxu0 %v485_v0  ;;  %v490_v5 = vld [vmem:[%s678_s1 + $0xc8] sm:$0xff]   ;;  %v494_v9 = vld [vmem:[%s678_s1 + $0xd0] sm:$0xff]   ;;  %v101_v36 = vshrl.u32 %v100_v30, 7 }
   0x3   :  { %v487_v2 = vld [vmem:[%s678_s1] sm:$0xff]   ;;  %461 = vmatprep.subr.bf16.mxu1 %v486_v1  ;;  %v491_v6 = vld [vmem:[%s678_s1 + $0x8] sm:$0xff]   ;;  %v495_v10 = vld [vmem:[%s678_s1 + $0x10] sm:$0xff]  }
   0x4   :  { %v488_v3 = vld [vmem:[%s678_s1 + $0x80] sm:$0xff]   ;;  %440 = vmatpush3.bf16.msra.mxu0 %v487_v2  ;;  %v492_v7 = vld [vmem:[%s678_s1 + $0x88] sm:$0xff]   ;;  %v496_v11 = vld [vmem:[%s678_s1 + $0x90] sm:$0xff]  }
   0x5   :  { %462 = vmatpush3.bf16.msra.mxu1 %v488_v3  ;;  %441 = vmatprep.subr.bf16.mxu0 %v489_v4  ;;  %v497_v12 = vld [vmem:[%s678_s1 + $0x58] sm:$0xff]   ;;  %v501_v16 = vld [vmem:[%s678_s1 + $0x60] sm:$0xff]   ;;  %v505_v20 = vld [vmem:[%s678_s1 + $0x68] sm:$0xff]  }
   0x6   :  { %463 = vmatprep.subr.bf16.mxu1 %v490_v5  ;;  %v498_v13 = vld [vmem:[%s678_s1 + $0xd8] sm:$0xff]   ;;  %v502_v17 = vld [vmem:[%s678_s1 + $0xe0] sm:$0xff]   ;;  %v506_v21 = vld [vmem:[%s678_s1 + $0xe8] sm:$0xff]  }
   0x7   :  { %v499_v14 = vld [vmem:[%s678_s1 + $0x18] sm:$0xff]   ;;  %v503_v18 = vld [vmem:[%s678_s1 + $0x20] sm:$0xff]   ;;  %v507_v22 = vld [vmem:[%s678_s1 + $0x28] sm:$0xff]  }
   0x8   :  { %442 = vmatpush3.bf16.msra.mxu0 %v491_v6  ;;  %v500_v15 = vld [vmem:[%s678_s1 + $0x98] sm:$0xff]   ;;  %v504_v19 = vld [vmem:[%s678_s1 + $0xa0] sm:$0xff]   ;;  %v508_v23 = vld [vmem:[%s678_s1 + $0xa8] sm:$0xff]  }
   0x9   :  { %464 = vmatpush3.bf16.msra.mxu1 %v492_v7  ;;  %443 = vmatprep.subr.bf16.mxu0 %v493_v8  ;;  %v509_v24 = vld [vmem:[%s678_s1 + $0x70] sm:$0xff]   ;;  %v513_v28 = vld [vmem:[%s678_s1 + $0x78] sm:$0xff]   ;;  %v406_v33 = vld.sshfl [vmem:[%s677_s0] sm:$0x33 pattern:$0x75316420] }
   0xa   :  { %465 = vmatprep.subr.bf16.mxu1 %v494_v9  ;;  %v510_v25 = vld [vmem:[%s678_s1 + $0xf0] sm:$0xff]   ;;  %v514_v29 = vld [vmem:[%s678_s1 + $0xf8] sm:$0xff]  }
   0xb   :  { %v511_v26 = vld [vmem:[%s678_s1 + $0x30] sm:$0xff]   ;;  %v515_v31 = vld [vmem:[%s678_s1 + $0x38] sm:$0xff]  }
   0xc   :  { %444 = vmatpush3.bf16.msra.mxu0 %v495_v10  ;;  %v512_v27 = vld [vmem:[%s678_s1 + $0xb0] sm:$0xff]   ;;  %v516_v32 = vld [vmem:[%s678_s1 + $0xb8] sm:$0xff]  }
   0xd   :  { %466 = vmatpush3.bf16.msra.mxu1 %v496_v11  ;;  %445 = vmatprep.subr.bf16.mxu0 %v497_v12 }
   0xe   :  { %467 = vmatprep.subr.bf16.mxu1 %v498_v13 }
  0x10   :  { %446 = vmatpush3.bf16.msra.mxu0 %v499_v14 }
  0x11   :  { %468 = vmatpush3.bf16.msra.mxu1 %v500_v15  ;;  %447 = vmatprep.subr.bf16.mxu0 %v501_v16 }
  0x12   :  { %469 = vmatprep.subr.bf16.mxu1 %v502_v17 }
  0x14   :  { %448 = vmatpush3.bf16.msra.mxu0 %v503_v18 }
  0x15   :  { %470 = vmatpush3.bf16.msra.mxu1 %v504_v19  ;;  %449 = vmatprep.subr.bf16.mxu0 %v505_v20 }
  0x16   :  { %471 = vmatprep.subr.bf16.mxu1 %v506_v21 }
  0x18   :  { %450 = vmatpush3.bf16.msra.mxu0 %v507_v22 }
  0x19   :  { %472 = vmatpush3.bf16.msra.mxu1 %v508_v23  ;;  %451 = vmatprep.subr.bf16.mxu0 %v509_v24 }
  0x1a   :  { %473 = vmatprep.subr.bf16.mxu1 %v510_v25 }
  0x1c   :  { %452 = vmatpush3.bf16.msra.mxu0 %v511_v26 }
  0x1d   :  { %474 = vmatpush3.bf16.msra.mxu1 %v512_v27  ;;  %453 = vmatprep.subr.bf16.mxu0 %v513_v28 }
  0x1e   :  { %475 = vmatprep.subr.bf16.mxu1 %v514_v29 }
  0x20   :  { %454 = vmatpush3.bf16.msra.mxu0 %v515_v31 }
  0x21   :  { %476 = vmatpush3.bf16.msra.mxu1 %v516_v32 }
  0x22   :  { %8 = vsyncpa [#allocation3], 0  ;;  %v96_v37 = vcombine.high %v406_v33, %v406_v33  ;;  %v99_v38 = vunpack.c.0.s8 %v98_v35  ;;  %v405_v45 = vld [vmem:[%s679_s2] ss:$0 sm:$0xff]  ;;  %s542_s0 = smov [#allocation2]   ;;  %vm389_vm0 = vcmask 74752  }
  0x23   :  { %s397_s25 = sshll.u32 %s542_s0, 4  ;;  %s398_s25 = int_to_ptr.vmem [resolvable:$true] %s397_s25 }
  0x24   :  { %v102_v39 = vsub.s32 %v99_v38, %v101_v36  ;;  %s517_s26 = scalar_lea.vmem %s398_s25, 32  ;;  %p522_p1 = scmp.lt.s32.totalorder %s398_s25, %s398_s25 }
  0x25   :  { %p518_p0 = scmp.ne.s32.totalorder %s398_s25, %s517_s26  ;;  %p523_p2 = scmp.lt.s32.totalorder %s517_s26, %s517_s26 }
  0x26   :  { %v110_v40 = vrot.slane %v96_v37, %v102_v39  ;;  %v103_v41 = vrot.slane %v406_v33, %v102_v39 }
  0x27   :  { %p524_p3 = por %p523_p2, %p522_p1 }
  0x28   :  { %341 = vmatprep.mubr.bf16.mxu0 %v110_v40  ;;  %v112_v42 = vcombine.high %v110_v40, %v110_v40  ;;  %v111_v43 = vcombine.high %v103_v41, %v103_v41 }
  0x29   :  { %342 = vmatmul.mubr.bf16.vlgmr.msra.gmra.mrb[0].mxu0 %v103_v41  ;;  %p525_p4 = pnand %p524_p3, %p518_p0 }
  0x2a   :  { %381 = vmatprep.mubr.bf16.mxu1 %v112_v42 }
  0x2b   :  { %382 = vmatmul.mubr.bf16.vlgmr.msra.gmra.mrb[0].mxu1 %v111_v43 }
  0xfc   :  { %v455_v44 = vpop.f32.mrb[0].mxu0 }
  0xfd   :  { %v456_v46 = vpop.f32.mrb[1].mxu0 }
  0xfe   :  { %v477_v47 = vpop.f32.mrb[0].mxu1  ;;  %v457_v48 = vadd.f32 %v456_v46, %v455_v44  ;;  %v458_v49 = vpop.f32.mrb[2].mxu0 }
  0xff   :  { %v478_v50 = vpop.f32.mrb[1].mxu1  ;;  %v459_v51 = vpop.f32.mrb[3].mxu0 }
 0x100   :  { %v344_v52 = vadd.f32 %v457_v48, %v405_v45  ;;  %v479_v53 = vadd.f32 %v478_v50, %v477_v47  ;;  %v480_v54 = vpop.f32.mrb[2].mxu1 }
 0x101   :  { %v481_v55 = vpop.f32.mrb[3].mxu1 }
 0x102   :  { %v384_v56 = vadd.f32 %v479_v53, %v344_v52 }
 0x104   :  { %390 = vst.msk [vmem:[#allocation2] sm:$0x3] %vm389_vm0, %v384_v56 }
 0x105   :  { %528 = shalt.err (!%p525_p4)
}
 0x106   :  { %s529_s28 = scalar_lea.hbm %s680_s3, 32 }
 0x107   :  { %p530_p5 = scmp.ne.s32.totalorder %s680_s3, %s529_s28  ;;  %p533_p6 = scmp.lt.u32.totalorder %s529_s28, %s680_s3 }
 0x109   :  { %p535_p7 = pnand %p533_p6, %p530_p5 }
 0x10b   :  { %538 = shalt.err (!%p535_p7)
}
 0x10c   :  { %400 = dma.vmem_to_hbm [thread:$0]  %s398_s25, 32, %s680_s3, [#allocation3]  }
 0x10d   :  { %539 = dma.done.wait [#allocation3], 32  }
 0x10e   :  { %540 = vsyncadd [#allocation3], 4294967264 }
 0x10f   :  { %404 = vsyncpa [#allocation3], 1 }

</bundles_post_ra>
